<compile_context>
chip_gen: v6e
topology: v6e:2x2x1
jax: 0.10.0
libtpu: 0.0.40
codegen_flags: <defaults>
</compile_context>

<pallas_src>
import functools

import jax
import jax.numpy as jnp
from jax import lax
from jax.experimental import pallas as pl
from jax.experimental.pallas import tpu as pltpu

MAX_PAD = 18       # largest dilation/padding among aspp2 (6), aspp3 (12), aspp4 (18)
LPAD = 32          # left  W halo: >= MAX_PAD, multiple of 16 keeps centre taps aligned
RPAD = MAX_PAD     # right W halo


def _aspp_kernel(x_ref, w15_ref, w2_ref, w3_ref, w4_ref, wc15_ref, wc234_ref,
                 o_ref, pre_ref, acc_ref, *, TH, W, Cin, Cout):
    """One grid step = TH output rows of one image.

    x_ref  : (TH + 2*MAX_PAD, LPAD + W + RPAD, Cin)  bf16 haloed window (VMEM)
    w*_ref : resident weights (untiled VMEM, single-buffered)
    o_ref  : (TH, W, Cout) f32 output rows
    pre_ref, acc_ref : (TH*W, Cout) f32 scratch accumulators
    """
    f32 = jnp.float32
    cdt = x_ref.dtype
    relu = lambda t: jnp.maximum(t, 0.0)
    P = MAX_PAD

    # Centre patch (the unhaloed tile itself); shared by both 1x1 branches and
    # every dilated branch's centre tap.  Row offset P is on the free leading
    # dim; column offset LPAD is a multiple of 16, so this slice stays cheap.
    xc = x_ref[P:P + TH, LPAD:LPAD + W, :].reshape(TH * W, Cin)

    # aspp1 + aspp5 (both 1x1 convs of x) fused into one K=Cin, N=2*Cout matmul
    # and folded straight into the conv2 accumulator via their conv2 row-blocks.
    x15 = relu(jnp.dot(xc, w15_ref[...], preferred_element_type=f32)).astype(cdt)
    acc_ref[...] = jnp.dot(x15, wc15_ref[...], preferred_element_type=f32)

    def dilated_branch(w_ref, wc_b, d):
        w = w_ref[...]                                   # (9, Cin, Cout)
        # Centre tap reuses the resident centre patch.
        pre_ref[...] = jnp.dot(xc, w[4], preferred_element_type=f32)
        for ki in range(3):
            i0 = P + (ki - 1) * d                        # leading-dim offset: free
            for kj in range(3):
                if ki == 1 and kj == 1:
                    continue
                j0 = LPAD + (kj - 1) * d
                patch = x_ref[i0:i0 + TH, j0:j0 + W, :].reshape(TH * W, Cin)
                pre_ref[...] += jnp.dot(patch, w[ki * 3 + kj],
                                        preferred_element_type=f32)
        b = relu(pre_ref[...]).astype(cdt)               # branch output, bf16
        acc_ref[...] += jnp.dot(b, wc_b, preferred_element_type=f32)

    dilated_branch(w2_ref, wc234_ref[0], 6)              # aspp2, dilation 6
    dilated_branch(w3_ref, wc234_ref[1], 12)             # aspp3, dilation 12
    dilated_branch(w4_ref, wc234_ref[2], 18)             # aspp4, dilation 18

    o_ref[...] = relu(acc_ref[...]).reshape(TH, W, Cout).astype(o_ref.dtype)


def aspp_forward_nhwc(x_nhwc, params, *, tile_h=None):
    """ASPP forward, NHWC in / NHWC out (f32)."""
    N, H, W, Cin = x_nhwc.shape
    Cout = params["w1"].shape[-1]
    cdt = jnp.bfloat16
    P = MAX_PAD

    # Row-tile size.  For production shapes, re-derive per generation: pick the
    # largest TH whose per-step footprint (haloed window + f32 accumulators +
    # matmul temporaries, input/output double-buffered, weights resident) stays
    # well inside scoped VMEM (~24 MiB v5e, ~48 MiB v6e, ~40 MiB v7x).
    if tile_h is None:
        tile_h = min(H, 32)
    TH = int(tile_h)
    T = -(-H // TH)                      # row tiles per image
    THp = TH + 2 * P
    Wp = LPAD + W + RPAD

    # ---- weight repacking (once, wrapper-side) ----
    #  aspp1/aspp5 fused along N -> (Cin, 2*Cout); their conv2 row-blocks fused
    #  -> (2*Cout, Cout); conv2 row-blocks for aspp2/3/4 -> (3, Cout, Cout).
    wc = params["wc"]
    w15 = jnp.concatenate([params["w1"], params["w5"]], axis=1).astype(cdt)
    wc15 = jnp.concatenate([wc[:Cout], wc[4 * Cout:]], axis=0).astype(cdt)
    wc234 = jnp.stack([wc[Cout:2 * Cout], wc[2 * Cout:3 * Cout],
                       wc[3 * Cout:4 * Cout]], axis=0).astype(cdt)
    w2 = params["w2"].astype(cdt)
    w3 = params["w3"].astype(cdt)
    w4 = params["w4"].astype(cdt)

    # ---- wrapper-built haloed, non-overlapping row tiles ----
    # One cheap pad + re-window pass; the kernel then needs no zero-fill or
    # interior copy, and overlapping halos never break BlockSpec pipelining.
    xb = x_nhwc.astype(cdt)
    xp = jnp.pad(xb, ((0, 0), (P, P + T * TH - H), (LPAD, RPAD), (0, 0)))
    xt = jnp.stack([xp[:, t * TH:t * TH + THp] for t in range(T)], axis=1)
    xt = xt.reshape(N * T, THp, Wp, Cin)

    kernel = functools.partial(_aspp_kernel, TH=TH, W=W, Cin=Cin, Cout=Cout)

    # Weights: untiled, VMEM-resident, single-buffered for the whole kernel.
    wspec = pl.BlockSpec(memory_space=pltpu.MemorySpace.VMEM)

    # Scoped-VMEM limit sized from the per-step footprint (never below the
    # 32 MiB default, capped safely under v7x's 64 MiB physical VMEM).
    weight_bytes = 2 * sum(int(a.size) for a in (w15, w2, w3, w4, wc15, wc234))
    step_bytes = (2 * (THp * Wp * Cin * 2)               # haloed input window x2 bufs
                  + 2 * (TH * W * Cout * 4)              # output block x2 bufs
                  + 2 * (TH * W * Cout * 4)              # pre/acc scratch
                  + 4 * (TH * W * max(Cin, Cout) * 4))   # matmul temporaries (generous)
    vmem_limit = int(min(max(4 * (weight_bytes + step_bytes), 32 << 20), 56 << 20))

    out = pl.pallas_call(
        kernel,
        out_shape=jax.ShapeDtypeStruct((N * T, TH, W, Cout), jnp.float32),
        grid_spec=pltpu.PrefetchScalarGridSpec(
            num_scalar_prefetch=0,
            grid=(N * T,),
            in_specs=[
                pl.BlockSpec((None, THp, Wp, Cin), lambda s: (s, 0, 0, 0)),
                wspec, wspec, wspec, wspec, wspec, wspec,
            ],
            out_specs=pl.BlockSpec((None, TH, W, Cout), lambda s: (s, 0, 0, 0)),
            scratch_shapes=[pltpu.VMEM((TH * W, Cout), jnp.float32),   # pre
                            pltpu.VMEM((TH * W, Cout), jnp.float32)],  # acc
        ),
        compiler_params=pltpu.CompilerParams(
            dimension_semantics=("parallel",),
            vmem_limit_bytes=vmem_limit),
    )(xt, w15, w2, w3, w4, wc15, wc234)

    out = out.reshape(N, T * TH, W, Cout)[:, :H]
    return out


def aspp_forward(x_nchw, params, *, tile_h=None):
    """PyTorch-convention wrapper: NCHW in / NCHW out."""
    x_nhwc = jnp.transpose(x_nchw, (0, 2, 3, 1))
    out = aspp_forward_nhwc(x_nhwc, params, tile_h=tile_h)
    return jnp.transpose(out, (0, 3, 1, 2))


def init_params(key, Cin, Cout):
    """Deterministic synthetic weights (conv weights stored in matmul form)."""
    ks = jax.random.split(key, 6)

    def conv_w(k, shape, fan_in):
        return jax.random.normal(k, shape, jnp.float32) * (2.0 / fan_in) ** 0.5

    return dict(
        w1=conv_w(ks[0], (Cin, Cout), Cin),               # aspp1: 1x1
        w2=conv_w(ks[1], (9, Cin, Cout), 9 * Cin),        # aspp2: 3x3 taps (HW-major)
        w3=conv_w(ks[2], (9, Cin, Cout), 9 * Cin),        # aspp3
        w4=conv_w(ks[3], (9, Cin, Cout), 9 * Cin),        # aspp4
        w5=conv_w(ks[4], (Cin, Cout), Cin),               # aspp5: 1x1
        wc=conv_w(ks[5], (5 * Cout, Cout), 5 * Cout),     # conv2: 1x1 over concat
    )


def aspp_reference(x_nchw, params):
    """Plain-JAX reference (lax convs) mirroring the kernel's bf16/f32 numerics."""
    bf16, f32 = jnp.bfloat16, jnp.float32
    x = jnp.transpose(x_nchw, (0, 2, 3, 1)).astype(bf16)
    dn = ("NHWC", "HWIO", "NHWC")
    relu = lambda t: jnp.maximum(t, 0.0)

    def c1(w):
        return lax.conv_general_dilated(
            x, w.reshape(1, 1, *w.shape).astype(bf16), (1, 1), "VALID",
            dimension_numbers=dn, preferred_element_type=f32)

    def c3(w, d):
        wh = w.reshape(3, 3, w.shape[1], w.shape[2]).astype(bf16)
        return lax.conv_general_dilated(
            x, wh, (1, 1), padding=[(d, d), (d, d)], rhs_dilation=(d, d),
            dimension_numbers=dn, preferred_element_type=f32)

    x1 = relu(c1(params["w1"])).astype(bf16)
    x2 = relu(c3(params["w2"], 6)).astype(bf16)
    x3 = relu(c3(params["w3"], 12)).astype(bf16)
    x4 = relu(c3(params["w4"], 18)).astype(bf16)
    x5 = relu(c1(params["w5"])).astype(bf16)
    cat = jnp.concatenate([x1, x2, x3, x4, x5], axis=-1)
    out = relu(jnp.einsum("nhwk,ko->nhwo", cat, params["wc"].astype(bf16),
                          preferred_element_type=f32))
    return jnp.transpose(out, (0, 3, 1, 2))


if __name__ == "__main__":
    N, Cin, H, W, Cout = 2, 4, 16, 16, 8
    key = jax.random.PRNGKey(0)
    kx, kp = jax.random.split(key)
    x = jax.random.normal(kx, (N, Cin, H, W), jnp.float32)
    params = init_params(kp, Cin, Cout)

    # tile_h=8 exercises the row-tile grid axis (2 row tiles x 2 images = 4 steps).
    fwd = jax.jit(functools.partial(aspp_forward, tile_h=8))
    out = jax.block_until_ready(fwd(x, params))
    assert out.shape == (N, Cout, H, W)

    ref = aspp_reference(x, params)
    err = float(jnp.max(jnp.abs(out - ref)))
    assert err < 2e-2, f"max abs err {err}"

    print("KERNEL_OK")
</pallas_src>

<mosaic_0001>
module attributes {stable_mosaic.version = 11 : i64} {
  func.func @_aspp_kernel(%arg0: i32, %arg1: memref<1x44x66x4xbf16, #tpu.memory_space<vmem>>, %arg2: memref<4x16xbf16, #tpu.memory_space<vmem>>, %arg3: memref<9x4x8xbf16, #tpu.memory_space<vmem>>, %arg4: memref<9x4x8xbf16, #tpu.memory_space<vmem>>, %arg5: memref<9x4x8xbf16, #tpu.memory_space<vmem>>, %arg6: memref<16x8xbf16, #tpu.memory_space<vmem>>, %arg7: memref<3x8x8xbf16, #tpu.memory_space<vmem>>, %arg8: memref<1x8x16x8xf32, #tpu.memory_space<vmem>>, %arg9: memref<128x8xf32, #tpu.memory_space<vmem>>, %arg10: memref<128x8xf32, #tpu.memory_space<vmem>>) attributes {dimension_semantics = [#tpu.dimension_semantics<parallel>], iteration_bounds = array<i64: 4>, scalar_prefetch = 0 : i64, scratch_operands = 2 : i64, tpu.core_type = #tpu.core_type<tc>, window_params = [{transform_indices = @transform_0, window_bounds = array<i64: 1, 44, 66, 4>}, {pipeline_mode = #tpu.pipeline_mode<synchronous>, transform_indices = @transform_1, window_bounds = array<i64: 4, 16>}, {pipeline_mode = #tpu.pipeline_mode<synchronous>, transform_indices = @transform_2, window_bounds = array<i64: 9, 4, 8>}, {pipeline_mode = #tpu.pipeline_mode<synchronous>, transform_indices = @transform_3, window_bounds = array<i64: 9, 4, 8>}, {pipeline_mode = #tpu.pipeline_mode<synchronous>, transform_indices = @transform_4, window_bounds = array<i64: 9, 4, 8>}, {pipeline_mode = #tpu.pipeline_mode<synchronous>, transform_indices = @transform_5, window_bounds = array<i64: 16, 8>}, {pipeline_mode = #tpu.pipeline_mode<synchronous>, transform_indices = @transform_6, window_bounds = array<i64: 3, 8, 8>}, {transform_indices = @transform_7, window_bounds = array<i64: 1, 8, 16, 8>}]} {
    %c0 = arith.constant 0 : index
    %c18 = arith.constant 18 : index
    %c32 = arith.constant 32 : index
    %c0_0 = arith.constant 0 : index
    %0 = vector.load %arg1[%c0, %c18, %c32, %c0_0] : memref<1x44x66x4xbf16, #tpu.memory_space<vmem>>, vector<1x8x16x4xbf16>
    %1 = vector.shape_cast %0 : vector<1x8x16x4xbf16> to vector<8x16x4xbf16>
    %2 = vector.shape_cast %1 : vector<8x16x4xbf16> to vector<128x4xbf16>
    %c0_1 = arith.constant 0 : index
    %c0_2 = arith.constant 0 : index
    %3 = vector.load %arg2[%c0_1, %c0_2] : memref<4x16xbf16, #tpu.memory_space<vmem>>, vector<4x16xbf16>
    %cst = arith.constant dense<0.000000e+00> : vector<128x16xf32>
    %4 = tpu.matmul %2, %3, %cst {dimension_numbers = #tpu.dot_dimension_numbers<[1], [0], [0], [1], [0, 0, 1, 1], [], []>} : vector<128x4xbf16>, vector<4x16xbf16>, vector<128x16xf32> -> vector<128x16xf32>
    %cst_3 = arith.constant 0.000000e+00 : f32
    %5 = vector.broadcast %cst_3 : f32 to vector<128x16xf32>
    %6 = arith.maximumf %4, %5 : vector<128x16xf32>
    %7 = arith.truncf %6 : vector<128x16xf32> to vector<128x16xbf16>
    %c0_4 = arith.constant 0 : index
    %c0_5 = arith.constant 0 : index
    %8 = vector.load %arg6[%c0_4, %c0_5] : memref<16x8xbf16, #tpu.memory_space<vmem>>, vector<16x8xbf16>
    %cst_6 = arith.constant dense<0.000000e+00> : vector<128x8xf32>
    %9 = tpu.matmul %7, %8, %cst_6 {dimension_numbers = #tpu.dot_dimension_numbers<[1], [0], [0], [1], [0, 0, 1, 1], [], []>} : vector<128x16xbf16>, vector<16x8xbf16>, vector<128x8xf32> -> vector<128x8xf32>
    %c0_7 = arith.constant 0 : index
    %c0_8 = arith.constant 0 : index
    %10 = vector.load %arg10[%c0_7, %c0_8] : memref<128x8xf32, #tpu.memory_space<vmem>>, vector<128x8xf32>
    tpu.vector_store %arg10[%c0_7, %c0_8], %9 {strides = array<i32>} : memref<128x8xf32, #tpu.memory_space<vmem>>, vector<128x8xf32>,
    %c0_9 = arith.constant 0 : index
    %c0_10 = arith.constant 0 : index
    %c0_11 = arith.constant 0 : index
    %11 = vector.load %arg7[%c0_9, %c0_10, %c0_11] : memref<3x8x8xbf16, #tpu.memory_space<vmem>>, vector<1x8x8xbf16>
    %12 = vector.shape_cast %11 : vector<1x8x8xbf16> to vector<8x8xbf16>
    %c0_12 = arith.constant 0 : index
    %c0_13 = arith.constant 0 : index
    %c0_14 = arith.constant 0 : index
    %13 = vector.load %arg3[%c0_12, %c0_13, %c0_14] : memref<9x4x8xbf16, #tpu.memory_space<vmem>>, vector<9x4x8xbf16>
    %14 = vector.extract_strided_slice %13 {offsets = [4, 0, 0], sizes = [1, 4, 8], strides = [1, 1, 1]} : vector<9x4x8xbf16> to vector<1x4x8xbf16>
    %15 = vector.shape_cast %14 : vector<1x4x8xbf16> to vector<4x8xbf16>
    %cst_15 = arith.constant dense<0.000000e+00> : vector<128x8xf32>
    %16 = tpu.matmul %2, %15, %cst_15 {dimension_numbers = #tpu.dot_dimension_numbers<[1], [0], [0], [1], [0, 0, 1, 1], [], []>} : vector<128x4xbf16>, vector<4x8xbf16>, vector<128x8xf32> -> vector<128x8xf32>
    %c0_16 = arith.constant 0 : index
    %c0_17 = arith.constant 0 : index
    %17 = vector.load %arg9[%c0_16, %c0_17] : memref<128x8xf32, #tpu.memory_space<vmem>>, vector<128x8xf32>
    tpu.vector_store %arg9[%c0_16, %c0_17], %16 {strides = array<i32>} : memref<128x8xf32, #tpu.memory_space<vmem>>, vector<128x8xf32>,
    %c0_18 = arith.constant 0 : index
    %c12 = arith.constant 12 : index
    %c26 = arith.constant 26 : index
    %c0_19 = arith.constant 0 : index
    %18 = vector.load %arg1[%c0_18, %c12, %c26, %c0_19] : memref<1x44x66x4xbf16, #tpu.memory_space<vmem>>, vector<1x8x16x4xbf16>
    %19 = vector.shape_cast %18 : vector<1x8x16x4xbf16> to vector<8x16x4xbf16>
    %20 = vector.shape_cast %19 : vector<8x16x4xbf16> to vector<128x4xbf16>
    %c0_20 = arith.constant 0 : index
    %c0_21 = arith.constant 0 : index
    %21 = vector.load %arg9[%c0_20, %c0_21] : memref<128x8xf32, #tpu.memory_space<vmem>>, vector<128x8xf32>
    %22 = vector.extract_strided_slice %13 {offsets = [0, 0, 0], sizes = [1, 4, 8], strides = [1, 1, 1]} : vector<9x4x8xbf16> to vector<1x4x8xbf16>
    %23 = vector.shape_cast %22 : vector<1x4x8xbf16> to vector<4x8xbf16>
    %cst_22 = arith.constant dense<0.000000e+00> : vector<128x8xf32>
    %24 = tpu.matmul %20, %23, %cst_22 {dimension_numbers = #tpu.dot_dimension_numbers<[1], [0], [0], [1], [0, 0, 1, 1], [], []>} : vector<128x4xbf16>, vector<4x8xbf16>, vector<128x8xf32> -> vector<128x8xf32>
    %25 = arith.addf %21, %24 : vector<128x8xf32>
    %c0_23 = arith.constant 0 : index
    %c0_24 = arith.constant 0 : index
    %26 = vector.load %arg9[%c0_23, %c0_24] : memref<128x8xf32, #tpu.memory_space<vmem>>, vector<128x8xf32>
    tpu.vector_store %arg9[%c0_23, %c0_24], %25 {strides = array<i32>} : memref<128x8xf32, #tpu.memory_space<vmem>>, vector<128x8xf32>,
    %c0_25 = arith.constant 0 : index
    %c12_26 = arith.constant 12 : index
    %c32_27 = arith.constant 32 : index
    %c0_28 = arith.constant 0 : index
    %27 = vector.load %arg1[%c0_25, %c12_26, %c32_27, %c0_28] : memref<1x44x66x4xbf16, #tpu.memory_space<vmem>>, vector<1x8x16x4xbf16>
    %28 = vector.shape_cast %27 : vector<1x8x16x4xbf16> to vector<8x16x4xbf16>
    %29 = vector.shape_cast %28 : vector<8x16x4xbf16> to vector<128x4xbf16>
    %c0_29 = arith.constant 0 : index
    %c0_30 = arith.constant 0 : index
    %30 = vector.load %arg9[%c0_29, %c0_30] : memref<128x8xf32, #tpu.memory_space<vmem>>, vector<128x8xf32>
    %31 = vector.extract_strided_slice %13 {offsets = [1, 0, 0], sizes = [1, 4, 8], strides = [1, 1, 1]} : vector<9x4x8xbf16> to vector<1x4x8xbf16>
    %32 = vector.shape_cast %31 : vector<1x4x8xbf16> to vector<4x8xbf16>
    %cst_31 = arith.constant dense<0.000000e+00> : vector<128x8xf32>
    %33 = tpu.matmul %29, %32, %cst_31 {dimension_numbers = #tpu.dot_dimension_numbers<[1], [0], [0], [1], [0, 0, 1, 1], [], []>} : vector<128x4xbf16>, vector<4x8xbf16>, vector<128x8xf32> -> vector<128x8xf32>
    %34 = arith.addf %30, %33 : vector<128x8xf32>
    %c0_32 = arith.constant 0 : index
    %c0_33 = arith.constant 0 : index
    %35 = vector.load %arg9[%c0_32, %c0_33] : memref<128x8xf32, #tpu.memory_space<vmem>>, vector<128x8xf32>
    tpu.vector_store %arg9[%c0_32, %c0_33], %34 {strides = array<i32>} : memref<128x8xf32, #tpu.memory_space<vmem>>, vector<128x8xf32>,
    %c0_34 = arith.constant 0 : index
    %c12_35 = arith.constant 12 : index
    %c38 = arith.constant 38 : index
    %c0_36 = arith.constant 0 : index
    %36 = vector.load %arg1[%c0_34, %c12_35, %c38, %c0_36] : memref<1x44x66x4xbf16, #tpu.memory_space<vmem>>, vector<1x8x16x4xbf16>
    %37 = vector.shape_cast %36 : vector<1x8x16x4xbf16> to vector<8x16x4xbf16>
    %38 = vector.shape_cast %37 : vector<8x16x4xbf16> to vector<128x4xbf16>
    %c0_37 = arith.constant 0 : index
    %c0_38 = arith.constant 0 : index
    %39 = vector.load %arg9[%c0_37, %c0_38] : memref<128x8xf32, #tpu.memory_space<vmem>>, vector<128x8xf32>
    %40 = vector.extract_strided_slice %13 {offsets = [2, 0, 0], sizes = [1, 4, 8], strides = [1, 1, 1]} : vector<9x4x8xbf16> to vector<1x4x8xbf16>
    %41 = vector.shape_cast %40 : vector<1x4x8xbf16> to vector<4x8xbf16>
    %cst_39 = arith.constant dense<0.000000e+00> : vector<128x8xf32>
    %42 = tpu.matmul %38, %41, %cst_39 {dimension_numbers = #tpu.dot_dimension_numbers<[1], [0], [0], [1], [0, 0, 1, 1], [], []>} : vector<128x4xbf16>, vector<4x8xbf16>, vector<128x8xf32> -> vector<128x8xf32>
    %43 = arith.addf %39, %42 : vector<128x8xf32>
    %c0_40 = arith.constant 0 : index
    %c0_41 = arith.constant 0 : index
    %44 = vector.load %arg9[%c0_40, %c0_41] : memref<128x8xf32, #tpu.memory_space<vmem>>, vector<128x8xf32>
    tpu.vector_store %arg9[%c0_40, %c0_41], %43 {strides = array<i32>} : memref<128x8xf32, #tpu.memory_space<vmem>>, vector<128x8xf32>,
    %c0_42 = arith.constant 0 : index
    %c18_43 = arith.constant 18 : index
    %c26_44 = arith.constant 26 : index
    %c0_45 = arith.constant 0 : index
    %45 = vector.load %arg1[%c0_42, %c18_43, %c26_44, %c0_45] : memref<1x44x66x4xbf16, #tpu.memory_space<vmem>>, vector<1x8x16x4xbf16>
    %46 = vector.shape_cast %45 : vector<1x8x16x4xbf16> to vector<8x16x4xbf16>
    %47 = vector.shape_cast %46 : vector<8x16x4xbf16> to vector<128x4xbf16>
    %c0_46 = arith.constant 0 : index
    %c0_47 = arith.constant 0 : index
    %48 = vector.load %arg9[%c0_46, %c0_47] : memref<128x8xf32, #tpu.memory_space<vmem>>, vector<128x8xf32>
    %49 = vector.extract_strided_slice %13 {offsets = [3, 0, 0], sizes = [1, 4, 8], strides = [1, 1, 1]} : vector<9x4x8xbf16> to vector<1x4x8xbf16>
    %50 = vector.shape_cast %49 : vector<1x4x8xbf16> to vector<4x8xbf16>
    %cst_48 = arith.constant dense<0.000000e+00> : vector<128x8xf32>
    %51 = tpu.matmul %47, %50, %cst_48 {dimension_numbers = #tpu.dot_dimension_numbers<[1], [0], [0], [1], [0, 0, 1, 1], [], []>} : vector<128x4xbf16>, vector<4x8xbf16>, vector<128x8xf32> -> vector<128x8xf32>
    %52 = arith.addf %48, %51 : vector<128x8xf32>
    %c0_49 = arith.constant 0 : index
    %c0_50 = arith.constant 0 : index
    %53 = vector.load %arg9[%c0_49, %c0_50] : memref<128x8xf32, #tpu.memory_space<vmem>>, vector<128x8xf32>
    tpu.vector_store %arg9[%c0_49, %c0_50], %52 {strides = array<i32>} : memref<128x8xf32, #tpu.memory_space<vmem>>, vector<128x8xf32>,
    %c0_51 = arith.constant 0 : index
    %c18_52 = arith.constant 18 : index
    %c38_53 = arith.constant 38 : index
    %c0_54 = arith.constant 0 : index
    %54 = vector.load %arg1[%c0_51, %c18_52, %c38_53, %c0_54] : memref<1x44x66x4xbf16, #tpu.memory_space<vmem>>, vector<1x8x16x4xbf16>
    %55 = vector.shape_cast %54 : vector<1x8x16x4xbf16> to vector<8x16x4xbf16>
    %56 = vector.shape_cast %55 : vector<8x16x4xbf16> to vector<128x4xbf16>
    %c0_55 = arith.constant 0 : index
    %c0_56 = arith.constant 0 : index
    %57 = vector.load %arg9[%c0_55, %c0_56] : memref<128x8xf32, #tpu.memory_space<vmem>>, vector<128x8xf32>
    %58 = vector.extract_strided_slice %13 {offsets = [5, 0, 0], sizes = [1, 4, 8], strides = [1, 1, 1]} : vector<9x4x8xbf16> to vector<1x4x8xbf16>
    %59 = vector.shape_cast %58 : vector<1x4x8xbf16> to vector<4x8xbf16>
    %cst_57 = arith.constant dense<0.000000e+00> : vector<128x8xf32>
    %60 = tpu.matmul %56, %59, %cst_57 {dimension_numbers = #tpu.dot_dimension_numbers<[1], [0], [0], [1], [0, 0, 1, 1], [], []>} : vector<128x4xbf16>, vector<4x8xbf16>, vector<128x8xf32> -> vector<128x8xf32>
    %61 = arith.addf %57, %60 : vector<128x8xf32>
    %c0_58 = arith.constant 0 : index
    %c0_59 = arith.constant 0 : index
    %62 = vector.load %arg9[%c0_58, %c0_59] : memref<128x8xf32, #tpu.memory_space<vmem>>, vector<128x8xf32>
    tpu.vector_store %arg9[%c0_58, %c0_59], %61 {strides = array<i32>} : memref<128x8xf32, #tpu.memory_space<vmem>>, vector<128x8xf32>,
    %c0_60 = arith.constant 0 : index
    %c24 = arith.constant 24 : index
    %c26_61 = arith.constant 26 : index
    %c0_62 = arith.constant 0 : index
    %63 = vector.load %arg1[%c0_60, %c24, %c26_61, %c0_62] : memref<1x44x66x4xbf16, #tpu.memory_space<vmem>>, vector<1x8x16x4xbf16>
    %64 = vector.shape_cast %63 : vector<1x8x16x4xbf16> to vector<8x16x4xbf16>
    %65 = vector.shape_cast %64 : vector<8x16x4xbf16> to vector<128x4xbf16>
    %c0_63 = arith.constant 0 : index
    %c0_64 = arith.constant 0 : index
    %66 = vector.load %arg9[%c0_63, %c0_64] : memref<128x8xf32, #tpu.memory_space<vmem>>, vector<128x8xf32>
    %67 = vector.extract_strided_slice %13 {offsets = [6, 0, 0], sizes = [1, 4, 8], strides = [1, 1, 1]} : vector<9x4x8xbf16> to vector<1x4x8xbf16>
    %68 = vector.shape_cast %67 : vector<1x4x8xbf16> to vector<4x8xbf16>
    %cst_65 = arith.constant dense<0.000000e+00> : vector<128x8xf32>
    %69 = tpu.matmul %65, %68, %cst_65 {dimension_numbers = #tpu.dot_dimension_numbers<[1], [0], [0], [1], [0, 0, 1, 1], [], []>} : vector<128x4xbf16>, vector<4x8xbf16>, vector<128x8xf32> -> vector<128x8xf32>
    %70 = arith.addf %66, %69 : vector<128x8xf32>
    %c0_66 = arith.constant 0 : index
    %c0_67 = arith.constant 0 : index
    %71 = vector.load %arg9[%c0_66, %c0_67] : memref<128x8xf32, #tpu.memory_space<vmem>>, vector<128x8xf32>
    tpu.vector_store %arg9[%c0_66, %c0_67], %70 {strides = array<i32>} : memref<128x8xf32, #tpu.memory_space<vmem>>, vector<128x8xf32>,
    %c0_68 = arith.constant 0 : index
    %c24_69 = arith.constant 24 : index
    %c32_70 = arith.constant 32 : index
    %c0_71 = arith.constant 0 : index
    %72 = vector.load %arg1[%c0_68, %c24_69, %c32_70, %c0_71] : memref<1x44x66x4xbf16, #tpu.memory_space<vmem>>, vector<1x8x16x4xbf16>
    %73 = vector.shape_cast %72 : vector<1x8x16x4xbf16> to vector<8x16x4xbf16>
    %74 = vector.shape_cast %73 : vector<8x16x4xbf16> to vector<128x4xbf16>
    %c0_72 = arith.constant 0 : index
    %c0_73 = arith.constant 0 : index
    %75 = vector.load %arg9[%c0_72, %c0_73] : memref<128x8xf32, #tpu.memory_space<vmem>>, vector<128x8xf32>
    %76 = vector.extract_strided_slice %13 {offsets = [7, 0, 0], sizes = [1, 4, 8], strides = [1, 1, 1]} : vector<9x4x8xbf16> to vector<1x4x8xbf16>
    %77 = vector.shape_cast %76 : vector<1x4x8xbf16> to vector<4x8xbf16>
    %cst_74 = arith.constant dense<0.000000e+00> : vector<128x8xf32>
    %78 = tpu.matmul %74, %77, %cst_74 {dimension_numbers = #tpu.dot_dimension_numbers<[1], [0], [0], [1], [0, 0, 1, 1], [], []>} : vector<128x4xbf16>, vector<4x8xbf16>, vector<128x8xf32> -> vector<128x8xf32>
    %79 = arith.addf %75, %78 : vector<128x8xf32>
    %c0_75 = arith.constant 0 : index
    %c0_76 = arith.constant 0 : index
    %80 = vector.load %arg9[%c0_75, %c0_76] : memref<128x8xf32, #tpu.memory_space<vmem>>, vector<128x8xf32>
    tpu.vector_store %arg9[%c0_75, %c0_76], %79 {strides = array<i32>} : memref<128x8xf32, #tpu.memory_space<vmem>>, vector<128x8xf32>,
    %c0_77 = arith.constant 0 : index
    %c24_78 = arith.constant 24 : index
    %c38_79 = arith.constant 38 : index
    %c0_80 = arith.constant 0 : index
    %81 = vector.load %arg1[%c0_77, %c24_78, %c38_79, %c0_80] : memref<1x44x66x4xbf16, #tpu.memory_space<vmem>>, vector<1x8x16x4xbf16>
    %82 = vector.shape_cast %81 : vector<1x8x16x4xbf16> to vector<8x16x4xbf16>
    %83 = vector.shape_cast %82 : vector<8x16x4xbf16> to vector<128x4xbf16>
    %c0_81 = arith.constant 0 : index
    %c0_82 = arith.constant 0 : index
    %84 = vector.load %arg9[%c0_81, %c0_82] : memref<128x8xf32, #tpu.memory_space<vmem>>, vector<128x8xf32>
    %85 = vector.extract_strided_slice %13 {offsets = [8, 0, 0], sizes = [1, 4, 8], strides = [1, 1, 1]} : vector<9x4x8xbf16> to vector<1x4x8xbf16>
    %86 = vector.shape_cast %85 : vector<1x4x8xbf16> to vector<4x8xbf16>
    %cst_83 = arith.constant dense<0.000000e+00> : vector<128x8xf32>
    %87 = tpu.matmul %83, %86, %cst_83 {dimension_numbers = #tpu.dot_dimension_numbers<[1], [0], [0], [1], [0, 0, 1, 1], [], []>} : vector<128x4xbf16>, vector<4x8xbf16>, vector<128x8xf32> -> vector<128x8xf32>
    %88 = arith.addf %84, %87 : vector<128x8xf32>
    %c0_84 = arith.constant 0 : index
    %c0_85 = arith.constant 0 : index
    %89 = vector.load %arg9[%c0_84, %c0_85] : memref<128x8xf32, #tpu.memory_space<vmem>>, vector<128x8xf32>
    tpu.vector_store %arg9[%c0_84, %c0_85], %88 {strides = array<i32>} : memref<128x8xf32, #tpu.memory_space<vmem>>, vector<128x8xf32>,
    %c0_86 = arith.constant 0 : index
    %c0_87 = arith.constant 0 : index
    %90 = vector.load %arg9[%c0_86, %c0_87] : memref<128x8xf32, #tpu.memory_space<vmem>>, vector<128x8xf32>
    %cst_88 = arith.constant 0.000000e+00 : f32
    %91 = vector.broadcast %cst_88 : f32 to vector<128x8xf32>
    %92 = arith.maximumf %90, %91 : vector<128x8xf32>
    %93 = arith.truncf %92 : vector<128x8xf32> to vector<128x8xbf16>
    %c0_89 = arith.constant 0 : index
    %c0_90 = arith.constant 0 : index
    %94 = vector.load %arg10[%c0_89, %c0_90] : memref<128x8xf32, #tpu.memory_space<vmem>>, vector<128x8xf32>
    %cst_91 = arith.constant dense<0.000000e+00> : vector<128x8xf32>
    %95 = tpu.matmul %93, %12, %cst_91 {dimension_numbers = #tpu.dot_dimension_numbers<[1], [0], [0], [1], [0, 0, 1, 1], [], []>} : vector<128x8xbf16>, vector<8x8xbf16>, vector<128x8xf32> -> vector<128x8xf32>
    %96 = arith.addf %94, %95 : vector<128x8xf32>
    %c0_92 = arith.constant 0 : index
    %c0_93 = arith.constant 0 : index
    %97 = vector.load %arg10[%c0_92, %c0_93] : memref<128x8xf32, #tpu.memory_space<vmem>>, vector<128x8xf32>
    tpu.vector_store %arg10[%c0_92, %c0_93], %96 {strides = array<i32>} : memref<128x8xf32, #tpu.memory_space<vmem>>, vector<128x8xf32>,
    %c1 = arith.constant 1 : index
    %c0_94 = arith.constant 0 : index
    %c0_95 = arith.constant 0 : index
    %98 = vector.load %arg7[%c1, %c0_94, %c0_95] : memref<3x8x8xbf16, #tpu.memory_space<vmem>>, vector<1x8x8xbf16>
    %99 = vector.shape_cast %98 : vector<1x8x8xbf16> to vector<8x8xbf16>
    %c0_96 = arith.constant 0 : index
    %c0_97 = arith.constant 0 : index
    %c0_98 = arith.constant 0 : index
    %100 = vector.load %arg4[%c0_96, %c0_97, %c0_98] : memref<9x4x8xbf16, #tpu.memory_space<vmem>>, vector<9x4x8xbf16>
    %101 = vector.extract_strided_slice %100 {offsets = [4, 0, 0], sizes = [1, 4, 8], strides = [1, 1, 1]} : vector<9x4x8xbf16> to vector<1x4x8xbf16>
    %102 = vector.shape_cast %101 : vector<1x4x8xbf16> to vector<4x8xbf16>
    %cst_99 = arith.constant dense<0.000000e+00> : vector<128x8xf32>
    %103 = tpu.matmul %2, %102, %cst_99 {dimension_numbers = #tpu.dot_dimension_numbers<[1], [0], [0], [1], [0, 0, 1, 1], [], []>} : vector<128x4xbf16>, vector<4x8xbf16>, vector<128x8xf32> -> vector<128x8xf32>
    %c0_100 = arith.constant 0 : index
    %c0_101 = arith.constant 0 : index
    %104 = vector.load %arg9[%c0_100, %c0_101] : memref<128x8xf32, #tpu.memory_space<vmem>>, vector<128x8xf32>
    tpu.vector_store %arg9[%c0_100, %c0_101], %103 {strides = array<i32>} : memref<128x8xf32, #tpu.memory_space<vmem>>, vector<128x8xf32>,
    %c0_102 = arith.constant 0 : index
    %c6 = arith.constant 6 : index
    %c20 = arith.constant 20 : index
    %c0_103 = arith.constant 0 : index
    %105 = vector.load %arg1[%c0_102, %c6, %c20, %c0_103] : memref<1x44x66x4xbf16, #tpu.memory_space<vmem>>, vector<1x8x16x4xbf16>
    %106 = vector.shape_cast %105 : vector<1x8x16x4xbf16> to vector<8x16x4xbf16>
    %107 = vector.shape_cast %106 : vector<8x16x4xbf16> to vector<128x4xbf16>
    %c0_104 = arith.constant 0 : index
    %c0_105 = arith.constant 0 : index
    %108 = vector.load %arg9[%c0_104, %c0_105] : memref<128x8xf32, #tpu.memory_space<vmem>>, vector<128x8xf32>
    %109 = vector.extract_strided_slice %100 {offsets = [0, 0, 0], sizes = [1, 4, 8], strides = [1, 1, 1]} : vector<9x4x8xbf16> to vector<1x4x8xbf16>
    %110 = vector.shape_cast %109 : vector<1x4x8xbf16> to vector<4x8xbf16>
    %cst_106 = arith.constant dense<0.000000e+00> : vector<128x8xf32>
    %111 = tpu.matmul %107, %110, %cst_106 {dimension_numbers = #tpu.dot_dimension_numbers<[1], [0], [0], [1], [0, 0, 1, 1], [], []>} : vector<128x4xbf16>, vector<4x8xbf16>, vector<128x8xf32> -> vector<128x8xf32>
    %112 = arith.addf %108, %111 : vector<128x8xf32>
    %c0_107 = arith.constant 0 : index
    %c0_108 = arith.constant 0 : index
    %113 = vector.load %arg9[%c0_107, %c0_108] : memref<128x8xf32, #tpu.memory_space<vmem>>, vector<128x8xf32>
    tpu.vector_store %arg9[%c0_107, %c0_108], %112 {strides = array<i32>} : memref<128x8xf32, #tpu.memory_space<vmem>>, vector<128x8xf32>,
    %c0_109 = arith.constant 0 : index
    %c6_110 = arith.constant 6 : index
    %c32_111 = arith.constant 32 : index
    %c0_112 = arith.constant 0 : index
    %114 = vector.load %arg1[%c0_109, %c6_110, %c32_111, %c0_112] : memref<1x44x66x4xbf16, #tpu.memory_space<vmem>>, vector<1x8x16x4xbf16>
    %115 = vector.shape_cast %114 : vector<1x8x16x4xbf16> to vector<8x16x4xbf16>
    %116 = vector.shape_cast %115 : vector<8x16x4xbf16> to vector<128x4xbf16>
    %c0_113 = arith.constant 0 : index
    %c0_114 = arith.constant 0 : index
    %117 = vector.load %arg9[%c0_113, %c0_114] : memref<128x8xf32, #tpu.memory_space<vmem>>, vector<128x8xf32>
    %118 = vector.extract_strided_slice %100 {offsets = [1, 0, 0], sizes = [1, 4, 8], strides = [1, 1, 1]} : vector<9x4x8xbf16> to vector<1x4x8xbf16>
    %119 = vector.shape_cast %118 : vector<1x4x8xbf16> to vector<4x8xbf16>
    %cst_115 = arith.constant dense<0.000000e+00> : vector<128x8xf32>
    %120 = tpu.matmul %116, %119, %cst_115 {dimension_numbers = #tpu.dot_dimension_numbers<[1], [0], [0], [1], [0, 0, 1, 1], [], []>} : vector<128x4xbf16>, vector<4x8xbf16>, vector<128x8xf32> -> vector<128x8xf32>
    %121 = arith.addf %117, %120 : vector<128x8xf32>
    %c0_116 = arith.constant 0 : index
    %c0_117 = arith.constant 0 : index
    %122 = vector.load %arg9[%c0_116, %c0_117] : memref<128x8xf32, #tpu.memory_space<vmem>>, vector<128x8xf32>
    tpu.vector_store %arg9[%c0_116, %c0_117], %121 {strides = array<i32>} : memref<128x8xf32, #tpu.memory_space<vmem>>, vector<128x8xf32>,
    %c0_118 = arith.constant 0 : index
    %c6_119 = arith.constant 6 : index
    %c44 = arith.constant 44 : index
    %c0_120 = arith.constant 0 : index
    %123 = vector.load %arg1[%c0_118, %c6_119, %c44, %c0_120] : memref<1x44x66x4xbf16, #tpu.memory_space<vmem>>, vector<1x8x16x4xbf16>
    %124 = vector.shape_cast %123 : vector<1x8x16x4xbf16> to vector<8x16x4xbf16>
    %125 = vector.shape_cast %124 : vector<8x16x4xbf16> to vector<128x4xbf16>
    %c0_121 = arith.constant 0 : index
    %c0_122 = arith.constant 0 : index
    %126 = vector.load %arg9[%c0_121, %c0_122] : memref<128x8xf32, #tpu.memory_space<vmem>>, vector<128x8xf32>
    %127 = vector.extract_strided_slice %100 {offsets = [2, 0, 0], sizes = [1, 4, 8], strides = [1, 1, 1]} : vector<9x4x8xbf16> to vector<1x4x8xbf16>
    %128 = vector.shape_cast %127 : vector<1x4x8xbf16> to vector<4x8xbf16>
    %cst_123 = arith.constant dense<0.000000e+00> : vector<128x8xf32>
    %129 = tpu.matmul %125, %128, %cst_123 {dimension_numbers = #tpu.dot_dimension_numbers<[1], [0], [0], [1], [0, 0, 1, 1], [], []>} : vector<128x4xbf16>, vector<4x8xbf16>, vector<128x8xf32> -> vector<128x8xf32>
    %130 = arith.addf %126, %129 : vector<128x8xf32>
    %c0_124 = arith.constant 0 : index
    %c0_125 = arith.constant 0 : index
    %131 = vector.load %arg9[%c0_124, %c0_125] : memref<128x8xf32, #tpu.memory_space<vmem>>, vector<128x8xf32>
    tpu.vector_store %arg9[%c0_124, %c0_125], %130 {strides = array<i32>} : memref<128x8xf32, #tpu.memory_space<vmem>>, vector<128x8xf32>,
    %c0_126 = arith.constant 0 : index
    %c18_127 = arith.constant 18 : index
    %c20_128 = arith.constant 20 : index
    %c0_129 = arith.constant 0 : index
    %132 = vector.load %arg1[%c0_126, %c18_127, %c20_128, %c0_129] : memref<1x44x66x4xbf16, #tpu.memory_space<vmem>>, vector<1x8x16x4xbf16>
    %133 = vector.shape_cast %132 : vector<1x8x16x4xbf16> to vector<8x16x4xbf16>
    %134 = vector.shape_cast %133 : vector<8x16x4xbf16> to vector<128x4xbf16>
    %c0_130 = arith.constant 0 : index
    %c0_131 = arith.constant 0 : index
    %135 = vector.load %arg9[%c0_130, %c0_131] : memref<128x8xf32, #tpu.memory_space<vmem>>, vector<128x8xf32>
    %136 = vector.extract_strided_slice %100 {offsets = [3, 0, 0], sizes = [1, 4, 8], strides = [1, 1, 1]} : vector<9x4x8xbf16> to vector<1x4x8xbf16>
    %137 = vector.shape_cast %136 : vector<1x4x8xbf16> to vector<4x8xbf16>
    %cst_132 = arith.constant dense<0.000000e+00> : vector<128x8xf32>
    %138 = tpu.matmul %134, %137, %cst_132 {dimension_numbers = #tpu.dot_dimension_numbers<[1], [0], [0], [1], [0, 0, 1, 1], [], []>} : vector<128x4xbf16>, vector<4x8xbf16>, vector<128x8xf32> -> vector<128x8xf32>
    %139 = arith.addf %135, %138 : vector<128x8xf32>
    %c0_133 = arith.constant 0 : index
    %c0_134 = arith.constant 0 : index
    %140 = vector.load %arg9[%c0_133, %c0_134] : memref<128x8xf32, #tpu.memory_space<vmem>>, vector<128x8xf32>
    tpu.vector_store %arg9[%c0_133, %c0_134], %139 {strides = array<i32>} : memref<128x8xf32, #tpu.memory_space<vmem>>, vector<128x8xf32>,
    %c0_135 = arith.constant 0 : index
    %c18_136 = arith.constant 18 : index
    %c44_137 = arith.constant 44 : index
    %c0_138 = arith.constant 0 : index
    %141 = vector.load %arg1[%c0_135, %c18_136, %c44_137, %c0_138] : memref<1x44x66x4xbf16, #tpu.memory_space<vmem>>, vector<1x8x16x4xbf16>
    %142 = vector.shape_cast %141 : vector<1x8x16x4xbf16> to vector<8x16x4xbf16>
    %143 = vector.shape_cast %142 : vector<8x16x4xbf16> to vector<128x4xbf16>
    %c0_139 = arith.constant 0 : index
    %c0_140 = arith.constant 0 : index
    %144 = vector.load %arg9[%c0_139, %c0_140] : memref<128x8xf32, #tpu.memory_space<vmem>>, vector<128x8xf32>
    %145 = vector.extract_strided_slice %100 {offsets = [5, 0, 0], sizes = [1, 4, 8], strides = [1, 1, 1]} : vector<9x4x8xbf16> to vector<1x4x8xbf16>
    %146 = vector.shape_cast %145 : vector<1x4x8xbf16> to vector<4x8xbf16>
    %cst_141 = arith.constant dense<0.000000e+00> : vector<128x8xf32>
    %147 = tpu.matmul %143, %146, %cst_141 {dimension_numbers = #tpu.dot_dimension_numbers<[1], [0], [0], [1], [0, 0, 1, 1], [], []>} : vector<128x4xbf16>, vector<4x8xbf16>, vector<128x8xf32> -> vector<128x8xf32>
    %148 = arith.addf %144, %147 : vector<128x8xf32>
    %c0_142 = arith.constant 0 : index
    %c0_143 = arith.constant 0 : index
    %149 = vector.load %arg9[%c0_142, %c0_143] : memref<128x8xf32, #tpu.memory_space<vmem>>, vector<128x8xf32>
    tpu.vector_store %arg9[%c0_142, %c0_143], %148 {strides = array<i32>} : memref<128x8xf32, #tpu.memory_space<vmem>>, vector<128x8xf32>,
    %c0_144 = arith.constant 0 : index
    %c30 = arith.constant 30 : index
    %c20_145 = arith.constant 20 : index
    %c0_146 = arith.constant 0 : index
    %150 = vector.load %arg1[%c0_144, %c30, %c20_145, %c0_146] : memref<1x44x66x4xbf16, #tpu.memory_space<vmem>>, vector<1x8x16x4xbf16>
    %151 = vector.shape_cast %150 : vector<1x8x16x4xbf16> to vector<8x16x4xbf16>
    %152 = vector.shape_cast %151 : vector<8x16x4xbf16> to vector<128x4xbf16>
    %c0_147 = arith.constant 0 : index
    %c0_148 = arith.constant 0 : index
    %153 = vector.load %arg9[%c0_147, %c0_148] : memref<128x8xf32, #tpu.memory_space<vmem>>, vector<128x8xf32>
    %154 = vector.extract_strided_slice %100 {offsets = [6, 0, 0], sizes = [1, 4, 8], strides = [1, 1, 1]} : vector<9x4x8xbf16> to vector<1x4x8xbf16>
    %155 = vector.shape_cast %154 : vector<1x4x8xbf16> to vector<4x8xbf16>
    %cst_149 = arith.constant dense<0.000000e+00> : vector<128x8xf32>
    %156 = tpu.matmul %152, %155, %cst_149 {dimension_numbers = #tpu.dot_dimension_numbers<[1], [0], [0], [1], [0, 0, 1, 1], [], []>} : vector<128x4xbf16>, vector<4x8xbf16>, vector<128x8xf32> -> vector<128x8xf32>
    %157 = arith.addf %153, %156 : vector<128x8xf32>
    %c0_150 = arith.constant 0 : index
    %c0_151 = arith.constant 0 : index
    %158 = vector.load %arg9[%c0_150, %c0_151] : memref<128x8xf32, #tpu.memory_space<vmem>>, vector<128x8xf32>
    tpu.vector_store %arg9[%c0_150, %c0_151], %157 {strides = array<i32>} : memref<128x8xf32, #tpu.memory_space<vmem>>, vector<128x8xf32>,
    %c0_152 = arith.constant 0 : index
    %c30_153 = arith.constant 30 : index
    %c32_154 = arith.constant 32 : index
    %c0_155 = arith.constant 0 : index
    %159 = vector.load %arg1[%c0_152, %c30_153, %c32_154, %c0_155] : memref<1x44x66x4xbf16, #tpu.memory_space<vmem>>, vector<1x8x16x4xbf16>
    %160 = vector.shape_cast %159 : vector<1x8x16x4xbf16> to vector<8x16x4xbf16>
    %161 = vector.shape_cast %160 : vector<8x16x4xbf16> to vector<128x4xbf16>
    %c0_156 = arith.constant 0 : index
    %c0_157 = arith.constant 0 : index
    %162 = vector.load %arg9[%c0_156, %c0_157] : memref<128x8xf32, #tpu.memory_space<vmem>>, vector<128x8xf32>
    %163 = vector.extract_strided_slice %100 {offsets = [7, 0, 0], sizes = [1, 4, 8], strides = [1, 1, 1]} : vector<9x4x8xbf16> to vector<1x4x8xbf16>
    %164 = vector.shape_cast %163 : vector<1x4x8xbf16> to vector<4x8xbf16>
    %cst_158 = arith.constant dense<0.000000e+00> : vector<128x8xf32>
    %165 = tpu.matmul %161, %164, %cst_158 {dimension_numbers = #tpu.dot_dimension_numbers<[1], [0], [0], [1], [0, 0, 1, 1], [], []>} : vector<128x4xbf16>, vector<4x8xbf16>, vector<128x8xf32> -> vector<128x8xf32>
    %166 = arith.addf %162, %165 : vector<128x8xf32>
    %c0_159 = arith.constant 0 : index
    %c0_160 = arith.constant 0 : index
    %167 = vector.load %arg9[%c0_159, %c0_160] : memref<128x8xf32, #tpu.memory_space<vmem>>, vector<128x8xf32>
    tpu.vector_store %arg9[%c0_159, %c0_160], %166 {strides = array<i32>} : memref<128x8xf32, #tpu.memory_space<vmem>>, vector<128x8xf32>,
    %c0_161 = arith.constant 0 : index
    %c30_162 = arith.constant 30 : index
    %c44_163 = arith.constant 44 : index
    %c0_164 = arith.constant 0 : index
    %168 = vector.load %arg1[%c0_161, %c30_162, %c44_163, %c0_164] : memref<1x44x66x4xbf16, #tpu.memory_space<vmem>>, vector<1x8x16x4xbf16>
    %169 = vector.shape_cast %168 : vector<1x8x16x4xbf16> to vector<8x16x4xbf16>
    %170 = vector.shape_cast %169 : vector<8x16x4xbf16> to vector<128x4xbf16>
    %c0_165 = arith.constant 0 : index
    %c0_166 = arith.constant 0 : index
    %171 = vector.load %arg9[%c0_165, %c0_166] : memref<128x8xf32, #tpu.memory_space<vmem>>, vector<128x8xf32>
    %172 = vector.extract_strided_slice %100 {offsets = [8, 0, 0], sizes = [1, 4, 8], strides = [1, 1, 1]} : vector<9x4x8xbf16> to vector<1x4x8xbf16>
    %173 = vector.shape_cast %172 : vector<1x4x8xbf16> to vector<4x8xbf16>
    %cst_167 = arith.constant dense<0.000000e+00> : vector<128x8xf32>
    %174 = tpu.matmul %170, %173, %cst_167 {dimension_numbers = #tpu.dot_dimension_numbers<[1], [0], [0], [1], [0, 0, 1, 1], [], []>} : vector<128x4xbf16>, vector<4x8xbf16>, vector<128x8xf32> -> vector<128x8xf32>
    %175 = arith.addf %171, %174 : vector<128x8xf32>
    %c0_168 = arith.constant 0 : index
    %c0_169 = arith.constant 0 : index
    %176 = vector.load %arg9[%c0_168, %c0_169] : memref<128x8xf32, #tpu.memory_space<vmem>>, vector<128x8xf32>
    tpu.vector_store %arg9[%c0_168, %c0_169], %175 {strides = array<i32>} : memref<128x8xf32, #tpu.memory_space<vmem>>, vector<128x8xf32>,
    %c0_170 = arith.constant 0 : index
    %c0_171 = arith.constant 0 : index
    %177 = vector.load %arg9[%c0_170, %c0_171] : memref<128x8xf32, #tpu.memory_space<vmem>>, vector<128x8xf32>
    %cst_172 = arith.constant 0.000000e+00 : f32
    %178 = vector.broadcast %cst_172 : f32 to vector<128x8xf32>
    %179 = arith.maximumf %177, %178 : vector<128x8xf32>
    %180 = arith.truncf %179 : vector<128x8xf32> to vector<128x8xbf16>
    %c0_173 = arith.constant 0 : index
    %c0_174 = arith.constant 0 : index
    %181 = vector.load %arg10[%c0_173, %c0_174] : memref<128x8xf32, #tpu.memory_space<vmem>>, vector<128x8xf32>
    %cst_175 = arith.constant dense<0.000000e+00> : vector<128x8xf32>
    %182 = tpu.matmul %180, %99, %cst_175 {dimension_numbers = #tpu.dot_dimension_numbers<[1], [0], [0], [1], [0, 0, 1, 1], [], []>} : vector<128x8xbf16>, vector<8x8xbf16>, vector<128x8xf32> -> vector<128x8xf32>
    %183 = arith.addf %181, %182 : vector<128x8xf32>
    %c0_176 = arith.constant 0 : index
    %c0_177 = arith.constant 0 : index
    %184 = vector.load %arg10[%c0_176, %c0_177] : memref<128x8xf32, #tpu.memory_space<vmem>>, vector<128x8xf32>
    tpu.vector_store %arg10[%c0_176, %c0_177], %183 {strides = array<i32>} : memref<128x8xf32, #tpu.memory_space<vmem>>, vector<128x8xf32>,
    %c2 = arith.constant 2 : index
    %c0_178 = arith.constant 0 : index
    %c0_179 = arith.constant 0 : index
    %185 = vector.load %arg7[%c2, %c0_178, %c0_179] : memref<3x8x8xbf16, #tpu.memory_space<vmem>>, vector<1x8x8xbf16>
    %186 = vector.shape_cast %185 : vector<1x8x8xbf16> to vector<8x8xbf16>
    %c0_180 = arith.constant 0 : index
    %c0_181 = arith.constant 0 : index
    %c0_182 = arith.constant 0 : index
    %187 = vector.load %arg5[%c0_180, %c0_181, %c0_182] : memref<9x4x8xbf16, #tpu.memory_space<vmem>>, vector<9x4x8xbf16>
    %188 = vector.extract_strided_slice %187 {offsets = [4, 0, 0], sizes = [1, 4, 8], strides = [1, 1, 1]} : vector<9x4x8xbf16> to vector<1x4x8xbf16>
    %189 = vector.shape_cast %188 : vector<1x4x8xbf16> to vector<4x8xbf16>
    %cst_183 = arith.constant dense<0.000000e+00> : vector<128x8xf32>
    %190 = tpu.matmul %2, %189, %cst_183 {dimension_numbers = #tpu.dot_dimension_numbers<[1], [0], [0], [1], [0, 0, 1, 1], [], []>} : vector<128x4xbf16>, vector<4x8xbf16>, vector<128x8xf32> -> vector<128x8xf32>
    %c0_184 = arith.constant 0 : index
    %c0_185 = arith.constant 0 : index
    %191 = vector.load %arg9[%c0_184, %c0_185] : memref<128x8xf32, #tpu.memory_space<vmem>>, vector<128x8xf32>
    tpu.vector_store %arg9[%c0_184, %c0_185], %190 {strides = array<i32>} : memref<128x8xf32, #tpu.memory_space<vmem>>, vector<128x8xf32>,
    %c0_186 = arith.constant 0 : index
    %c0_187 = arith.constant 0 : index
    %c14 = arith.constant 14 : index
    %c0_188 = arith.constant 0 : index
    %192 = vector.load %arg1[%c0_186, %c0_187, %c14, %c0_188] : memref<1x44x66x4xbf16, #tpu.memory_space<vmem>>, vector<1x8x16x4xbf16>
    %193 = vector.shape_cast %192 : vector<1x8x16x4xbf16> to vector<8x16x4xbf16>
    %194 = vector.shape_cast %193 : vector<8x16x4xbf16> to vector<128x4xbf16>
    %c0_189 = arith.constant 0 : index
    %c0_190 = arith.constant 0 : index
    %195 = vector.load %arg9[%c0_189, %c0_190] : memref<128x8xf32, #tpu.memory_space<vmem>>, vector<128x8xf32>
    %196 = vector.extract_strided_slice %187 {offsets = [0, 0, 0], sizes = [1, 4, 8], strides = [1, 1, 1]} : vector<9x4x8xbf16> to vector<1x4x8xbf16>
    %197 = vector.shape_cast %196 : vector<1x4x8xbf16> to vector<4x8xbf16>
    %cst_191 = arith.constant dense<0.000000e+00> : vector<128x8xf32>
    %198 = tpu.matmul %194, %197, %cst_191 {dimension_numbers = #tpu.dot_dimension_numbers<[1], [0], [0], [1], [0, 0, 1, 1], [], []>} : vector<128x4xbf16>, vector<4x8xbf16>, vector<128x8xf32> -> vector<128x8xf32>
    %199 = arith.addf %195, %198 : vector<128x8xf32>
    %c0_192 = arith.constant 0 : index
    %c0_193 = arith.constant 0 : index
    %200 = vector.load %arg9[%c0_192, %c0_193] : memref<128x8xf32, #tpu.memory_space<vmem>>, vector<128x8xf32>
    tpu.vector_store %arg9[%c0_192, %c0_193], %199 {strides = array<i32>} : memref<128x8xf32, #tpu.memory_space<vmem>>, vector<128x8xf32>,
    %c0_194 = arith.constant 0 : index
    %c0_195 = arith.constant 0 : index
    %c32_196 = arith.constant 32 : index
    %c0_197 = arith.constant 0 : index
    %201 = vector.load %arg1[%c0_194, %c0_195, %c32_196, %c0_197] : memref<1x44x66x4xbf16, #tpu.memory_space<vmem>>, vector<1x8x16x4xbf16>
    %202 = vector.shape_cast %201 : vector<1x8x16x4xbf16> to vector<8x16x4xbf16>
    %203 = vector.shape_cast %202 : vector<8x16x4xbf16> to vector<128x4xbf16>
    %c0_198 = arith.constant 0 : index
    %c0_199 = arith.constant 0 : index
    %204 = vector.load %arg9[%c0_198, %c0_199] : memref<128x8xf32, #tpu.memory_space<vmem>>, vector<128x8xf32>
    %205 = vector.extract_strided_slice %187 {offsets = [1, 0, 0], sizes = [1, 4, 8], strides = [1, 1, 1]} : vector<9x4x8xbf16> to vector<1x4x8xbf16>
    %206 = vector.shape_cast %205 : vector<1x4x8xbf16> to vector<4x8xbf16>
    %cst_200 = arith.constant dense<0.000000e+00> : vector<128x8xf32>
    %207 = tpu.matmul %203, %206, %cst_200 {dimension_numbers = #tpu.dot_dimension_numbers<[1], [0], [0], [1], [0, 0, 1, 1], [], []>} : vector<128x4xbf16>, vector<4x8xbf16>, vector<128x8xf32> -> vector<128x8xf32>
    %208 = arith.addf %204, %207 : vector<128x8xf32>
    %c0_201 = arith.constant 0 : index
    %c0_202 = arith.constant 0 : index
    %209 = vector.load %arg9[%c0_201, %c0_202] : memref<128x8xf32, #tpu.memory_space<vmem>>, vector<128x8xf32>
    tpu.vector_store %arg9[%c0_201, %c0_202], %208 {strides = array<i32>} : memref<128x8xf32, #tpu.memory_space<vmem>>, vector<128x8xf32>,
    %c0_203 = arith.constant 0 : index
    %c0_204 = arith.constant 0 : index
    %c50 = arith.constant 50 : index
    %c0_205 = arith.constant 0 : index
    %210 = vector.load %arg1[%c0_203, %c0_204, %c50, %c0_205] : memref<1x44x66x4xbf16, #tpu.memory_space<vmem>>, vector<1x8x16x4xbf16>
    %211 = vector.shape_cast %210 : vector<1x8x16x4xbf16> to vector<8x16x4xbf16>
    %212 = vector.shape_cast %211 : vector<8x16x4xbf16> to vector<128x4xbf16>
    %c0_206 = arith.constant 0 : index
    %c0_207 = arith.constant 0 : index
    %213 = vector.load %arg9[%c0_206, %c0_207] : memref<128x8xf32, #tpu.memory_space<vmem>>, vector<128x8xf32>
    %214 = vector.extract_strided_slice %187 {offsets = [2, 0, 0], sizes = [1, 4, 8], strides = [1, 1, 1]} : vector<9x4x8xbf16> to vector<1x4x8xbf16>
    %215 = vector.shape_cast %214 : vector<1x4x8xbf16> to vector<4x8xbf16>
    %cst_208 = arith.constant dense<0.000000e+00> : vector<128x8xf32>
    %216 = tpu.matmul %212, %215, %cst_208 {dimension_numbers = #tpu.dot_dimension_numbers<[1], [0], [0], [1], [0, 0, 1, 1], [], []>} : vector<128x4xbf16>, vector<4x8xbf16>, vector<128x8xf32> -> vector<128x8xf32>
    %217 = arith.addf %213, %216 : vector<128x8xf32>
    %c0_209 = arith.constant 0 : index
    %c0_210 = arith.constant 0 : index
    %218 = vector.load %arg9[%c0_209, %c0_210] : memref<128x8xf32, #tpu.memory_space<vmem>>, vector<128x8xf32>
    tpu.vector_store %arg9[%c0_209, %c0_210], %217 {strides = array<i32>} : memref<128x8xf32, #tpu.memory_space<vmem>>, vector<128x8xf32>,
    %c0_211 = arith.constant 0 : index
    %c18_212 = arith.constant 18 : index
    %c14_213 = arith.constant 14 : index
    %c0_214 = arith.constant 0 : index
    %219 = vector.load %arg1[%c0_211, %c18_212, %c14_213, %c0_214] : memref<1x44x66x4xbf16, #tpu.memory_space<vmem>>, vector<1x8x16x4xbf16>
    %220 = vector.shape_cast %219 : vector<1x8x16x4xbf16> to vector<8x16x4xbf16>
    %221 = vector.shape_cast %220 : vector<8x16x4xbf16> to vector<128x4xbf16>
    %c0_215 = arith.constant 0 : index
    %c0_216 = arith.constant 0 : index
    %222 = vector.load %arg9[%c0_215, %c0_216] : memref<128x8xf32, #tpu.memory_space<vmem>>, vector<128x8xf32>
    %223 = vector.extract_strided_slice %187 {offsets = [3, 0, 0], sizes = [1, 4, 8], strides = [1, 1, 1]} : vector<9x4x8xbf16> to vector<1x4x8xbf16>
    %224 = vector.shape_cast %223 : vector<1x4x8xbf16> to vector<4x8xbf16>
    %cst_217 = arith.constant dense<0.000000e+00> : vector<128x8xf32>
    %225 = tpu.matmul %221, %224, %cst_217 {dimension_numbers = #tpu.dot_dimension_numbers<[1], [0], [0], [1], [0, 0, 1, 1], [], []>} : vector<128x4xbf16>, vector<4x8xbf16>, vector<128x8xf32> -> vector<128x8xf32>
    %226 = arith.addf %222, %225 : vector<128x8xf32>
    %c0_218 = arith.constant 0 : index
    %c0_219 = arith.constant 0 : index
    %227 = vector.load %arg9[%c0_218, %c0_219] : memref<128x8xf32, #tpu.memory_space<vmem>>, vector<128x8xf32>
    tpu.vector_store %arg9[%c0_218, %c0_219], %226 {strides = array<i32>} : memref<128x8xf32, #tpu.memory_space<vmem>>, vector<128x8xf32>,
    %c0_220 = arith.constant 0 : index
    %c18_221 = arith.constant 18 : index
    %c50_222 = arith.constant 50 : index
    %c0_223 = arith.constant 0 : index
    %228 = vector.load %arg1[%c0_220, %c18_221, %c50_222, %c0_223] : memref<1x44x66x4xbf16, #tpu.memory_space<vmem>>, vector<1x8x16x4xbf16>
    %229 = vector.shape_cast %228 : vector<1x8x16x4xbf16> to vector<8x16x4xbf16>
    %230 = vector.shape_cast %229 : vector<8x16x4xbf16> to vector<128x4xbf16>
    %c0_224 = arith.constant 0 : index
    %c0_225 = arith.constant 0 : index
    %231 = vector.load %arg9[%c0_224, %c0_225] : memref<128x8xf32, #tpu.memory_space<vmem>>, vector<128x8xf32>
    %232 = vector.extract_strided_slice %187 {offsets = [5, 0, 0], sizes = [1, 4, 8], strides = [1, 1, 1]} : vector<9x4x8xbf16> to vector<1x4x8xbf16>
    %233 = vector.shape_cast %232 : vector<1x4x8xbf16> to vector<4x8xbf16>
    %cst_226 = arith.constant dense<0.000000e+00> : vector<128x8xf32>
    %234 = tpu.matmul %230, %233, %cst_226 {dimension_numbers = #tpu.dot_dimension_numbers<[1], [0], [0], [1], [0, 0, 1, 1], [], []>} : vector<128x4xbf16>, vector<4x8xbf16>, vector<128x8xf32> -> vector<128x8xf32>
    %235 = arith.addf %231, %234 : vector<128x8xf32>
    %c0_227 = arith.constant 0 : index
    %c0_228 = arith.constant 0 : index
    %236 = vector.load %arg9[%c0_227, %c0_228] : memref<128x8xf32, #tpu.memory_space<vmem>>, vector<128x8xf32>
    tpu.vector_store %arg9[%c0_227, %c0_228], %235 {strides = array<i32>} : memref<128x8xf32, #tpu.memory_space<vmem>>, vector<128x8xf32>,
    %c0_229 = arith.constant 0 : index
    %c36 = arith.constant 36 : index
    %c14_230 = arith.constant 14 : index
    %c0_231 = arith.constant 0 : index
    %237 = vector.load %arg1[%c0_229, %c36, %c14_230, %c0_231] : memref<1x44x66x4xbf16, #tpu.memory_space<vmem>>, vector<1x8x16x4xbf16>
    %238 = vector.shape_cast %237 : vector<1x8x16x4xbf16> to vector<8x16x4xbf16>
    %239 = vector.shape_cast %238 : vector<8x16x4xbf16> to vector<128x4xbf16>
    %c0_232 = arith.constant 0 : index
    %c0_233 = arith.constant 0 : index
    %240 = vector.load %arg9[%c0_232, %c0_233] : memref<128x8xf32, #tpu.memory_space<vmem>>, vector<128x8xf32>
    %241 = vector.extract_strided_slice %187 {offsets = [6, 0, 0], sizes = [1, 4, 8], strides = [1, 1, 1]} : vector<9x4x8xbf16> to vector<1x4x8xbf16>
    %242 = vector.shape_cast %241 : vector<1x4x8xbf16> to vector<4x8xbf16>
    %cst_234 = arith.constant dense<0.000000e+00> : vector<128x8xf32>
    %243 = tpu.matmul %239, %242, %cst_234 {dimension_numbers = #tpu.dot_dimension_numbers<[1], [0], [0], [1], [0, 0, 1, 1], [], []>} : vector<128x4xbf16>, vector<4x8xbf16>, vector<128x8xf32> -> vector<128x8xf32>
    %244 = arith.addf %240, %243 : vector<128x8xf32>
    %c0_235 = arith.constant 0 : index
    %c0_236 = arith.constant 0 : index
    %245 = vector.load %arg9[%c0_235, %c0_236] : memref<128x8xf32, #tpu.memory_space<vmem>>, vector<128x8xf32>
    tpu.vector_store %arg9[%c0_235, %c0_236], %244 {strides = array<i32>} : memref<128x8xf32, #tpu.memory_space<vmem>>, vector<128x8xf32>,
    %c0_237 = arith.constant 0 : index
    %c36_238 = arith.constant 36 : index
    %c32_239 = arith.constant 32 : index
    %c0_240 = arith.constant 0 : index
    %246 = vector.load %arg1[%c0_237, %c36_238, %c32_239, %c0_240] : memref<1x44x66x4xbf16, #tpu.memory_space<vmem>>, vector<1x8x16x4xbf16>
    %247 = vector.shape_cast %246 : vector<1x8x16x4xbf16> to vector<8x16x4xbf16>
    %248 = vector.shape_cast %247 : vector<8x16x4xbf16> to vector<128x4xbf16>
    %c0_241 = arith.constant 0 : index
    %c0_242 = arith.constant 0 : index
    %249 = vector.load %arg9[%c0_241, %c0_242] : memref<128x8xf32, #tpu.memory_space<vmem>>, vector<128x8xf32>
    %250 = vector.extract_strided_slice %187 {offsets = [7, 0, 0], sizes = [1, 4, 8], strides = [1, 1, 1]} : vector<9x4x8xbf16> to vector<1x4x8xbf16>
    %251 = vector.shape_cast %250 : vector<1x4x8xbf16> to vector<4x8xbf16>
    %cst_243 = arith.constant dense<0.000000e+00> : vector<128x8xf32>
    %252 = tpu.matmul %248, %251, %cst_243 {dimension_numbers = #tpu.dot_dimension_numbers<[1], [0], [0], [1], [0, 0, 1, 1], [], []>} : vector<128x4xbf16>, vector<4x8xbf16>, vector<128x8xf32> -> vector<128x8xf32>
    %253 = arith.addf %249, %252 : vector<128x8xf32>
    %c0_244 = arith.constant 0 : index
    %c0_245 = arith.constant 0 : index
    %254 = vector.load %arg9[%c0_244, %c0_245] : memref<128x8xf32, #tpu.memory_space<vmem>>, vector<128x8xf32>
    tpu.vector_store %arg9[%c0_244, %c0_245], %253 {strides = array<i32>} : memref<128x8xf32, #tpu.memory_space<vmem>>, vector<128x8xf32>,
    %c0_246 = arith.constant 0 : index
    %c36_247 = arith.constant 36 : index
    %c50_248 = arith.constant 50 : index
    %c0_249 = arith.constant 0 : index
    %255 = vector.load %arg1[%c0_246, %c36_247, %c50_248, %c0_249] : memref<1x44x66x4xbf16, #tpu.memory_space<vmem>>, vector<1x8x16x4xbf16>
    %256 = vector.shape_cast %255 : vector<1x8x16x4xbf16> to vector<8x16x4xbf16>
    %257 = vector.shape_cast %256 : vector<8x16x4xbf16> to vector<128x4xbf16>
    %c0_250 = arith.constant 0 : index
    %c0_251 = arith.constant 0 : index
    %258 = vector.load %arg9[%c0_250, %c0_251] : memref<128x8xf32, #tpu.memory_space<vmem>>, vector<128x8xf32>
    %259 = vector.extract_strided_slice %187 {offsets = [8, 0, 0], sizes = [1, 4, 8], strides = [1, 1, 1]} : vector<9x4x8xbf16> to vector<1x4x8xbf16>
    %260 = vector.shape_cast %259 : vector<1x4x8xbf16> to vector<4x8xbf16>
    %cst_252 = arith.constant dense<0.000000e+00> : vector<128x8xf32>
    %261 = tpu.matmul %257, %260, %cst_252 {dimension_numbers = #tpu.dot_dimension_numbers<[1], [0], [0], [1], [0, 0, 1, 1], [], []>} : vector<128x4xbf16>, vector<4x8xbf16>, vector<128x8xf32> -> vector<128x8xf32>
    %262 = arith.addf %258, %261 : vector<128x8xf32>
    %c0_253 = arith.constant 0 : index
    %c0_254 = arith.constant 0 : index
    %263 = vector.load %arg9[%c0_253, %c0_254] : memref<128x8xf32, #tpu.memory_space<vmem>>, vector<128x8xf32>
    tpu.vector_store %arg9[%c0_253, %c0_254], %262 {strides = array<i32>} : memref<128x8xf32, #tpu.memory_space<vmem>>, vector<128x8xf32>,
    %c0_255 = arith.constant 0 : index
    %c0_256 = arith.constant 0 : index
    %264 = vector.load %arg9[%c0_255, %c0_256] : memref<128x8xf32, #tpu.memory_space<vmem>>, vector<128x8xf32>
    %cst_257 = arith.constant 0.000000e+00 : f32
    %265 = vector.broadcast %cst_257 : f32 to vector<128x8xf32>
    %266 = arith.maximumf %264, %265 : vector<128x8xf32>
    %267 = arith.truncf %266 : vector<128x8xf32> to vector<128x8xbf16>
    %c0_258 = arith.constant 0 : index
    %c0_259 = arith.constant 0 : index
    %268 = vector.load %arg10[%c0_258, %c0_259] : memref<128x8xf32, #tpu.memory_space<vmem>>, vector<128x8xf32>
    %cst_260 = arith.constant dense<0.000000e+00> : vector<128x8xf32>
    %269 = tpu.matmul %267, %186, %cst_260 {dimension_numbers = #tpu.dot_dimension_numbers<[1], [0], [0], [1], [0, 0, 1, 1], [], []>} : vector<128x8xbf16>, vector<8x8xbf16>, vector<128x8xf32> -> vector<128x8xf32>
    %270 = arith.addf %268, %269 : vector<128x8xf32>
    %c0_261 = arith.constant 0 : index
    %c0_262 = arith.constant 0 : index
    %271 = vector.load %arg10[%c0_261, %c0_262] : memref<128x8xf32, #tpu.memory_space<vmem>>, vector<128x8xf32>
    tpu.vector_store %arg10[%c0_261, %c0_262], %270 {strides = array<i32>} : memref<128x8xf32, #tpu.memory_space<vmem>>, vector<128x8xf32>,
    %c0_263 = arith.constant 0 : index
    %c0_264 = arith.constant 0 : index
    %272 = vector.load %arg10[%c0_263, %c0_264] : memref<128x8xf32, #tpu.memory_space<vmem>>, vector<128x8xf32>
    %cst_265 = arith.constant 0.000000e+00 : f32
    %273 = vector.broadcast %cst_265 : f32 to vector<128x8xf32>
    %274 = arith.maximumf %272, %273 : vector<128x8xf32>
    %275 = vector.shape_cast %274 : vector<128x8xf32> to vector<8x16x8xf32>
    %c0_266 = arith.constant 0 : index
    %c0_267 = arith.constant 0 : index
    %c0_268 = arith.constant 0 : index
    %c0_269 = arith.constant 0 : index
    %276 = vector.load %arg8[%c0_266, %c0_267, %c0_268, %c0_269] : memref<1x8x16x8xf32, #tpu.memory_space<vmem>>, vector<1x8x16x8xf32>
    %277 = vector.shape_cast %276 : vector<1x8x16x8xf32> to vector<8x16x8xf32>
    %278 = vector.shape_cast %275 : vector<8x16x8xf32> to vector<1x8x16x8xf32>
    tpu.vector_store %arg8[%c0_266, %c0_267, %c0_268, %c0_269], %278 {strides = array<i32>} : memref<1x8x16x8xf32, #tpu.memory_space<vmem>>, vector<1x8x16x8xf32>,
    return
  }
  func.func @transform_0(%arg0: i32) -> (i32, i32, i32, i32) {
    %c0_i32 = arith.constant 0 : i32
    %c0_i32_0 = arith.constant 0 : i32
    %c0_i32_1 = arith.constant 0 : i32
    %c0_i32_2 = arith.constant 0 : i32
    return %arg0, %c0_i32, %c0_i32_0, %c0_i32_1 : i32, i32, i32, i32
  }
  func.func @transform_1(%arg0: i32) -> (i32, i32) {
    %c0_i32 = arith.constant 0 : i32
    %c0_i32_0 = arith.constant 0 : i32
    %c0_i32_1 = arith.constant 0 : i32
    return %c0_i32, %c0_i32_0 : i32, i32
  }
  func.func @transform_2(%arg0: i32) -> (i32, i32, i32) {
    %c0_i32 = arith.constant 0 : i32
    %c0_i32_0 = arith.constant 0 : i32
    %c0_i32_1 = arith.constant 0 : i32
    %c0_i32_2 = arith.constant 0 : i32
    return %c0_i32, %c0_i32_0, %c0_i32_1 : i32, i32, i32
  }
  func.func @transform_3(%arg0: i32) -> (i32, i32, i32) {
    %c0_i32 = arith.constant 0 : i32
    %c0_i32_0 = arith.constant 0 : i32
    %c0_i32_1 = arith.constant 0 : i32
    %c0_i32_2 = arith.constant 0 : i32
    return %c0_i32, %c0_i32_0, %c0_i32_1 : i32, i32, i32
  }
  func.func @transform_4(%arg0: i32) -> (i32, i32, i32) {
    %c0_i32 = arith.constant 0 : i32
    %c0_i32_0 = arith.constant 0 : i32
    %c0_i32_1 = arith.constant 0 : i32
    %c0_i32_2 = arith.constant 0 : i32
    return %c0_i32, %c0_i32_0, %c0_i32_1 : i32, i32, i32
  }
  func.func @transform_5(%arg0: i32) -> (i32, i32) {
    %c0_i32 = arith.constant 0 : i32
    %c0_i32_0 = arith.constant 0 : i32
    %c0_i32_1 = arith.constant 0 : i32
    return %c0_i32, %c0_i32_0 : i32, i32
  }
  func.func @transform_6(%arg0: i32) -> (i32, i32, i32) {
    %c0_i32 = arith.constant 0 : i32
    %c0_i32_0 = arith.constant 0 : i32
    %c0_i32_1 = arith.constant 0 : i32
    %c0_i32_2 = arith.constant 0 : i32
    return %c0_i32, %c0_i32_0, %c0_i32_1 : i32, i32, i32
  }
  func.func @transform_7(%arg0: i32) -> (i32, i32, i32, i32) {
    %c0_i32 = arith.constant 0 : i32
    %c0_i32_0 = arith.constant 0 : i32
    %c0_i32_1 = arith.constant 0 : i32
    %c0_i32_2 = arith.constant 0 : i32
    return %arg0, %c0_i32, %c0_i32_0, %c0_i32_1 : i32, i32, i32, i32
  }
}

</mosaic_0001>

<bundles_post_ra>
// kernel: aspp_forward.1
= control target key start
LH: loop header
LB: loop body
LE: loop exit
PB: predicated region body
PF: predicated region fallthrough
CT: control target
= control target key end

     0   :  { %s10658_s24 = smov 0   ;;  %s13409_s0 = inlined_call_operand.vmem [shape: bf16[4,44,66,4], index: 0, kind: input, shape index: {}]   ;;  %s13410_s1 = inlined_call_operand.vmem [shape: bf16[4,16], index: 1, kind: input, shape index: {}]   ;;  %s13411_s2 = inlined_call_operand.vmem [shape: bf16[9,4,8], index: 2, kind: input, shape index: {}]   ;;  %s13412_s3 = inlined_call_operand.vmem [shape: bf16[9,4,8], index: 3, kind: input, shape index: {}]   ;;  %s13413_s4 = inlined_call_operand.vmem [shape: bf16[9,4,8], index: 4, kind: input, shape index: {}]   ;;  %s13414_s5 = inlined_call_operand.vmem [shape: bf16[16,8], index: 5, kind: input, shape index: {}]   ;;  %s13415_s6 = inlined_call_operand.vmem [shape: bf16[3,8,8], index: 6, kind: input, shape index: {}]   ;;  %s13416_s7 = inlined_call_operand.vmem [shape: f32[4,8,16,8], index: 7, kind: output, shape index: {}]  }
   0x1 LB: > { %s8537_s25 = sadd.s32 4294967295, %s10616_s24   ;;  %p8541_p0 = scmp.ge.s32.totalorder %s10616_s24, 1  ;;  %s10616_s24 = sphi %s10658_s24, %s17_s24  }
   0x2   : > { %p237_p1 = scmp.lt.s32.totalorder %s10616_s24, 5 }
   0x4   : > { %p238_p2 = pnand %p8541_p0, %p237_p1 }
   0x5   : > { %p269_p3 = scmp.lt.s32.totalorder (!%p238_p2), %s8537_s25, 3 }
   0x6   : > { %241 = sbr.rel (%p238_p2) target bundleno = 1513 (0x5e9), region = 48 }
   0xb   : > { %v297_v0 = vld [vmem:[%s13410_s1] sm:$0x3]  ;;  %vm363_vm0 = vcmask 1041408   ;;  %v640_v2 = vld [vmem:[%s13411_s2 + $0x8] sm:$0x3]  ;;  %s13424_s25 = smov (!%p269_p3, %s8537_s25), 3 }
   0xc   : > { %10495 = vmatprep.subr.msk.bf16.mxu0 %vm363_vm0, %v297_v0  ;;  %v365_v1 = vsel %vm363_vm0, %v297_v0, 0  ;;  %s10526_s30 = smul.u32 1584, %s13424_s25  ;;  %vm338_vm1 = vcmask 31744   ;;  %v646_v5 = vsel %vm363_vm0, %v640_v2, 0  ;;  %v10543_v12 = vld [vmem:[%s13414_s5] sm:$0xff]   ;;  %vm810_vm2 = vcmask 1042432  }
   0xd   : > { %9920 = vmatpush3.bf16.msra.mxu0 %v365_v1  ;;  %9937 = vmatprep.subr.bf16.mxu1 %v10543_v12  ;;  %v10714_v13 = vld [vmem:[%s13411_s2] sm:$0x3]  ;;  %v637_v14 = vld [vmem:[%s13411_s2 + $0x2] sm:$0x3]  ;;  %v639_v18 = vld [vmem:[%s13411_s2 + $0x6] sm:$0x3] }
   0xe   : > { %10496 = vmatprep.subr.msk.bf16.mxu0 %vm363_vm0, %v640_v2  ;;  %s10681_s10 = scalar_lea.vmem %s13409_s0, %s10526_s30  ;;  %9938 = vmatpush3.bf16.msra.mxu1 %v10543_v12  ;;  %v1162_v15 = vsel %vm363_vm0, %v637_v14, 0  ;;  %v1765_v21 = vsel %vm363_vm0, %v639_v18, 0  ;;  %vm811_vm3 = vcmask 1046532   ;;  %v642_v60 = vld [vmem:[%s13411_s2 + $0xc] sm:$0x3]  ;;  %vm496_vm5 = vcmask 130048  }
   0xf   : > { %v10535_v3 = vld [vmem:[%s10681_s10 + $0x298] sm:$0xff]   ;;  %v10537_v6 = vld [vmem:[%s10681_s10 + $0x2e0] sm:$0xff]   ;;  %v10539_v8 = vld [vmem:[%s10681_s10 + $0x328] sm:$0xff]   ;;  %10497 = vmatprep.subr.msk.bf16.mxu1 %vm363_vm0, %v10714_v13  ;;  %v2366_v0 = vsel %vm363_vm0, %v642_v60, 0  ;;  %vm1341_vm6 = vcmask 1040384   ;;  %vm1342_vm7 = vcmask 1044484  }
  0x10   : > { %v10536_v4 = vld [vmem:[%s10681_s10 + $0x2bc] sm:$0xff]   ;;  %9921 = vmatprep.mubr.msk.bf16.mxu0 %vm338_vm1, %v10535_v3  ;;  %v10538_v7 = vld [vmem:[%s10681_s10 + $0x304] sm:$0xff]   ;;  %v10540_v9 = vld [vmem:[%s10681_s10 + $0x34c] sm:$0xff]   ;;  %vm618_vm9 = vcmask 64512   ;;  %vm3105_vm10 = vcmask 1043456   ;;  %vm3415_vm11 = vcmask 1045508  }
  0x11   : > { %9922 = vmatmul.mubr.msk.bf16.vlgmr.msra.gmra.mxu0 %vm338_vm1, %v10536_v4  ;;  %v10541_v10 = vld [vmem:[%s10681_s10 + $0x370] sm:$0xff]   ;;  %v10544_v16 = vld [vmem:[%s10681_s10 + $0x1c0] sm:$0xff]   ;;  %v10546_v19 = vld [vmem:[%s10681_s10 + $0x208] sm:$0xff]   ;;  %s9630_s14 = sshll.u32 %s13424_s25, 7 }
  0x12   : > { %9925 = vmatprep.mubr.msk.bf16.mxu0 %vm338_vm1, %v10537_v6  ;;  %9956 = vmatpush3.bf16.msra.mxu0 %v646_v5  ;;  %v10542_v11 = vld [vmem:[%s10681_s10 + $0x394] sm:$0xff]   ;;  %v10545_v17 = vld [vmem:[%s10681_s10 + $0x1e4] sm:$0xff]   ;;  %v10547_v20 = vld [vmem:[%s10681_s10 + $0x22c] sm:$0xff]   ;;  %s13360_s17 = scalar_lea.vmem %s13416_s7, %s9630_s14 }
  0x13   : > { %10498 = vmatprep.subr.msk.bf16.mxu0 %vm363_vm0, %v637_v14  ;;  %v10548_v22 = vld [vmem:[%s10681_s10 + $0x250] sm:$0xff]   ;;  %v10550_v24 = vld [vmem:[%s10681_s10 + $0x298] sm:$0xff]   ;;  %v8727_v34 = vld [vmem:[%s10681_s10 + $0x2c0] sm:$0x1] }
  0x14   : > { %v10549_v23 = vld [vmem:[%s10681_s10 + $0x274] sm:$0xff]   ;;  %v10551_v25 = vld [vmem:[%s10681_s10 + $0x2bc] sm:$0xff]   ;;  %vm10750_vm4 = vmor %vm810_vm2, %vm811_vm3  ;;  %v1656_v40 = vrot.slane %v8727_v34, 5 }
  0x15   : > { %v8723_v26 = vld [vmem:[%s10681_s10 + $0x298] sm:$0xf]  ;;  %v8726_v27 = vld [vmem:[%s10681_s10 + $0x2bc] sm:$0xf]  ;;  %v8722_v28 = vld [vmem:[%s10681_s10 + $0x294] sm:$0xe] }
  0x16   : > { %v8724_v29 = vld [vmem:[%s10681_s10 + $0x29c] sm:$0x1]  ;;  %v1646_v30 = vrot.slane %v8723_v26, 5  ;;  %v8746_v31 = vrot.slane %v8722_v28, 9  ;;  %v8725_v33 = vld [vmem:[%s10681_s10 + $0x2b8] sm:$0xe]  ;;  %vm10901_vm8 = vmor %vm1341_vm6, %vm1342_vm7 }
  0x17   : > { %v1649_v32 = vrot.slane %v8724_v29, 5  ;;  %v8747_v37 = vrot.slane %v8725_v33, 9  ;;  %v1653_v38 = vrot.slane %v8726_v27, 5  ;;  %v8729_v46 = vld [vmem:[%s10681_s10 + $0x2e0] sm:$0xf]  ;;  %vm11494_vm12 = vmor %vm363_vm0, %vm3415_vm11 }
  0x18   : > { %v1648_v36 = vrot.slane %v1646_v30, 4  ;;  %v1647_v39 = vsel %vm10750_vm4, %v8746_v31, %v1646_v30  ;;  %v1660_v48 = vrot.slane %v8729_v46, 5  ;;  %v8732_v49 = vld [vmem:[%s10681_s10 + $0x304] sm:$0xf]  ;;  %v8728_v50 = vld [vmem:[%s10681_s10 + $0x2dc] sm:$0xe] }
  0x19   : > { %9926 = vmatmul.mubr.msk.bf16.gmra.mxu0 %vm338_vm1, %v10538_v7  ;;  %v1654_v42 = vsel %vm10750_vm4, %v8747_v37, %v1653_v38  ;;  %v1655_v43 = vrot.slane %v1653_v38, 4  ;;  %v8730_v51 = vld [vmem:[%s10681_s10 + $0x2e4] sm:$0x1]  ;;  %v1667_v52 = vrot.slane %v8732_v49, 5  ;;  %v8748_v53 = vrot.slane %v8728_v50, 9 }
  0x1a   : > { %9929 = vmatprep.mubr.msk.bf16.mxu0 %vm338_vm1, %v10539_v8  ;;  %v1650_v41 = vsel %vm10750_vm4, %v1648_v36, %v1649_v32  ;;  %v1662_v54 = vrot.slane %v1660_v48, 4  ;;  %v1663_v55 = vrot.slane %v8730_v51, 5  ;;  %v8731_v56 = vld [vmem:[%s10681_s10 + $0x300] sm:$0xe]  ;;  %v8733_v57 = vld [vmem:[%s10681_s10 + $0x308] sm:$0x1] }
  0x1b   : > { %v8754_v44 = vcombine.low %v1647_v39, %v1650_v41  ;;  %v1657_v45 = vsel %vm10750_vm4, %v1655_v43, %v1656_v40  ;;  %v8749_v58 = vrot.slane %v8731_v56, 9  ;;  %v1669_v59 = vrot.slane %v1667_v52, 4  ;;  %v8735_v5 = vld [vmem:[%s10681_s10 + $0x328] sm:$0xf]  ;;  %v8741_v26 = vld [vmem:[%s10681_s10 + $0x370] sm:$0xf] }
  0x1c   : > { %v8755_v47 = vcombine.low %v1654_v42, %v1657_v45  ;;  %v1661_v61 = vsel %vm10750_vm4, %v8748_v53, %v1660_v48  ;;  %v1664_v62 = vsel %vm10750_vm4, %v1662_v54, %v1663_v55  ;;  %v1670_v63 = vrot.slane %v8733_v57, 5  ;;  %v8744_v28 = vld [vmem:[%s10681_s10 + $0x394] sm:$0xf]  ;;  %v8740_v29 = vld [vmem:[%s10681_s10 + $0x36c] sm:$0xe] }
  0x1d   : > { %v8756_v1 = vcombine.low %v1661_v61, %v1664_v62  ;;  %v1668_v2 = vsel %vm10750_vm4, %v8749_v58, %v1667_v52  ;;  %v1688_v27 = vrot.slane %v8741_v26, 5  ;;  %v8742_v30 = vld [vmem:[%s10681_s10 + $0x374] sm:$0x1]  ;;  %v1695_v31 = vrot.slane %v8744_v28, 5  ;;  %v8743_v34 = vld [vmem:[%s10681_s10 + $0x390] sm:$0xe] }
  0x1e   : > { %v8752_v32 = vrot.slane %v8740_v29, 9  ;;  %v8745_v36 = vld [vmem:[%s10681_s10 + $0x398] sm:$0x1]  ;;  %v1691_v37 = vrot.slane %v8742_v30, 5  ;;  %v8753_v38 = vrot.slane %v8743_v34, 9 }
  0x1f   : > { %v1690_v33 = vrot.slane %v1688_v27, 4  ;;  %v1697_v39 = vrot.slane %v1695_v31, 4  ;;  %v1698_v41 = vrot.slane %v8745_v36, 5  ;;  %v8822_v49 = vld [vmem:[%s10681_s10 + $0x394] sm:$0xf] }
  0x20   : > { %v1689_v40 = vsel %vm10750_vm4, %v8752_v32, %v1688_v27  ;;  %v1696_v43 = vsel %vm10750_vm4, %v8753_v38, %v1695_v31  ;;  %v8818_v50 = vld [vmem:[%s10681_s10 + $0x36c] sm:$0xe]  ;;  %v8820_v51 = vld [vmem:[%s10681_s10 + $0x374] sm:$0x1]  ;;  %v2254_v52 = vrot.slane %v8822_v49, 5 }
  0x21   : > { %9930 = vmatmul.mubr.msk.bf16.gmra.mxu0 %vm338_vm1, %v10540_v9  ;;  %v1692_v42 = vsel %vm10750_vm4, %v1690_v33, %v1691_v37  ;;  %v1699_v45 = vsel %vm10750_vm4, %v1697_v39, %v1698_v41  ;;  %v8842_v53 = vrot.slane %v8818_v50, 9  ;;  %v2250_v55 = vrot.slane %v8820_v51, 5  ;;  %v8821_v56 = vld [vmem:[%s10681_s10 + $0x390] sm:$0xe]  ;;  %v8823_v57 = vld [vmem:[%s10681_s10 + $0x398] sm:$0x1] }
  0x22   : > { %9933 = vmatprep.mubr.msk.bf16.mxu0 %vm338_vm1, %v10541_v10  ;;  %v8761_v46 = vcombine.low %v1696_v43, %v1699_v45  ;;  %v8843_v58 = vrot.slane %v8821_v56, 9  ;;  %v8831_v26 = vld [vmem:[%s10681_s10 + $0x400] sm:$0xf]  ;;  %v8834_v28 = vld [vmem:[%s10681_s10 + $0x424] sm:$0xf] }
  0x23   : > { %v2275_v27 = vrot.slane %v8831_v26, 5  ;;  %v8830_v29 = vld [vmem:[%s10681_s10 + $0x3fc] sm:$0xe]  ;;  %v8832_v30 = vld [vmem:[%s10681_s10 + $0x404] sm:$0x1]  ;;  %v2282_v31 = vrot.slane %v8834_v28, 5 }
  0x24   : > { %v8846_v32 = vrot.slane %v8830_v29, 9  ;;  %v2278_v34 = vrot.slane %v8832_v30, 5  ;;  %v8833_v36 = vld [vmem:[%s10681_s10 + $0x420] sm:$0xe]  ;;  %v8835_v37 = vld [vmem:[%s10681_s10 + $0x428] sm:$0x1] }
  0x25   : > { %v2277_v33 = vrot.slane %v2275_v27, 4  ;;  %v8847_v38 = vrot.slane %v8833_v36, 9  ;;  %v2284_v39 = vrot.slane %v2282_v31, 4  ;;  %v8840_v50 = vld [vmem:[%s10681_s10 + $0x46c] sm:$0xf] }
  0x26   : > { %v8836_v51 = vld [vmem:[%s10681_s10 + $0x444] sm:$0xe]  ;;  %v8901_v26 = vld [vmem:[%s10681_s10 + $0x394] sm:$0x8]  ;;  %v8903_v28 = vld [vmem:[%s10681_s10 + $0x39c] sm:$0x7] }
  0x27   : > { %v2279_v41 = vsel %vm10750_vm4, %v2277_v33, %v2278_v34  ;;  %v8923_v29 = vrot.slane %v8901_v26, 11  ;;  %v2785_v34 = vrot.slane %v8903_v28, 7  ;;  %v10957_v28 = vld [vmem:[%s10681_s10 + $0x1e8] sm:$0x1] }
  0x29   : > { %9934 = vmatmul.mubr.msk.bf16.gmra.mxu0 %vm338_vm1, %v10542_v11 }
  0x2a   : > { %9957 = vmatprep.mubr.msk.bf16.mxu0 %vm338_vm1, %v10535_v3  ;;  %v1671_v3 = vsel %vm10750_vm4, %v1669_v59, %v1670_v63  ;;  %v2256_v59 = vrot.slane %v2254_v52, 4  ;;  %v2255_v63 = vsel %vm10750_vm4, %v8843_v58, %v2254_v52  ;;  %v8838_v52 = vld [vmem:[%s10681_s10 + $0x44c] sm:$0x1]  ;;  %v8841_v58 = vld [vmem:[%s10681_s10 + $0x470] sm:$0x1] }
  0x31   : > { %9958 = vmatmul.mubr.msk.bf16.vlgmr.msra.gmra.mxu0 %vm338_vm1, %v10536_v4  ;;  %v8757_v4 = vcombine.low %v1668_v2, %v1671_v3  ;;  %v8825_v2 = vld [vmem:[%s10681_s10 + $0x3b8] sm:$0xf] }
  0x32   : > { %9961 = vmatprep.mubr.msk.bf16.mxu0 %vm338_vm1, %v10537_v6  ;;  %9992 = vmatpush3.bf16.msra.mxu0 %v1162_v15  ;;  %v1674_v6 = vrot.slane %v8735_v5, 5  ;;  %v8737_v15 = vld [vmem:[%s10681_s10 + $0x348] sm:$0xe]  ;;  %v8828_v5 = vld [vmem:[%s10681_s10 + $0x3dc] sm:$0xf] }
  0x33   : > { %10500 = vmatprep.subr.msk.bf16.mxu0 %vm363_vm0, %v639_v18 }
  0x34   : > { %v1676_v12 = vrot.slane %v1674_v6, 4 }
  0x39   : > { %9962 = vmatmul.mubr.msk.bf16.gmra.mxu0 %vm338_vm1, %v10538_v7  ;;  %v8738_v7 = vld [vmem:[%s10681_s10 + $0x34c] sm:$0xf] }
  0x3a   : > { %9965 = vmatprep.mubr.msk.bf16.mxu0 %vm338_vm1, %v10539_v8  ;;  %v8734_v8 = vld [vmem:[%s10681_s10 + $0x324] sm:$0xe] }
  0x41   : > { %9966 = vmatmul.mubr.msk.bf16.gmra.mxu0 %vm338_vm1, %v10540_v9  ;;  %v8736_v9 = vld [vmem:[%s10681_s10 + $0x32c] sm:$0x1] }
  0x42   : > { %9969 = vmatprep.mubr.msk.bf16.mxu0 %vm338_vm1, %v10541_v10  ;;  %v1681_v10 = vrot.slane %v8738_v7, 5  ;;  %v1677_v14 = vrot.slane %v8736_v9, 5  ;;  %v8826_v7 = vld [vmem:[%s10681_s10 + $0x3bc] sm:$0x1] }
  0x44   : > { %v1683_v18 = vrot.slane %v1681_v10, 4 }
  0x49   : > { %9970 = vmatmul.mubr.msk.bf16.gmra.mxu0 %vm338_vm1, %v10542_v11  ;;  %v8750_v11 = vrot.slane %v8734_v8, 9  ;;  %v2268_v8 = vrot.slane %v8828_v5, 5 }
  0x4a   : > { %9993 = vmatprep.mubr.msk.bf16.mxu0 %vm338_vm1, %v10544_v16  ;;  %v8739_v16 = vld [vmem:[%s10681_s10 + $0x350] sm:$0x1] }
  0x51   : > { %9994 = vmatmul.mubr.msk.bf16.vlgmr.msra.gmra.mxu0 %vm338_vm1, %v10545_v17  ;;  %v8751_v17 = vrot.slane %v8737_v15, 9 }
  0x52   : > { %10028 = vmatpush3.bf16.msra.mxu0 %v1765_v21  ;;  %9997 = vmatprep.mubr.msk.bf16.mxu0 %vm338_vm1, %v10546_v19  ;;  %v1675_v19 = vsel %vm10750_vm4, %v8750_v11, %v1674_v6  ;;  %v1684_v21 = vrot.slane %v8739_v16, 5  ;;  %v8824_v6 = vld [vmem:[%s10681_s10 + $0x3b4] sm:$0xe]  ;;  %v2264_v11 = vrot.slane %v8826_v7, 5  ;;  %v2270_v16 = vrot.slane %v2268_v8, 4 }
  0x53   : > { %10502 = vmatprep.subr.msk.bf16.mxu0 %vm363_vm0, %v642_v60  ;;  %v8844_v9 = vrot.slane %v8824_v6, 9 }
  0x59   : > { %9998 = vmatmul.mubr.msk.bf16.gmra.mxu0 %vm338_vm1, %v10547_v20  ;;  %v1678_v20 = vsel %vm10750_vm4, %v1676_v12, %v1677_v14  ;;  %v8827_v12 = vld [vmem:[%s10681_s10 + $0x3d8] sm:$0xe]  ;;  %v8829_v14 = vld [vmem:[%s10681_s10 + $0x3e0] sm:$0x1] }
  0x5a   : > { %10001 = vmatprep.mubr.msk.bf16.mxu0 %vm338_vm1, %v10548_v22  ;;  %v8758_v22 = vcombine.low %v1675_v19, %v1678_v20  ;;  %v8845_v15 = vrot.slane %v8827_v12, 9  ;;  %v2271_v20 = vrot.slane %v8829_v14, 5 }
  0x61   : > { %10002 = vmatmul.mubr.msk.bf16.gmra.mxu0 %vm338_vm1, %v10549_v23  ;;  %v1682_v23 = vsel %vm10750_vm4, %v8751_v17, %v1681_v10  ;;  %v644_v17 = vld [vmem:[%s13411_s2 + $0x10] sm:$0x3] }
  0x62   : > { %10005 = vmatprep.mubr.msk.bf16.mxu0 %vm338_vm1, %v10550_v24  ;;  %v1685_v24 = vsel %vm10750_vm4, %v1683_v18, %v1684_v21  ;;  %v2894_v21 = vsel %vm363_vm0, %v644_v17, 0 }
  0x69   : > { %10006 = vmatmul.mubr.msk.bf16.gmra.mxu0 %vm338_vm1, %v10551_v25  ;;  %v8759_v25 = vcombine.low %v1682_v23, %v1685_v24  ;;  %v2269_v23 = vsel %vm10750_vm4, %v8845_v15, %v2268_v8  ;;  %v2272_v24 = vsel %vm10750_vm4, %v2270_v16, %v2271_v20  ;;  %v8902_v15 = vld [vmem:[%s10681_s10 + $0x398] sm:$0xf] }
  0x6a   : > { %10029 = vmatprep.mubr.msk.bf16.mxu0 %vm338_vm1, %v8754_v44  ;;  %v8760_v44 = vcombine.low %v1689_v40, %v1692_v42  ;;  %v2276_v40 = vsel %vm10750_vm4, %v8846_v32, %v2275_v27  ;;  %v2285_v42 = vrot.slane %v8835_v37, 5  ;;  %v2782_v20 = vrot.slane %v8902_v15, 7  ;;  %v10897_v27 = vld [vmem:[%s13411_s2 + $0x4] sm:$0x3] }
  0x6b   : > { %v8854_v43 = vcombine.low %v2276_v40, %v2279_v41 }
  0x6c   : > { %v2286_v45 = vsel %vm10750_vm4, %v2284_v39, %v2285_v42  ;;  %v2784_v30 = vrot.slane %v2782_v20, 4  ;;  %v2783_v37 = vsel %vm10901_vm8, %v8923_v29, %v2782_v20  ;;  %v8910_v29 = vld [vmem:[%s10681_s10 + $0x400] sm:$0x8] }
  0x6e   : > { %v2786_v40 = vsel %vm10901_vm8, %v2784_v30, %v2785_v34  ;;  %v8912_v30 = vld [vmem:[%s10681_s10 + $0x408] sm:$0x7]  ;;  %v8926_v34 = vrot.slane %v8910_v29, 11 }
  0x71   : > { %10030 = vmatmul.mubr.msk.bf16.vlgmr.msra.gmra.mxu0 %vm338_vm1, %v8755_v47  ;;  %v8819_v47 = vld [vmem:[%s10681_s10 + $0x370] sm:$0xf] }
  0x72   : > { %10064 = vmatpush3.bf16.msra.mxu0 %v2366_v0  ;;  %10033 = vmatprep.mubr.msk.bf16.mxu0 %vm338_vm1, %v8756_v1  ;;  %v2247_v48 = vrot.slane %v8819_v47, 5  ;;  %v2257_v0 = vrot.slane %v8823_v57, 5  ;;  %v8837_v47 = vld [vmem:[%s10681_s10 + $0x448] sm:$0xf] }
  0x73   : > { %10504 = vmatprep.subr.msk.bf16.mxu0 %vm363_vm0, %v644_v17  ;;  %v2289_v49 = vrot.slane %v8837_v47, 5  ;;  %v8839_v57 = vld [vmem:[%s10681_s10 + $0x468] sm:$0xe]  ;;  %v934_v17 = vsel %vm363_vm0, %v10714_v13, 0  ;;  %v10920_v47 = vld [vmem:[%s10681_s10 + $0x1c0] sm:$0xf] }
  0x74   : > { %v2249_v54 = vrot.slane %v2247_v48, 4  ;;  %v2248_v60 = vsel %vm10750_vm4, %v8842_v53, %v2247_v48  ;;  %v2258_v1 = vsel %vm10750_vm4, %v2256_v59, %v2257_v0  ;;  %v2296_v53 = vrot.slane %v8840_v50, 5 }
  0x75   : > { %v8851_v3 = vcombine.low %v2255_v63, %v2258_v1  ;;  %v2291_v56 = vrot.slane %v2289_v49, 4  ;;  %v2292_v59 = vrot.slane %v8838_v52, 5  ;;  %v2299_v0 = vrot.slane %v8841_v58, 5  ;;  %v8904_v52 = vld [vmem:[%s10681_s10 + $0x3b8] sm:$0x8] }
  0x76   : > { %v2251_v61 = vsel %vm10750_vm4, %v2249_v54, %v2250_v55  ;;  %v8848_v55 = vrot.slane %v8836_v51, 9  ;;  %v2298_v63 = vrot.slane %v2296_v53, 4  ;;  %v10924_v51 = vld [vmem:[%s10681_s10 + $0x1bc] sm:$0xe] }
  0x77   : > { %v8850_v62 = vcombine.low %v2248_v60, %v2251_v61  ;;  %v8849_v60 = vrot.slane %v8839_v57, 9  ;;  %v2293_v1 = vsel %vm10750_vm4, %v2291_v56, %v2292_v59  ;;  %v8924_v57 = vrot.slane %v8904_v52, 11 }
  0x78   : > { %v2300_v6 = vsel %vm10750_vm4, %v2298_v63, %v2299_v0 }
  0x79   : > { %10034 = vmatmul.mubr.msk.bf16.gmra.mxu0 %vm338_vm1, %v8757_v4  ;;  %v2261_v4 = vrot.slane %v8825_v2, 5  ;;  %v2297_v2 = vsel %vm10750_vm4, %v8849_v60, %v2296_v53  ;;  %v8906_v53 = vld [vmem:[%s10681_s10 + $0x3c0] sm:$0x7]  ;;  %v8907_v60 = vld [vmem:[%s10681_s10 + $0x3dc] sm:$0x8] }
  0x7a   : > { %10037 = vmatprep.mubr.msk.bf16.mxu0 %vm338_vm1, %v8758_v22  ;;  %v2792_v59 = vrot.slane %v8906_v53, 7  ;;  %v8925_v63 = vrot.slane %v8907_v60, 11 }
  0x7b   : > { %v2263_v10 = vrot.slane %v2261_v4, 4  ;;  %v2262_v18 = vsel %vm10750_vm4, %v8844_v9, %v2261_v4  ;;  %v8857_v9 = vcombine.low %v2297_v2, %v2300_v6 }
  0x7d   : > { %v2265_v19 = vsel %vm10750_vm4, %v2263_v10, %v2264_v11  ;;  %v8899_v10 = vld [vmem:[%s10681_s10 + $0x374] sm:$0xf] }
  0x7e   : > { %v8852_v22 = vcombine.low %v2262_v18, %v2265_v19  ;;  %v2775_v14 = vrot.slane %v8899_v10, 7  ;;  %v8898_v18 = vld [vmem:[%s10681_s10 + $0x370] sm:$0x8]  ;;  %v8900_v19 = vld [vmem:[%s10681_s10 + $0x378] sm:$0x7]  ;;  %v8618_v10 = vrot.slane %v10924_v51, 9 }
  0x81   : > { %10038 = vmatmul.mubr.msk.bf16.gmra.mxu0 %vm338_vm1, %v8759_v25  ;;  %v8853_v25 = vcombine.low %v2269_v23, %v2272_v24  ;;  %v8922_v23 = vrot.slane %v8898_v18, 11  ;;  %v2777_v24 = vrot.slane %v2775_v14, 4  ;;  %v8911_v18 = vld [vmem:[%s10681_s10 + $0x404] sm:$0xf] }
  0x82   : > { %10041 = vmatprep.mubr.msk.bf16.mxu0 %vm338_vm1, %v8760_v44  ;;  %v2283_v44 = vsel %vm10750_vm4, %v8847_v38, %v2282_v31 }
  0x83   : > { %v2776_v32 = vsel %vm10901_vm8, %v8922_v23, %v2775_v14  ;;  %v2803_v23 = vrot.slane %v8911_v18, 7  ;;  %v8607_v18 = vld [vmem:[%s10681_s10 + $0x250] sm:$0xf] }
  0x89   : > { %10042 = vmatmul.mubr.msk.bf16.gmra.mxu0 %vm338_vm1, %v8761_v46  ;;  %v8855_v46 = vcombine.low %v2283_v44, %v2286_v45  ;;  %v8905_v44 = vld [vmem:[%s10681_s10 + $0x3bc] sm:$0xf] }
  0x8a   : > { %10065 = vmatprep.mubr.msk.bf16.mxu0 %vm338_vm1, %v8850_v62  ;;  %v2290_v62 = vsel %vm10750_vm4, %v8848_v55, %v2289_v49  ;;  %v8908_v49 = vld [vmem:[%s10681_s10 + $0x3e0] sm:$0xf] }
  0x8b   : > { %v8856_v5 = vcombine.low %v2290_v62, %v2293_v1  ;;  %v8909_v62 = vld [vmem:[%s10681_s10 + $0x3e4] sm:$0x7] }
  0x91   : > { %10066 = vmatmul.mubr.msk.bf16.vlgmr.msra.gmra.mxu0 %vm338_vm1, %v8851_v3 }
  0x92   : > { %10100 = vmatpush3.bf16.msra.mxu0 %v2894_v21  ;;  %10069 = vmatprep.mubr.msk.bf16.mxu0 %vm338_vm1, %v8852_v22 }
  0x99   : > { %10070 = vmatmul.mubr.msk.bf16.gmra.mxu0 %vm338_vm1, %v8853_v25  ;;  %v2778_v25 = vrot.slane %v8900_v19, 7 }
  0x9a   : > { %10073 = vmatprep.mubr.msk.bf16.mxu0 %vm338_vm1, %v8854_v43  ;;  %v8931_v43 = vcombine.low %v2783_v37, %v2786_v40  ;;  %v2806_v37 = vrot.slane %v8912_v30, 7  ;;  %v8915_v40 = vld [vmem:[%s10681_s10 + $0x42c] sm:$0x7] }
  0x9b   : > { %v2779_v33 = vsel %vm10901_vm8, %v2777_v24, %v2778_v25  ;;  %v8914_v24 = vld [vmem:[%s10681_s10 + $0x428] sm:$0xf] }
  0x9c   : > { %v8930_v36 = vcombine.low %v2776_v32, %v2779_v33 }
  0xa1   : > { %10074 = vmatmul.mubr.msk.bf16.gmra.mxu0 %vm338_vm1, %v8855_v46 }
  0xa2   : > { %10077 = vmatprep.mubr.msk.bf16.mxu0 %vm338_vm1, %v8856_v5  ;;  %v815_v5 = vrot.slane %v10920_v47, 5  ;;  %v2813_v47 = vrot.slane %v8915_v40, 7 }
  0xa4   : > { %v817_v26 = vrot.slane %v815_v5, 4 }
  0xa9   : > { %10078 = vmatmul.mubr.msk.bf16.gmra.mxu0 %vm338_vm1, %v8857_v9 }
  0xaa   : > { %10101 = vmatprep.mubr.msk.bf16.mxu0 %vm338_vm1, %v8930_v36  ;;  %v2805_v36 = vrot.slane %v2803_v23, 4 }
  0xb1   : > { %10102 = vmatmul.mubr.msk.bf16.vlgmr.msra.gmra.mxu0 %vm338_vm1, %v8931_v43 }
  0xd1   : > { %v9923_v48 = vpop.f32.mrf.mxu0 }
  0xd2   : > { %v466_v11 = vmax.f32 %v9923_v48, 0.0  ;;  %v2789_v48 = vrot.slane %v8905_v44, 7 }
  0xd3   : > { %v401_v54 = vpop.f32.mrf.mxu0 }
  0xd4   : > { %v464_v7 = vmax.f32 %v401_v54, 0.0  ;;  %v2796_v54 = vrot.slane %v8908_v49, 7  ;;  %v2791_v58 = vrot.slane %v2789_v48, 4  ;;  %v2790_v2 = vsel %vm10901_vm8, %v8924_v57, %v2789_v48  ;;  %v8602_v57 = vld [vmem:[%s10681_s10 + $0x20c] sm:$0x1] }
  0xd5   : > { %v9924_v61 = vpop.f32.mrf.mxu0  ;;  %v816_v48 = vsel %vm10750_vm4, %v8618_v10, %v815_v5  ;;  %v8920_v5 = vld [vmem:[%s10681_s10 + $0x470] sm:$0xf] }
  0xd6   : > { %v467_v3 = vmax.f32 %v9924_v61, 0.0  ;;  %v8596_v61 = vld [vmem:[%s10681_s10 + $0x1c4] sm:$0x1]  ;;  %v2798_v0 = vrot.slane %v2796_v54, 4  ;;  %v8918_v10 = vld [vmem:[%s10681_s10 + $0x450] sm:$0x7] }
  0xd7   : > { %v404_v4 = vpop.f32.mrf.mxu0 }
  0xd8   : > { %v465_v8 = vmax.f32 %v404_v4, 0.0  ;;  %v481_v21 = vpack.c.bf16 %v467_v3, %v466_v11  ;;  %v2793_v3 = vsel %vm10901_vm8, %v2791_v58, %v2792_v59  ;;  %v2799_v4 = vrot.slane %v8909_v62, 7 }
  0xd9   : > { %v9927_v12 = vpop.f32.mrf.mxu0  ;;  %v8932_v6 = vcombine.low %v2790_v2, %v2793_v3  ;;  %v818_v11 = vrot.slane %v8596_v61, 5  ;;  %v8604_v3 = vld [vmem:[%s10681_s10 + $0x22c] sm:$0xf] }
  0xda   : > { %v480_v16 = vpack.c.bf16 %v465_v8, %v464_v7  ;;  %v470_v45 = vmax.f32 %v9927_v12, 0.0  ;;  %v2797_v7 = vsel %vm10901_vm8, %v8925_v63, %v2796_v54  ;;  %v2800_v12 = vsel %vm10901_vm8, %v2798_v0, %v2799_v4  ;;  %v8917_v63 = vld [vmem:[%s10681_s10 + $0x44c] sm:$0xf] }
  0xdb   : > { %v417_v22 = vpop.f32.mrf.mxu0  ;;  %10105 = vmatprep.mubr.msk.bf16.mxu0 %vm338_vm1, %v8932_v6  ;;  %v2817_v4 = vrot.slane %v8917_v63, 7 }
  0xdc   : > { %9939 = vmatprep.mubr.msk.bf16.mxu1 %vm496_vm5, %v480_v16  ;;  %v468_v41 = vmax.f32 %v417_v22, 0.0  ;;  %v10945_v16 = vld [vmem:[%s10681_s10 + $0x1e4] sm:$0xf]  ;;  %v10953_v22 = vld [vmem:[%s10681_s10 + $0x208] sm:$0xf] }
  0xdd   : > { %v9928_v31 = vpop.f32.mrf.mxu0  ;;  %9940 = vmatmul.mubr.msk.bf16.vlgmr.msra.gmra.mxu1 %vm496_vm5, %v481_v21  ;;  %v10950_v21 = vld [vmem:[%s10681_s10 + $0x1e0] sm:$0xe]  ;;  %v829_v44 = vrot.slane %v10953_v22, 5 }
  0xde   : > { %9974 = vmatpush3.bf16.msra.mxu1 %v934_v17  ;;  %v471_v38 = vmax.f32 %v9928_v31, 0.0  ;;  %v8933_v17 = vcombine.low %v2797_v7, %v2800_v12  ;;  %v2810_v31 = vrot.slane %v8914_v24, 7  ;;  %v8619_v49 = vrot.slane %v10950_v21, 9 }
  0xdf   : > { %v420_v39 = vpop.f32.mrf.mxu0  ;;  %10499 = vmatprep.subr.msk.bf16.mxu1 %vm363_vm0, %v10897_v27  ;;  %v831_v2 = vrot.slane %v829_v44, 4 }
  0xe0   : > { %v469_v42 = vmax.f32 %v420_v39, 0.0  ;;  %v483_v55 = vpack.c.bf16 %v471_v38, %v470_v45  ;;  %10106 = vmatmul.mubr.msk.bf16.gmra.mxu0 %vm338_vm1, %v8933_v17  ;;  %v8913_v38 = vld [vmem:[%s10681_s10 + $0x424] sm:$0x8]  ;;  %v822_v39 = vrot.slane %v10945_v16, 5  ;;  %v2804_v45 = vsel %vm10901_vm8, %v8926_v34, %v2803_v23  ;;  %v8919_v17 = vld [vmem:[%s10681_s10 + $0x46c] sm:$0x8] }
  0xe1   : > { %v9931_v46 = vpop.f32.mrf.mxu0  ;;  %v2820_v16 = vrot.slane %v8918_v10, 7  ;;  %v8605_v34 = vld [vmem:[%s10681_s10 + $0x230] sm:$0x1] }
  0xe2   : > { %v482_v50 = vpack.c.bf16 %v469_v42, %v468_v41  ;;  %v474_v19 = vmax.f32 %v9931_v46, 0.0  ;;  %v8927_v41 = vrot.slane %v8913_v38, 11  ;;  %v2812_v42 = vrot.slane %v2810_v31, 4  ;;  %v8606_v38 = vld [vmem:[%s10681_s10 + $0x24c] sm:$0xe] }
  0xe3   : > { %v433_v56 = vpop.f32.mrf.mxu0  ;;  %v2807_v46 = vsel %vm10901_vm8, %v2805_v36, %v2806_v37  ;;  %v824_v61 = vrot.slane %v822_v39, 4  ;;  %v823_v22 = vsel %vm10750_vm4, %v8619_v49, %v822_v39  ;;  %v843_v36 = vrot.slane %v8607_v18, 5  ;;  %v8608_v39 = vld [vmem:[%s10681_s10 + $0x254] sm:$0x1]  ;;  %v8674_v18 = vld [vmem:[%s10681_s10 + $0x1c0] sm:$0x8] }
  0xe4   : > { %9943 = vmatprep.mubr.msk.bf16.mxu1 %vm496_vm5, %v482_v50  ;;  %v472_v14 = vmax.f32 %v433_v56, 0.0  ;;  %v8600_v50 = vld [vmem:[%s10681_s10 + $0x204] sm:$0xe]  ;;  %v8934_v51 = vcombine.low %v2804_v45, %v2807_v46  ;;  %v2811_v52 = vsel %vm10901_vm8, %v8927_v41, %v2810_v31  ;;  %v825_v56 = vrot.slane %v10957_v28, 5 }
  0xe5   : > { %v9932_v1 = vpop.f32.mrf.mxu0  ;;  %9944 = vmatmul.mubr.msk.bf16.gmra.mxu1 %vm496_vm5, %v483_v55  ;;  %v819_v55 = vsel %vm10750_vm4, %v817_v26, %v818_v11  ;;  %v2814_v58 = vsel %vm10901_vm8, %v2812_v42, %v2813_v47  ;;  %v2824_v11 = vrot.slane %v8920_v5, 7  ;;  %v836_v28 = vrot.slane %v8604_v3, 5 }
  0xe6   : > { %v475_v8 = vmax.f32 %v9932_v1, 0.0  ;;  %10109 = vmatprep.mubr.msk.bf16.mxu0 %vm338_vm1, %v8934_v51  ;;  %v8935_v62 = vcombine.low %v2811_v52, %v2814_v58  ;;  %v8620_v1 = vrot.slane %v8600_v50, 9  ;;  %v8626_v7 = vcombine.low %v816_v48, %v819_v55  ;;  %v8610_v50 = vld [vmem:[%s10681_s10 + $0x274] sm:$0xf]  ;;  %v8613_v51 = vld [vmem:[%s10681_s10 + $0x298] sm:$0xf] }
  0xe7   : > { %v436_v9 = vpop.f32.mrf.mxu0  ;;  %v2826_v21 = vrot.slane %v2824_v11, 4  ;;  %v826_v26 = vsel %vm10750_vm4, %v824_v61, %v825_v56  ;;  %v839_v45 = vrot.slane %v8605_v34, 5  ;;  %v1465_v46 = vsel %vm363_vm0, %v10897_v27, 0  ;;  %v11026_v52 = vld [vmem:[%s13411_s2 + $0xa] sm:$0x3] }
  0xe8   : > { %v473_v15 = vmax.f32 %v436_v9, 0.0  ;;  %v485_v32 = vpack.c.bf16 %v475_v8, %v474_v19  ;;  %v832_v8 = vrot.slane %v8602_v57, 5  ;;  %v8916_v9 = vld [vmem:[%s10681_s10 + $0x448] sm:$0x8]  ;;  %10110 = vmatmul.mubr.msk.bf16.gmra.mxu0 %vm338_vm1, %v8935_v62  ;;  %v8921_v19 = vld [vmem:[%s10681_s10 + $0x474] sm:$0x7]  ;;  %v830_v31 = vsel %vm10750_vm4, %v8620_v1, %v829_v44 }
  0xe9   : > { %v9935_v20 = vpop.f32.mrf.mxu0  ;;  %v8627_v41 = vcombine.low %v823_v22, %v826_v26  ;;  %v838_v44 = vrot.slane %v836_v28, 4  ;;  %v8622_v47 = vrot.slane %v8606_v38, 9  ;;  %v845_v48 = vrot.slane %v843_v36, 4  ;;  %v8609_v58 = vld [vmem:[%s10681_s10 + $0x270] sm:$0xe] }
  0xea   : > { %v484_v25 = vpack.c.bf16 %v473_v15, %v472_v14  ;;  %v478_v0 = vmax.f32 %v9935_v20, 0.0  ;;  %v8928_v14 = vrot.slane %v8916_v9, 11  ;;  %v2819_v15 = vrot.slane %v2817_v4, 4  ;;  %v8612_v61 = vld [vmem:[%s10681_s10 + $0x294] sm:$0xe] }
  0xeb   : > { %v449_v33 = vpop.f32.mrf.mxu0  ;;  %v8929_v20 = vrot.slane %v8919_v17, 11  ;;  %v846_v49 = vrot.slane %v8608_v39, 5  ;;  %v850_v55 = vrot.slane %v8610_v50, 5  ;;  %v844_v56 = vsel %vm10750_vm4, %v8622_v47, %v843_v36  ;;  %v8614_v62 = vld [vmem:[%s10681_s10 + $0x29c] sm:$0x1] }
  0xec   : > { %9947 = vmatprep.mubr.msk.bf16.mxu1 %vm496_vm5, %v484_v25  ;;  %v476_v59 = vmax.f32 %v449_v33, 0.0  ;;  %v2818_v23 = vsel %vm10901_vm8, %v8928_v14, %v2817_v4  ;;  %v2821_v24 = vsel %vm10901_vm8, %v2819_v15, %v2820_v16  ;;  %v2827_v25 = vrot.slane %v8921_v19, 7  ;;  %v8603_v33 = vld [vmem:[%s10681_s10 + $0x228] sm:$0xe]  ;;  %v8615_v15 = vld [vmem:[%s10681_s10 + $0x2b8] sm:$0xe] }
  0xed   : > { %v9936_v43 = vpop.f32.mrf.mxu0  ;;  %9948 = vmatmul.mubr.msk.bf16.gmra.mxu1 %vm496_vm5, %v485_v32  ;;  %v8936_v29 = vcombine.low %v2818_v23, %v2821_v24  ;;  %v2825_v30 = vsel %vm10901_vm8, %v8929_v20, %v2824_v11  ;;  %v833_v32 = vsel %vm10750_vm4, %v831_v2, %v832_v8  ;;  %v847_v57 = vsel %vm10750_vm4, %v845_v48, %v846_v49  ;;  %v8675_v8 = vld [vmem:[%s10681_s10 + $0x1c4] sm:$0xf]  ;;  %v8617_v16 = vld [vmem:[%s10681_s10 + $0x2c0] sm:$0x1]  ;;  %v8676_v19 = vld [vmem:[%s10681_s10 + $0x1c8] sm:$0x7] }
  0xee   : > { %v479_v53 = vmax.f32 %v9936_v43, 0.0  ;;  %v2828_v37 = vsel %vm10901_vm8, %v2826_v21, %v2827_v25  ;;  %v8628_v42 = vcombine.low %v830_v31, %v833_v32  ;;  %v8621_v43 = vrot.slane %v8603_v33, 9  ;;  %v8679_v38 = vld [vmem:[%s10681_s10 + $0x1ec] sm:$0x7]  ;;  %v8684_v50 = vld [vmem:[%s10681_s10 + $0x230] sm:$0xf] }
  0xef   : > { %v452_v54 = vpop.f32.mrf.mxu0  ;;  %10113 = vmatprep.mubr.msk.bf16.mxu0 %vm338_vm1, %v8936_v29  ;;  %v8937_v40 = vcombine.low %v2825_v30, %v2828_v37  ;;  %v8623_v1 = vrot.slane %v8609_v58, 9  ;;  %v852_v2 = vrot.slane %v850_v55, 4  ;;  %v8624_v4 = vrot.slane %v8612_v61, 9  ;;  %v8678_v29 = vld [vmem:[%s10681_s10 + $0x1e8] sm:$0xf] }
  0xf0   : > { %v477_v60 = vmax.f32 %v452_v54, 0.0  ;;  %v487_v12 = vpack.c.bf16 %v479_v53, %v478_v0  ;;  %v10592_v53 = vld [vmem:[%s10681_s10 + $0x298] sm:$0xff]   ;;  %v837_v27 = vsel %vm10750_vm4, %v8621_v43, %v836_v28  ;;  %v840_v54 = vsel %vm10750_vm4, %v838_v44, %v839_v45  ;;  %v8681_v30 = vld [vmem:[%s10681_s10 + $0x20c] sm:$0xf]  ;;  %v8677_v37 = vld [vmem:[%s10681_s10 + $0x1e4] sm:$0x8] }
  0xf1   : > { %10114 = vmatmul.mubr.msk.bf16.gmra.mxu0 %vm338_vm1, %v8937_v40  ;;  %v8629_v63 = vcombine.low %v837_v27, %v840_v54  ;;  %v8630_v0 = vcombine.low %v844_v56, %v847_v57  ;;  %v851_v9 = vsel %vm10750_vm4, %v8623_v1, %v850_v55  ;;  %v1346_v17 = vrot.slane %v8675_v8, 7  ;;  %v8680_v40 = vld [vmem:[%s10681_s10 + $0x208] sm:$0x8]  ;;  %v8683_v57 = vld [vmem:[%s10681_s10 + $0x22c] sm:$0x8] }
  0xf2   : > { %v486_v6 = vpack.c.bf16 %v477_v60, %v476_v59  ;;  %10137 = vmatprep.mubr.msk.bf16.mxu0 %vm338_vm1, %v10592_v53  ;;  %v8611_v59 = vld [vmem:[%s10681_s10 + $0x278] sm:$0x1]  ;;  %v857_v60 = vrot.slane %v8613_v51, 5  ;;  %v8625_v22 = vrot.slane %v8615_v15, 9  ;;  %v867_v24 = vrot.slane %v8617_v16, 5 }
  0xf3   : > { %v853_v3 = vrot.slane %v8611_v59, 5  ;;  %v8698_v25 = vrot.slane %v8674_v18, 11  ;;  %v1348_v26 = vrot.slane %v1346_v17, 4  ;;  %v1349_v28 = vrot.slane %v8676_v19, 7  ;;  %v8687_v51 = vld [vmem:[%s10681_s10 + $0x254] sm:$0xf] }
  0xf4   : > { %9951 = vmatprep.mubr.msk.bf16.mxu1 %vm496_vm5, %v486_v6  ;;  %v859_v5 = vrot.slane %v857_v60, 4  ;;  %v860_v6 = vrot.slane %v8614_v62, 5  ;;  %v1353_v33 = vrot.slane %v8678_v29, 7  ;;  %v1360_v39 = vrot.slane %v8681_v30, 7  ;;  %v8685_v58 = vld [vmem:[%s10681_s10 + $0x234] sm:$0x7] }
  0xf5   : > { %9952 = vmatmul.mubr.msk.bf16.gmra.mxu1 %vm496_vm5, %v487_v12  ;;  %v854_v10 = vsel %vm10750_vm4, %v852_v2, %v853_v3  ;;  %v858_v12 = vsel %vm10750_vm4, %v8624_v4, %v857_v60  ;;  %v1347_v34 = vsel %vm10901_vm8, %v8698_v25, %v1346_v17  ;;  %v1350_v36 = vsel %vm10901_vm8, %v1348_v26, %v1349_v28  ;;  %v8686_v60 = vld [vmem:[%s10681_s10 + $0x250] sm:$0x8]  ;;  %v8688_v61 = vld [vmem:[%s10681_s10 + $0x258] sm:$0x7]  ;;  %v8693_v8 = vld [vmem:[%s10681_s10 + $0x29c] sm:$0xf] }
  0xf6   : > { %9975 = vmatprep.mubr.msk.bf16.mxu1 %vm338_vm1, %v8626_v7  ;;  %v8616_v7 = vld [vmem:[%s10681_s10 + $0x2bc] sm:$0xf]  ;;  %v861_v14 = vsel %vm10750_vm4, %v859_v5, %v860_v6  ;;  %v8631_v20 = vcombine.low %v851_v9, %v854_v10  ;;  %v8706_v43 = vcombine.low %v1347_v34, %v1350_v36  ;;  %v8699_v44 = vrot.slane %v8677_v37, 11  ;;  %v11101_v9 = vld [vmem:[%s13411_s2 + $0xe] sm:$0x3] }
  0xf7   : > { %v864_v11 = vrot.slane %v8616_v7, 5  ;;  %v8632_v21 = vcombine.low %v858_v12, %v861_v14  ;;  %v1355_v45 = vrot.slane %v1353_v33, 4  ;;  %v8700_v47 = vrot.slane %v8680_v40, 11  ;;  %v8690_v7 = vld [vmem:[%s10681_s10 + $0x278] sm:$0xf] }
  0xf8   : > { %v1362_v48 = vrot.slane %v1360_v39, 4  ;;  %v1354_v53 = vsel %vm10901_vm8, %v8699_v44, %v1353_v33  ;;  %v1367_v54 = vrot.slane %v8684_v50, 7  ;;  %v1374_v59 = vrot.slane %v8687_v51, 7  ;;  %v8689_v15 = vld [vmem:[%s10681_s10 + $0x274] sm:$0x8] }
  0xf9   : > { %v866_v23 = vrot.slane %v864_v11, 4  ;;  %v865_v31 = vsel %vm10750_vm4, %v8625_v22, %v864_v11  ;;  %v1361_v55 = vsel %vm10901_vm8, %v8700_v47, %v1360_v39  ;;  %v1370_v2 = vrot.slane %v8685_v58, 7  ;;  %v8691_v16 = vld [vmem:[%s10681_s10 + $0x27c] sm:$0x7]  ;;  %v8692_v18 = vld [vmem:[%s10681_s10 + $0x298] sm:$0x8] }
  0xfa   : > { %v1369_v1 = vrot.slane %v1367_v54, 4  ;;  %v2065_v3 = vsel %vm363_vm0, %v11026_v52, 0  ;;  %v8702_v4 = vrot.slane %v8686_v60, 11  ;;  %v1376_v5 = vrot.slane %v1374_v59, 4  ;;  %v8694_v19 = vld [vmem:[%s10681_s10 + $0x2a0] sm:$0x7] }
  0xfb   : > { %v868_v32 = vsel %vm10750_vm4, %v866_v23, %v867_v24  ;;  %v1377_v6 = vrot.slane %v8688_v61, 7  ;;  %v1381_v11 = vrot.slane %v8690_v7, 7  ;;  %v1388_v17 = vrot.slane %v8693_v8, 7  ;;  %v8696_v30 = vld [vmem:[%s10681_s10 + $0x2c0] sm:$0xf] }
  0xfc   : > { %v1371_v10 = vsel %vm10901_vm8, %v1369_v1, %v1370_v2  ;;  %v1375_v12 = vsel %vm10901_vm8, %v8702_v4, %v1374_v59  ;;  %v8703_v23 = vrot.slane %v8689_v15, 11  ;;  %v1384_v25 = vrot.slane %v8691_v16, 7  ;;  %v8695_v40 = vld [vmem:[%s10681_s10 + $0x2bc] sm:$0x8]  ;;  %v8770_v44 = vld [vmem:[%s10681_s10 + $0x298] sm:$0x8] }
  0xfd   : > { %9976 = vmatmul.mubr.msk.bf16.vlgmr.msra.gmra.mxu1 %vm338_vm1, %v8627_v41  ;;  %v8682_v41 = vld [vmem:[%s10681_s10 + $0x210] sm:$0x7]  ;;  %v1378_v14 = vsel %vm10901_vm8, %v1376_v5, %v1377_v6  ;;  %v1383_v24 = vrot.slane %v1381_v11, 4  ;;  %v8704_v26 = vrot.slane %v8692_v18, 11  ;;  %v1390_v28 = vrot.slane %v1388_v17, 4 }
  0xfe   : > { %10010 = vmatpush3.bf16.msra.mxu1 %v1465_v46  ;;  %9979 = vmatprep.mubr.msk.bf16.mxu1 %vm338_vm1, %v8628_v42  ;;  %v8633_v42 = vcombine.low %v865_v31, %v868_v32  ;;  %v1356_v46 = vrot.slane %v8679_v38, 7  ;;  %v1363_v49 = vrot.slane %v8682_v41, 7  ;;  %v8710_v22 = vcombine.low %v1375_v12, %v1378_v14  ;;  %v8771_v32 = vld [vmem:[%s10681_s10 + $0x29c] sm:$0xf]  ;;  %v8697_v41 = vld [vmem:[%s10681_s10 + $0x2c4] sm:$0x7] }
  0xff   : > { %10501 = vmatprep.subr.msk.bf16.mxu1 %vm363_vm0, %v11026_v52  ;;  %v1391_v29 = vrot.slane %v8694_v19, 7  ;;  %v1382_v34 = vsel %vm10901_vm8, %v8703_v23, %v1381_v11  ;;  %v1385_v36 = vsel %vm10901_vm8, %v1383_v24, %v1384_v25  ;;  %v1395_v37 = vrot.slane %v8696_v30, 7  ;;  %v8775_v1 = vld [vmem:[%s10681_s10 + $0x2c4] sm:$0x7]  ;;  %v8776_v4 = vld [vmem:[%s10681_s10 + $0x2e0] sm:$0x8] }
 0x100   : > { %v1357_v27 = vsel %vm10901_vm8, %v1355_v45, %v1356_v46  ;;  %v1364_v56 = vsel %vm10901_vm8, %v1362_v48, %v1363_v49  ;;  %v1389_v38 = vsel %vm10901_vm8, %v8704_v26, %v1388_v17  ;;  %v8772_v45 = vld [vmem:[%s10681_s10 + $0x2a0] sm:$0x7]  ;;  %v8711_v46 = vcombine.low %v1382_v34, %v1385_v36  ;;  %v8778_v5 = vld [vmem:[%s10681_s10 + $0x2e8] sm:$0x7]  ;;  %v8783_v18 = vld [vmem:[%s10681_s10 + $0x32c] sm:$0xf] }
 0x101   : > { %v8707_v62 = vcombine.low %v1354_v53, %v1357_v27  ;;  %v1392_v39 = vsel %vm10901_vm8, %v1390_v28, %v1391_v29  ;;  %v8705_v49 = vrot.slane %v8695_v40, 11  ;;  %v1397_v50 = vrot.slane %v1395_v37, 4  ;;  %v8780_v16 = vld [vmem:[%s10681_s10 + $0x308] sm:$0xf]  ;;  %v8779_v25 = vld [vmem:[%s10681_s10 + $0x304] sm:$0x8] }
 0x102   : > { %v8712_v48 = vcombine.low %v1389_v38, %v1392_v39  ;;  %v1398_v51 = vrot.slane %v8697_v41, 7  ;;  %v8794_v53 = vrot.slane %v8770_v44, 11  ;;  %v1956_v11 = vrot.slane %v8775_v1, 7  ;;  %v8781_v26 = vld [vmem:[%s10681_s10 + $0x30c] sm:$0x7] }
 0x103   : > { %v1396_v59 = vsel %vm10901_vm8, %v8705_v49, %v1395_v37  ;;  %v8796_v12 = vrot.slane %v8776_v4, 11  ;;  %v1963_v15 = vrot.slane %v8778_v5, 7  ;;  %v1974_v28 = vrot.slane %v8783_v18, 7  ;;  %v8782_v30 = vld [vmem:[%s10681_s10 + $0x328] sm:$0x8] }
 0x104   : > { %v1399_v60 = vsel %vm10901_vm8, %v1397_v50, %v1398_v51  ;;  %v8797_v36 = vrot.slane %v8779_v25, 11  ;;  %v1970_v38 = vrot.slane %v8781_v26, 7  ;;  %v2594_v39 = vsel %vm363_vm0, %v11101_v9, 0  ;;  %v8785_v51 = vld [vmem:[%s10681_s10 + $0x34c] sm:$0x8]  ;;  %v10554_v25 = vld [vmem:[%s10681_s10 + $0x3b8] sm:$0xff]  }
 0x105   : > { %9980 = vmatmul.mubr.msk.bf16.gmra.mxu1 %vm338_vm1, %v8629_v63  ;;  %v8708_v63 = vcombine.low %v1361_v55, %v1364_v56  ;;  %v8774_v55 = vld [vmem:[%s10681_s10 + $0x2c0] sm:$0xf]  ;;  %v8713_v6 = vcombine.low %v1396_v59, %v1399_v60  ;;  %v8798_v40 = vrot.slane %v8782_v30, 11  ;;  %v1976_v41 = vrot.slane %v1974_v28, 4  ;;  %v8792_v1 = vld [vmem:[%s10681_s10 + $0x398] sm:$0xf] }
 0x106   : > { %9983 = vmatprep.mubr.msk.bf16.mxu1 %vm338_vm1, %v8630_v0  ;;  %v8701_v0 = vrot.slane %v8683_v57, 11  ;;  %v8777_v57 = vld [vmem:[%s10681_s10 + $0x2e4] sm:$0xf]  ;;  %v1953_v61 = vrot.slane %v8774_v55, 7  ;;  %v8788_v55 = vld [vmem:[%s10681_s10 + $0x370] sm:$0x8] }
 0x107   : > { %v1960_v2 = vrot.slane %v8777_v57, 7  ;;  %v1975_v49 = vsel %vm10901_vm8, %v8798_v40, %v1974_v28  ;;  %v8799_v59 = vrot.slane %v8785_v51, 11  ;;  %v1995_v4 = vrot.slane %v8792_v1, 7  ;;  %v10555_v28 = vld [vmem:[%s10681_s10 + $0x3dc] sm:$0xff]  }
 0x108   : > { %v1368_v52 = vsel %vm10901_vm8, %v8701_v0, %v1367_v54  ;;  %v1949_v54 = vrot.slane %v8772_v45, 7  ;;  %v8773_v0 = vld [vmem:[%s10681_s10 + $0x2bc] sm:$0x8]  ;;  %v8789_v45 = vld [vmem:[%s10681_s10 + $0x374] sm:$0xf]  ;;  %v10556_v30 = vld [vmem:[%s10681_s10 + $0x400] sm:$0xff]  }
 0x109   : > { %v1962_v14 = vrot.slane %v1960_v2, 4  ;;  %v1961_v23 = vsel %vm10901_vm8, %v8796_v12, %v1960_v2 }
 0x10b   : > { %v1964_v24 = vsel %vm10901_vm8, %v1962_v14, %v1963_v15  ;;  %v1997_v14 = vrot.slane %v1995_v4, 4 }
 0x10c   : > { %v8804_v34 = vcombine.low %v1961_v23, %v1964_v24  ;;  %v10553_v23 = vld [vmem:[%s10681_s10 + $0x394] sm:$0xff]  }
 0x10d   : > { %9984 = vmatmul.mubr.msk.bf16.gmra.mxu1 %vm338_vm1, %v8631_v20  ;;  %v8709_v20 = vcombine.low %v1368_v52, %v1371_v10  ;;  %v8795_v52 = vrot.slane %v8773_v0, 11  ;;  %v1955_v10 = vrot.slane %v1953_v61, 4 }
 0x10e   : > { %9987 = vmatprep.mubr.msk.bf16.mxu1 %vm338_vm1, %v8632_v21  ;;  %v9959_v21 = vpop.f32.mrf.mxu0 }
 0x10f   : > { %747 = vst.msk [vmem:[#allocation2 + $0x10] sm:$0xff] %vm618_vm9, %v9959_v21  ;;  %v1957_v21 = vsel %vm10901_vm8, %v1955_v10, %v1956_v11 }
 0x110   : > { %v682_v31 = vpop.f32.mrf.mxu0 }
 0x111   : > { %745 = vst.msk [vmem:[#allocation2] sm:$0xff] %vm618_vm9, %v682_v31  ;;  %v8784_v31 = vld [vmem:[%s10681_s10 + $0x330] sm:$0x7] }
 0x112   : > { %v9960_v33 = vpop.f32.mrf.mxu0 }
 0x113   : > { %748 = vst.msk [vmem:[#allocation2 + $0x18] sm:$0xff] %vm618_vm9, %v9960_v33 }
 0x115   : > { %9988 = vmatmul.mubr.msk.bf16.gmra.mxu1 %vm338_vm1, %v8633_v42  ;;  %v1946_v42 = vrot.slane %v8771_v32, 7 }
 0x116   : > { %10011 = vmatprep.mubr.msk.bf16.mxu1 %vm338_vm1, %v8706_v43  ;;  %v685_v43 = vpop.f32.mrf.mxu0 }
 0x117   : > { %746 = vst.msk [vmem:[#allocation2 + $0x8] sm:$0xff] %vm618_vm9, %v685_v43  ;;  %v1948_v27 = vrot.slane %v1946_v42, 4  ;;  %v8786_v43 = vld [vmem:[%s10681_s10 + $0x350] sm:$0xf] }
 0x118   : > { %v9963_v47 = vpop.f32.mrf.mxu0 }
 0x119   : > { %751 = vst.msk [vmem:[#allocation2 + $0x30] sm:$0xff] %vm618_vm9, %v9963_v47 }
 0x11a   : > { %v698_v56 = vpop.f32.mrf.mxu0 }
 0x11b   : > { %749 = vst.msk [vmem:[#allocation2 + $0x20] sm:$0xff] %vm618_vm9, %v698_v56  ;;  %v8790_v56 = vld [vmem:[%s10681_s10 + $0x378] sm:$0x7] }
 0x11c   : > { %v9964_v58 = vpop.f32.mrf.mxu0  ;;  %v1991_v0 = vrot.slane %v8790_v56, 7 }
 0x11d   : > { %10012 = vmatmul.mubr.msk.bf16.vlgmr.msra.gmra.mxu1 %vm338_vm1, %v8707_v62  ;;  %752 = vst.msk [vmem:[#allocation2 + $0x38] sm:$0xff] %vm618_vm9, %v9964_v58  ;;  %v1947_v62 = vsel %vm10901_vm8, %v8794_v53, %v1946_v42  ;;  %v1977_v42 = vrot.slane %v8784_v31, 7  ;;  %v8787_v53 = vld [vmem:[%s10681_s10 + $0x354] sm:$0x7] }
 0x11e   : > { %10046 = vmatpush3.bf16.msra.mxu1 %v2065_v3  ;;  %10015 = vmatprep.mubr.msk.bf16.mxu1 %vm338_vm1, %v8708_v63  ;;  %v1950_v63 = vsel %vm10901_vm8, %v1948_v27, %v1949_v54  ;;  %v701_v3 = vpop.f32.mrf.mxu0  ;;  %v1988_v27 = vrot.slane %v8789_v45, 7 }
 0x11f   : > { %10503 = vmatprep.subr.msk.bf16.mxu1 %vm363_vm0, %v11101_v9  ;;  %750 = vst.msk [vmem:[#allocation2 + $0x28] sm:$0xff] %vm618_vm9, %v701_v3  ;;  %v8802_v8 = vcombine.low %v1947_v62, %v1950_v63  ;;  %v1978_v50 = vsel %vm10901_vm8, %v1976_v41, %v1977_v42  ;;  %v8800_v62 = vrot.slane %v8788_v55, 11 }
 0x120   : > { %v9967_v7 = vpop.f32.mrf.mxu0  ;;  %v8806_v58 = vcombine.low %v1975_v49, %v1978_v50  ;;  %v1990_v63 = vrot.slane %v1988_v27, 4 }
 0x121   : > { %755 = vst.msk [vmem:[#allocation2 + $0x50] sm:$0xff] %vm618_vm9, %v9967_v7  ;;  %v1989_v5 = vsel %vm10901_vm8, %v8800_v62, %v1988_v27  ;;  %v8791_v7 = vld [vmem:[%s10681_s10 + $0x394] sm:$0x8] }
 0x122   : > { %v714_v17 = vpop.f32.mrf.mxu0  ;;  %v8801_v12 = vrot.slane %v8791_v7, 11 }
 0x123   : > { %753 = vst.msk [vmem:[#allocation2 + $0x40] sm:$0xff] %vm618_vm9, %v714_v17 }
 0x124   : > { %v9968_v19 = vpop.f32.mrf.mxu0  ;;  %v1996_v17 = vsel %vm10901_vm8, %v8801_v12, %v1995_v4 }
 0x125   : > { %10016 = vmatmul.mubr.msk.bf16.gmra.mxu1 %vm338_vm1, %v8709_v20  ;;  %v1954_v20 = vsel %vm10901_vm8, %v8795_v52, %v1953_v61  ;;  %756 = vst.msk [vmem:[#allocation2 + $0x58] sm:$0xff] %vm618_vm9, %v9968_v19  ;;  %v1984_v61 = vrot.slane %v8787_v53, 7 }
 0x126   : > { %10019 = vmatprep.mubr.msk.bf16.mxu1 %vm338_vm1, %v8710_v22  ;;  %v1967_v22 = vrot.slane %v8780_v16, 7  ;;  %v717_v29 = vpop.f32.mrf.mxu0  ;;  %v8803_v32 = vcombine.low %v1954_v20, %v1957_v21  ;;  %v10552_v21 = vld [vmem:[%s10681_s10 + $0x370] sm:$0xff]  }
 0x127   : > { %754 = vst.msk [vmem:[#allocation2 + $0x48] sm:$0xff] %vm618_vm9, %v717_v29 }
 0x128   : > { %v9971_v33 = vpop.f32.mrf.mxu0  ;;  %v1969_v37 = vrot.slane %v1967_v22, 4  ;;  %v1968_v9 = vsel %vm10901_vm8, %v8797_v36, %v1967_v22 }
 0x129   : > { %759 = vst.msk [vmem:[#allocation2 + $0x70] sm:$0xff] %vm618_vm9, %v9971_v33 }
 0x12a   : > { %v730_v44 = vpop.f32.mrf.mxu0  ;;  %v1971_v47 = vsel %vm10901_vm8, %v1969_v37, %v1970_v38  ;;  %v10559_v37 = vld [vmem:[%s10681_s10 + $0x46c] sm:$0xff]  }
 0x12b   : > { %757 = vst.msk [vmem:[#allocation2 + $0x60] sm:$0xff] %vm618_vm9, %v730_v44  ;;  %v8805_v57 = vcombine.low %v1968_v9, %v1971_v47 }
 0x12d   : > { %10020 = vmatmul.mubr.msk.bf16.gmra.mxu1 %vm338_vm1, %v8711_v46  ;;  %v9972_v46 = vpop.f32.mrf.mxu0 }
 0x12e   : > { %10023 = vmatprep.mubr.msk.bf16.mxu1 %vm338_vm1, %v8712_v48  ;;  %v1981_v48 = vrot.slane %v8786_v43, 7  ;;  %760 = vst.msk [vmem:[#allocation2 + $0x78] sm:$0xff] %vm618_vm9, %v9972_v46 }
 0x12f   : > { %v733_v54 = vpop.f32.mrf.mxu0 }
 0x130   : > { %758 = vst.msk [vmem:[#allocation2 + $0x68] sm:$0xff] %vm618_vm9, %v733_v54  ;;  %v1983_v60 = vrot.slane %v1981_v48, 4  ;;  %v1982_v2 = vsel %vm10901_vm8, %v8799_v59, %v1981_v48  ;;  %v635_v54 = vld [vmem:[%s13415_s6] sm:$0xf] }
 0x131   : > { %v11214_v10 = vpop.f32.mrf.mxu0 }
 0x132   : > { %v1985_v3 = vsel %vm10901_vm8, %v1983_v60, %v1984_v61 }
 0x133   : > { %v8807_v52 = vcombine.low %v1982_v2, %v1985_v3  ;;  %v11217_v16 = vpop.f32.mrf.mxu0 }
 0x135   : > { %10024 = vmatmul.mubr.msk.bf16.gmra.mxu1 %vm338_vm1, %v8713_v6  ;;  %v1992_v6 = vsel %vm10901_vm8, %v1990_v63, %v1991_v0  ;;  %v11224_v20 = vpop.f32.mrf.mxu0  ;;  %v3244_v0 = vld [vmem:[%s13412_s3 + $0x8] sm:$0x3] }
 0x136   : > { %10047 = vmatprep.mubr.msk.bf16.mxu1 %vm338_vm1, %v8802_v8  ;;  %v8793_v8 = vld [vmem:[%s10681_s10 + $0x39c] sm:$0x7]  ;;  %v8808_v11 = vcombine.low %v1989_v5, %v1992_v6  ;;  %10506 = vmatprep.subr.msk.bf16.mxu0 %vm363_vm0, %v3244_v0  ;;  %v3250_v2 = vsel %vm363_vm0, %v3244_v0, 0 }
 0x137   : > { %v1998_v15 = vrot.slane %v8793_v8, 7  ;;  %v11228_v22 = vpop.f32.mrf.mxu0  ;;  %10136 = vmatpush3.bf16.msra.mxu0 %v3250_v2  ;;  %v10593_v6 = vld [vmem:[%s10681_s10 + $0x2bc] sm:$0xff]  }
 0x138   : > { %v873_v2 = vld [vmem:[#allocation2 + $0x20] sm:$0xff] }
 0x139   : > { %v1999_v18 = vsel %vm10901_vm8, %v1997_v14, %v1998_v15  ;;  %v11232_v24 = vpop.f32.mrf.mxu0 }
 0x13a   : > { %v8809_v19 = vcombine.low %v1996_v17, %v1999_v18  ;;  %10138 = vmatmul.mubr.msk.bf16.vlgmr.msra.gmra.mxu0 %vm338_vm1, %v10593_v6  ;;  %v10595_v17 = vld [vmem:[%s10681_s10 + $0x304] sm:$0xff]   ;;  %v871_v18 = vld [vmem:[#allocation2 + $0x10] sm:$0xff] }
 0x13b   : > { %v11236_v26 = vpop.f32.mrf.mxu0 }
 0x13d   : > { %10048 = vmatmul.mubr.msk.bf16.vlgmr.msra.gmra.mxu1 %vm338_vm1, %v8803_v32  ;;  %v11240_v29 = vpop.f32.mrf.mxu0  ;;  %v10557_v32 = vld [vmem:[%s10681_s10 + $0x424] sm:$0xff]  }
 0x13e   : > { %10082 = vmatpush3.bf16.msra.mxu1 %v2594_v39  ;;  %10051 = vmatprep.mubr.msk.bf16.mxu1 %vm338_vm1, %v8804_v34  ;;  %v10558_v34 = vld [vmem:[%s10681_s10 + $0x448] sm:$0xff]  }
 0x13f   : > { %v11244_v31 = vpop.f32.mrf.mxu0  ;;  %10505 = vmatprep.subr.msk.bf16.mxu1 %vm3105_vm10, %v635_v54 }
 0x141   : > { %v11248_v33 = vpop.f32.mrf.mxu0 }
 0x143   : > { %v11252_v36 = vpop.f32.mrf.mxu0 }
 0x145   : > { %10052 = vmatmul.mubr.msk.bf16.gmra.mxu1 %vm338_vm1, %v8805_v57  ;;  %v11256_v38 = vpop.f32.mrf.mxu0  ;;  %v3107_v57 = vsel %vm3105_vm10, %v635_v54, 0 }
 0x146   : > { %10055 = vmatprep.mubr.msk.bf16.mxu1 %vm338_vm1, %v8806_v58 }
 0x147   : > { %v11259_v39 = vpop.f32.mrf.mxu0 }
 0x149   : > { %v11261_v40 = vpop.f32.mrf.mxu0 }
 0x14b   : > { %v11263_v41 = vpop.f32.mrf.mxu0 }
 0x14d   : > { %10056 = vmatmul.mubr.msk.bf16.gmra.mxu1 %vm338_vm1, %v8807_v52  ;;  %v11265_v42 = vpop.f32.mrf.mxu0  ;;  %v10594_v52 = vld [vmem:[%s10681_s10 + $0x2e0] sm:$0xff]  }
 0x14e   : > { %10059 = vmatprep.mubr.msk.bf16.mxu1 %vm338_vm1, %v8808_v11  ;;  %10141 = vmatprep.mubr.msk.bf16.mxu0 %vm338_vm1, %v10594_v52 }
 0x14f   : > { %v11267_v43 = vpop.f32.mrf.mxu0  ;;  %10142 = vmatmul.mubr.msk.bf16.gmra.mxu0 %vm338_vm1, %v10595_v17 }
 0x151   : > { %v11269_v44 = vpop.f32.mrf.mxu0 }
 0x153   : > { %v11271_v45 = vpop.f32.mrf.mxu0 }
 0x155   : > { %10060 = vmatmul.mubr.msk.bf16.gmra.mxu1 %vm338_vm1, %v8809_v19  ;;  %v11273_v46 = vpop.f32.mrf.mxu0 }
 0x156   : > { %10083 = vmatprep.mubr.msk.bf16.mxu1 %vm338_vm1, %v10552_v21 }
 0x157   : > { %v11275_v9 = vpop.f32.mrf.mxu0 }
 0x159   : > { %v11277_v47 = vpop.f32.mrf.mxu0 }
 0x15b   : > { %v11279_v49 = vpop.f32.mrf.mxu0 }
 0x15d   : > { %10084 = vmatmul.mubr.msk.bf16.vlgmr.msra.gmra.mxu1 %vm338_vm1, %v10553_v23  ;;  %v11283_v53 = vpop.f32.mrf.mxu0  ;;  %v10596_v23 = vld [vmem:[%s10681_s10 + $0x328] sm:$0xff]  }
 0x15e   : > { %10087 = vmatprep.mubr.msk.bf16.mxu1 %vm338_vm1, %v10554_v25  ;;  %10118 = vmatpush3.bf16.msra.mxu1 %v3107_v57  ;;  %v10597_v57 = vld [vmem:[%s10681_s10 + $0x34c] sm:$0xff]  }
 0x15f   : > { %v11290_v56 = vpop.f32.mrf.mxu0  ;;  %10145 = vmatprep.mubr.msk.bf16.mxu0 %vm338_vm1, %v10596_v23  ;;  %v874_v23 = vld [vmem:[#allocation2 + $0x28] sm:$0xff] }
 0x160   : > { %10146 = vmatmul.mubr.msk.bf16.gmra.mxu0 %vm338_vm1, %v10597_v57 }
 0x161   : > { %v11296_v60 = vpop.f32.mrf.mxu0 }
 0x163   : > { %v11300_v63 = vpop.f32.mrf.mxu0 }
 0x165   : > { %10088 = vmatmul.mubr.msk.bf16.gmra.mxu1 %vm338_vm1, %v10555_v28  ;;  %v11309_v4 = vpop.f32.mrf.mxu0  ;;  %v869_v28 = vld [vmem:[#allocation2] sm:$0xff] }
 0x166   : > { %10091 = vmatprep.mubr.msk.bf16.mxu1 %vm338_vm1, %v10556_v30 }
 0x167   : > { %v11315_v8 = vpop.f32.mrf.mxu0 }
 0x169   : > { %v11321_v14 = vpop.f32.mrf.mxu0 }
 0x16b   : > { %v11327_v21 = vpop.f32.mrf.mxu0 }
 0x16d   : > { %10092 = vmatmul.mubr.msk.bf16.gmra.mxu1 %vm338_vm1, %v10557_v32 }
 0x16e   : > { %10095 = vmatprep.mubr.msk.bf16.mxu1 %vm338_vm1, %v10558_v34  ;;  %v872_v34 = vld [vmem:[#allocation2 + $0x18] sm:$0xff] }
 0x175   : > { %10096 = vmatmul.mubr.msk.bf16.gmra.mxu1 %vm338_vm1, %v10559_v37 }
 0x19d   : > { %v9941_v48 = vpop.f32.mrf.mxu1 }
 0x19e   : > { %621 = vst.msk [vmem:[#allocation3 + $0x10] sm:$0xff] %vm618_vm9, %v9941_v48  ;;  %v11332_v48 = vpop.f32.mrf.mxu0 }
 0x19f   : > { %v555_v50 = vpop.f32.mrf.mxu1 }
 0x1a0   : > { %619 = vst.msk [vmem:[#allocation3] sm:$0xff] %vm618_vm9, %v555_v50 }
 0x1a1   : > { %v9942_v51 = vpop.f32.mrf.mxu1 }
 0x1a2   : > { %622 = vst.msk [vmem:[#allocation3 + $0x18] sm:$0xff] %vm618_vm9, %v9942_v51  ;;  %v870_v51 = vld [vmem:[#allocation2 + $0x8] sm:$0xff] }
 0x1a3   : > { %v558_v27 = vpop.f32.mrf.mxu1 }
 0x1a4   : > { %620 = vst.msk [vmem:[#allocation3 + $0x8] sm:$0xff] %vm618_vm9, %v558_v27 }
 0x1a5   : > { %v9945_v55 = vpop.f32.mrf.mxu1 }
 0x1a6   : > { %625 = vst.msk [vmem:[#allocation3 + $0x30] sm:$0xff] %vm618_vm9, %v9945_v55  ;;  %v3240_v55 = vld [vmem:[%s13412_s3] sm:$0x3] }
 0x1a7   : > { %v571_v58 = vpop.f32.mrf.mxu1  ;;  %10507 = vmatprep.subr.msk.bf16.mxu1 %vm363_vm0, %v3240_v55 }
 0x1a8   : > { %623 = vst.msk [vmem:[#allocation3 + $0x20] sm:$0xff] %vm618_vm9, %v571_v58  ;;  %v875_v58 = vld [vmem:[#allocation2 + $0x30] sm:$0xff] }
 0x1a9   : > { %v9946_v59 = vpop.f32.mrf.mxu1 }
 0x1aa   : > { %626 = vst.msk [vmem:[#allocation3 + $0x38] sm:$0xff] %vm618_vm9, %v9946_v59 }
 0x1ab   : > { %v574_v61 = vpop.f32.mrf.mxu1 }
 0x1ac   : > { %624 = vst.msk [vmem:[#allocation3 + $0x28] sm:$0xff] %vm618_vm9, %v574_v61  ;;  %v11341_v61 = vpop.f32.mrf.mxu0 }
 0x1ad   : > { %v9949_v62 = vpop.f32.mrf.mxu1 }
 0x1ae   : > { %629 = vst.msk [vmem:[#allocation3 + $0x50] sm:$0xff] %vm618_vm9, %v9949_v62  ;;  %v10598_v62 = vld [vmem:[%s10681_s10 + $0x370] sm:$0xff]  }
 0x1af   : > { %v587_v1 = vpop.f32.mrf.mxu1  ;;  %10149 = vmatprep.mubr.msk.bf16.mxu0 %vm338_vm1, %v10598_v62  ;;  %v880_v62 = vld [vmem:[#allocation2 + $0x58] sm:$0xff] }
 0x1b0   : > { %627 = vst.msk [vmem:[#allocation3 + $0x40] sm:$0xff] %vm618_vm9, %v587_v1 }
 0x1b1   : > { %v9950_v3 = vpop.f32.mrf.mxu1 }
 0x1b2   : > { %630 = vst.msk [vmem:[#allocation3 + $0x58] sm:$0xff] %vm618_vm9, %v9950_v3 }
 0x1b3   : > { %v590_v5 = vpop.f32.mrf.mxu1 }
 0x1b4   : > { %628 = vst.msk [vmem:[#allocation3 + $0x48] sm:$0xff] %vm618_vm9, %v590_v5 }
 0x1b5   : > { %v9953_v7 = vpop.f32.mrf.mxu1 }
 0x1b6   : > { %633 = vst.msk [vmem:[#allocation3 + $0x70] sm:$0xff] %vm618_vm9, %v9953_v7  ;;  %v3241_v7 = vld [vmem:[%s13412_s3 + $0x2] sm:$0x3] }
 0x1b7   : > { %v603_v11 = vpop.f32.mrf.mxu1  ;;  %10508 = vmatprep.subr.msk.bf16.mxu0 %vm363_vm0, %v3241_v7  ;;  %v3766_v17 = vsel %vm363_vm0, %v3241_v7, 0 }
 0x1b8   : > { %631 = vst.msk [vmem:[#allocation3 + $0x60] sm:$0xff] %vm618_vm9, %v603_v11  ;;  %v876_v11 = vld [vmem:[#allocation2 + $0x38] sm:$0xff]  ;;  %10172 = vmatpush3.bf16.msra.mxu0 %v3766_v17 }
 0x1b9   : > { %v9954_v12 = vpop.f32.mrf.mxu1 }
 0x1ba   : > { %634 = vst.msk [vmem:[#allocation3 + $0x78] sm:$0xff] %vm618_vm9, %v9954_v12 }
 0x1bb   : > { %v606_v15 = vpop.f32.mrf.mxu1 }
 0x1bc   : > { %632 = vst.msk [vmem:[#allocation3 + $0x68] sm:$0xff] %vm618_vm9, %v606_v15  ;;  %v11352_v15 = vpop.f32.mrf.mxu0 }
 0x1bd   : > { %v9977_v19 = vpop.f32.mrf.mxu1 }
 0x1be   : > { %v1035_v25 = vadd.f32 %v9977_v19, %v871_v18 }
 0x1bf   : > { %v970_v30 = vpop.f32.mrf.mxu1 }
 0x1c0   : > { %1051 = vst.msk [vmem:[#allocation2 + $0x10] sm:$0xff] %vm618_vm9, %v1035_v25  ;;  %v1033_v32 = vadd.f32 %v970_v30, %v869_v28 }
 0x1c1   : > { %v9978_v37 = vpop.f32.mrf.mxu1 }
 0x1c2   : > { %1049 = vst.msk [vmem:[#allocation2] sm:$0xff] %vm618_vm9, %v1033_v32  ;;  %v1036_v50 = vadd.f32 %v9978_v37, %v872_v34  ;;  %v10599_v32 = vld [vmem:[%s10681_s10 + $0x394] sm:$0xff]  }
 0x1c3   : > { %v973_v27 = vpop.f32.mrf.mxu1  ;;  %10150 = vmatmul.mubr.msk.bf16.gmra.mxu0 %vm338_vm1, %v10599_v32  ;;  %v879_v37 = vld [vmem:[#allocation2 + $0x50] sm:$0xff] }
 0x1c4   : > { %1052 = vst.msk [vmem:[#allocation2 + $0x18] sm:$0xff] %vm618_vm9, %v1036_v50  ;;  %v1034_v54 = vadd.f32 %v973_v27, %v870_v51  ;;  %v11364_v50 = vpop.f32.mrf.mxu0 }
 0x1c5   : > { %v9981_v59 = vpop.f32.mrf.mxu1 }
 0x1c6   : > { %1050 = vst.msk [vmem:[#allocation2 + $0x8] sm:$0xff] %vm618_vm9, %v1034_v54  ;;  %v1039_v0 = vadd.f32 %v9981_v59, %v875_v58 }
 0x1c7   : > { %v1083_v1 = vld [vmem:[#allocation2 + $0x10] sm:$0xff]  ;;  %v986_v3 = vpop.f32.mrf.mxu1 }
 0x1c8   : > { %v1263_v5 = vadd.f32 %v11214_v10, %v1083_v1  ;;  %1055 = vst.msk [vmem:[#allocation2 + $0x30] sm:$0xff] %vm618_vm9, %v1039_v0  ;;  %v1037_v6 = vadd.f32 %v986_v3, %v873_v2  ;;  %v11372_v1 = vpop.f32.mrf.mxu0 }
 0x1c9   : > { %v1081_v52 = vld [vmem:[#allocation2] sm:$0xff]  ;;  %v9982_v12 = vpop.f32.mrf.mxu1 }
 0x1ca   : > { %1279 = vst.msk [vmem:[#allocation2 + $0x10] sm:$0xff] %vm618_vm9, %v1263_v5  ;;  %v1261_v10 = vadd.f32 %v11217_v16, %v1081_v52  ;;  %1053 = vst.msk [vmem:[#allocation2 + $0x20] sm:$0xff] %vm618_vm9, %v1037_v6  ;;  %v1040_v18 = vadd.f32 %v9982_v12, %v876_v11  ;;  %v878_v5 = vld [vmem:[#allocation2 + $0x48] sm:$0xff]  ;;  %v883_v11 = vld [vmem:[#allocation2 + $0x70] sm:$0xff]  ;;  %v11380_v17 = vpop.f32.mrf.mxu0 }
 0x1cb   : > { %v1084_v19 = vld [vmem:[#allocation2 + $0x18] sm:$0xff]  ;;  %v989_v25 = vpop.f32.mrf.mxu1 }
 0x1cc   : > { %1277 = vst.msk [vmem:[#allocation2] sm:$0xff] %vm618_vm9, %v1261_v10  ;;  %v1264_v28 = vadd.f32 %v11224_v20, %v1084_v19  ;;  %1056 = vst.msk [vmem:[#allocation2 + $0x38] sm:$0xff] %vm618_vm9, %v1040_v18  ;;  %v1038_v30 = vadd.f32 %v989_v25, %v874_v23  ;;  %v877_v20 = vld [vmem:[#allocation2 + $0x40] sm:$0xff] }
 0x1cd   : > { %v1082_v34 = vld [vmem:[#allocation2 + $0x8] sm:$0xff]  ;;  %v9985_v16 = vpop.f32.mrf.mxu1  ;;  %v881_v19 = vld [vmem:[#allocation2 + $0x60] sm:$0xff] }
 0x1ce   : > { %1280 = vst.msk [vmem:[#allocation2 + $0x18] sm:$0xff] %vm618_vm9, %v1264_v28  ;;  %v1262_v51 = vadd.f32 %v11228_v22, %v1082_v34  ;;  %1054 = vst.msk [vmem:[#allocation2 + $0x28] sm:$0xff] %vm618_vm9, %v1038_v30  ;;  %v1043_v27 = vadd.f32 %v9985_v16, %v879_v37  ;;  %v884_v30 = vld [vmem:[#allocation2 + $0x78] sm:$0xff]  ;;  %v11388_v34 = vpop.f32.mrf.mxu0 }
 0x1cf   : > { %v1087_v54 = vld [vmem:[#allocation2 + $0x30] sm:$0xff]  ;;  %v1002_v55 = vpop.f32.mrf.mxu1 }
 0x1d0   : > { %1278 = vst.msk [vmem:[#allocation2 + $0x8] sm:$0xff] %vm618_vm9, %v1262_v51  ;;  %v1267_v57 = vadd.f32 %v11232_v24, %v1087_v54  ;;  %1059 = vst.msk [vmem:[#allocation2 + $0x50] sm:$0xff] %vm618_vm9, %v1043_v27  ;;  %v1041_v58 = vadd.f32 %v1002_v55, %v877_v20  ;;  %v882_v51 = vld [vmem:[#allocation2 + $0x68] sm:$0xff] }
 0x1d1   : > { %v1085_v59 = vld [vmem:[#allocation2 + $0x20] sm:$0xff]  ;;  %v9986_v0 = vpop.f32.mrf.mxu1  ;;  %v1402_v55 = vld [vmem:[#allocation2 + $0x10] sm:$0xff] }
 0x1d2   : > { %1283 = vst.msk [vmem:[#allocation2 + $0x30] sm:$0xff] %vm618_vm9, %v1267_v57  ;;  %v1265_v22 = vadd.f32 %v11236_v26, %v1085_v59  ;;  %1057 = vst.msk [vmem:[#allocation2 + $0x40] sm:$0xff] %vm618_vm9, %v1041_v58  ;;  %v1044_v2 = vadd.f32 %v9986_v0, %v880_v62  ;;  %v11396_v58 = vpop.f32.mrf.mxu0  ;;  %v10560_v62 = vld [vmem:[%s10681_s10 + $0xe8] sm:$0xff]  }
 0x1d3   : > { %v1088_v3 = vld [vmem:[#allocation2 + $0x38] sm:$0xff]  ;;  %v1005_v6 = vpop.f32.mrf.mxu1  ;;  %v10561_v0 = vld [vmem:[%s10681_s10 + $0x10c] sm:$0xff]   ;;  %10173 = vmatprep.mubr.msk.bf16.mxu0 %vm338_vm1, %v10560_v62 }
 0x1d4   : > { %1281 = vst.msk [vmem:[#allocation2 + $0x20] sm:$0xff] %vm618_vm9, %v1265_v22  ;;  %v1268_v24 = vadd.f32 %v11240_v29, %v1088_v3  ;;  %1060 = vst.msk [vmem:[#allocation2 + $0x58] sm:$0xff] %vm618_vm9, %v1044_v2  ;;  %v1042_v7 = vadd.f32 %v1005_v6, %v878_v5  ;;  %v1400_v2 = vld [vmem:[#allocation2] sm:$0xff]  ;;  %10174 = vmatmul.mubr.msk.bf16.vlgmr.msra.gmra.mxu0 %vm338_vm1, %v10561_v0 }
 0x1d5   : > { %v1086_v52 = vld [vmem:[#allocation2 + $0x28] sm:$0xff]  ;;  %v9989_v12 = vpop.f32.mrf.mxu1 }
 0x1d6   : > { %1284 = vst.msk [vmem:[#allocation2 + $0x38] sm:$0xff] %vm618_vm9, %v1268_v24  ;;  %v1266_v26 = vadd.f32 %v11244_v31, %v1086_v52  ;;  %1058 = vst.msk [vmem:[#allocation2 + $0x48] sm:$0xff] %vm618_vm9, %v1042_v7  ;;  %v1047_v10 = vadd.f32 %v9989_v12, %v883_v11  ;;  %v1403_v24 = vld [vmem:[#allocation2 + $0x18] sm:$0xff]  ;;  %v11407_v7 = vpop.f32.mrf.mxu0 }
 0x1d7   : > { %v1091_v18 = vld [vmem:[#allocation2 + $0x50] sm:$0xff]  ;;  %v1018_v23 = vpop.f32.mrf.mxu1  ;;  %v1401_v12 = vld [vmem:[#allocation2 + $0x8] sm:$0xff] }
 0x1d8   : > { %1282 = vst.msk [vmem:[#allocation2 + $0x28] sm:$0xff] %vm618_vm9, %v1266_v26  ;;  %v1271_v29 = vadd.f32 %v11248_v33, %v1091_v18  ;;  %1063 = vst.msk [vmem:[#allocation2 + $0x70] sm:$0xff] %vm618_vm9, %v1047_v10  ;;  %v1045_v25 = vadd.f32 %v1018_v23, %v881_v19 }
 0x1d9   : > { %v1089_v28 = vld [vmem:[#allocation2 + $0x40] sm:$0xff]  ;;  %v9990_v32 = vpop.f32.mrf.mxu1  ;;  %v1406_v23 = vld [vmem:[#allocation2 + $0x30] sm:$0xff] }
 0x1da   : > { %1287 = vst.msk [vmem:[#allocation2 + $0x50] sm:$0xff] %vm618_vm9, %v1271_v29  ;;  %v1269_v31 = vadd.f32 %v11252_v36, %v1089_v28  ;;  %1061 = vst.msk [vmem:[#allocation2 + $0x60] sm:$0xff] %vm618_vm9, %v1045_v25  ;;  %v1048_v37 = vadd.f32 %v9990_v32, %v884_v30  ;;  %v11416_v25 = vpop.f32.mrf.mxu0  ;;  %v10562_v32 = vld [vmem:[%s10681_s10 + $0x130] sm:$0xff]  }
 0x1db   : > { %v1092_v16 = vld [vmem:[#allocation2 + $0x58] sm:$0xff]  ;;  %v1021_v33 = vpop.f32.mrf.mxu1  ;;  %10177 = vmatprep.mubr.msk.bf16.mxu0 %vm338_vm1, %v10562_v32 }
 0x1dc   : > { %1285 = vst.msk [vmem:[#allocation2 + $0x40] sm:$0xff] %vm618_vm9, %v1269_v31  ;;  %v1272_v27 = vadd.f32 %v11256_v38, %v1092_v16  ;;  %1064 = vst.msk [vmem:[#allocation2 + $0x78] sm:$0xff] %vm618_vm9, %v1048_v37  ;;  %v1046_v54 = vadd.f32 %v1021_v33, %v882_v51  ;;  %v10563_v31 = vld [vmem:[%s10681_s10 + $0x154] sm:$0xff]   ;;  %v1404_v16 = vld [vmem:[#allocation2 + $0x20] sm:$0xff] }
 0x1dd   : > { %v1090_v20 = vld [vmem:[#allocation2 + $0x48] sm:$0xff]  ;;  %v10013_v57 = vpop.f32.mrf.mxu1  ;;  %10178 = vmatmul.mubr.msk.bf16.gmra.mxu0 %vm338_vm1, %v10563_v31 }
 0x1de   : > { %1288 = vst.msk [vmem:[#allocation2 + $0x58] sm:$0xff] %vm618_vm9, %v1272_v27  ;;  %v1270_v36 = vadd.f32 %v11259_v39, %v1090_v20  ;;  %1062 = vst.msk [vmem:[#allocation2 + $0x68] sm:$0xff] %vm618_vm9, %v1046_v54  ;;  %v1566_v59 = vadd.f32 %v10013_v57, %v1402_v55  ;;  %v1407_v54 = vld [vmem:[#allocation2 + $0x38] sm:$0xff]  ;;  %v11432_v55 = vpop.f32.mrf.mxu0 }
 0x1df   : > { %v1095_v22 = vld [vmem:[#allocation2 + $0x70] sm:$0xff]  ;;  %v1501_v38 = vpop.f32.mrf.mxu1 }
 0x1e0   : > { %1286 = vst.msk [vmem:[#allocation2 + $0x48] sm:$0xff] %vm618_vm9, %v1270_v36  ;;  %v1275_v3 = vadd.f32 %v11261_v40, %v1095_v22  ;;  %1582 = vst.msk [vmem:[#allocation2 + $0x10] sm:$0xff] %vm618_vm9, %v1566_v59  ;;  %v1564_v5 = vadd.f32 %v1501_v38, %v1400_v2  ;;  %v1405_v59 = vld [vmem:[#allocation2 + $0x28] sm:$0xff] }
 0x1e1   : > { %v1093_v6 = vld [vmem:[#allocation2 + $0x60] sm:$0xff]  ;;  %v10014_v39 = vpop.f32.mrf.mxu1  ;;  %v1410_v38 = vld [vmem:[#allocation2 + $0x50] sm:$0xff] }
 0x1e2   : > { %1291 = vst.msk [vmem:[#allocation2 + $0x70] sm:$0xff] %vm618_vm9, %v1275_v3  ;;  %v1273_v52 = vadd.f32 %v11263_v41, %v1093_v6  ;;  %1580 = vst.msk [vmem:[#allocation2] sm:$0xff] %vm618_vm9, %v1564_v5  ;;  %v1567_v11 = vadd.f32 %v10014_v39, %v1403_v24  ;;  %v3243_v41 = vld [vmem:[%s13412_s3 + $0x6] sm:$0x3]  ;;  %v11441_v5 = vpop.f32.mrf.mxu0  ;;  %v10565_v39 = vld [vmem:[%s10681_s10 + $0x19c] sm:$0xff]  }
 0x1e3   : > { %v1096_v40 = vld [vmem:[#allocation2 + $0x78] sm:$0xff]  ;;  %v1504_v26 = vpop.f32.mrf.mxu1  ;;  %10510 = vmatprep.subr.msk.bf16.mxu0 %vm363_vm0, %v3243_v41 }
 0x1e4   : > { %1289 = vst.msk [vmem:[#allocation2 + $0x60] sm:$0xff] %vm618_vm9, %v1273_v52  ;;  %v1276_v10 = vadd.f32 %v11265_v42, %v1096_v40  ;;  %1583 = vst.msk [vmem:[#allocation2 + $0x18] sm:$0xff] %vm618_vm9, %v1567_v11  ;;  %v1565_v18 = vadd.f32 %v1504_v26, %v1401_v12  ;;  %v4366_v42 = vsel %vm363_vm0, %v3243_v41, 0  ;;  %v1408_v11 = vld [vmem:[#allocation2 + $0x40] sm:$0xff] }
 0x1e5   : > { %v1094_v19 = vld [vmem:[#allocation2 + $0x68] sm:$0xff]  ;;  %v10017_v29 = vpop.f32.mrf.mxu1  ;;  %10208 = vmatpush3.bf16.msra.mxu0 %v4366_v42 }
 0x1e6   : > { %1292 = vst.msk [vmem:[#allocation2 + $0x78] sm:$0xff] %vm618_vm9, %v1276_v10  ;;  %v1274_v28 = vadd.f32 %v11267_v43, %v1094_v19  ;;  %1581 = vst.msk [vmem:[#allocation2 + $0x8] sm:$0xff] %vm618_vm9, %v1565_v18  ;;  %v1570_v30 = vadd.f32 %v10017_v29, %v1406_v23  ;;  %v1411_v10 = vld [vmem:[#allocation2 + $0x58] sm:$0xff] }
 0x1e7   : > { %v1702_v37 = vld [vmem:[#allocation2 + $0x10] sm:$0xff]  ;;  %v1517_v51 = vpop.f32.mrf.mxu1 }
 0x1e8   : > { %1290 = vst.msk [vmem:[#allocation2 + $0x68] sm:$0xff] %vm618_vm9, %v1274_v28  ;;  %v1866_v33 = vadd.f32 %v11269_v44, %v1702_v37  ;;  %1586 = vst.msk [vmem:[#allocation2 + $0x30] sm:$0xff] %vm618_vm9, %v1570_v30  ;;  %v1568_v43 = vadd.f32 %v1517_v51, %v1404_v16 }
 0x1e9   : > { %v1700_v27 = vld [vmem:[#allocation2] sm:$0xff]  ;;  %v10018_v20 = vpop.f32.mrf.mxu1  ;;  %v1414_v32 = vld [vmem:[#allocation2 + $0x70] sm:$0xff] }
 0x1ea   : > { %1882 = vst.msk [vmem:[#allocation2 + $0x10] sm:$0xff] %vm618_vm9, %v1866_v33  ;;  %v1864_v57 = vadd.f32 %v11271_v45, %v1700_v27  ;;  %1584 = vst.msk [vmem:[#allocation2 + $0x20] sm:$0xff] %vm618_vm9, %v1568_v43  ;;  %v1571_v44 = vadd.f32 %v10018_v20, %v1407_v54  ;;  %v10564_v45 = vld [vmem:[%s10681_s10 + $0x178] sm:$0xff]   ;;  %v10567_v33 = vld [vmem:[%s10681_s10 + $0x1e4] sm:$0xff]  }
 0x1eb   : > { %v1703_v36 = vld [vmem:[#allocation2 + $0x18] sm:$0xff]  ;;  %v1520_v62 = vpop.f32.mrf.mxu1  ;;  %10181 = vmatprep.mubr.msk.bf16.mxu0 %vm338_vm1, %v10564_v45  ;;  %v1412_v27 = vld [vmem:[#allocation2 + $0x60] sm:$0xff] }
 0x1ec   : > { %1880 = vst.msk [vmem:[#allocation2] sm:$0xff] %vm618_vm9, %v1864_v57  ;;  %v1867_v0 = vadd.f32 %v11273_v46, %v1703_v36  ;;  %1587 = vst.msk [vmem:[#allocation2 + $0x38] sm:$0xff] %vm618_vm9, %v1571_v44  ;;  %v1569_v22 = vadd.f32 %v1520_v62, %v1405_v59  ;;  %10182 = vmatmul.mubr.msk.bf16.gmra.mxu0 %vm338_vm1, %v10565_v39  ;;  %v9091_v62 = vld [vmem:[%s10681_s10 + $0x290] sm:$0xc]  ;;  %v9094_v39 = vld [vmem:[%s10681_s10 + $0x2b4] sm:$0xc] }
 0x1ed   : > { %v1701_v2 = vld [vmem:[#allocation2 + $0x8] sm:$0xff]  ;;  %v10021_v3 = vpop.f32.mrf.mxu1  ;;  %v1415_v57 = vld [vmem:[#allocation2 + $0x78] sm:$0xff]  ;;  %v9115_v45 = vrot.slane %v9091_v62, 10 }
 0x1ee   : > { %1883 = vst.msk [vmem:[#allocation2 + $0x18] sm:$0xff] %vm618_vm9, %v1867_v0  ;;  %v1865_v6 = vadd.f32 %v11275_v9, %v1701_v2  ;;  %1585 = vst.msk [vmem:[#allocation2 + $0x28] sm:$0xff] %vm618_vm9, %v1569_v22  ;;  %v1574_v24 = vadd.f32 %v10021_v3, %v1410_v38  ;;  %v11452_v9 = vpop.f32.mrf.mxu0  ;;  %v9092_v0 = vld [vmem:[%s10681_s10 + $0x294] sm:$0xf]  ;;  %v9093_v3 = vld [vmem:[%s10681_s10 + $0x298] sm:$0x3] }
 0x1ef   : > { %v1706_v52 = vld [vmem:[#allocation2 + $0x30] sm:$0xff]  ;;  %v1533_v46 = vpop.f32.mrf.mxu1  ;;  %v1413_v2 = vld [vmem:[#allocation2 + $0x68] sm:$0xff] }
 0x1f0   : > { %1881 = vst.msk [vmem:[#allocation2 + $0x8] sm:$0xff] %vm618_vm9, %v1865_v6  ;;  %v1870_v40 = vadd.f32 %v11277_v47, %v1706_v52  ;;  %1590 = vst.msk [vmem:[#allocation2 + $0x50] sm:$0xff] %vm618_vm9, %v1574_v24  ;;  %v1572_v12 = vadd.f32 %v1533_v46, %v1408_v11  ;;  %v1409_v47 = vld [vmem:[#allocation2 + $0x48] sm:$0xff]  ;;  %v11461_v37 = vpop.f32.mrf.mxu0  ;;  %v4247_v24 = vrot.slane %v9092_v0, 6  ;;  %v9095_v52 = vld [vmem:[%s10681_s10 + $0x2b8] sm:$0xf] }
 0x1f1   : > { %v1704_v26 = vld [vmem:[#allocation2 + $0x20] sm:$0xff]  ;;  %v10022_v18 = vpop.f32.mrf.mxu1  ;;  %v2002_v46 = vld [vmem:[#allocation2 + $0x10] sm:$0xff] }
 0x1f2   : > { %1886 = vst.msk [vmem:[#allocation2 + $0x30] sm:$0xff] %vm618_vm9, %v1870_v40  ;;  %v1868_v19 = vadd.f32 %v11279_v49, %v1704_v26  ;;  %1588 = vst.msk [vmem:[#allocation2 + $0x40] sm:$0xff] %vm618_vm9, %v1572_v12  ;;  %v1575_v23 = vadd.f32 %v10022_v18, %v1411_v10  ;;  %v10566_v49 = vld [vmem:[%s10681_s10 + $0x1c0] sm:$0xff]   ;;  %v11472_v36 = vpop.f32.mrf.mxu0  ;;  %v4250_v26 = vrot.slane %v9093_v3, 6  ;;  %v9096_v10 = vld [vmem:[%s10681_s10 + $0x2bc] sm:$0x3] }
 0x1f3   : > { %v1707_v29 = vld [vmem:[#allocation2 + $0x38] sm:$0xff]  ;;  %v1536_v41 = vpop.f32.mrf.mxu1  ;;  %10185 = vmatprep.mubr.msk.bf16.mxu0 %vm338_vm1, %v10566_v49  ;;  %v9116_v18 = vrot.slane %v9094_v39, 10 }
 0x1f4   : > { %1884 = vst.msk [vmem:[#allocation2 + $0x20] sm:$0xff] %vm618_vm9, %v1868_v19  ;;  %v1871_v28 = vadd.f32 %v11283_v53, %v1707_v29  ;;  %1591 = vst.msk [vmem:[#allocation2 + $0x58] sm:$0xff] %vm618_vm9, %v1575_v23  ;;  %v1573_v30 = vadd.f32 %v1536_v41, %v1409_v47  ;;  %10186 = vmatmul.mubr.msk.bf16.gmra.mxu0 %vm338_vm1, %v10567_v33  ;;  %v11486_v12 = vpop.f32.mrf.mxu0  ;;  %v2000_v47 = vld [vmem:[#allocation2] sm:$0xff]  ;;  %v9100_v39 = vld [vmem:[%s10681_s10 + $0x2fc] sm:$0xc] }
 0x1f5   : > { %v1705_v42 = vld [vmem:[#allocation2 + $0x28] sm:$0xff]  ;;  %v10025_v31 = vpop.f32.mrf.mxu1 }
 0x1f6   : > { %1887 = vst.msk [vmem:[#allocation2 + $0x38] sm:$0xff] %vm618_vm9, %v1871_v28  ;;  %v1869_v16 = vadd.f32 %v11290_v56, %v1705_v42  ;;  %1589 = vst.msk [vmem:[#allocation2 + $0x48] sm:$0xff] %vm618_vm9, %v1573_v30  ;;  %v1578_v51 = vadd.f32 %v10025_v31, %v1414_v32  ;;  %v4248_v28 = vsel %vm11494_vm12, %v9115_v45, %v4247_v24  ;;  %v4249_v30 = vrot.slane %v4247_v24, 4  ;;  %v11503_v33 = vpop.f32.mrf.mxu0  ;;  %v3246_v24 = vld [vmem:[%s13412_s3 + $0xc] sm:$0x3] }
 0x1f7   : > { %v1710_v43 = vld [vmem:[#allocation2 + $0x50] sm:$0xff]  ;;  %v1549_v53 = vpop.f32.mrf.mxu1  ;;  %v4254_v42 = vrot.slane %v9095_v52, 6  ;;  %v4257_v32 = vrot.slane %v9096_v10, 6  ;;  %10512 = vmatprep.subr.msk.bf16.mxu0 %vm363_vm0, %v3246_v24 }
 0x1f8   : > { %1885 = vst.msk [vmem:[#allocation2 + $0x28] sm:$0xff] %vm618_vm9, %v1869_v16  ;;  %v1874_v54 = vadd.f32 %v11296_v60, %v1710_v43  ;;  %1594 = vst.msk [vmem:[#allocation2 + $0x70] sm:$0xff] %vm618_vm9, %v1578_v51  ;;  %v1576_v20 = vadd.f32 %v1549_v53, %v1412_v27  ;;  %v2003_v16 = vld [vmem:[#allocation2 + $0x18] sm:$0xff]  ;;  %v4251_v43 = vsel %vm11494_vm12, %v4249_v30, %v4250_v26  ;;  %v9102_v26 = vld [vmem:[%s10681_s10 + $0x304] sm:$0x3] }
 0x1f9   : > { %v1708_v56 = vld [vmem:[#allocation2 + $0x40] sm:$0xff]  ;;  %v10026_v44 = vpop.f32.mrf.mxu1  ;;  %v4255_v27 = vsel %vm11494_vm12, %v9116_v18, %v4254_v42  ;;  %v4256_v53 = vrot.slane %v4254_v42, 4 }
 0x1fa   : > { %1890 = vst.msk [vmem:[#allocation2 + $0x50] sm:$0xff] %vm618_vm9, %v1874_v54  ;;  %v1872_v59 = vadd.f32 %v11300_v63, %v1708_v56  ;;  %1592 = vst.msk [vmem:[#allocation2 + $0x60] sm:$0xff] %vm618_vm9, %v1576_v20  ;;  %v1579_v60 = vadd.f32 %v10026_v44, %v1415_v57  ;;  %v9123_v20 = vcombine.low %v4248_v28, %v4251_v43  ;;  %v9097_v56 = vld [vmem:[%s10681_s10 + $0x2d8] sm:$0xc]  ;;  %v9098_v57 = vld [vmem:[%s10681_s10 + $0x2dc] sm:$0xf] }
 0x1fb   : > { %v1711_v22 = vld [vmem:[#allocation2 + $0x58] sm:$0xff]  ;;  %v1552_v38 = vpop.f32.mrf.mxu1  ;;  %v4258_v62 = vsel %vm11494_vm12, %v4256_v53, %v4257_v32  ;;  %v9117_v3 = vrot.slane %v9097_v56, 10  ;;  %v2004_v18 = vld [vmem:[#allocation2 + $0x20] sm:$0xff]  ;;  %v9118_v28 = vrot.slane %v9100_v39, 10 }
 0x1fc   : > { %1888 = vst.msk [vmem:[#allocation2 + $0x40] sm:$0xff] %vm618_vm9, %v1872_v59  ;;  %v1875_v6 = vadd.f32 %v11309_v4, %v1711_v22  ;;  %1595 = vst.msk [vmem:[#allocation2 + $0x78] sm:$0xff] %vm618_vm9, %v1579_v60  ;;  %v1577_v63 = vadd.f32 %v1552_v38, %v1413_v2  ;;  %v2001_v59 = vld [vmem:[#allocation2 + $0x8] sm:$0xff]  ;;  %v2006_v22 = vld [vmem:[#allocation2 + $0x30] sm:$0xff]  ;;  %10209 = vmatprep.mubr.msk.bf16.mxu0 %vm338_vm1, %v9123_v20  ;;  %v9124_v2 = vcombine.low %v4255_v27, %v4258_v62 }
 0x1fd   : > { %v1709_v11 = vld [vmem:[#allocation2 + $0x48] sm:$0xff]  ;;  %v10049_v40 = vpop.f32.mrf.mxu1  ;;  %v9099_v38 = vld [vmem:[%s10681_s10 + $0x2e0] sm:$0x3]  ;;  %v2007_v42 = vld [vmem:[#allocation2 + $0x38] sm:$0xff] }
 0x1fe   : > { %1891 = vst.msk [vmem:[#allocation2 + $0x58] sm:$0xff] %vm618_vm9, %v1875_v6  ;;  %v1873_v19 = vadd.f32 %v11315_v8, %v1709_v11  ;;  %1593 = vst.msk [vmem:[#allocation2 + $0x68] sm:$0xff] %vm618_vm9, %v1577_v63  ;;  %v2166_v4 = vadd.f32 %v10049_v40, %v2002_v46  ;;  %v11521_v63 = vpop.f32.mrf.mxu0  ;;  %10210 = vmatmul.mubr.msk.bf16.vlgmr.msra.gmra.mxu0 %vm338_vm1, %v9124_v2  ;;  %v4967_v46 = vsel %vm363_vm0, %v3246_v24, 0  ;;  %v9101_v40 = vld [vmem:[%s10681_s10 + $0x300] sm:$0xf] }
 0x1ff   : > { %v1714_v29 = vld [vmem:[#allocation2 + $0x70] sm:$0xff]  ;;  %v2101_v41 = vpop.f32.mrf.mxu1  ;;  %10244 = vmatpush3.bf16.msra.mxu0 %v4967_v46  ;;  %v2005_v53 = vld [vmem:[#allocation2 + $0x28] sm:$0xff] }
 0x200   : > { %1889 = vst.msk [vmem:[#allocation2 + $0x48] sm:$0xff] %vm618_vm9, %v1873_v19  ;;  %v1878_v8 = vadd.f32 %v11321_v14, %v1714_v29  ;;  %2182 = vst.msk [vmem:[#allocation2 + $0x10] sm:$0xff] %vm618_vm9, %v2166_v4  ;;  %v2164_v31 = vadd.f32 %v2101_v41, %v2000_v47 }
 0x201   : > { %v1712_v49 = vld [vmem:[#allocation2 + $0x60] sm:$0xff]  ;;  %v10050_v51 = vpop.f32.mrf.mxu1 }
 0x202   : > { %1894 = vst.msk [vmem:[#allocation2 + $0x70] sm:$0xff] %vm618_vm9, %v1878_v8  ;;  %v1876_v14 = vadd.f32 %v11327_v21, %v1712_v49  ;;  %2180 = vst.msk [vmem:[#allocation2] sm:$0xff] %vm618_vm9, %v2164_v31  ;;  %v2167_v54 = vadd.f32 %v10050_v51, %v2003_v16  ;;  %v11540_v8 = vpop.f32.mrf.mxu0  ;;  %v4268_v49 = vrot.slane %v9101_v40, 6  ;;  %v4271_v16 = vrot.slane %v9102_v26, 6 }
 0x203   : > { %v1715_v44 = vld [vmem:[#allocation2 + $0x78] sm:$0xff]  ;;  %v2104_v60 = vpop.f32.mrf.mxu1 }
 0x204   : > { %1892 = vst.msk [vmem:[#allocation2 + $0x60] sm:$0xff] %vm618_vm9, %v1876_v14  ;;  %v1879_v0 = vadd.f32 %v11332_v48, %v1715_v44  ;;  %2183 = vst.msk [vmem:[#allocation2 + $0x18] sm:$0xff] %vm618_vm9, %v2167_v54  ;;  %v2165_v21 = vadd.f32 %v2104_v60, %v2001_v59  ;;  %v4261_v48 = vrot.slane %v9098_v57, 6  ;;  %v4269_v54 = vsel %vm11494_vm12, %v9118_v28, %v4268_v49  ;;  %v2010_v57 = vld [vmem:[#allocation2 + $0x50] sm:$0xff]  ;;  %v9103_v44 = vld [vmem:[%s10681_s10 + $0x320] sm:$0xc]  ;;  %v11554_v62 = vpop.f32.mrf.mxu0 }
 0x205   : > { %v1713_v45 = vld [vmem:[#allocation2 + $0x68] sm:$0xff]  ;;  %v10053_v6 = vpop.f32.mrf.mxu1  ;;  %v4270_v20 = vrot.slane %v4268_v49, 4  ;;  %v2011_v26 = vld [vmem:[#allocation2 + $0x58] sm:$0xff] }
 0x206   : > { %1895 = vst.msk [vmem:[#allocation2 + $0x78] sm:$0xff] %vm618_vm9, %v1879_v0  ;;  %v1877_v52 = vadd.f32 %v11341_v61, %v1713_v45  ;;  %2181 = vst.msk [vmem:[#allocation2 + $0x8] sm:$0xff] %vm618_vm9, %v2165_v21  ;;  %v2170_v11 = vadd.f32 %v10053_v6, %v2006_v22  ;;  %v4262_v4 = vsel %vm11494_vm12, %v9117_v3, %v4261_v48  ;;  %v4263_v29 = vrot.slane %v4261_v48, 4  ;;  %v9104_v21 = vld [vmem:[%s10681_s10 + $0x324] sm:$0xf] }
 0x207   : > { %v2303_v10 = vld [vmem:[#allocation2 + $0x10] sm:$0xff]  ;;  %v2117_v19 = vpop.f32.mrf.mxu1  ;;  %v4264_v61 = vrot.slane %v9099_v38, 6  ;;  %v4272_v0 = vsel %vm11494_vm12, %v4270_v20, %v4271_v16  ;;  %v9105_v22 = vld [vmem:[%s10681_s10 + $0x328] sm:$0x3]  ;;  %v9106_v3 = vld [vmem:[%s10681_s10 + $0x344] sm:$0xc] }
 0x208   : > { %1893 = vst.msk [vmem:[#allocation2 + $0x68] sm:$0xff] %vm618_vm9, %v1877_v52  ;;  %v2467_v47 = vadd.f32 %v11352_v15, %v2303_v10  ;;  %2186 = vst.msk [vmem:[#allocation2 + $0x30] sm:$0xff] %vm618_vm9, %v2170_v11  ;;  %v2168_v41 = vadd.f32 %v2117_v19, %v2004_v18  ;;  %v9126_v38 = vcombine.low %v4269_v54, %v4272_v0  ;;  %v9107_v45 = vld [vmem:[%s10681_s10 + $0x348] sm:$0xf]  ;;  %v9108_v6 = vld [vmem:[%s10681_s10 + $0x34c] sm:$0x3]  ;;  %v11570_v18 = vpop.f32.mrf.mxu0 }
 0x209   : > { %v2301_v30 = vld [vmem:[#allocation2] sm:$0xff]  ;;  %v10054_v32 = vpop.f32.mrf.mxu1  ;;  %v4265_v31 = vsel %vm11494_vm12, %v4263_v29, %v4264_v61  ;;  %v9119_v52 = vrot.slane %v9103_v44, 10  ;;  %v4278_v19 = vrot.slane %v9105_v22, 6  ;;  %v4282_v29 = vrot.slane %v9107_v45, 6  ;;  %v2009_v28 = vld [vmem:[#allocation2 + $0x48] sm:$0xff] }
 0x20a   : > { %2483 = vst.msk [vmem:[#allocation2 + $0x10] sm:$0xff] %vm618_vm9, %v2467_v47  ;;  %v2465_v51 = vadd.f32 %v11364_v50, %v2301_v30  ;;  %2184 = vst.msk [vmem:[#allocation2 + $0x20] sm:$0xff] %vm618_vm9, %v2168_v41  ;;  %v2171_v15 = vadd.f32 %v10054_v32, %v2007_v42  ;;  %v9125_v43 = vcombine.low %v4262_v4, %v4265_v31  ;;  %v2008_v48 = vld [vmem:[#allocation2 + $0x40] sm:$0xff]  ;;  %v9120_v4 = vrot.slane %v9106_v3, 10  ;;  %v9109_v54 = vld [vmem:[%s10681_s10 + $0x368] sm:$0xc] }
 0x20b   : > { %v2304_v27 = vld [vmem:[#allocation2 + $0x18] sm:$0xff]  ;;  %v2120_v14 = vpop.f32.mrf.mxu1  ;;  %v4285_v61 = vrot.slane %v9108_v6, 6  ;;  %v4284_v49 = vrot.slane %v4282_v29, 4  ;;  %v9111_v44 = vld [vmem:[%s10681_s10 + $0x370] sm:$0x3]  ;;  %v2012_v0 = vld [vmem:[#allocation2 + $0x60] sm:$0xff] }
 0x20c   : > { %2481 = vst.msk [vmem:[#allocation2] sm:$0xff] %vm618_vm9, %v2465_v51  ;;  %v2468_v56 = vadd.f32 %v11372_v1, %v2304_v27  ;;  %2187 = vst.msk [vmem:[#allocation2 + $0x38] sm:$0xff] %vm618_vm9, %v2171_v15  ;;  %v2169_v50 = vadd.f32 %v2120_v14, %v2005_v53  ;;  %10213 = vmatprep.mubr.msk.bf16.mxu0 %vm338_vm1, %v9125_v43  ;;  %v4283_v31 = vsel %vm11494_vm12, %v9120_v4, %v4282_v29  ;;  %v2014_v15 = vld [vmem:[#allocation2 + $0x70] sm:$0xff]  ;;  %v11582_v27 = vpop.f32.mrf.mxu0 }
 0x20d   : > { %v2302_v59 = vld [vmem:[#allocation2 + $0x8] sm:$0xff]  ;;  %v10057_v60 = vpop.f32.mrf.mxu1  ;;  %10214 = vmatmul.mubr.msk.bf16.gmra.mxu0 %vm338_vm1, %v9126_v38  ;;  %v4286_v14 = vsel %vm11494_vm12, %v4284_v49, %v4285_v61  ;;  %v9113_v38 = vld [vmem:[%s10681_s10 + $0x390] sm:$0xf]  ;;  %v9187_v49 = vld [vmem:[%s10681_s10 + $0x440] sm:$0xc] }
 0x20e   : > { %2484 = vst.msk [vmem:[#allocation2 + $0x18] sm:$0xff] %vm618_vm9, %v2468_v56  ;;  %v2466_v1 = vadd.f32 %v11380_v17, %v2302_v59  ;;  %2185 = vst.msk [vmem:[#allocation2 + $0x28] sm:$0xff] %vm618_vm9, %v2169_v50  ;;  %v2174_v2 = vadd.f32 %v10057_v60, %v2010_v57  ;;  %v4275_v17 = vrot.slane %v9104_v21, 6  ;;  %v9128_v50 = vcombine.low %v4283_v31, %v4286_v14  ;;  %v9110_v57 = vld [vmem:[%s10681_s10 + $0x36c] sm:$0xf]  ;;  %v11600_v6 = vpop.f32.mrf.mxu0 }
 0x20f   : > { %v2307_v24 = vld [vmem:[#allocation2 + $0x30] sm:$0xff]  ;;  %v2133_v39 = vpop.f32.mrf.mxu1  ;;  %v9112_v59 = vld [vmem:[%s10681_s10 + $0x38c] sm:$0xc]  ;;  %v9188_v14 = vld [vmem:[%s10681_s10 + $0x444] sm:$0xf] }
 0x210   : > { %2482 = vst.msk [vmem:[#allocation2 + $0x8] sm:$0xff] %vm618_vm9, %v2466_v1  ;;  %v2471_v11 = vadd.f32 %v11388_v34, %v2307_v24  ;;  %2190 = vst.msk [vmem:[#allocation2 + $0x50] sm:$0xff] %vm618_vm9, %v2174_v2  ;;  %v2172_v46 = vadd.f32 %v2133_v39, %v2008_v48  ;;  %v4276_v42 = vsel %vm11494_vm12, %v9119_v52, %v4275_v17  ;;  %v4277_v32 = vrot.slane %v4275_v17, 4  ;;  %v2015_v1 = vld [vmem:[#allocation2 + $0x78] sm:$0xff]  ;;  %v9114_v39 = vld [vmem:[%s10681_s10 + $0x394] sm:$0x3] }
 0x211   : > { %v2305_v40 = vld [vmem:[#allocation2 + $0x20] sm:$0xff]  ;;  %v10058_v10 = vpop.f32.mrf.mxu1  ;;  %v9121_v2 = vrot.slane %v9109_v54, 10  ;;  %v4289_v24 = vrot.slane %v9110_v57, 6  ;;  %v4292_v48 = vrot.slane %v9111_v44, 6  ;;  %v9122_v52 = vrot.slane %v9112_v59, 10  ;;  %v2013_v17 = vld [vmem:[#allocation2 + $0x68] sm:$0xff] }
 0x212   : > { %2487 = vst.msk [vmem:[#allocation2 + $0x30] sm:$0xff] %vm618_vm9, %v2471_v11  ;;  %v2469_v47 = vadd.f32 %v11396_v58, %v2305_v40  ;;  %2188 = vst.msk [vmem:[#allocation2 + $0x40] sm:$0xff] %vm618_vm9, %v2172_v46  ;;  %v2175_v34 = vadd.f32 %v10058_v10, %v2011_v26  ;;  %v4279_v53 = vsel %vm11494_vm12, %v4277_v32, %v4278_v19  ;;  %v4296_v19 = vrot.slane %v9113_v38, 6  ;;  %v9189_v54 = vld [vmem:[%s10681_s10 + $0x448] sm:$0x3] }
 0x213   : > { %v2308_v41 = vld [vmem:[#allocation2 + $0x38] sm:$0xff]  ;;  %v2136_v30 = vpop.f32.mrf.mxu1  ;;  %v9127_v56 = vcombine.low %v4276_v42, %v4279_v53  ;;  %v4290_v26 = vsel %vm11494_vm12, %v9121_v2, %v4289_v24  ;;  %v4291_v10 = vrot.slane %v4289_v24, 4  ;;  %v9211_v44 = vrot.slane %v9187_v49, 10  ;;  %v9191_v59 = vld [vmem:[%s10681_s10 + $0x468] sm:$0xf] }
 0x214   : > { %2485 = vst.msk [vmem:[#allocation2 + $0x20] sm:$0xff] %vm618_vm9, %v2469_v47  ;;  %v2472_v16 = vadd.f32 %v11407_v7, %v2308_v41  ;;  %2191 = vst.msk [vmem:[#allocation2 + $0x58] sm:$0xff] %vm618_vm9, %v2175_v34  ;;  %v2173_v58 = vadd.f32 %v2136_v30, %v2009_v28  ;;  %v2515_v47 = vld [vmem:[#allocation2 + $0x10] sm:$0xff]  ;;  %v11612_v41 = vpop.f32.mrf.mxu0  ;;  %v4297_v30 = vsel %vm11494_vm12, %v9122_v52, %v4296_v19  ;;  %v4298_v42 = vrot.slane %v4296_v19, 4 }
 0x215   : > { %v2306_v51 = vld [vmem:[#allocation2 + $0x28] sm:$0xff]  ;;  %v10061_v43 = vpop.f32.mrf.mxu1  ;;  %10217 = vmatprep.mubr.msk.bf16.mxu0 %vm338_vm1, %v9127_v56  ;;  %v4293_v28 = vsel %vm11494_vm12, %v4291_v10, %v4292_v48  ;;  %v2516_v56 = vld [vmem:[#allocation2 + $0x18] sm:$0xff]  ;;  %v4851_v2 = vrot.slane %v9189_v54, 6 }
 0x216   : > { %2488 = vst.msk [vmem:[#allocation2 + $0x38] sm:$0xff] %vm618_vm9, %v2472_v16  ;;  %v2470_v7 = vadd.f32 %v11416_v25, %v2306_v51  ;;  %2189 = vst.msk [vmem:[#allocation2 + $0x48] sm:$0xff] %vm618_vm9, %v2173_v58  ;;  %v2178_v20 = vadd.f32 %v10061_v43, %v2014_v15  ;;  %10218 = vmatmul.mubr.msk.bf16.gmra.mxu0 %vm338_vm1, %v9128_v50  ;;  %v9129_v31 = vcombine.low %v4290_v26, %v4293_v28  ;;  %v2513_v58 = vld [vmem:[#allocation2] sm:$0xff]  ;;  %v11631_v57 = vpop.f32.mrf.mxu0 }
 0x217   : > { %v2311_v60 = vld [vmem:[#allocation2 + $0x50] sm:$0xff]  ;;  %v2149_v21 = vpop.f32.mrf.mxu1 }
 0x218   : > { %2486 = vst.msk [vmem:[#allocation2 + $0x28] sm:$0xff] %vm618_vm9, %v2470_v7  ;;  %v2475_v22 = vadd.f32 %v11432_v55, %v2311_v60  ;;  %2194 = vst.msk [vmem:[#allocation2 + $0x70] sm:$0xff] %vm618_vm9, %v2178_v20  ;;  %v2176_v25 = vadd.f32 %v2149_v21, %v2012_v0  ;;  %10221 = vmatprep.mubr.msk.bf16.mxu0 %vm338_vm1, %v9129_v31  ;;  %v9190_v7 = vld [vmem:[%s10681_s10 + $0x464] sm:$0xc]  ;;  %v9192_v0 = vld [vmem:[%s10681_s10 + $0x46c] sm:$0x3]  ;;  %v11642_v52 = vpop.f32.mrf.mxu0 }
 0x219   : > { %v2309_v3 = vld [vmem:[#allocation2 + $0x40] sm:$0xff]  ;;  %v10062_v45 = vpop.f32.mrf.mxu1  ;;  %v9212_v38 = vrot.slane %v9190_v7, 10  ;;  %v2519_v48 = vld [vmem:[#allocation2 + $0x30] sm:$0xff] }
 0x21a   : > { %2491 = vst.msk [vmem:[#allocation2 + $0x50] sm:$0xff] %vm618_vm9, %v2475_v22  ;;  %v2473_v55 = vadd.f32 %v11441_v5, %v2309_v3  ;;  %2192 = vst.msk [vmem:[#allocation2 + $0x60] sm:$0xff] %vm618_vm9, %v2176_v25  ;;  %v2179_v11 = vadd.f32 %v10062_v45, %v2015_v1  ;;  %v4299_v5 = vrot.slane %v9114_v39, 6  ;;  %v2514_v22 = vld [vmem:[#allocation2 + $0x8] sm:$0xff]  ;;  %v4848_v1 = vrot.slane %v9188_v14, 6 }
 0x21b   : > { %v2312_v46 = vld [vmem:[#allocation2 + $0x58] sm:$0xff]  ;;  %v2152_v40 = vpop.f32.mrf.mxu1  ;;  %v2517_v10 = vld [vmem:[#allocation2 + $0x20] sm:$0xff]  ;;  %v9197_v14 = vld [vmem:[%s10681_s10 + $0x4b0] sm:$0xf] }
 0x21c   : > { %2489 = vst.msk [vmem:[#allocation2 + $0x40] sm:$0xff] %vm618_vm9, %v2473_v55  ;;  %v2476_v4 = vadd.f32 %v11452_v9, %v2312_v46  ;;  %2195 = vst.msk [vmem:[#allocation2 + $0x78] sm:$0xff] %vm618_vm9, %v2179_v11  ;;  %v2177_v29 = vadd.f32 %v2152_v40, %v2013_v17  ;;  %v4300_v15 = vsel %vm11494_vm12, %v4298_v42, %v4299_v5  ;;  %v4850_v11 = vrot.slane %v4848_v1, 4  ;;  %v3248_v17 = vld [vmem:[%s13412_s3 + $0x10] sm:$0x3]  ;;  %v11660_v42 = vpop.f32.mrf.mxu0 }
 0x21d   : > { %v2310_v61 = vld [vmem:[#allocation2 + $0x48] sm:$0xff]  ;;  %v10085_v34 = vpop.f32.mrf.mxu1  ;;  %v9130_v53 = vcombine.low %v4297_v30, %v4300_v15  ;;  %v4849_v55 = vsel %vm11494_vm12, %v9211_v44, %v4848_v1  ;;  %v4858_v46 = vrot.slane %v9192_v0, 6  ;;  %10514 = vmatprep.subr.msk.bf16.mxu0 %vm363_vm0, %v3248_v17  ;;  %v2520_v28 = vld [vmem:[#allocation2 + $0x38] sm:$0xff] }
 0x21e   : > { %2492 = vst.msk [vmem:[#allocation2 + $0x58] sm:$0xff] %vm618_vm9, %v2476_v4  ;;  %v2474_v9 = vadd.f32 %v11461_v37, %v2310_v61  ;;  %2193 = vst.msk [vmem:[#allocation2 + $0x68] sm:$0xff] %vm618_vm9, %v2177_v29  ;;  %v2695_v32 = vadd.f32 %v10085_v34, %v2515_v47  ;;  %v4852_v4 = vsel %vm11494_vm12, %v4850_v11, %v4851_v2 }
 0x21f   : > { %v2315_v16 = vld [vmem:[#allocation2 + $0x70] sm:$0xff]  ;;  %v2630_v51 = vpop.f32.mrf.mxu1  ;;  %10222 = vmatmul.mubr.msk.bf16.gmra.mxu0 %vm338_vm1, %v9130_v53  ;;  %v9219_v47 = vcombine.low %v4849_v55, %v4852_v4  ;;  %v5495_v53 = vsel %vm363_vm0, %v3248_v17, 0 }
 0x220   : > { %2490 = vst.msk [vmem:[#allocation2 + $0x48] sm:$0xff] %vm618_vm9, %v2474_v9  ;;  %v2479_v43 = vadd.f32 %v11472_v36, %v2315_v16  ;;  %2711 = vst.msk [vmem:[#allocation2 + $0x10] sm:$0xff] %vm618_vm9, %v2695_v32  ;;  %v2693_v37 = vadd.f32 %v2630_v51, %v2513_v58  ;;  %v9193_v32 = vld [vmem:[%s10681_s10 + $0x488] sm:$0xc]  ;;  %v9194_v16 = vld [vmem:[%s10681_s10 + $0x48c] sm:$0xf] }
 0x221   : > { %v2313_v20 = vld [vmem:[#allocation2 + $0x60] sm:$0xff]  ;;  %v10086_v50 = vpop.f32.mrf.mxu1  ;;  %10245 = vmatprep.mubr.msk.bf16.mxu0 %vm338_vm1, %v9219_v47  ;;  %v9195_v58 = vld [vmem:[%s10681_s10 + $0x490] sm:$0x3]  ;;  %v9196_v51 = vld [vmem:[%s10681_s10 + $0x4ac] sm:$0xc]  ;;  %v9213_v7 = vrot.slane %v9193_v32, 10 }
 0x222   : > { %2495 = vst.msk [vmem:[#allocation2 + $0x70] sm:$0xff] %vm618_vm9, %v2479_v43  ;;  %v2477_v36 = vadd.f32 %v11486_v12, %v2313_v20  ;;  %2709 = vst.msk [vmem:[#allocation2] sm:$0xff] %vm618_vm9, %v2693_v37  ;;  %v2696_v60 = vadd.f32 %v10086_v50, %v2516_v56  ;;  %v4855_v12 = vrot.slane %v9191_v59, 6  ;;  %v2518_v43 = vld [vmem:[#allocation2 + $0x28] sm:$0xff]  ;;  %v9198_v20 = vld [vmem:[%s10681_s10 + $0x4b4] sm:$0x3]  ;;  %v11679_v59 = vpop.f32.mrf.mxu0 }
 0x223   : > { %v2316_v21 = vld [vmem:[#allocation2 + $0x78] sm:$0xff]  ;;  %v2633_v25 = vpop.f32.mrf.mxu1  ;;  %v2523_v50 = vld [vmem:[#allocation2 + $0x50] sm:$0xff]  ;;  %v9214_v0 = vrot.slane %v9196_v51, 10  ;;  %v2521_v1 = vld [vmem:[#allocation2 + $0x40] sm:$0xff] }
 0x224   : > { %2493 = vst.msk [vmem:[#allocation2 + $0x60] sm:$0xff] %vm618_vm9, %v2477_v36  ;;  %v2480_v3 = vadd.f32 %v11503_v33, %v2316_v21  ;;  %2712 = vst.msk [vmem:[#allocation2 + $0x18] sm:$0xff] %vm618_vm9, %v2696_v60  ;;  %v2694_v45 = vadd.f32 %v2633_v25, %v2514_v22  ;;  %v4856_v29 = vsel %vm11494_vm12, %v9212_v38, %v4855_v12  ;;  %v4857_v5 = vrot.slane %v4855_v12, 4  ;;  %v11689_v11 = vpop.f32.mrf.mxu0  ;;  %v9200_v47 = vld [vmem:[%s10681_s10 + $0x4d4] sm:$0xf] }
 0x225   : > { %v2314_v24 = vld [vmem:[#allocation2 + $0x68] sm:$0xff]  ;;  %v10089_v39 = vpop.f32.mrf.mxu1  ;;  %v4862_v36 = vrot.slane %v9194_v16, 6  ;;  %v4865_v60 = vrot.slane %v9195_v58, 6  ;;  %v4869_v22 = vrot.slane %v9197_v14, 6  ;;  %v10600_v51 = vld [vmem:[%s13412_s3] sm:$0x3] }
 0x226   : > { %2496 = vst.msk [vmem:[#allocation2 + $0x78] sm:$0xff] %vm618_vm9, %v2480_v3  ;;  %v2478_v33 = vadd.f32 %v11521_v63, %v2314_v24  ;;  %2710 = vst.msk [vmem:[#allocation2 + $0x8] sm:$0xff] %vm618_vm9, %v2694_v45  ;;  %v2699_v40 = vadd.f32 %v10089_v39, %v2519_v48  ;;  %v4859_v9 = vsel %vm11494_vm12, %v4857_v5, %v4858_v46  ;;  %v4872_v45 = vrot.slane %v9198_v20, 6  ;;  %v2524_v39 = vld [vmem:[#allocation2 + $0x58] sm:$0xff] }
 0x227   : > { %v2831_v26 = vld [vmem:[#allocation2 + $0x10] sm:$0xff]  ;;  %v2646_v19 = vpop.f32.mrf.mxu1  ;;  %v9220_v49 = vcombine.low %v4856_v29, %v4859_v9  ;;  %v4863_v38 = vsel %vm11494_vm12, %v9213_v7, %v4862_v36  ;;  %v4864_v3 = vrot.slane %v4862_v36, 4  ;;  %v4870_v17 = vsel %vm11494_vm12, %v9214_v0, %v4869_v22  ;;  %v11707_v9 = vpop.f32.mrf.mxu0  ;;  %v9203_v36 = vld [vmem:[%s10681_s10 + $0x4f8] sm:$0xf] }
 0x228   : > { %2494 = vst.msk [vmem:[#allocation2 + $0x68] sm:$0xff] %vm618_vm9, %v2478_v33  ;;  %v2995_v63 = vadd.f32 %v11540_v8, %v2831_v26  ;;  %2715 = vst.msk [vmem:[#allocation2 + $0x30] sm:$0xff] %vm618_vm9, %v2699_v40  ;;  %v2697_v61 = vadd.f32 %v2646_v19, %v2517_v10  ;;  %v2522_v10 = vld [vmem:[#allocation2 + $0x48] sm:$0xff] }
 0x229   : > { %v2829_v34 = vld [vmem:[#allocation2] sm:$0xff]  ;;  %v10090_v30 = vpop.f32.mrf.mxu1  ;;  %10246 = vmatmul.mubr.msk.bf16.vlgmr.msra.gmra.mxu0 %vm338_vm1, %v9220_v49  ;;  %v4866_v46 = vsel %vm11494_vm12, %v4864_v3, %v4865_v60  ;;  %v2527_v4 = vld [vmem:[#allocation2 + $0x70] sm:$0xff]  ;;  %v9204_v60 = vld [vmem:[%s10681_s10 + $0x4fc] sm:$0x3] }
 0x22a   : > { %3011 = vst.msk [vmem:[#allocation2 + $0x10] sm:$0xff] %vm618_vm9, %v2995_v63  ;;  %v2993_v8 = vadd.f32 %v11554_v62, %v2829_v34  ;;  %2713 = vst.msk [vmem:[#allocation2 + $0x20] sm:$0xff] %vm618_vm9, %v2697_v61  ;;  %v2700_v31 = vadd.f32 %v10090_v30, %v2520_v28  ;;  %10280 = vmatpush3.bf16.msra.mxu0 %v5495_v53  ;;  %v9221_v40 = vcombine.low %v4863_v38, %v4866_v46  ;;  %v9199_v61 = vld [vmem:[%s10681_s10 + $0x4d0] sm:$0xc]  ;;  %v9201_v34 = vld [vmem:[%s10681_s10 + $0x4d8] sm:$0x3] }
 0x22b   : > { %v2832_v15 = vld [vmem:[#allocation2 + $0x18] sm:$0xff]  ;;  %v2649_v37 = vpop.f32.mrf.mxu1  ;;  %v2525_v16 = vld [vmem:[#allocation2 + $0x60] sm:$0xff]  ;;  %v4879_v7 = vrot.slane %v9201_v34, 6  ;;  %v11736_v46 = vld [vmem:[%s10681_s10 + $0xe8] sm:$0x3] }
 0x22c   : > { %3009 = vst.msk [vmem:[#allocation2] sm:$0xff] %vm618_vm9, %v2993_v8  ;;  %v2996_v62 = vadd.f32 %v11570_v18, %v2832_v15  ;;  %2716 = vst.msk [vmem:[#allocation2 + $0x38] sm:$0xff] %vm618_vm9, %v2700_v31  ;;  %v2698_v54 = vadd.f32 %v2649_v37, %v2518_v43  ;;  %10249 = vmatprep.mubr.msk.bf16.mxu0 %vm338_vm1, %v9221_v40  ;;  %v11710_v31 = vld [vmem:[%s10681_s10 + $0xe4] sm:$0xf]  ;;  %v3538_v15 = vsel %vm363_vm0, %v10600_v51, 0 }
 0x22d   : > { %v2830_v56 = vld [vmem:[#allocation2 + $0x8] sm:$0xff]  ;;  %v10093_v44 = vpop.f32.mrf.mxu1  ;;  %v9202_v43 = vld [vmem:[%s10681_s10 + $0x4f4] sm:$0xc] }
 0x22e   : > { %3012 = vst.msk [vmem:[#allocation2 + $0x18] sm:$0xff] %vm618_vm9, %v2996_v62  ;;  %v2994_v18 = vadd.f32 %v11582_v27, %v2830_v56  ;;  %2714 = vst.msk [vmem:[#allocation2 + $0x28] sm:$0xff] %vm618_vm9, %v2698_v54  ;;  %v2703_v21 = vadd.f32 %v10093_v44, %v2523_v50  ;;  %v4871_v27 = vrot.slane %v4869_v22, 4  ;;  %v9215_v62 = vrot.slane %v9199_v61, 10  ;;  %v10115_v22 = vpop.f32.mrf.mxu0 }
 0x22f   : > { %v2835_v25 = vld [vmem:[#allocation2 + $0x30] sm:$0xff]  ;;  %v2662_v2 = vpop.f32.mrf.mxu1  ;;  %v4876_v54 = vrot.slane %v9200_v47, 6  ;;  %v9216_v38 = vrot.slane %v9202_v43, 10 }
 0x230   : > { %3010 = vst.msk [vmem:[#allocation2 + $0x8] sm:$0xff] %vm618_vm9, %v2994_v18  ;;  %v2999_v12 = vadd.f32 %v11600_v6, %v2835_v25  ;;  %2719 = vst.msk [vmem:[#allocation2 + $0x50] sm:$0xff] %vm618_vm9, %v2703_v21  ;;  %v2701_v24 = vadd.f32 %v2662_v2, %v2521_v1  ;;  %v4873_v29 = vsel %vm11494_vm12, %v4871_v27, %v4872_v45  ;;  %v2528_v18 = vld [vmem:[#allocation2 + $0x78] sm:$0xff] }
 0x231   : > { %v2833_v48 = vld [vmem:[#allocation2 + $0x20] sm:$0xff]  ;;  %v10094_v55 = vpop.f32.mrf.mxu1  ;;  %v9222_v63 = vcombine.low %v4870_v17, %v4873_v29  ;;  %v3027_v58 = vld [vmem:[#allocation2 + $0x10] sm:$0xff]  ;;  %v4877_v1 = vsel %vm11494_vm12, %v9215_v62, %v4876_v54  ;;  %v4878_v2 = vrot.slane %v4876_v54, 4  ;;  %v2978_v29 = vpop.f32.mrf.mxu0 }
 0x232   : > { %3015 = vst.msk [vmem:[#allocation2 + $0x30] sm:$0xff] %vm618_vm9, %v2999_v12  ;;  %v2997_v6 = vadd.f32 %v11612_v41, %v2833_v48  ;;  %2717 = vst.msk [vmem:[#allocation2 + $0x40] sm:$0xff] %vm618_vm9, %v2701_v24  ;;  %v2704_v33 = vadd.f32 %v10094_v55, %v2524_v39  ;;  %v3043_v25 = vmax.f32 %v3027_v58, 0.0  ;;  %v11732_v12 = vld [vmem:[%s10681_s10 + $0xe0] sm:$0xc]  ;;  %v3419_v24 = vrot.slane %v11710_v31, 6 }
 0x233   : > { %v2836_v26 = vld [vmem:[#allocation2 + $0x38] sm:$0xff]  ;;  %v2665_v19 = vpop.f32.mrf.mxu1  ;;  %v3025_v32 = vld [vmem:[#allocation2] sm:$0xff]  ;;  %10250 = vmatmul.mubr.msk.bf16.gmra.mxu0 %vm338_vm1, %v9222_v63  ;;  %v2526_v48 = vld [vmem:[#allocation2 + $0x68] sm:$0xff]  ;;  %v4880_v17 = vsel %vm11494_vm12, %v4878_v2, %v4879_v7  ;;  %v8987_v34 = vrot.slane %v11732_v12, 10  ;;  %v10116_v62 = vpop.f32.mrf.mxu0 }
 0x234   : > { %3013 = vst.msk [vmem:[#allocation2 + $0x20] sm:$0xff] %vm618_vm9, %v2997_v6  ;;  %v3000_v5 = vadd.f32 %v11631_v57, %v2836_v26  ;;  %2720 = vst.msk [vmem:[#allocation2 + $0x58] sm:$0xff] %vm618_vm9, %v2704_v33  ;;  %v2702_v41 = vadd.f32 %v2665_v19, %v2522_v10  ;;  %v3041_v50 = vmax.f32 %v3025_v32, 0.0  ;;  %v4883_v6 = vrot.slane %v9203_v36, 6  ;;  %v11747_v26 = vld [vmem:[%s13412_s3 + $0x4] sm:$0x3] }
 0x235   : > { %v2834_v28 = vld [vmem:[#allocation2 + $0x28] sm:$0xff]  ;;  %v10097_v30 = vpop.f32.mrf.mxu1  ;;  %v3028_v8 = vld [vmem:[#allocation2 + $0x18] sm:$0xff]  ;;  %v11750_v10 = vld [vmem:[%s10681_s10 + $0x104] sm:$0xc]  ;;  %v9223_v19 = vcombine.low %v4877_v1, %v4880_v17 }
 0x236   : > { %3016 = vst.msk [vmem:[#allocation2 + $0x38] sm:$0xff] %vm618_vm9, %v3000_v5  ;;  %v2998_v57 = vadd.f32 %v11642_v52, %v2834_v28  ;;  %2718 = vst.msk [vmem:[#allocation2 + $0x48] sm:$0xff] %vm618_vm9, %v2702_v41  ;;  %v2707_v49 = vadd.f32 %v10097_v30, %v2527_v4  ;;  %v3044_v52 = vmax.f32 %v3028_v8, 0.0  ;;  %v4884_v41 = vsel %vm11494_vm12, %v9216_v38, %v4883_v6  ;;  %v9205_v32 = vld [vmem:[%s10681_s10 + $0x518] sm:$0xc] }
 0x237   : > { %v2839_v37 = vld [vmem:[#allocation2 + $0x50] sm:$0xff]  ;;  %v2678_v53 = vpop.f32.mrf.mxu1  ;;  %v3026_v14 = vld [vmem:[#allocation2 + $0x8] sm:$0xff]  ;;  %v4885_v63 = vrot.slane %v4883_v6, 4  ;;  %v11761_v28 = vrot.slane %v3419_v24, 4  ;;  %v3422_v30 = vrot.slane %v11736_v46, 6  ;;  %10253 = vmatprep.mubr.msk.bf16.mxu0 %vm338_vm1, %v9223_v19 }
 0x238   : > { %3014 = vst.msk [vmem:[#allocation2 + $0x28] sm:$0xff] %vm618_vm9, %v2998_v57  ;;  %v3003_v20 = vadd.f32 %v11660_v42, %v2839_v37  ;;  %2723 = vst.msk [vmem:[#allocation2 + $0x70] sm:$0xff] %vm618_vm9, %v2707_v49  ;;  %v2705_v56 = vadd.f32 %v2678_v53, %v2525_v16  ;;  %v3042_v44 = vmax.f32 %v3026_v14, 0.0  ;;  %v3058_v55 = vpack.c.bf16 %v3044_v52, %v3043_v25  ;;  %v9206_v58 = vld [vmem:[%s10681_s10 + $0x51c] sm:$0xf] }
 0x239   : > { %v2837_v0 = vld [vmem:[#allocation2 + $0x40] sm:$0xff]  ;;  %v10098_v21 = vpop.f32.mrf.mxu1  ;;  %v3031_v47 = vld [vmem:[#allocation2 + $0x30] sm:$0xff]  ;;  %v8988_v49 = vrot.slane %v11750_v10, 10  ;;  %v9208_v14 = vld [vmem:[%s10681_s10 + $0x53c] sm:$0xc]  ;;  %v4890_v25 = vrot.slane %v9206_v58, 6 }
 0x23a   : > { %3019 = vst.msk [vmem:[#allocation2 + $0x50] sm:$0xff] %vm618_vm9, %v3003_v20  ;;  %v3001_v42 = vadd.f32 %v11679_v59, %v2837_v0  ;;  %2721 = vst.msk [vmem:[#allocation2 + $0x60] sm:$0xff] %vm618_vm9, %v2705_v56  ;;  %v2708_v3 = vadd.f32 %v10098_v21, %v2528_v18  ;;  %v3057_v45 = vpack.c.bf16 %v3042_v44, %v3041_v50  ;;  %v4886_v59 = vrot.slane %v9204_v60, 6  ;;  %v9207_v53 = vld [vmem:[%s10681_s10 + $0x520] sm:$0x3] }
 0x23b   : > { %v2840_v27 = vld [vmem:[#allocation2 + $0x58] sm:$0xff]  ;;  %v2681_v39 = vpop.f32.mrf.mxu1  ;;  %v3029_v5 = vld [vmem:[#allocation2 + $0x20] sm:$0xff]  ;;  %v3047_v54 = vmax.f32 %v3031_v47, 0.0  ;;  %v9217_v20 = vrot.slane %v9205_v32, 10  ;;  %v9267_v60 = vld [vmem:[%s10681_s10 + $0x44c] sm:$0xc] }
 0x23c   : > { %3017 = vst.msk [vmem:[#allocation2 + $0x40] sm:$0xff] %vm618_vm9, %v3001_v42  ;;  %v3004_v33 = vadd.f32 %v11689_v11, %v2840_v27  ;;  %2724 = vst.msk [vmem:[#allocation2 + $0x78] sm:$0xff] %vm618_vm9, %v2708_v3  ;;  %v2706_v40 = vadd.f32 %v2681_v39, %v2526_v48  ;;  %10119 = vmatprep.mubr.msk.bf16.mxu1 %vm618_vm9, %v3057_v45  ;;  %v4887_v16 = vsel %vm11494_vm12, %v4885_v63, %v4886_v59  ;;  %v9209_v56 = vld [vmem:[%s10681_s10 + $0x540] sm:$0xf]  ;;  %v9210_v36 = vld [vmem:[%s10681_s10 + $0x544] sm:$0x3]  ;;  %v2981_v39 = vpop.f32.mrf.mxu0 }
 0x23d   : > { %v2838_v4 = vld [vmem:[#allocation2 + $0x48] sm:$0xff]  ;;  %10120 = vmatmul.mubr.msk.bf16.vlgmr.msra.gmra.mxu1 %vm618_vm9, %v3058_v55  ;;  %v3032_v11 = vld [vmem:[#allocation2 + $0x38] sm:$0xff]  ;;  %v9224_v37 = vcombine.low %v4884_v41, %v4887_v16  ;;  %v9268_v0 = vld [vmem:[%s10681_s10 + $0x450] sm:$0xf]  ;;  %v4893_v1 = vrot.slane %v9207_v53, 6  ;;  %v9218_v2 = vrot.slane %v9208_v14, 10  ;;  %v4891_v6 = vsel %vm11494_vm12, %v9217_v20, %v4890_v25 }
 0x23e   : > { %3020 = vst.msk [vmem:[#allocation2 + $0x58] sm:$0xff] %vm618_vm9, %v3004_v33  ;;  %v3002_v61 = vadd.f32 %v11707_v9, %v2838_v4  ;;  %2722 = vst.msk [vmem:[#allocation2 + $0x68] sm:$0xff] %vm618_vm9, %v2706_v40  ;;  %10154 = vmatpush3.bf16.msra.mxu1 %v3538_v15  ;;  %v3048_v9 = vmax.f32 %v3032_v11, 0.0  ;;  %v3045_v15 = vmax.f32 %v3029_v5, 0.0  ;;  %v4897_v3 = vrot.slane %v9209_v56, 6 }
 0x23f   : > { %v2843_v8 = vld [vmem:[#allocation2 + $0x70] sm:$0xff]  ;;  %v3030_v57 = vld [vmem:[#allocation2 + $0x28] sm:$0xff]  ;;  %10509 = vmatprep.subr.msk.bf16.mxu1 %vm363_vm0, %v11747_v26  ;;  %10254 = vmatmul.mubr.msk.bf16.gmra.mxu0 %vm338_vm1, %v9224_v37  ;;  %v4892_v59 = vrot.slane %v4890_v25, 4  ;;  %v4900_v33 = vrot.slane %v9210_v36, 6  ;;  %v9291_v40 = vrot.slane %v9267_v60, 10  ;;  %v5376_v32 = vrot.slane %v9268_v0, 6 }
 0x240   : > { %3018 = vst.msk [vmem:[#allocation2 + $0x48] sm:$0xff] %vm618_vm9, %v3002_v61  ;;  %v3007_v51 = vadd.f32 %v10115_v22, %v2843_v8  ;;  %v3046_v43 = vmax.f32 %v3030_v57, 0.0  ;;  %v3060_v21 = vpack.c.bf16 %v3048_v9, %v3047_v54  ;;  %v9269_v45 = vld [vmem:[%s10681_s10 + $0x454] sm:$0x3]  ;;  %v9270_v27 = vld [vmem:[%s10681_s10 + $0x470] sm:$0xc] }
 0x241   : > { %v2841_v52 = vld [vmem:[#allocation2 + $0x60] sm:$0xff]  ;;  %v11775_v7 = vld [vmem:[#allocation2 + $0x50] sm:$0xff]  ;;  %v11790_v17 = vld [vmem:[%s10681_s10 + $0x108] sm:$0xf]  ;;  %v4899_v5 = vrot.slane %v4897_v3, 4  ;;  %v4894_v47 = vsel %vm11494_vm12, %v4892_v59, %v4893_v1  ;;  %v5379_v8 = vrot.slane %v9269_v45, 6  ;;  %v5377_v53 = vsel %vm11494_vm12, %v9291_v40, %v5376_v32 }
 0x242   : > { %3023 = vst.msk [vmem:[#allocation2 + $0x70] sm:$0xff] %vm618_vm9, %v3007_v51  ;;  %v3005_v50 = vadd.f32 %v2978_v29, %v2841_v52  ;;  %v3059_v44 = vpack.c.bf16 %v3046_v43, %v3045_v15  ;;  %v3051_v42 = vmax.f32 %v11775_v7, 0.0  ;;  %v4898_v29 = vsel %vm11494_vm12, %v9218_v2, %v4897_v3  ;;  %v9271_v11 = vld [vmem:[%s10681_s10 + $0x474] sm:$0xf]  ;;  %v9272_v41 = vld [vmem:[%s10681_s10 + $0x478] sm:$0x3] }
 0x243   : > { %v2844_v18 = vld [vmem:[#allocation2 + $0x78] sm:$0xff]  ;;  %v3033_v22 = vld [vmem:[#allocation2 + $0x40] sm:$0xff]  ;;  %v9273_v57 = vld [vmem:[%s10681_s10 + $0x494] sm:$0xc]  ;;  %v9225_v16 = vcombine.low %v4891_v6, %v4894_v47  ;;  %v4901_v58 = vsel %vm11494_vm12, %v4899_v5, %v4900_v33  ;;  %v9292_v51 = vrot.slane %v9270_v27, 10  ;;  %v5378_v14 = vrot.slane %v5376_v32, 4 }
 0x244   : > { %3021 = vst.msk [vmem:[#allocation2 + $0x60] sm:$0xff] %vm618_vm9, %v3005_v50  ;;  %v3008_v38 = vadd.f32 %v10116_v62, %v2844_v18  ;;  %10123 = vmatprep.mubr.msk.bf16.mxu1 %vm618_vm9, %v3059_v44  ;;  %v3049_v4 = vmax.f32 %v3033_v22, 0.0  ;;  %v9274_v15 = vld [vmem:[%s10681_s10 + $0x498] sm:$0xf]  ;;  %v11807_v43 = vld [vmem:[%s10681_s10 + $0x12c] sm:$0xf]  ;;  %v9226_v37 = vcombine.low %v4898_v29, %v4901_v58  ;;  %v3420_v33 = vsel %vm11494_vm12, %v8987_v34, %v3419_v24 }
 0x245   : > { %v2842_v48 = vld [vmem:[#allocation2 + $0x68] sm:$0xff]  ;;  %10124 = vmatmul.mubr.msk.bf16.gmra.mxu1 %vm618_vm9, %v3060_v21  ;;  %v3036_v55 = vld [vmem:[#allocation2 + $0x58] sm:$0xff]  ;;  %v5383_v52 = vrot.slane %v9271_v11, 6  ;;  %v3426_v7 = vrot.slane %v11790_v17, 6  ;;  %10257 = vmatprep.mubr.msk.bf16.mxu0 %vm338_vm1, %v9225_v16  ;;  %v5386_v20 = vrot.slane %v9272_v41, 6  ;;  %v9293_v56 = vrot.slane %v9273_v57, 10 }
 0x246   : > { %3024 = vst.msk [vmem:[#allocation2 + $0x78] sm:$0xff] %vm618_vm9, %v3008_v38  ;;  %v3006_v19 = vadd.f32 %v2981_v39, %v2842_v48  ;;  %v3052_v61 = vmax.f32 %v3036_v55, 0.0  ;;  %v9275_v62 = vld [vmem:[%s10681_s10 + $0x49c] sm:$0x3]  ;;  %v5380_v60 = vsel %vm11494_vm12, %v5378_v14, %v5379_v8  ;;  %v5390_v18 = vrot.slane %v9274_v15, 6 }
 0x247   : > { %v3034_v63 = vld [vmem:[#allocation2 + $0x48] sm:$0xff]  ;;  %v9277_v50 = vld [vmem:[%s10681_s10 + $0x4bc] sm:$0xf]  ;;  %10258 = vmatmul.mubr.msk.bf16.gmra.mxu0 %vm338_vm1, %v9226_v37  ;;  %v5385_v0 = vrot.slane %v5383_v52, 4  ;;  %v9276_v21 = vld [vmem:[%s10681_s10 + $0x4b8] sm:$0xc]  ;;  %v9299_v25 = vcombine.low %v5377_v53, %v5380_v60  ;;  %v5384_v1 = vsel %vm11494_vm12, %v9292_v51, %v5383_v52  ;;  %v3423_v40 = vsel %vm11494_vm12, %v11761_v28, %v3422_v30 }
 0x248   : > { %3022 = vst.msk [vmem:[#allocation2 + $0x68] sm:$0xff] %vm618_vm9, %v3006_v19  ;;  %v3050_v9 = vmax.f32 %v3034_v63, 0.0  ;;  %v3062_v44 = vpack.c.bf16 %v3052_v61, %v3051_v42  ;;  %v3433_v22 = vrot.slane %v11807_v43, 6  ;;  %v5393_v2 = vrot.slane %v9275_v62, 6  ;;  %v9280_v38 = vld [vmem:[%s10681_s10 + $0x4e0] sm:$0xf] }
 0x249   : > { %v3039_v42 = vld [vmem:[#allocation2 + $0x70] sm:$0xff]  ;;  %v8968_v45 = vld [vmem:[%s10681_s10 + $0x10c] sm:$0x3]  ;;  %v5387_v27 = vsel %vm11494_vm12, %v5385_v0, %v5386_v20  ;;  %v5391_v48 = vsel %vm11494_vm12, %v9293_v56, %v5390_v18  ;;  %v5392_v39 = vrot.slane %v5390_v18, 4  ;;  %v9278_v55 = vld [vmem:[%s10681_s10 + $0x4c0] sm:$0x3]  ;;  %10281 = vmatprep.mubr.msk.bf16.mxu0 %vm338_vm1, %v9299_v25  ;;  %v8995_v16 = vcombine.low %v3420_v33, %v3423_v40 }
 0x24a   : > { %v3061_v54 = vpack.c.bf16 %v3050_v9, %v3049_v4  ;;  %v5397_v6 = vrot.slane %v9277_v50, 6  ;;  %v9294_v19 = vrot.slane %v9276_v21, 10  ;;  %v9279_v4 = vld [vmem:[%s10681_s10 + $0x4dc] sm:$0xc]  ;;  %v9281_v29 = vld [vmem:[%s10681_s10 + $0x4e4] sm:$0x3]  ;;  %v9300_v41 = vcombine.low %v5384_v1, %v5387_v27 }
 0x24b   : > { %v3037_v36 = vld [vmem:[#allocation2 + $0x60] sm:$0xff]  ;;  %v8969_v31 = vld [vmem:[%s10681_s10 + $0x128] sm:$0xc]  ;;  %v5394_v12 = vsel %vm11494_vm12, %v5392_v39, %v5393_v2  ;;  %v5404_v24 = vrot.slane %v9280_v38, 6  ;;  %v8971_v34 = vld [vmem:[%s10681_s10 + $0x130] sm:$0x3]  ;;  %v3427_v25 = vsel %vm11494_vm12, %v8988_v49, %v3426_v7 }
 0x24c   : > { %10127 = vmatprep.mubr.msk.bf16.mxu1 %vm618_vm9, %v3061_v54  ;;  %v3053_v59 = vmax.f32 %v3037_v36, 0.0  ;;  %v9301_v63 = vcombine.low %v5391_v48, %v5394_v12  ;;  %v5399_v28 = vrot.slane %v5397_v6, 4  ;;  %v5400_v30 = vrot.slane %v9278_v55, 6  ;;  %v9283_v57 = vld [vmem:[%s10681_s10 + $0x504] sm:$0xf] }
 0x24d   : > { %10128 = vmatmul.mubr.msk.bf16.gmra.mxu1 %vm618_vm9, %v3062_v44  ;;  %v3040_v3 = vld [vmem:[#allocation2 + $0x78] sm:$0xff]  ;;  %v3055_v61 = vmax.f32 %v3039_v42, 0.0  ;;  %v9295_v47 = vrot.slane %v9279_v4, 10  ;;  %v5406_v32 = vrot.slane %v5404_v24, 4  ;;  %v5407_v8 = vrot.slane %v9281_v29, 6 }
 0x24e   : > { %v3056_v11 = vmax.f32 %v3040_v3, 0.0  ;;  %v3428_v58 = vrot.slane %v3426_v7, 4  ;;  %v3429_v51 = vrot.slane %v8968_v45, 6  ;;  %v11853_v15 = vld [vmem:[%s10681_s10 + $0x150] sm:$0xf]  ;;  %v8989_v14 = vrot.slane %v8969_v31, 10 }
 0x24f   : > { %v3038_v5 = vld [vmem:[#allocation2 + $0x68] sm:$0xff]  ;;  %v3435_v52 = vrot.slane %v3433_v22, 4  ;;  %v3436_v62 = vrot.slane %v8971_v34, 6  ;;  %10282 = vmatmul.mubr.msk.bf16.vlgmr.msra.gmra.mxu0 %vm338_vm1, %v9300_v41  ;;  %v11861_v54 = vld [vmem:[%s10681_s10 + $0x174] sm:$0xf]  ;;  %v5398_v20 = vsel %vm11494_vm12, %v9294_v19, %v5397_v6  ;;  %v5401_v56 = vsel %vm11494_vm12, %v5399_v28, %v5400_v30 }
 0x250   : > { %v3054_v46 = vmax.f32 %v3038_v5, 0.0  ;;  %v9286_v37 = vld [vmem:[%s10681_s10 + $0x528] sm:$0xf]  ;;  %v3064_v53 = vpack.c.bf16 %v3056_v11, %v3055_v61  ;;  %10285 = vmatprep.mubr.msk.bf16.mxu0 %vm338_vm1, %v9301_v63  ;;  %v5411_v50 = vrot.slane %v9283_v57, 6  ;;  %v3440_v44 = vrot.slane %v11853_v15, 6 }
 0x251   : > { %v5405_v36 = vsel %vm11494_vm12, %v9295_v47, %v5404_v24  ;;  %v5408_v60 = vsel %vm11494_vm12, %v5406_v32, %v5407_v8  ;;  %v9282_v0 = vld [vmem:[%s10681_s10 + $0x500] sm:$0xc]  ;;  %v9284_v18 = vld [vmem:[%s10681_s10 + $0x508] sm:$0x3]  ;;  %v5418_v21 = vrot.slane %v9286_v37, 6  ;;  %v3430_v1 = vsel %vm11494_vm12, %v3428_v58, %v3429_v51 }
 0x252   : > { %v3063_v9 = vpack.c.bf16 %v3054_v46, %v3053_v59  ;;  %v8972_v2 = vld [vmem:[%s10681_s10 + $0x14c] sm:$0xc]  ;;  %v9285_v38 = vld [vmem:[%s10681_s10 + $0x524] sm:$0xc]  ;;  %v9287_v42 = vld [vmem:[%s10681_s10 + $0x52c] sm:$0x3]  ;;  %v3434_v3 = vsel %vm11494_vm12, %v8989_v14, %v3433_v22  ;;  %v3437_v17 = vsel %vm11494_vm12, %v3435_v52, %v3436_v62  ;;  %v9302_v49 = vcombine.low %v5398_v20, %v5401_v56 }
 0x253   : > { %v8974_v45 = vld [vmem:[%s10681_s10 + $0x154] sm:$0x3]  ;;  %v8975_v10 = vld [vmem:[%s10681_s10 + $0x170] sm:$0xc]  ;;  %v3447_v27 = vrot.slane %v11861_v54, 6  ;;  %v9303_v48 = vcombine.low %v5405_v36, %v5408_v60  ;;  %v9296_v39 = vrot.slane %v9282_v0, 10  ;;  %v8996_v43 = vcombine.low %v3427_v25, %v3430_v1 }
 0x254   : > { %10131 = vmatprep.mubr.msk.bf16.mxu1 %vm618_vm9, %v3063_v9  ;;  %v8977_v7 = vld [vmem:[%s10681_s10 + $0x178] sm:$0x3]  ;;  %v5413_v55 = vrot.slane %v5411_v50, 4  ;;  %v5414_v6 = vrot.slane %v9284_v18, 6  ;;  %v9297_v59 = vrot.slane %v9285_v38, 10  ;;  %v5420_v33 = vrot.slane %v5418_v21, 4 }
 0x255   : > { %10132 = vmatmul.mubr.msk.bf16.gmra.mxu1 %vm618_vm9, %v3064_v53  ;;  %v5421_v40 = vrot.slane %v9287_v42, 6  ;;  %v9289_v22 = vld [vmem:[%s10681_s10 + $0x54c] sm:$0xf]  ;;  %v8997_v19 = vcombine.low %v3434_v3, %v3437_v17  ;;  %v8990_v4 = vrot.slane %v8972_v2, 10  ;;  %v3442_v29 = vrot.slane %v3440_v44, 4 }
 0x256   : > { %10155 = vmatprep.mubr.msk.bf16.mxu1 %vm338_vm1, %v8995_v16  ;;  %v3443_v5 = vrot.slane %v8974_v45, 6  ;;  %v4066_v11 = vsel %vm363_vm0, %v11747_v26, 0  ;;  %v8991_v31 = vrot.slane %v8975_v10, 10  ;;  %v3449_v41 = vrot.slane %v3447_v27, 4  ;;  %v8979_v24 = vld [vmem:[%s10681_s10 + $0x198] sm:$0xf] }
 0x257   : > { %v3450_v12 = vrot.slane %v8977_v7, 6  ;;  %10286 = vmatmul.mubr.msk.bf16.gmra.mxu0 %vm338_vm1, %v9302_v49  ;;  %v8982_v46 = vld [vmem:[%s10681_s10 + $0x1bc] sm:$0xf]  ;;  %v11907_v34 = vld [vmem:[%s13412_s3 + $0xa] sm:$0x3]  ;;  %v5412_v63 = vsel %vm11494_vm12, %v9296_v39, %v5411_v50  ;;  %v5415_v26 = vsel %vm11494_vm12, %v5413_v55, %v5414_v6  ;;  %v5425_v28 = vrot.slane %v9289_v22, 6 }
 0x258   : > { %10289 = vmatprep.mubr.msk.bf16.mxu0 %vm338_vm1, %v9303_v48  ;;  %v5419_v30 = vsel %vm11494_vm12, %v9297_v59, %v5418_v21  ;;  %v5422_v61 = vsel %vm11494_vm12, %v5420_v33, %v5421_v40  ;;  %v9288_v47 = vld [vmem:[%s10681_s10 + $0x548] sm:$0xc]  ;;  %v9290_v32 = vld [vmem:[%s10681_s10 + $0x550] sm:$0x3]  ;;  %v3441_v8 = vsel %vm11494_vm12, %v8990_v4, %v3440_v44  ;;  %v3444_v57 = vsel %vm11494_vm12, %v3442_v29, %v3443_v5  ;;  %v8978_v9 = vld [vmem:[%s10681_s10 + $0x194] sm:$0xc] }
 0x259   : > { %v3454_v16 = vrot.slane %v8979_v24, 6  ;;  %v3448_v58 = vsel %vm11494_vm12, %v8991_v31, %v3447_v27  ;;  %v3451_v51 = vsel %vm11494_vm12, %v3449_v41, %v3450_v12  ;;  %v8980_v15 = vld [vmem:[%s10681_s10 + $0x19c] sm:$0x3]  ;;  %v8981_v37 = vld [vmem:[%s10681_s10 + $0x1b8] sm:$0xc]  ;;  %v3461_v53 = vrot.slane %v8982_v46, 6 }
 0x25a   : > { %v9304_v14 = vcombine.low %v5412_v63, %v5415_v26  ;;  %v8983_v52 = vld [vmem:[%s10681_s10 + $0x1c0] sm:$0x3]  ;;  %v9305_v62 = vcombine.low %v5419_v30, %v5422_v61  ;;  %v9298_v54 = vrot.slane %v9288_v47, 10  ;;  %v5427_v20 = vrot.slane %v5425_v28, 4  ;;  %v9044_v2 = vld [vmem:[%s10681_s10 + $0xf0] sm:$0xf] }
 0x25b   : > { %v5428_v56 = vrot.slane %v9290_v32, 6  ;;  %v8998_v50 = vcombine.low %v3441_v8, %v3444_v57  ;;  %v8999_v44 = vcombine.low %v3448_v58, %v3451_v51  ;;  %v8992_v36 = vrot.slane %v8978_v9, 10  ;;  %v8985_v1 = vld [vmem:[%s10681_s10 + $0x1e0] sm:$0xf]  ;;  %v8984_v49 = vld [vmem:[%s10681_s10 + $0x1dc] sm:$0xc] }
 0x25c   : > { %v3456_v60 = vrot.slane %v3454_v16, 4  ;;  %v3457_v0 = vrot.slane %v8980_v15, 6  ;;  %v8993_v18 = vrot.slane %v8981_v37, 10  ;;  %v3463_v21 = vrot.slane %v3461_v53, 4  ;;  %v8986_v7 = vld [vmem:[%s10681_s10 + $0x1e4] sm:$0x3] }
 0x25d   : > { %10156 = vmatmul.mubr.msk.bf16.vlgmr.msra.gmra.mxu1 %vm338_vm1, %v8996_v43  ;;  %v3464_v25 = vrot.slane %v8983_v52, 6  ;;  %v5426_v38 = vsel %vm11494_vm12, %v9298_v54, %v5425_v28  ;;  %v5429_v42 = vsel %vm11494_vm12, %v5427_v20, %v5428_v56  ;;  %v3455_v3 = vsel %vm11494_vm12, %v8992_v36, %v3454_v16  ;;  %v9043_v55 = vld [vmem:[%s10681_s10 + $0xec] sm:$0xc]  ;;  %v9045_v6 = vld [vmem:[%s10681_s10 + $0xf4] sm:$0x3]  ;;  %v10601_v31 = vld [vmem:[%s10681_s10 + $0x298] sm:$0xff]  }
 0x25e   : > { %10190 = vmatpush3.bf16.msra.mxu1 %v4066_v11  ;;  %10159 = vmatprep.mubr.msk.bf16.mxu1 %vm338_vm1, %v8997_v19  ;;  %v3458_v17 = vsel %vm11494_vm12, %v3456_v60, %v3457_v0  ;;  %v3468_v45 = vrot.slane %v8985_v1, 6  ;;  %v3462_v10 = vsel %vm11494_vm12, %v8993_v18, %v3461_v53  ;;  %v3947_v48 = vrot.slane %v9044_v2, 6  ;;  %v9047_v5 = vld [vmem:[%s10681_s10 + $0x114] sm:$0xf]  ;;  %v9050_v11 = vld [vmem:[%s10681_s10 + $0x138] sm:$0xf] }
 0x25f   : > { %10511 = vmatprep.subr.msk.bf16.mxu1 %vm363_vm0, %v11907_v34  ;;  %10290 = vmatmul.mubr.msk.bf16.gmra.mxu0 %vm338_vm1, %v9304_v14  ;;  %v3465_v27 = vsel %vm11494_vm12, %v3463_v21, %v3464_v25  ;;  %v9306_v39 = vcombine.low %v5426_v38, %v5429_v42  ;;  %v9000_v43 = vcombine.low %v3455_v3, %v3458_v17  ;;  %v8994_v33 = vrot.slane %v8984_v49, 10  ;;  %v9046_v26 = vld [vmem:[%s10681_s10 + $0x110] sm:$0xc]  ;;  %v9048_v28 = vld [vmem:[%s10681_s10 + $0x118] sm:$0x3] }
 0x260   : > { %10293 = vmatprep.mubr.msk.bf16.mxu0 %vm338_vm1, %v9305_v62  ;;  %v9001_v59 = vcombine.low %v3462_v10, %v3465_v27  ;;  %v3470_v40 = vrot.slane %v3468_v45, 4  ;;  %v3471_v22 = vrot.slane %v8986_v7, 6  ;;  %v9067_v19 = vrot.slane %v9043_v55, 10  ;;  %v9049_v61 = vld [vmem:[%s10681_s10 + $0x134] sm:$0xc] }
 0x261   : > { %v3949_v4 = vrot.slane %v3947_v48, 4  ;;  %v3950_v29 = vrot.slane %v9045_v6, 6  ;;  %v3469_v41 = vsel %vm11494_vm12, %v8994_v33, %v3468_v45  ;;  %v3954_v24 = vrot.slane %v9047_v5, 6  ;;  %v9051_v47 = vld [vmem:[%s10681_s10 + $0x13c] sm:$0x3] }
 0x262   : > { %v3472_v12 = vsel %vm11494_vm12, %v3470_v40, %v3471_v22  ;;  %v3948_v46 = vsel %vm11494_vm12, %v9067_v19, %v3947_v48  ;;  %v3961_v30 = vrot.slane %v9050_v11, 6  ;;  %v9068_v57 = vrot.slane %v9046_v26, 10  ;;  %v9053_v37 = vld [vmem:[%s10681_s10 + $0x15c] sm:$0xf]  ;;  %v9056_v53 = vld [vmem:[%s10681_s10 + $0x180] sm:$0xf]  ;;  %v10139_v40 = vpop.f32.mrf.mxu0 }
 0x263   : > { %v3951_v63 = vsel %vm11494_vm12, %v3949_v4, %v3950_v29  ;;  %v9002_v32 = vcombine.low %v3469_v41, %v3472_v12  ;;  %v3956_v9 = vrot.slane %v3954_v24, 4  ;;  %v3957_v16 = vrot.slane %v9048_v28, 6  ;;  %v9052_v56 = vld [vmem:[%s10681_s10 + $0x158] sm:$0xc]  ;;  %v9055_v36 = vld [vmem:[%s10681_s10 + $0x17c] sm:$0xc] }
 0x264   : > { %v9075_v8 = vcombine.low %v3948_v46, %v3951_v63  ;;  %v9069_v58 = vrot.slane %v9049_v61, 10  ;;  %v3963_v51 = vrot.slane %v3961_v30, 4  ;;  %v3964_v15 = vrot.slane %v9051_v47, 6  ;;  %v9057_v60 = vld [vmem:[%s10681_s10 + $0x184] sm:$0x3]  ;;  %3351 = vst.msk [vmem:[#allocation2 + $0x10] sm:$0xff] %vm618_vm9, %v10139_v40  ;;  %v3286_v12 = vpop.f32.mrf.mxu0 }
 0x265   : > { %10160 = vmatmul.mubr.msk.bf16.gmra.mxu1 %vm338_vm1, %v8998_v50  ;;  %v3955_v14 = vsel %vm11494_vm12, %v9068_v57, %v3954_v24  ;;  %v3958_v52 = vsel %vm11494_vm12, %v3956_v9, %v3957_v16  ;;  %v3968_v62 = vrot.slane %v9053_v37, 6  ;;  %v9054_v50 = vld [vmem:[%s10681_s10 + $0x160] sm:$0x3]  ;;  %v9070_v21 = vrot.slane %v9052_v56, 10  ;;  %v9059_v17 = vld [vmem:[%s10681_s10 + $0x1a4] sm:$0xf] }
 0x266   : > { %10163 = vmatprep.mubr.msk.bf16.mxu1 %vm338_vm1, %v8999_v44  ;;  %v3962_v54 = vsel %vm11494_vm12, %v9069_v58, %v3961_v30  ;;  %v3965_v20 = vsel %vm11494_vm12, %v3963_v51, %v3964_v15  ;;  %v3975_v44 = vrot.slane %v9056_v53, 6  ;;  %v9076_v0 = vcombine.low %v3955_v14, %v3958_v52  ;;  %v9062_v45 = vld [vmem:[%s10681_s10 + $0x1c8] sm:$0xf]  ;;  %v12000_v10 = vld [vmem:[%s13412_s3 + $0xe] sm:$0x3]  ;;  %3349 = vst.msk [vmem:[#allocation2] sm:$0xff] %vm618_vm9, %v3286_v12  ;;  %v10140_v46 = vpop.f32.mrf.mxu0 }
 0x267   : > { %10294 = vmatmul.mubr.msk.bf16.gmra.mxu0 %vm338_vm1, %v9306_v39  ;;  %v9077_v18 = vcombine.low %v3962_v54, %v3965_v20  ;;  %v3970_v25 = vrot.slane %v3968_v62, 4  ;;  %v3971_v1 = vrot.slane %v9054_v50, 6  ;;  %v4666_v2 = vsel %vm363_vm0, %v11907_v34, 0  ;;  %v9058_v39 = vld [vmem:[%s10681_s10 + $0x1a0] sm:$0xc]  ;;  %3352 = vst.msk [vmem:[#allocation2 + $0x18] sm:$0xff] %vm618_vm9, %v10140_v46 }
 0x268   : > { %10317 = vmatprep.mubr.msk.bf16.mxu0 %vm338_vm1, %v10601_v31  ;;  %v9071_v38 = vrot.slane %v9055_v36, 10  ;;  %v3977_v42 = vrot.slane %v3975_v44, 4  ;;  %v3978_v3 = vrot.slane %v9057_v60, 6  ;;  %v3969_v34 = vsel %vm11494_vm12, %v9070_v21, %v3968_v62  ;;  %v9060_v55 = vld [vmem:[%s10681_s10 + $0x1a8] sm:$0x3]  ;;  %v3289_v57 = vpop.f32.mrf.mxu0 }
 0x269   : > { %v3972_v27 = vsel %vm11494_vm12, %v3970_v25, %v3971_v1  ;;  %v3982_v49 = vrot.slane %v9059_v17, 6  ;;  %v3989_v6 = vrot.slane %v9062_v45, 6  ;;  %v9072_v19 = vrot.slane %v9058_v39, 10  ;;  %v9065_v41 = vld [vmem:[%s10681_s10 + $0x1ec] sm:$0xf]  ;;  %3350 = vst.msk [vmem:[#allocation2 + $0x8] sm:$0xff] %vm618_vm9, %v3289_v57 }
 0x26a   : > { %v3976_v7 = vsel %vm11494_vm12, %v9071_v38, %v3975_v44  ;;  %v3979_v48 = vsel %vm11494_vm12, %v3977_v42, %v3978_v3  ;;  %v9078_v33 = vcombine.low %v3969_v34, %v3972_v27  ;;  %v3985_v29 = vrot.slane %v9060_v55, 6  ;;  %v9140_v24 = vld [vmem:[%s10681_s10 + $0x2a0] sm:$0xf]  ;;  %v9064_v47 = vld [vmem:[%s10681_s10 + $0x1e8] sm:$0xc]  ;;  %v10143_v51 = vpop.f32.mrf.mxu0 }
 0x26b   : > { %v9079_v22 = vcombine.low %v3976_v7, %v3979_v48  ;;  %v3984_v4 = vrot.slane %v3982_v49, 4  ;;  %v3991_v11 = vrot.slane %v3989_v6, 4  ;;  %v3983_v63 = vsel %vm11494_vm12, %v9072_v19, %v3982_v49  ;;  %v9139_v9 = vld [vmem:[%s10681_s10 + $0x29c] sm:$0xc]  ;;  %v9141_v16 = vld [vmem:[%s10681_s10 + $0x2a4] sm:$0x3] }
 0x26c   : > { %v3996_v28 = vrot.slane %v9065_v41, 6  ;;  %v9074_v37 = vrot.slane %v9064_v47, 10  ;;  %3355 = vst.msk [vmem:[#allocation2 + $0x30] sm:$0xff] %vm618_vm9, %v10143_v51  ;;  %v9163_v52 = vrot.slane %v9139_v9, 10  ;;  %v4550_v54 = vrot.slane %v9141_v16, 6  ;;  %v3302_v56 = vpop.f32.mrf.mxu0 }
 0x26d   : > { %10164 = vmatmul.mubr.msk.bf16.gmra.mxu1 %vm338_vm1, %v9000_v43  ;;  %v9061_v43 = vld [vmem:[%s10681_s10 + $0x1c4] sm:$0xc]  ;;  %v3986_v26 = vsel %vm11494_vm12, %v3984_v4, %v3985_v29  ;;  %v9146_v50 = vld [vmem:[%s10681_s10 + $0x2e8] sm:$0xf]  ;;  %3353 = vst.msk [vmem:[#allocation2 + $0x20] sm:$0xff] %vm618_vm9, %v3302_v56  ;;  %v5195_v47 = vsel %vm363_vm0, %v12000_v10, 0 }
 0x26e   : > { %10167 = vmatprep.mubr.msk.bf16.mxu1 %vm338_vm1, %v9001_v59  ;;  %v9063_v59 = vld [vmem:[%s10681_s10 + $0x1cc] sm:$0x3]  ;;  %v9073_v5 = vrot.slane %v9061_v43, 10  ;;  %v9080_v58 = vcombine.low %v3983_v63, %v3986_v26  ;;  %v3998_v53 = vrot.slane %v3996_v28, 4  ;;  %v9143_v20 = vld [vmem:[%s10681_s10 + $0x2c4] sm:$0xf]  ;;  %v10144_v44 = vpop.f32.mrf.mxu0  ;;  %v3997_v36 = vsel %vm11494_vm12, %v9074_v37, %v3996_v28 }
 0x26f   : > { %v3992_v31 = vrot.slane %v9063_v59, 6  ;;  %3356 = vst.msk [vmem:[#allocation2 + $0x38] sm:$0xff] %vm618_vm9, %v10144_v44  ;;  %v9142_v25 = vld [vmem:[%s10681_s10 + $0x2c0] sm:$0xc]  ;;  %v9144_v1 = vld [vmem:[%s10681_s10 + $0x2c8] sm:$0x3] }
 0x270   : > { %v3990_v30 = vsel %vm11494_vm12, %v9073_v5, %v3989_v6  ;;  %v3305_v38 = vpop.f32.mrf.mxu0  ;;  %v9145_v42 = vld [vmem:[%s10681_s10 + $0x2e4] sm:$0xc]  ;;  %v9147_v3 = vld [vmem:[%s10681_s10 + $0x2ec] sm:$0x3]  ;;  %v9164_v27 = vrot.slane %v9142_v25, 10  ;;  %v4557_v7 = vrot.slane %v9144_v1, 6 }
 0x271   : > { %v3993_v61 = vsel %vm11494_vm12, %v3991_v11, %v3992_v31  ;;  %3354 = vst.msk [vmem:[#allocation2 + $0x28] sm:$0xff] %vm618_vm9, %v3305_v38  ;;  %v9165_v48 = vrot.slane %v9145_v42, 10  ;;  %v4564_v55 = vrot.slane %v9147_v3, 6  ;;  %v9149_v6 = vld [vmem:[%s10681_s10 + $0x30c] sm:$0xf] }
 0x272   : > { %v9081_v15 = vcombine.low %v3990_v30, %v3993_v61  ;;  %v10147_v45 = vpop.f32.mrf.mxu0  ;;  %v9152_v59 = vld [vmem:[%s10681_s10 + $0x330] sm:$0xf]  ;;  %v4568_v19 = vrot.slane %v9149_v6, 6  ;;  %v9148_v5 = vld [vmem:[%s10681_s10 + $0x308] sm:$0xc] }
 0x273   : > { %3359 = vst.msk [vmem:[#allocation2 + $0x50] sm:$0xff] %vm618_vm9, %v10147_v45  ;;  %v9150_v11 = vld [vmem:[%s10681_s10 + $0x310] sm:$0x3]  ;;  %v4575_v31 = vrot.slane %v9152_v59, 6  ;;  %v9151_v12 = vld [vmem:[%s10681_s10 + $0x32c] sm:$0xc] }
 0x274   : > { %v3318_v43 = vpop.f32.mrf.mxu0  ;;  %v9166_v28 = vrot.slane %v9148_v5, 10  ;;  %v4570_v30 = vrot.slane %v4568_v19, 4  ;;  %v4571_v61 = vrot.slane %v9150_v11, 6  ;;  %v9155_v9 = vld [vmem:[%s10681_s10 + $0x354] sm:$0xf] }
 0x275   : > { %10168 = vmatmul.mubr.msk.bf16.gmra.mxu1 %vm338_vm1, %v9002_v32  ;;  %v9066_v32 = vld [vmem:[%s10681_s10 + $0x1f0] sm:$0x3]  ;;  %3357 = vst.msk [vmem:[#allocation2 + $0x40] sm:$0xff] %vm618_vm9, %v3318_v43  ;;  %v4582_v37 = vrot.slane %v9155_v9, 6  ;;  %v9157_v56 = vld [vmem:[%s10681_s10 + $0x374] sm:$0xc] }
 0x276   : > { %10191 = vmatprep.mubr.msk.bf16.mxu1 %vm338_vm1, %v9075_v8  ;;  %v4547_v8 = vrot.slane %v9140_v24, 6  ;;  %v3999_v14 = vrot.slane %v9066_v32, 6  ;;  %v9153_v24 = vld [vmem:[%s10681_s10 + $0x334] sm:$0x3]  ;;  %v9167_v32 = vrot.slane %v9151_v12, 10  ;;  %v10572_v12 = vld [vmem:[%s10681_s10 + $0x4d8] sm:$0xff]  }
 0x277   : > { %v4578_v57 = vrot.slane %v9153_v24, 6  ;;  %v10570_v11 = vld [vmem:[%s10681_s10 + $0x490] sm:$0xff]  }
 0x278   : > { %v4549_v62 = vrot.slane %v4547_v8, 4  ;;  %v4000_v60 = vsel %vm11494_vm12, %v3998_v53, %v3999_v14  ;;  %v4576_v53 = vsel %vm11494_vm12, %v9167_v32, %v4575_v31 }
 0x279   : > { %v9082_v17 = vcombine.low %v3997_v36, %v4000_v60 }
 0x27a   : > { %v4551_v21 = vsel %vm11494_vm12, %v4549_v62, %v4550_v54  ;;  %v9156_v62 = vld [vmem:[%s10681_s10 + $0x358] sm:$0x3] }
 0x27d   : > { %10192 = vmatmul.mubr.msk.bf16.vlgmr.msra.gmra.mxu1 %vm338_vm1, %v9076_v0  ;;  %v4554_v0 = vrot.slane %v9143_v20, 6 }
 0x27e   : > { %10226 = vmatpush3.bf16.msra.mxu1 %v4666_v2  ;;  %10195 = vmatprep.mubr.msk.bf16.mxu1 %vm338_vm1, %v9077_v18  ;;  %v4548_v18 = vsel %vm11494_vm12, %v9163_v52, %v4547_v8  ;;  %v4561_v2 = vrot.slane %v9146_v50, 6  ;;  %v4577_v8 = vrot.slane %v4575_v31, 4  ;;  %v9154_v52 = vld [vmem:[%s10681_s10 + $0x350] sm:$0xc]  ;;  %v9159_v50 = vld [vmem:[%s10681_s10 + $0x37c] sm:$0x3] }
 0x27f   : > { %10513 = vmatprep.subr.msk.bf16.mxu1 %vm363_vm0, %v12000_v10  ;;  %v9171_v34 = vcombine.low %v4548_v18, %v4551_v21  ;;  %v4556_v49 = vrot.slane %v4554_v0, 4  ;;  %v4555_v40 = vsel %vm11494_vm12, %v9164_v27, %v4554_v0  ;;  %v4569_v10 = vsel %vm11494_vm12, %v9166_v28, %v4568_v19  ;;  %v9162_v27 = vld [vmem:[%s10681_s10 + $0x3a0] sm:$0x3]  ;;  %v10568_v19 = vld [vmem:[%s10681_s10 + $0x448] sm:$0xff]   ;;  %v10571_v31 = vld [vmem:[%s10681_s10 + $0x4b4] sm:$0xff]  }
 0x280   : > { %v4563_v39 = vrot.slane %v4561_v2, 4  ;;  %v4562_v4 = vsel %vm11494_vm12, %v9165_v48, %v4561_v2  ;;  %v4579_v14 = vsel %vm11494_vm12, %v4577_v8, %v4578_v57  ;;  %v9168_v60 = vrot.slane %v9154_v52, 10  ;;  %v9161_v2 = vld [vmem:[%s10681_s10 + $0x39c] sm:$0xf] }
 0x281   : > { %v9175_v36 = vcombine.low %v4576_v53, %v4579_v14  ;;  %v4584_v0 = vrot.slane %v4582_v37, 4  ;;  %v4585_v18 = vrot.slane %v9156_v62, 6  ;;  %v9169_v21 = vrot.slane %v9157_v56, 10  ;;  %v3065_v62 = vld [vmem:[#allocation3] sm:$0xff]  ;;  %v3068_v56 = vld [vmem:[#allocation3 + $0x18] sm:$0xff] }
 0x282   : > { %v4565_v29 = vsel %vm11494_vm12, %v4563_v39, %v4564_v55  ;;  %v4592_v1 = vrot.slane %v9159_v50, 6  ;;  %v4583_v38 = vsel %vm11494_vm12, %v9168_v60, %v4582_v37  ;;  %v4596_v3 = vrot.slane %v9161_v2, 6  ;;  %v3067_v37 = vld [vmem:[#allocation3 + $0x10] sm:$0xff]  ;;  %v3066_v60 = vld [vmem:[#allocation3 + $0x8] sm:$0xff] }
 0x283   : > { %v9173_v26 = vcombine.low %v4562_v4, %v4565_v29  ;;  %v4586_v42 = vsel %vm11494_vm12, %v4584_v0, %v4585_v18  ;;  %v4599_v6 = vrot.slane %v9162_v27, 6  ;;  %v10569_v29 = vld [vmem:[%s10681_s10 + $0x46c] sm:$0xff]  }
 0x284   : > { %v4598_v55 = vrot.slane %v4596_v3, 4 }
 0x285   : > { %10196 = vmatmul.mubr.msk.bf16.gmra.mxu1 %vm338_vm1, %v9078_v33  ;;  %v10148_v33 = vpop.f32.mrf.mxu0 }
 0x286   : > { %10199 = vmatprep.mubr.msk.bf16.mxu1 %vm338_vm1, %v9079_v22  ;;  %v4558_v22 = vsel %vm11494_vm12, %v4556_v49, %v4557_v7  ;;  %3360 = vst.msk [vmem:[#allocation2 + $0x58] sm:$0xff] %vm618_vm9, %v10148_v33  ;;  %v9176_v49 = vcombine.low %v4583_v38, %v4586_v42  ;;  %v4600_v33 = vsel %vm11494_vm12, %v4598_v55, %v4599_v6 }
 0x287   : > { %v3321_v41 = vpop.f32.mrf.mxu0  ;;  %v9172_v46 = vcombine.low %v4555_v40, %v4558_v22 }
 0x288   : > { %3358 = vst.msk [vmem:[#allocation2 + $0x48] sm:$0xff] %vm618_vm9, %v3321_v41 }
 0x289   : > { %v10151_v63 = vpop.f32.mrf.mxu0 }
 0x28a   : > { %3363 = vst.msk [vmem:[#allocation2 + $0x70] sm:$0xff] %vm618_vm9, %v10151_v63 }
 0x28b   : > { %v3334_v16 = vpop.f32.mrf.mxu0 }
 0x28c   : > { %3361 = vst.msk [vmem:[#allocation2 + $0x60] sm:$0xff] %vm618_vm9, %v3334_v16 }
 0x28d   : > { %10200 = vmatmul.mubr.msk.bf16.gmra.mxu1 %vm338_vm1, %v9080_v58  ;;  %v9158_v58 = vld [vmem:[%s10681_s10 + $0x378] sm:$0xf]  ;;  %v10152_v51 = vpop.f32.mrf.mxu0 }
 0x28e   : > { %10203 = vmatprep.mubr.msk.bf16.mxu1 %vm338_vm1, %v9081_v15  ;;  %v4572_v15 = vsel %vm11494_vm12, %v4570_v30, %v4571_v61  ;;  %3364 = vst.msk [vmem:[#allocation2 + $0x78] sm:$0xff] %vm618_vm9, %v10152_v51  ;;  %v4589_v54 = vrot.slane %v9158_v58, 6  ;;  %v10575_v30 = vld [vmem:[%s10681_s10 + $0x544] sm:$0xff]  }
 0x28f   : > { %v3337_v20 = vpop.f32.mrf.mxu0  ;;  %v9174_v44 = vcombine.low %v4569_v10, %v4572_v15 }
 0x290   : > { %3362 = vst.msk [vmem:[#allocation2 + $0x68] sm:$0xff] %vm618_vm9, %v3337_v20  ;;  %v4591_v25 = vrot.slane %v4589_v54, 4 }
 0x292   : > { %v4593_v45 = vsel %vm11494_vm12, %v4591_v25, %v4592_v1  ;;  %v3071_v25 = vld [vmem:[#allocation3 + $0x30] sm:$0xff] }
 0x294   : > { %v12113_v7 = vpop.f32.mrf.mxu0 }
 0x295   : > { %10204 = vmatmul.mubr.msk.bf16.gmra.mxu1 %vm338_vm1, %v9082_v17  ;;  %v4590_v17 = vsel %vm11494_vm12, %v9169_v21, %v4589_v54  ;;  %v8954_v21 = vld [vmem:[%s13415_s6 + $0x4] sm:$0xf] }
 0x296   : > { %10227 = vmatprep.mubr.msk.bf16.mxu1 %vm338_vm1, %v9171_v34  ;;  %v9160_v34 = vld [vmem:[%s10681_s10 + $0x398] sm:$0xc]  ;;  %v9177_v48 = vcombine.low %v4590_v17, %v4593_v45  ;;  %v12116_v43 = vpop.f32.mrf.mxu0  ;;  %v5707_v42 = vsel %vm3105_vm10, %v8954_v21, 0 }
 0x297   : > { %v9170_v39 = vrot.slane %v9160_v34, 10  ;;  %v3072_v34 = vld [vmem:[#allocation3 + $0x38] sm:$0xff] }
 0x298   : > { %v12123_v22 = vpop.f32.mrf.mxu0 }
 0x299   : > { %v4597_v59 = vsel %vm11494_vm12, %v9170_v39, %v4596_v3  ;;  %v3069_v3 = vld [vmem:[#allocation3 + $0x20] sm:$0xff]  ;;  %v3070_v39 = vld [vmem:[#allocation3 + $0x28] sm:$0xff] }
 0x29a   : > { %v9178_v40 = vcombine.low %v4597_v59, %v4600_v33  ;;  %v12127_v4 = vpop.f32.mrf.mxu0  ;;  %v3075_v59 = vld [vmem:[#allocation3 + $0x50] sm:$0xff] }
 0x29d   : > { %10228 = vmatmul.mubr.msk.bf16.vlgmr.msra.gmra.mxu1 %vm338_vm1, %v9172_v46  ;;  %v12131_v5 = vpop.f32.mrf.mxu0  ;;  %v10573_v46 = vld [vmem:[%s10681_s10 + $0x4fc] sm:$0xff]  }
 0x29e   : > { %10262 = vmatpush3.bf16.msra.mxu1 %v5195_v47  ;;  %10231 = vmatprep.mubr.msk.bf16.mxu1 %vm338_vm1, %v9173_v26  ;;  %v10574_v26 = vld [vmem:[%s10681_s10 + $0x520] sm:$0xff]  }
 0x29f   : > { %v12135_v23 = vpop.f32.mrf.mxu0  ;;  %10515 = vmatprep.subr.msk.bf16.mxu1 %vm3105_vm10, %v8954_v21 }
 0x2a1   : > { %v12139_v41 = vpop.f32.mrf.mxu0 }
 0x2a3   : > { %v12143_v24 = vpop.f32.mrf.mxu0 }
 0x2a5   : > { %10232 = vmatmul.mubr.msk.bf16.gmra.mxu1 %vm338_vm1, %v9174_v44 }
 0x2a6   : > { %10235 = vmatprep.mubr.msk.bf16.mxu1 %vm338_vm1, %v9175_v36 }
 0x2ac   : > { %v12147_v63 = vpop.f32.mrf.mxu0 }
 0x2ad   : > { %10236 = vmatmul.mubr.msk.bf16.gmra.mxu1 %vm338_vm1, %v9176_v49 }
 0x2ae   : > { %10239 = vmatprep.mubr.msk.bf16.mxu1 %vm338_vm1, %v9177_v48  ;;  %v12151_v28 = vpop.f32.mrf.mxu0 }
 0x2b0   : > { %v12155_v61 = vpop.f32.mrf.mxu0 }
 0x2b2   : > { %v12158_v47 = vpop.f32.mrf.mxu0 }
 0x2b4   : > { %v12160_v32 = vpop.f32.mrf.mxu0 }
 0x2b5   : > { %10240 = vmatmul.mubr.msk.bf16.gmra.mxu1 %vm338_vm1, %v9178_v40 }
 0x2b6   : > { %10263 = vmatprep.mubr.msk.bf16.mxu1 %vm338_vm1, %v10568_v19  ;;  %v12162_v8 = vpop.f32.mrf.mxu0 }
 0x2b8   : > { %v12164_v57 = vpop.f32.mrf.mxu0 }
 0x2ba   : > { %v12166_v9 = vpop.f32.mrf.mxu0 }
 0x2bd   : > { %10264 = vmatmul.mubr.msk.bf16.vlgmr.msra.gmra.mxu1 %vm338_vm1, %v10569_v29  ;;  %v5844_v29 = vld [vmem:[%s13413_s4 + $0x8] sm:$0x3] }
 0x2be   : > { %10267 = vmatprep.mubr.msk.bf16.mxu1 %vm338_vm1, %v10570_v11  ;;  %v12168_v16 = vpop.f32.mrf.mxu0  ;;  %10298 = vmatpush3.bf16.msra.mxu1 %v5707_v42  ;;  %v3073_v11 = vld [vmem:[#allocation3 + $0x40] sm:$0xff] }
 0x2bf   : > { %10516 = vmatprep.subr.msk.bf16.mxu0 %vm363_vm0, %v5844_v29 }
 0x2c0   : > { %v12170_v58 = vpop.f32.mrf.mxu0 }
 0x2c2   : > { %v12172_v51 = vpop.f32.mrf.mxu0 }
 0x2c4   : > { %v12174_v10 = vpop.f32.mrf.mxu0 }
 0x2c5   : > { %10268 = vmatmul.mubr.msk.bf16.gmra.mxu1 %vm338_vm1, %v10571_v31 }
 0x2c6   : > { %10271 = vmatprep.mubr.msk.bf16.mxu1 %vm338_vm1, %v10572_v12 }
 0x2cd   : > { %10272 = vmatmul.mubr.msk.bf16.gmra.mxu1 %vm338_vm1, %v10573_v46  ;;  %v12176_v15 = vpop.f32.mrf.mxu0  ;;  %v5850_v46 = vsel %vm363_vm0, %v5844_v29, 0 }
 0x2ce   : > { %10275 = vmatprep.mubr.msk.bf16.mxu1 %vm338_vm1, %v10574_v26  ;;  %v3076_v26 = vld [vmem:[#allocation3 + $0x58] sm:$0xff]  ;;  %10316 = vmatpush3.bf16.msra.mxu0 %v5850_v46 }
 0x2cf   : > { %v12178_v14 = vpop.f32.mrf.mxu0 }
 0x2d1   : > { %v12181_v44 = vpop.f32.mrf.mxu0 }
 0x2d3   : > { %v12188_v2 = vpop.f32.mrf.mxu0 }
 0x2d5   : > { %10276 = vmatmul.mubr.msk.bf16.gmra.mxu1 %vm338_vm1, %v10575_v30 }
 0x2d6   : > { %v12194_v49 = vpop.f32.mrf.mxu0 }
 0x2d8   : > { %v12198_v40 = vpop.f32.mrf.mxu0 }
 0x2fd   : > { %v10121_v53 = vpop.f32.mrf.mxu1 }
 0x2fe   : > { %v3208_v52 = vadd.f32 %v10121_v53, %v3067_v37  ;;  %v12207_v37 = vpop.f32.mrf.mxu0 }
 0x2ff   : > { %v3143_v54 = vpop.f32.mrf.mxu1 }
 0x300   : > { %3224 = vst.msk [vmem:[#allocation3 + $0x10] sm:$0xff] %vm618_vm9, %v3208_v52  ;;  %v3206_v20 = vadd.f32 %v3143_v54, %v3065_v62  ;;  %v3074_v52 = vld [vmem:[#allocation3 + $0x48] sm:$0xff] }
 0x301   : > { %v10122_v50 = vpop.f32.mrf.mxu1 }
 0x302   : > { %3222 = vst.msk [vmem:[#allocation3] sm:$0xff] %vm618_vm9, %v3206_v20  ;;  %v3209_v36 = vadd.f32 %v10122_v50, %v3068_v56  ;;  %v10602_v20 = vld [vmem:[%s10681_s10 + $0x2bc] sm:$0xff]   ;;  %v3079_v56 = vld [vmem:[#allocation3 + $0x70] sm:$0xff] }
 0x303   : > { %v3146_v0 = vpop.f32.mrf.mxu1  ;;  %10318 = vmatmul.mubr.msk.bf16.vlgmr.msra.gmra.mxu0 %vm338_vm1, %v10602_v20 }
 0x304   : > { %3225 = vst.msk [vmem:[#allocation3 + $0x18] sm:$0xff] %vm618_vm9, %v3209_v36  ;;  %v3207_v18 = vadd.f32 %v3146_v0, %v3066_v60  ;;  %v12213_v36 = vpop.f32.mrf.mxu0  ;;  %v10603_v60 = vld [vmem:[%s10681_s10 + $0x2e0] sm:$0xff]  }
 0x305   : > { %v10125_v1 = vpop.f32.mrf.mxu1  ;;  %10321 = vmatprep.mubr.msk.bf16.mxu0 %vm338_vm1, %v10603_v60 }
 0x306   : > { %3223 = vst.msk [vmem:[#allocation3 + $0x8] sm:$0xff] %vm618_vm9, %v3207_v18  ;;  %v3212_v38 = vadd.f32 %v10125_v1, %v3071_v25  ;;  %v3077_v18 = vld [vmem:[#allocation3 + $0x60] sm:$0xff]  ;;  %v3080_v1 = vld [vmem:[#allocation3 + $0x78] sm:$0xff]  ;;  %v12219_v42 = vpop.f32.mrf.mxu0 }
 0x307   : > { %v3159_v17 = vpop.f32.mrf.mxu1 }
 0x308   : > { %3228 = vst.msk [vmem:[#allocation3 + $0x30] sm:$0xff] %vm618_vm9, %v3212_v38  ;;  %v3210_v45 = vadd.f32 %v3159_v17, %v3069_v3  ;;  %v3078_v17 = vld [vmem:[#allocation3 + $0x68] sm:$0xff] }
 0x309   : > { %v10126_v27 = vpop.f32.mrf.mxu1 }
 0x30a   : > { %3226 = vst.msk [vmem:[#allocation3 + $0x20] sm:$0xff] %vm618_vm9, %v3210_v45  ;;  %v3213_v48 = vadd.f32 %v10126_v27, %v3072_v34  ;;  %v10604_v27 = vld [vmem:[%s10681_s10 + $0x304] sm:$0xff]  }
 0x30b   : > { %v3162_v55 = vpop.f32.mrf.mxu1  ;;  %10322 = vmatmul.mubr.msk.bf16.gmra.mxu0 %vm338_vm1, %v10604_v27 }
 0x30c   : > { %3229 = vst.msk [vmem:[#allocation3 + $0x38] sm:$0xff] %vm618_vm9, %v3213_v48  ;;  %v3211_v6 = vadd.f32 %v3162_v55, %v3070_v39  ;;  %v3475_v48 = vld [vmem:[#allocation2 + $0x10] sm:$0xff]  ;;  %v12225_v55 = vpop.f32.mrf.mxu0 }
 0x30d   : > { %v10129_v33 = vpop.f32.mrf.mxu1 }
 0x30e   : > { %3227 = vst.msk [vmem:[#allocation3 + $0x28] sm:$0xff] %vm618_vm9, %v3211_v6  ;;  %v3216_v19 = vadd.f32 %v10129_v33, %v3075_v59  ;;  %v10605_v6 = vld [vmem:[%s10681_s10 + $0x328] sm:$0xff]   ;;  %v3473_v33 = vld [vmem:[#allocation2] sm:$0xff] }
 0x30f   : > { %v3175_v31 = vpop.f32.mrf.mxu1  ;;  %10325 = vmatprep.mubr.msk.bf16.mxu0 %vm338_vm1, %v10605_v6  ;;  %v3478_v6 = vld [vmem:[#allocation2 + $0x28] sm:$0xff] }
 0x310   : > { %3232 = vst.msk [vmem:[#allocation3 + $0x50] sm:$0xff] %vm618_vm9, %v3216_v19  ;;  %v3214_v12 = vadd.f32 %v3175_v31, %v3073_v11  ;;  %v3476_v11 = vld [vmem:[#allocation2 + $0x18] sm:$0xff] }
 0x311   : > { %v10130_v30 = vpop.f32.mrf.mxu1 }
 0x312   : > { %3230 = vst.msk [vmem:[#allocation3 + $0x40] sm:$0xff] %vm618_vm9, %v3214_v12  ;;  %v3217_v53 = vadd.f32 %v10130_v30, %v3076_v26  ;;  %v12231_v12 = vpop.f32.mrf.mxu0  ;;  %v3474_v26 = vld [vmem:[#allocation2 + $0x8] sm:$0xff] }
 0x313   : > { %v3178_v62 = vpop.f32.mrf.mxu1 }
 0x314   : > { %3233 = vst.msk [vmem:[#allocation3 + $0x58] sm:$0xff] %vm618_vm9, %v3217_v53  ;;  %v3215_v54 = vadd.f32 %v3178_v62, %v3074_v52  ;;  %v5840_v52 = vld [vmem:[%s13413_s4] sm:$0x3]  ;;  %v10606_v62 = vld [vmem:[%s10681_s10 + $0x34c] sm:$0xff]  }
 0x315   : > { %v10133_v50 = vpop.f32.mrf.mxu1  ;;  %10326 = vmatmul.mubr.msk.bf16.gmra.mxu0 %vm338_vm1, %v10606_v62  ;;  %10517 = vmatprep.subr.msk.bf16.mxu1 %vm363_vm0, %v5840_v52 }
 0x316   : > { %3231 = vst.msk [vmem:[#allocation3 + $0x48] sm:$0xff] %vm618_vm9, %v3215_v54  ;;  %v3220_v0 = vadd.f32 %v10133_v50, %v3079_v56  ;;  %v3479_v54 = vld [vmem:[#allocation2 + $0x30] sm:$0xff]  ;;  %v12240_v56 = vpop.f32.mrf.mxu0 }
 0x317   : > { %v3191_v21 = vpop.f32.mrf.mxu1  ;;  %v10607_v50 = vld [vmem:[%s10681_s10 + $0x370] sm:$0xff]  }
 0x318   : > { %3236 = vst.msk [vmem:[#allocation3 + $0x70] sm:$0xff] %vm618_vm9, %v3220_v0  ;;  %v3218_v25 = vadd.f32 %v3191_v21, %v3077_v18  ;;  %10329 = vmatprep.mubr.msk.bf16.mxu0 %vm338_vm1, %v10607_v50  ;;  %v3477_v18 = vld [vmem:[#allocation2 + $0x20] sm:$0xff]  ;;  %v3484_v50 = vld [vmem:[#allocation2 + $0x58] sm:$0xff] }
 0x319   : > { %v10134_v38 = vpop.f32.mrf.mxu1 }
 0x31a   : > { %3234 = vst.msk [vmem:[#allocation3 + $0x60] sm:$0xff] %vm618_vm9, %v3218_v25  ;;  %v3221_v3 = vadd.f32 %v10134_v38, %v3080_v1  ;;  %v5841_v38 = vld [vmem:[%s13413_s4 + $0x2] sm:$0x3] }
 0x31b   : > { %v3194_v45 = vpop.f32.mrf.mxu1  ;;  %10518 = vmatprep.subr.msk.bf16.mxu0 %vm363_vm0, %v5841_v38  ;;  %v6362_v27 = vsel %vm363_vm0, %v5841_v38, 0 }
 0x31c   : > { %3237 = vst.msk [vmem:[#allocation3 + $0x78] sm:$0xff] %vm618_vm9, %v3221_v3  ;;  %v3219_v34 = vadd.f32 %v3194_v45, %v3078_v17  ;;  %v3480_v17 = vld [vmem:[#allocation2 + $0x38] sm:$0xff]  ;;  %10352 = vmatpush3.bf16.msra.mxu0 %v6362_v27 }
 0x31d   : > { %v10157_v39 = vpop.f32.mrf.mxu1 }
 0x31e   : > { %3235 = vst.msk [vmem:[#allocation3 + $0x68] sm:$0xff] %vm618_vm9, %v3219_v34  ;;  %v3639_v59 = vadd.f32 %v10157_v39, %v3475_v48  ;;  %v12251_v34 = vpop.f32.mrf.mxu0 }
 0x31f   : > { %v3574_v19 = vpop.f32.mrf.mxu1 }
 0x320   : > { %3655 = vst.msk [vmem:[#allocation2 + $0x10] sm:$0xff] %vm618_vm9, %v3639_v59  ;;  %v3637_v29 = vadd.f32 %v3574_v19, %v3473_v33 }
 0x321   : > { %v10158_v31 = vpop.f32.mrf.mxu1 }
 0x322   : > { %3653 = vst.msk [vmem:[#allocation2] sm:$0xff] %vm618_vm9, %v3637_v29  ;;  %v3640_v46 = vadd.f32 %v10158_v31, %v3476_v11  ;;  %v10608_v29 = vld [vmem:[%s10681_s10 + $0x394] sm:$0xff]  }
 0x323   : > { %v3577_v30 = vpop.f32.mrf.mxu1  ;;  %10330 = vmatmul.mubr.msk.bf16.gmra.mxu0 %vm338_vm1, %v10608_v29  ;;  %v3483_v31 = vld [vmem:[#allocation2 + $0x50] sm:$0xff] }
 0x324   : > { %3656 = vst.msk [vmem:[#allocation2 + $0x18] sm:$0xff] %vm618_vm9, %v3640_v46  ;;  %v3638_v53 = vadd.f32 %v3577_v30, %v3474_v26  ;;  %v12263_v46 = vpop.f32.mrf.mxu0 }
 0x325   : > { %v10161_v20 = vpop.f32.mrf.mxu1 }
 0x326   : > { %3654 = vst.msk [vmem:[#allocation2 + $0x8] sm:$0xff] %vm618_vm9, %v3638_v53  ;;  %v3643_v60 = vadd.f32 %v10161_v20, %v3479_v54 }
 0x327   : > { %v3687_v0 = vld [vmem:[#allocation2 + $0x10] sm:$0xff]  ;;  %v3590_v21 = vpop.f32.mrf.mxu1 }
 0x328   : > { %v3867_v25 = vadd.f32 %v12113_v7, %v3687_v0  ;;  %3659 = vst.msk [vmem:[#allocation2 + $0x30] sm:$0xff] %vm618_vm9, %v3643_v60  ;;  %v3641_v1 = vadd.f32 %v3590_v21, %v3477_v18  ;;  %v12271_v0 = vpop.f32.mrf.mxu0 }
 0x329   : > { %v3685_v3 = vld [vmem:[#allocation2] sm:$0xff]  ;;  %v10162_v45 = vpop.f32.mrf.mxu1 }
 0x32a   : > { %3883 = vst.msk [vmem:[#allocation2 + $0x10] sm:$0xff] %vm618_vm9, %v3867_v25  ;;  %v3865_v7 = vadd.f32 %v12116_v43, %v3685_v3  ;;  %3657 = vst.msk [vmem:[#allocation2 + $0x20] sm:$0xff] %vm618_vm9, %v3641_v1  ;;  %v3644_v48 = vadd.f32 %v10162_v45, %v3480_v17  ;;  %v3482_v25 = vld [vmem:[#allocation2 + $0x48] sm:$0xff]  ;;  %v3487_v17 = vld [vmem:[#allocation2 + $0x70] sm:$0xff]  ;;  %v12279_v27 = vpop.f32.mrf.mxu0 }
 0x32b   : > { %v3688_v39 = vld [vmem:[#allocation2 + $0x18] sm:$0xff]  ;;  %v3593_v59 = vpop.f32.mrf.mxu1 }
 0x32c   : > { %3881 = vst.msk [vmem:[#allocation2] sm:$0xff] %vm618_vm9, %v3865_v7  ;;  %v3868_v33 = vadd.f32 %v12123_v22, %v3688_v39  ;;  %3660 = vst.msk [vmem:[#allocation2 + $0x38] sm:$0xff] %vm618_vm9, %v3644_v48  ;;  %v3642_v19 = vadd.f32 %v3593_v59, %v3478_v6  ;;  %v3481_v22 = vld [vmem:[#allocation2 + $0x40] sm:$0xff] }
 0x32d   : > { %v3686_v11 = vld [vmem:[#allocation2 + $0x8] sm:$0xff]  ;;  %v10165_v43 = vpop.f32.mrf.mxu1  ;;  %v3485_v39 = vld [vmem:[#allocation2 + $0x60] sm:$0xff] }
 0x32e   : > { %3884 = vst.msk [vmem:[#allocation2 + $0x18] sm:$0xff] %vm618_vm9, %v3868_v33  ;;  %v3866_v26 = vadd.f32 %v12127_v4, %v3686_v11  ;;  %3658 = vst.msk [vmem:[#allocation2 + $0x28] sm:$0xff] %vm618_vm9, %v3642_v19  ;;  %v3647_v30 = vadd.f32 %v10165_v43, %v3483_v31  ;;  %v3488_v19 = vld [vmem:[#allocation2 + $0x78] sm:$0xff]  ;;  %v12287_v11 = vpop.f32.mrf.mxu0 }
 0x32f   : > { %v3691_v53 = vld [vmem:[#allocation2 + $0x30] sm:$0xff]  ;;  %v3606_v52 = vpop.f32.mrf.mxu1 }
 0x330   : > { %3882 = vst.msk [vmem:[#allocation2 + $0x8] sm:$0xff] %vm618_vm9, %v3866_v26  ;;  %v3871_v62 = vadd.f32 %v12131_v5, %v3691_v53  ;;  %3663 = vst.msk [vmem:[#allocation2 + $0x50] sm:$0xff] %vm618_vm9, %v3647_v30  ;;  %v3645_v54 = vadd.f32 %v3606_v52, %v3481_v22  ;;  %v3486_v26 = vld [vmem:[#allocation2 + $0x68] sm:$0xff] }
 0x331   : > { %v3689_v20 = vld [vmem:[#allocation2 + $0x20] sm:$0xff]  ;;  %v10166_v60 = vpop.f32.mrf.mxu1  ;;  %v4003_v52 = vld [vmem:[#allocation2 + $0x10] sm:$0xff] }
 0x332   : > { %3887 = vst.msk [vmem:[#allocation2 + $0x30] sm:$0xff] %vm618_vm9, %v3871_v62  ;;  %v3869_v4 = vadd.f32 %v12135_v23, %v3689_v20  ;;  %3661 = vst.msk [vmem:[#allocation2 + $0x40] sm:$0xff] %vm618_vm9, %v3645_v54  ;;  %v3648_v18 = vadd.f32 %v10166_v60, %v3484_v50  ;;  %v12295_v54 = vpop.f32.mrf.mxu0  ;;  %v10576_v50 = vld [vmem:[%s10681_s10 + $0x10] sm:$0xff]  }
 0x333   : > { %v3692_v21 = vld [vmem:[#allocation2 + $0x38] sm:$0xff]  ;;  %v3609_v1 = vpop.f32.mrf.mxu1  ;;  %10353 = vmatprep.mubr.msk.bf16.mxu0 %vm338_vm1, %v10576_v50 }
 0x334   : > { %3885 = vst.msk [vmem:[#allocation2 + $0x20] sm:$0xff] %vm618_vm9, %v3869_v4  ;;  %v3872_v5 = vadd.f32 %v12139_v41, %v3692_v21  ;;  %3664 = vst.msk [vmem:[#allocation2 + $0x58] sm:$0xff] %vm618_vm9, %v3648_v18  ;;  %v3646_v38 = vadd.f32 %v3609_v1, %v3482_v25  ;;  %v10577_v60 = vld [vmem:[%s10681_s10 + $0x34] sm:$0xff]   ;;  %v4001_v18 = vld [vmem:[#allocation2] sm:$0xff] }
 0x335   : > { %v3690_v3 = vld [vmem:[#allocation2 + $0x28] sm:$0xff]  ;;  %v10169_v45 = vpop.f32.mrf.mxu1  ;;  %10354 = vmatmul.mubr.msk.bf16.vlgmr.msra.gmra.mxu0 %vm338_vm1, %v10577_v60 }
 0x336   : > { %3888 = vst.msk [vmem:[#allocation2 + $0x38] sm:$0xff] %vm618_vm9, %v3872_v5  ;;  %v3870_v23 = vadd.f32 %v12143_v24, %v3690_v3  ;;  %3662 = vst.msk [vmem:[#allocation2 + $0x48] sm:$0xff] %vm618_vm9, %v3646_v38  ;;  %v3651_v7 = vadd.f32 %v10169_v45, %v3487_v17  ;;  %v4004_v5 = vld [vmem:[#allocation2 + $0x18] sm:$0xff]  ;;  %v12306_v38 = vpop.f32.mrf.mxu0 }
 0x337   : > { %v3695_v48 = vld [vmem:[#allocation2 + $0x50] sm:$0xff]  ;;  %v3622_v6 = vpop.f32.mrf.mxu1  ;;  %v4002_v45 = vld [vmem:[#allocation2 + $0x8] sm:$0xff] }
 0x338   : > { %3886 = vst.msk [vmem:[#allocation2 + $0x28] sm:$0xff] %vm618_vm9, %v3870_v23  ;;  %v3875_v41 = vadd.f32 %v12147_v63, %v3695_v48  ;;  %3667 = vst.msk [vmem:[#allocation2 + $0x70] sm:$0xff] %vm618_vm9, %v3651_v7  ;;  %v3649_v59 = vadd.f32 %v3622_v6, %v3485_v39 }
 0x339   : > { %v3693_v33 = vld [vmem:[#allocation2 + $0x40] sm:$0xff]  ;;  %v10170_v29 = vpop.f32.mrf.mxu1  ;;  %v4007_v6 = vld [vmem:[#allocation2 + $0x30] sm:$0xff] }
 0x33a   : > { %3891 = vst.msk [vmem:[#allocation2 + $0x50] sm:$0xff] %vm618_vm9, %v3875_v41  ;;  %v3873_v24 = vadd.f32 %v12151_v28, %v3693_v33  ;;  %3665 = vst.msk [vmem:[#allocation2 + $0x60] sm:$0xff] %vm618_vm9, %v3649_v59  ;;  %v3652_v31 = vadd.f32 %v10170_v29, %v3488_v19  ;;  %v12315_v59 = vpop.f32.mrf.mxu0  ;;  %v10578_v29 = vld [vmem:[%s10681_s10 + $0x58] sm:$0xff]  }
 0x33b   : > { %v3696_v43 = vld [vmem:[#allocation2 + $0x58] sm:$0xff]  ;;  %v3625_v63 = vpop.f32.mrf.mxu1  ;;  %10357 = vmatprep.mubr.msk.bf16.mxu0 %vm338_vm1, %v10578_v29 }
 0x33c   : > { %3889 = vst.msk [vmem:[#allocation2 + $0x40] sm:$0xff] %vm618_vm9, %v3873_v24  ;;  %v3876_v30 = vadd.f32 %v12155_v61, %v3696_v43  ;;  %3668 = vst.msk [vmem:[#allocation2 + $0x78] sm:$0xff] %vm618_vm9, %v3652_v31  ;;  %v3650_v53 = vadd.f32 %v3625_v63, %v3486_v26  ;;  %v10579_v24 = vld [vmem:[%s10681_s10 + $0x7c] sm:$0xff]  }
 0x33d   : > { %v3694_v22 = vld [vmem:[#allocation2 + $0x48] sm:$0xff]  ;;  %v10193_v62 = vpop.f32.mrf.mxu1  ;;  %v4005_v43 = vld [vmem:[#allocation2 + $0x20] sm:$0xff]  ;;  %10358 = vmatmul.mubr.msk.bf16.gmra.mxu0 %vm338_vm1, %v10579_v24 }
 0x33e   : > { %3892 = vst.msk [vmem:[#allocation2 + $0x58] sm:$0xff] %vm618_vm9, %v3876_v30  ;;  %v3874_v28 = vadd.f32 %v12158_v47, %v3694_v22  ;;  %3666 = vst.msk [vmem:[#allocation2 + $0x68] sm:$0xff] %vm618_vm9, %v3650_v53  ;;  %v4167_v20 = vadd.f32 %v10193_v62, %v4003_v52  ;;  %v4008_v53 = vld [vmem:[#allocation2 + $0x38] sm:$0xff]  ;;  %v12331_v52 = vpop.f32.mrf.mxu0 }
 0x33f   : > { %v3699_v4 = vld [vmem:[#allocation2 + $0x70] sm:$0xff]  ;;  %v4102_v61 = vpop.f32.mrf.mxu1 }
 0x340   : > { %3890 = vst.msk [vmem:[#allocation2 + $0x48] sm:$0xff] %vm618_vm9, %v3874_v28  ;;  %v3879_v21 = vadd.f32 %v12160_v32, %v3699_v4  ;;  %4183 = vst.msk [vmem:[#allocation2 + $0x10] sm:$0xff] %vm618_vm9, %v4167_v20  ;;  %v4165_v25 = vadd.f32 %v4102_v61, %v4001_v18  ;;  %v4006_v20 = vld [vmem:[#allocation2 + $0x28] sm:$0xff] }
 0x341   : > { %v3697_v1 = vld [vmem:[#allocation2 + $0x60] sm:$0xff]  ;;  %v10194_v47 = vpop.f32.mrf.mxu1  ;;  %v4011_v61 = vld [vmem:[#allocation2 + $0x50] sm:$0xff] }
 0x342   : > { %3895 = vst.msk [vmem:[#allocation2 + $0x70] sm:$0xff] %vm618_vm9, %v3879_v21  ;;  %v3877_v3 = vadd.f32 %v12162_v8, %v3697_v1  ;;  %4181 = vst.msk [vmem:[#allocation2] sm:$0xff] %vm618_vm9, %v4165_v25  ;;  %v4168_v17 = vadd.f32 %v10194_v47, %v4004_v5  ;;  %v5843_v8 = vld [vmem:[%s13413_s4 + $0x6] sm:$0x3]  ;;  %v12340_v25 = vpop.f32.mrf.mxu0 }
 0x343   : > { %v3700_v32 = vld [vmem:[#allocation2 + $0x78] sm:$0xff]  ;;  %v4105_v23 = vpop.f32.mrf.mxu1  ;;  %10520 = vmatprep.subr.msk.bf16.mxu0 %vm363_vm0, %v5843_v8  ;;  %v10581_v47 = vld [vmem:[%s10681_s10 + $0xc4] sm:$0xff]  }
 0x344   : > { %3893 = vst.msk [vmem:[#allocation2 + $0x60] sm:$0xff] %vm618_vm9, %v3877_v3  ;;  %v3880_v7 = vadd.f32 %v12164_v57, %v3700_v32  ;;  %4184 = vst.msk [vmem:[#allocation2 + $0x18] sm:$0xff] %vm618_vm9, %v4168_v17  ;;  %v4166_v48 = vadd.f32 %v4105_v23, %v4002_v45  ;;  %v6962_v57 = vsel %vm363_vm0, %v5843_v8, 0  ;;  %v4009_v17 = vld [vmem:[#allocation2 + $0x40] sm:$0xff] }
 0x345   : > { %v3698_v39 = vld [vmem:[#allocation2 + $0x68] sm:$0xff]  ;;  %v10197_v41 = vpop.f32.mrf.mxu1  ;;  %10388 = vmatpush3.bf16.msra.mxu0 %v6962_v57 }
 0x346   : > { %3896 = vst.msk [vmem:[#allocation2 + $0x78] sm:$0xff] %vm618_vm9, %v3880_v7  ;;  %v3878_v33 = vadd.f32 %v12166_v9, %v3698_v39  ;;  %4182 = vst.msk [vmem:[#allocation2 + $0x8] sm:$0xff] %vm618_vm9, %v4166_v48  ;;  %v4171_v19 = vadd.f32 %v10197_v41, %v4007_v6  ;;  %v4012_v7 = vld [vmem:[#allocation2 + $0x58] sm:$0xff] }
 0x347   : > { %v4303_v31 = vld [vmem:[#allocation2 + $0x10] sm:$0xff]  ;;  %v4118_v26 = vpop.f32.mrf.mxu1 }
 0x348   : > { %3894 = vst.msk [vmem:[#allocation2 + $0x68] sm:$0xff] %vm618_vm9, %v3878_v33  ;;  %v4467_v63 = vadd.f32 %v12168_v16, %v4303_v31  ;;  %4187 = vst.msk [vmem:[#allocation2 + $0x30] sm:$0xff] %vm618_vm9, %v4171_v19  ;;  %v4169_v9 = vadd.f32 %v4118_v26, %v4005_v43 }
 0x349   : > { %v4301_v30 = vld [vmem:[#allocation2] sm:$0xff]  ;;  %v10198_v22 = vpop.f32.mrf.mxu1  ;;  %v4015_v29 = vld [vmem:[#allocation2 + $0x70] sm:$0xff] }
 0x34a   : > { %4483 = vst.msk [vmem:[#allocation2 + $0x10] sm:$0xff] %vm618_vm9, %v4467_v63  ;;  %v4465_v62 = vadd.f32 %v12170_v58, %v4301_v30  ;;  %4185 = vst.msk [vmem:[#allocation2 + $0x20] sm:$0xff] %vm618_vm9, %v4169_v9  ;;  %v4172_v16 = vadd.f32 %v10198_v22, %v4008_v53  ;;  %v10580_v58 = vld [vmem:[%s10681_s10 + $0xa0] sm:$0xff]   ;;  %v10583_v63 = vld [vmem:[%s10681_s10 + $0x10c] sm:$0xff]  }
 0x34b   : > { %v4304_v28 = vld [vmem:[#allocation2 + $0x18] sm:$0xff]  ;;  %v4121_v50 = vpop.f32.mrf.mxu1  ;;  %10361 = vmatprep.mubr.msk.bf16.mxu0 %vm338_vm1, %v10580_v58  ;;  %v4013_v30 = vld [vmem:[#allocation2 + $0x60] sm:$0xff] }
 0x34c   : > { %4481 = vst.msk [vmem:[#allocation2] sm:$0xff] %vm618_vm9, %v4465_v62  ;;  %v4468_v60 = vadd.f32 %v12172_v51, %v4304_v28  ;;  %4188 = vst.msk [vmem:[#allocation2 + $0x38] sm:$0xff] %vm618_vm9, %v4172_v16  ;;  %v4170_v4 = vadd.f32 %v4121_v50, %v4006_v20  ;;  %10362 = vmatmul.mubr.msk.bf16.gmra.mxu0 %vm338_vm1, %v10581_v47  ;;  %v9396_v50 = vld [vmem:[%s10681_s10 + $0x28c] sm:$0x8]  ;;  %v9399_v47 = vld [vmem:[%s10681_s10 + $0x2b0] sm:$0x8] }
 0x34d   : > { %v4302_v18 = vld [vmem:[#allocation2 + $0x8] sm:$0xff]  ;;  %v10201_v21 = vpop.f32.mrf.mxu1  ;;  %v4016_v62 = vld [vmem:[#allocation2 + $0x78] sm:$0xff]  ;;  %v9420_v58 = vrot.slane %v9396_v50, 11 }
 0x34e   : > { %4484 = vst.msk [vmem:[#allocation2 + $0x18] sm:$0xff] %vm618_vm9, %v4468_v60  ;;  %v4466_v1 = vadd.f32 %v12174_v10, %v4302_v18  ;;  %4186 = vst.msk [vmem:[#allocation2 + $0x28] sm:$0xff] %vm618_vm9, %v4170_v4  ;;  %v4175_v5 = vadd.f32 %v10201_v21, %v4011_v61  ;;  %v12351_v10 = vpop.f32.mrf.mxu0  ;;  %v9397_v60 = vld [vmem:[%s10681_s10 + $0x290] sm:$0xf]  ;;  %v9398_v21 = vld [vmem:[%s10681_s10 + $0x294] sm:$0x7] }
 0x34f   : > { %v4307_v3 = vld [vmem:[#allocation2 + $0x30] sm:$0xff]  ;;  %v4134_v51 = vpop.f32.mrf.mxu1  ;;  %v4014_v18 = vld [vmem:[#allocation2 + $0x68] sm:$0xff] }
 0x350   : > { %4482 = vst.msk [vmem:[#allocation2 + $0x8] sm:$0xff] %vm618_vm9, %v4466_v1  ;;  %v4471_v32 = vadd.f32 %v12176_v15, %v4307_v3  ;;  %4191 = vst.msk [vmem:[#allocation2 + $0x50] sm:$0xff] %vm618_vm9, %v4175_v5  ;;  %v4173_v45 = vadd.f32 %v4134_v51, %v4009_v17  ;;  %v4010_v15 = vld [vmem:[#allocation2 + $0x48] sm:$0xff]  ;;  %v12360_v31 = vpop.f32.mrf.mxu0  ;;  %v9400_v3 = vld [vmem:[%s10681_s10 + $0x2b4] sm:$0xf] }
 0x351   : > { %v4305_v23 = vld [vmem:[#allocation2 + $0x20] sm:$0xff]  ;;  %v10202_v48 = vpop.f32.mrf.mxu1  ;;  %v4603_v51 = vld [vmem:[#allocation2 + $0x10] sm:$0xff] }
 0x352   : > { %4487 = vst.msk [vmem:[#allocation2 + $0x30] sm:$0xff] %vm618_vm9, %v4471_v32  ;;  %v4469_v39 = vadd.f32 %v12178_v14, %v4305_v23  ;;  %4189 = vst.msk [vmem:[#allocation2 + $0x40] sm:$0xff] %vm618_vm9, %v4173_v45  ;;  %v4176_v6 = vadd.f32 %v10202_v48, %v4012_v7  ;;  %v10582_v14 = vld [vmem:[%s10681_s10 + $0xe8] sm:$0xff]   ;;  %v12371_v28 = vpop.f32.mrf.mxu0  ;;  %v6846_v23 = vrot.slane %v9398_v21, 7  ;;  %v9401_v7 = vld [vmem:[%s10681_s10 + $0x2b8] sm:$0x7] }
 0x353   : > { %v4308_v41 = vld [vmem:[#allocation2 + $0x38] sm:$0xff]  ;;  %v4137_v8 = vpop.f32.mrf.mxu1  ;;  %10365 = vmatprep.mubr.msk.bf16.mxu0 %vm338_vm1, %v10582_v14  ;;  %v9421_v48 = vrot.slane %v9399_v47, 11 }
 0x354   : > { %4485 = vst.msk [vmem:[#allocation2 + $0x20] sm:$0xff] %vm618_vm9, %v4469_v39  ;;  %v4472_v33 = vadd.f32 %v12181_v44, %v4308_v41  ;;  %4192 = vst.msk [vmem:[#allocation2 + $0x58] sm:$0xff] %vm618_vm9, %v4176_v6  ;;  %v4174_v19 = vadd.f32 %v4137_v8, %v4010_v15  ;;  %10366 = vmatmul.mubr.msk.bf16.gmra.mxu0 %vm338_vm1, %v10583_v63  ;;  %v12385_v45 = vpop.f32.mrf.mxu0  ;;  %v4601_v41 = vld [vmem:[#allocation2] sm:$0xff] }
 0x355   : > { %v4306_v57 = vld [vmem:[#allocation2 + $0x28] sm:$0xff]  ;;  %v10205_v24 = vpop.f32.mrf.mxu1  ;;  %v4604_v14 = vld [vmem:[#allocation2 + $0x18] sm:$0xff] }
 0x356   : > { %4488 = vst.msk [vmem:[#allocation2 + $0x38] sm:$0xff] %vm618_vm9, %v4472_v33  ;;  %v4470_v43 = vadd.f32 %v12188_v2, %v4306_v57  ;;  %4190 = vst.msk [vmem:[#allocation2 + $0x48] sm:$0xff] %vm618_vm9, %v4174_v19  ;;  %v4179_v26 = vadd.f32 %v10205_v24, %v4015_v29  ;;  %v6850_v19 = vrot.slane %v9400_v3, 7  ;;  %v6853_v57 = vrot.slane %v9401_v7, 7 }
 0x357   : > { %v4311_v9 = vld [vmem:[#allocation2 + $0x50] sm:$0xff]  ;;  %v4150_v44 = vpop.f32.mrf.mxu1 }
 0x358   : > { %4486 = vst.msk [vmem:[#allocation2 + $0x28] sm:$0xff] %vm618_vm9, %v4470_v43  ;;  %v4475_v53 = vadd.f32 %v12194_v49, %v4311_v9  ;;  %4195 = vst.msk [vmem:[#allocation2 + $0x70] sm:$0xff] %vm618_vm9, %v4179_v26  ;;  %v4177_v22 = vadd.f32 %v4150_v44, %v4013_v30  ;;  %v12396_v26 = vpop.f32.mrf.mxu0  ;;  %v6851_v9 = vsel %vm10901_vm8, %v9421_v48, %v6850_v19  ;;  %v6852_v30 = vrot.slane %v6850_v19, 4 }
 0x359   : > { %v4309_v2 = vld [vmem:[#allocation2 + $0x40] sm:$0xff]  ;;  %v10206_v16 = vpop.f32.mrf.mxu1 }
 0x35a   : > { %4491 = vst.msk [vmem:[#allocation2 + $0x50] sm:$0xff] %vm618_vm9, %v4475_v53  ;;  %v4473_v20 = vadd.f32 %v12198_v40, %v4309_v2  ;;  %4193 = vst.msk [vmem:[#allocation2 + $0x60] sm:$0xff] %vm618_vm9, %v4177_v22  ;;  %v4180_v49 = vadd.f32 %v10206_v16, %v4016_v62  ;;  %v6843_v40 = vrot.slane %v9397_v60, 7  ;;  %v9402_v22 = vld [vmem:[%s10681_s10 + $0x2d4] sm:$0x8]  ;;  %v4602_v16 = vld [vmem:[#allocation2 + $0x8] sm:$0xff] }
 0x35b   : > { %v4312_v4 = vld [vmem:[#allocation2 + $0x58] sm:$0xff]  ;;  %v4153_v61 = vpop.f32.mrf.mxu1  ;;  %v4607_v60 = vld [vmem:[#allocation2 + $0x30] sm:$0xff]  ;;  %v4605_v7 = vld [vmem:[#allocation2 + $0x20] sm:$0xff] }
 0x35c   : > { %4489 = vst.msk [vmem:[#allocation2 + $0x40] sm:$0xff] %vm618_vm9, %v4473_v20  ;;  %v4476_v1 = vadd.f32 %v12207_v37, %v4312_v4  ;;  %4196 = vst.msk [vmem:[#allocation2 + $0x78] sm:$0xff] %vm618_vm9, %v4180_v49  ;;  %v4178_v5 = vadd.f32 %v4153_v61, %v4014_v18  ;;  %v6844_v8 = vsel %vm10901_vm8, %v9420_v58, %v6843_v40  ;;  %v6845_v33 = vrot.slane %v6843_v40, 4  ;;  %v9403_v2 = vld [vmem:[%s10681_s10 + $0x2d8] sm:$0xf] }
 0x35d   : > { %v4310_v17 = vld [vmem:[#allocation2 + $0x48] sm:$0xff]  ;;  %v10229_v32 = vpop.f32.mrf.mxu1  ;;  %v6854_v49 = vsel %vm10901_vm8, %v6852_v30, %v6853_v57  ;;  %v9404_v18 = vld [vmem:[%s10681_s10 + $0x2dc] sm:$0x7]  ;;  %v9422_v61 = vrot.slane %v9402_v22, 11  ;;  %v9405_v40 = vld [vmem:[%s10681_s10 + $0x2f8] sm:$0x8] }
 0x35e   : > { %4492 = vst.msk [vmem:[#allocation2 + $0x58] sm:$0xff] %vm618_vm9, %v4476_v1  ;;  %v4474_v39 = vadd.f32 %v12213_v36, %v4310_v17  ;;  %4194 = vst.msk [vmem:[#allocation2 + $0x68] sm:$0xff] %vm618_vm9, %v4178_v5  ;;  %v4767_v37 = vadd.f32 %v10229_v32, %v4603_v51  ;;  %v6847_v63 = vsel %vm10901_vm8, %v6845_v33, %v6846_v23  ;;  %v12414_v1 = vpop.f32.mrf.mxu0  ;;  %v5846_v5 = vld [vmem:[%s13413_s4 + $0xc] sm:$0x3]  ;;  %v9406_v51 = vld [vmem:[%s10681_s10 + $0x2fc] sm:$0xf] }
 0x35f   : > { %v4315_v6 = vld [vmem:[#allocation2 + $0x70] sm:$0xff]  ;;  %v4702_v15 = vpop.f32.mrf.mxu1  ;;  %v9428_v53 = vcombine.low %v6844_v8, %v6847_v63  ;;  %v9429_v4 = vcombine.low %v6851_v9, %v6854_v49  ;;  %10522 = vmatprep.subr.msk.bf16.mxu0 %vm363_vm0, %v5846_v5  ;;  %v7563_v17 = vsel %vm363_vm0, %v5846_v5, 0  ;;  %v9407_v32 = vld [vmem:[%s10681_s10 + $0x300] sm:$0x7]  ;;  %v4608_v33 = vld [vmem:[#allocation2 + $0x38] sm:$0xff] }
 0x360   : > { %4490 = vst.msk [vmem:[#allocation2 + $0x48] sm:$0xff] %vm618_vm9, %v4474_v39  ;;  %v4479_v29 = vadd.f32 %v12219_v42, %v4315_v6  ;;  %4783 = vst.msk [vmem:[#allocation2 + $0x10] sm:$0xff] %vm618_vm9, %v4767_v37  ;;  %v4765_v36 = vadd.f32 %v4702_v15, %v4601_v41  ;;  %v9423_v15 = vrot.slane %v9405_v40, 11  ;;  %v12433_v57 = vpop.f32.mrf.mxu0  ;;  %v4606_v9 = vld [vmem:[#allocation2 + $0x28] sm:$0xff] }
 0x361   : > { %v4313_v24 = vld [vmem:[#allocation2 + $0x60] sm:$0xff]  ;;  %v10230_v43 = vpop.f32.mrf.mxu1  ;;  %10389 = vmatprep.mubr.msk.bf16.mxu0 %vm338_vm1, %v9428_v53  ;;  %v4611_v22 = vld [vmem:[#allocation2 + $0x50] sm:$0xff] }
 0x362   : > { %4495 = vst.msk [vmem:[#allocation2 + $0x70] sm:$0xff] %vm618_vm9, %v4479_v29  ;;  %v4477_v42 = vadd.f32 %v12225_v55, %v4313_v24  ;;  %4781 = vst.msk [vmem:[#allocation2] sm:$0xff] %vm618_vm9, %v4765_v36  ;;  %v4768_v44 = vadd.f32 %v10230_v43, %v4604_v14  ;;  %10390 = vmatmul.mubr.msk.bf16.vlgmr.msra.gmra.mxu0 %vm338_vm1, %v9429_v4  ;;  %v6864_v36 = vrot.slane %v9406_v51, 7  ;;  %v6867_v24 = vrot.slane %v9407_v32, 7 }
 0x363   : > { %v4316_v62 = vld [vmem:[#allocation2 + $0x78] sm:$0xff]  ;;  %v4705_v20 = vpop.f32.mrf.mxu1  ;;  %10424 = vmatpush3.bf16.msra.mxu0 %v7563_v17  ;;  %v4609_v5 = vld [vmem:[#allocation2 + $0x40] sm:$0xff] }
 0x364   : > { %4493 = vst.msk [vmem:[#allocation2 + $0x60] sm:$0xff] %vm618_vm9, %v4477_v42  ;;  %v4480_v50 = vadd.f32 %v12231_v12, %v4316_v62  ;;  %4784 = vst.msk [vmem:[#allocation2 + $0x18] sm:$0xff] %vm618_vm9, %v4768_v44  ;;  %v4766_v55 = vadd.f32 %v4705_v20, %v4602_v16  ;;  %v6857_v12 = vrot.slane %v9403_v2, 7  ;;  %v6865_v42 = vsel %vm10901_vm8, %v9423_v15, %v6864_v36  ;;  %v9408_v2 = vld [vmem:[%s10681_s10 + $0x31c] sm:$0x8]  ;;  %v12447_v20 = vpop.f32.mrf.mxu0 }
 0x365   : > { %v4314_v21 = vld [vmem:[#allocation2 + $0x68] sm:$0xff]  ;;  %v10233_v58 = vpop.f32.mrf.mxu1  ;;  %v6866_v44 = vrot.slane %v6864_v36, 4  ;;  %v9424_v40 = vrot.slane %v9408_v2, 11  ;;  %v4612_v51 = vld [vmem:[#allocation2 + $0x58] sm:$0xff] }
 0x366   : > { %4496 = vst.msk [vmem:[#allocation2 + $0x78] sm:$0xff] %vm618_vm9, %v4480_v50  ;;  %v4478_v47 = vadd.f32 %v12240_v56, %v4314_v21  ;;  %4782 = vst.msk [vmem:[#allocation2 + $0x8] sm:$0xff] %vm618_vm9, %v4766_v55  ;;  %v4771_v3 = vadd.f32 %v10233_v58, %v4607_v60  ;;  %v6858_v39 = vsel %vm10901_vm8, %v9422_v61, %v6857_v12  ;;  %v6859_v37 = vrot.slane %v6857_v12, 4  ;;  %v9409_v50 = vld [vmem:[%s10681_s10 + $0x320] sm:$0xf] }
 0x367   : > { %v4904_v23 = vld [vmem:[#allocation2 + $0x10] sm:$0xff]  ;;  %v4718_v48 = vpop.f32.mrf.mxu1  ;;  %v6860_v56 = vrot.slane %v9404_v18, 7  ;;  %v6868_v49 = vsel %vm10901_vm8, %v6866_v44, %v6867_v24  ;;  %v9410_v55 = vld [vmem:[%s10681_s10 + $0x324] sm:$0x7]  ;;  %v9411_v18 = vld [vmem:[%s10681_s10 + $0x340] sm:$0x8] }
 0x368   : > { %4494 = vst.msk [vmem:[#allocation2 + $0x68] sm:$0xff] %vm618_vm9, %v4478_v47  ;;  %v5068_v6 = vadd.f32 %v12251_v34, %v4904_v23  ;;  %4787 = vst.msk [vmem:[#allocation2 + $0x30] sm:$0xff] %vm618_vm9, %v4771_v3  ;;  %v4769_v41 = vadd.f32 %v4718_v48, %v4605_v7  ;;  %v9431_v4 = vcombine.low %v6865_v42, %v6868_v49  ;;  %v9412_v61 = vld [vmem:[%s10681_s10 + $0x344] sm:$0xf]  ;;  %v9413_v21 = vld [vmem:[%s10681_s10 + $0x348] sm:$0x7]  ;;  %v12463_v23 = vpop.f32.mrf.mxu0 }
 0x369   : > { %v4902_v8 = vld [vmem:[#allocation2] sm:$0xff]  ;;  %v10234_v19 = vpop.f32.mrf.mxu1  ;;  %v6861_v29 = vsel %vm10901_vm8, %v6859_v37, %v6860_v56  ;;  %v6874_v7 = vrot.slane %v9410_v55, 7  ;;  %v9425_v48 = vrot.slane %v9411_v18, 11  ;;  %v6881_v37 = vrot.slane %v9413_v21, 7  ;;  %v9417_v2 = vld [vmem:[%s10681_s10 + $0x388] sm:$0x8] }
 0x36a   : > { %5084 = vst.msk [vmem:[#allocation2 + $0x10] sm:$0xff] %vm618_vm9, %v5068_v6  ;;  %v5066_v14 = vadd.f32 %v12263_v46, %v4902_v8  ;;  %4785 = vst.msk [vmem:[#allocation2 + $0x20] sm:$0xff] %vm618_vm9, %v4769_v41  ;;  %v4772_v34 = vadd.f32 %v10234_v19, %v4608_v33  ;;  %v9430_v43 = vcombine.low %v6858_v39, %v6861_v29  ;;  %v6878_v39 = vrot.slane %v9412_v61, 7  ;;  %v4610_v41 = vld [vmem:[#allocation2 + $0x48] sm:$0xff] }
 0x36b   : > { %v4905_v63 = vld [vmem:[#allocation2 + $0x18] sm:$0xff]  ;;  %v4721_v30 = vpop.f32.mrf.mxu1 }
 0x36c   : > { %5082 = vst.msk [vmem:[#allocation2] sm:$0xff] %vm618_vm9, %v5066_v14  ;;  %v5069_v53 = vadd.f32 %v12271_v0, %v4905_v63  ;;  %4788 = vst.msk [vmem:[#allocation2 + $0x38] sm:$0xff] %vm618_vm9, %v4772_v34  ;;  %v4770_v46 = vadd.f32 %v4721_v30, %v4606_v9  ;;  %10393 = vmatprep.mubr.msk.bf16.mxu0 %vm338_vm1, %v9430_v43  ;;  %v6879_v19 = vsel %vm10901_vm8, %v9425_v48, %v6878_v39  ;;  %v4615_v14 = vld [vmem:[#allocation2 + $0x70] sm:$0xff]  ;;  %v12475_v43 = vpop.f32.mrf.mxu0  ;;  %v9414_v30 = vld [vmem:[%s10681_s10 + $0x364] sm:$0x8] }
 0x36d   : > { %v4903_v62 = vld [vmem:[#allocation2 + $0x8] sm:$0xff]  ;;  %v10237_v16 = vpop.f32.mrf.mxu1  ;;  %10394 = vmatmul.mubr.msk.bf16.gmra.mxu0 %vm338_vm1, %v9431_v4  ;;  %v6880_v29 = vrot.slane %v6878_v39, 4  ;;  %v4616_v55 = vld [vmem:[#allocation2 + $0x78] sm:$0xff] }
 0x36e   : > { %5085 = vst.msk [vmem:[#allocation2 + $0x18] sm:$0xff] %vm618_vm9, %v5069_v53  ;;  %v5067_v0 = vadd.f32 %v12279_v27, %v4903_v62  ;;  %4786 = vst.msk [vmem:[#allocation2 + $0x28] sm:$0xff] %vm618_vm9, %v4770_v46  ;;  %v4775_v60 = vadd.f32 %v10237_v16, %v4611_v22  ;;  %v6871_v27 = vrot.slane %v9409_v50, 7  ;;  %v9415_v46 = vld [vmem:[%s10681_s10 + $0x368] sm:$0xf]  ;;  %v4613_v16 = vld [vmem:[#allocation2 + $0x60] sm:$0xff]  ;;  %v12493_v61 = vpop.f32.mrf.mxu0 }
 0x36f   : > { %v4908_v58 = vld [vmem:[#allocation2 + $0x30] sm:$0xff]  ;;  %v4734_v12 = vpop.f32.mrf.mxu1  ;;  %v6882_v9 = vsel %vm10901_vm8, %v6880_v29, %v6881_v37  ;;  %v9416_v22 = vld [vmem:[%s10681_s10 + $0x36c] sm:$0x7]  ;;  %v6885_v21 = vrot.slane %v9415_v46, 7 }
 0x370   : > { %5083 = vst.msk [vmem:[#allocation2 + $0x8] sm:$0xff] %vm618_vm9, %v5067_v0  ;;  %v5072_v47 = vadd.f32 %v12287_v11, %v4908_v58  ;;  %4791 = vst.msk [vmem:[#allocation2 + $0x50] sm:$0xff] %vm618_vm9, %v4775_v60  ;;  %v4773_v3 = vadd.f32 %v4734_v12, %v4609_v5  ;;  %v6872_v8 = vsel %vm10901_vm8, %v9424_v40, %v6871_v27  ;;  %v6873_v33 = vrot.slane %v6871_v27, 4  ;;  %v9418_v60 = vld [vmem:[%s10681_s10 + $0x38c] sm:$0xf] }
 0x371   : > { %v4906_v17 = vld [vmem:[#allocation2 + $0x20] sm:$0xff]  ;;  %v10238_v32 = vpop.f32.mrf.mxu1  ;;  %v9433_v53 = vcombine.low %v6879_v19, %v6882_v9  ;;  %v9426_v0 = vrot.slane %v9414_v30, 11  ;;  %v6888_v58 = vrot.slane %v9416_v22, 7  ;;  %v9419_v5 = vld [vmem:[%s10681_s10 + $0x390] sm:$0x7]  ;;  %v9427_v12 = vrot.slane %v9417_v2, 11 }
 0x372   : > { %5088 = vst.msk [vmem:[#allocation2 + $0x30] sm:$0xff] %vm618_vm9, %v5072_v47  ;;  %v5070_v56 = vadd.f32 %v12295_v54, %v4906_v17  ;;  %4789 = vst.msk [vmem:[#allocation2 + $0x40] sm:$0xff] %vm618_vm9, %v4773_v3  ;;  %v4776_v11 = vadd.f32 %v10238_v32, %v4612_v51  ;;  %v6875_v63 = vsel %vm10901_vm8, %v6873_v33, %v6874_v7  ;;  %v4614_v3 = vld [vmem:[#allocation2 + $0x68] sm:$0xff]  ;;  %v6887_v51 = vrot.slane %v6885_v21, 4  ;;  %v5116_v37 = vld [vmem:[#allocation2 + $0x10] sm:$0xff] }
 0x373   : > { %v4909_v6 = vld [vmem:[#allocation2 + $0x38] sm:$0xff]  ;;  %v4737_v15 = vpop.f32.mrf.mxu1  ;;  %v9432_v44 = vcombine.low %v6872_v8, %v6875_v63  ;;  %v6886_v17 = vsel %vm10901_vm8, %v9426_v0, %v6885_v21  ;;  %v6892_v32 = vrot.slane %v9418_v60, 7  ;;  %v9492_v19 = vld [vmem:[%s10681_s10 + $0x514] sm:$0x8] }
 0x374   : > { %5086 = vst.msk [vmem:[#allocation2 + $0x20] sm:$0xff] %vm618_vm9, %v5070_v56  ;;  %v5073_v36 = vadd.f32 %v12306_v38, %v4909_v6  ;;  %4792 = vst.msk [vmem:[#allocation2 + $0x58] sm:$0xff] %vm618_vm9, %v4776_v11  ;;  %v4774_v54 = vadd.f32 %v4737_v15, %v4610_v41  ;;  %v12505_v11 = vpop.f32.mrf.mxu0  ;;  %v6889_v6 = vsel %vm10901_vm8, %v6887_v51, %v6888_v58  ;;  %v9493_v63 = vld [vmem:[%s10681_s10 + $0x518] sm:$0xf]  ;;  %v9494_v9 = vld [vmem:[%s10681_s10 + $0x51c] sm:$0x7] }
 0x375   : > { %v4907_v24 = vld [vmem:[#allocation2 + $0x28] sm:$0xff]  ;;  %v10241_v34 = vpop.f32.mrf.mxu1  ;;  %10397 = vmatprep.mubr.msk.bf16.mxu0 %vm338_vm1, %v9432_v44  ;;  %v6893_v41 = vsel %vm10901_vm8, %v9427_v12, %v6892_v32  ;;  %v6894_v15 = vrot.slane %v6892_v32, 4  ;;  %v9434_v33 = vcombine.low %v6886_v17, %v6889_v6  ;;  %v9495_v30 = vld [vmem:[%s10681_s10 + $0x538] sm:$0x8]  ;;  %v9516_v46 = vrot.slane %v9492_v19, 11 }
 0x376   : > { %5089 = vst.msk [vmem:[#allocation2 + $0x38] sm:$0xff] %vm618_vm9, %v5073_v36  ;;  %v5071_v38 = vadd.f32 %v12315_v59, %v4907_v24  ;;  %4790 = vst.msk [vmem:[#allocation2 + $0x48] sm:$0xff] %vm618_vm9, %v4774_v54  ;;  %v4779_v42 = vadd.f32 %v10241_v34, %v4615_v14  ;;  %10398 = vmatmul.mubr.msk.bf16.gmra.mxu0 %vm338_vm1, %v9433_v53  ;;  %v5114_v36 = vld [vmem:[#allocation2] sm:$0xff]  ;;  %v12524_v53 = vpop.f32.mrf.mxu0  ;;  %v9496_v22 = vld [vmem:[%s10681_s10 + $0x53c] sm:$0xf]  ;;  %v9517_v0 = vrot.slane %v9495_v30, 11 }
 0x377   : > { %v4912_v62 = vld [vmem:[#allocation2 + $0x50] sm:$0xff]  ;;  %v4750_v49 = vpop.f32.mrf.mxu1  ;;  %10401 = vmatprep.mubr.msk.bf16.mxu0 %vm338_vm1, %v9434_v33  ;;  %v9499_v19 = vld [vmem:[%s10681_s10 + $0x560] sm:$0xf]  ;;  %v9503_v30 = vld [vmem:[%s10681_s10 + $0x588] sm:$0x7] }
 0x378   : > { %5087 = vst.msk [vmem:[#allocation2 + $0x28] sm:$0xff] %vm618_vm9, %v5071_v38  ;;  %v5076_v50 = vadd.f32 %v12331_v52, %v4912_v62  ;;  %4795 = vst.msk [vmem:[#allocation2 + $0x70] sm:$0xff] %vm618_vm9, %v4779_v42  ;;  %v4777_v59 = vadd.f32 %v4750_v49, %v4613_v16  ;;  %v5117_v42 = vld [vmem:[#allocation2 + $0x18] sm:$0xff]  ;;  %v9497_v62 = vld [vmem:[%s10681_s10 + $0x540] sm:$0x7] }
 0x379   : > { %v4910_v4 = vld [vmem:[#allocation2 + $0x40] sm:$0xff]  ;;  %v10242_v18 = vpop.f32.mrf.mxu1  ;;  %v5115_v49 = vld [vmem:[#allocation2 + $0x8] sm:$0xff]  ;;  %v5120_v21 = vld [vmem:[#allocation2 + $0x30] sm:$0xff] }
 0x37a   : > { %5092 = vst.msk [vmem:[#allocation2 + $0x50] sm:$0xff] %vm618_vm9, %v5076_v50  ;;  %v5074_v52 = vadd.f32 %v12340_v25, %v4910_v4  ;;  %4793 = vst.msk [vmem:[#allocation2 + $0x60] sm:$0xff] %vm618_vm9, %v4777_v59  ;;  %v4780_v40 = vadd.f32 %v10242_v18, %v4616_v55  ;;  %v6895_v25 = vrot.slane %v9419_v5, 7  ;;  %v7444_v59 = vrot.slane %v9493_v63, 7  ;;  %v12535_v5 = vpop.f32.mrf.mxu0 }
 0x37b   : > { %v4913_v47 = vld [vmem:[#allocation2 + $0x58] sm:$0xff]  ;;  %v4753_v27 = vpop.f32.mrf.mxu1  ;;  %v7447_v55 = vrot.slane %v9494_v9, 7  ;;  %v5118_v17 = vld [vmem:[#allocation2 + $0x20] sm:$0xff] }
 0x37c   : > { %5090 = vst.msk [vmem:[#allocation2 + $0x40] sm:$0xff] %vm618_vm9, %v5074_v52  ;;  %v5077_v7 = vadd.f32 %v12351_v10, %v4913_v47  ;;  %4796 = vst.msk [vmem:[#allocation2 + $0x78] sm:$0xff] %vm618_vm9, %v4780_v40  ;;  %v4778_v48 = vadd.f32 %v4753_v27, %v4614_v3  ;;  %v6896_v24 = vsel %vm10901_vm8, %v6894_v15, %v6895_v25  ;;  %v7446_v52 = vrot.slane %v7444_v59, 4  ;;  %v5848_v47 = vld [vmem:[%s13413_s4 + $0x10] sm:$0x3] }
 0x37d   : > { %v4911_v39 = vld [vmem:[#allocation2 + $0x48] sm:$0xff]  ;;  %v10265_v56 = vpop.f32.mrf.mxu1  ;;  %v9435_v34 = vcombine.low %v6893_v41, %v6896_v24  ;;  %v7445_v12 = vsel %vm10901_vm8, %v9516_v46, %v7444_v59  ;;  %v7454_v40 = vrot.slane %v9497_v62, 7  ;;  %10524 = vmatprep.subr.msk.bf16.mxu0 %vm363_vm0, %v5848_v47  ;;  %v12553_v41 = vpop.f32.mrf.mxu0 }
 0x37e   : > { %5093 = vst.msk [vmem:[#allocation2 + $0x58] sm:$0xff] %vm618_vm9, %v5077_v7  ;;  %v5075_v10 = vadd.f32 %v12360_v31, %v4911_v39  ;;  %4794 = vst.msk [vmem:[#allocation2 + $0x68] sm:$0xff] %vm618_vm9, %v4778_v48  ;;  %v5296_v8 = vadd.f32 %v10265_v56, %v5116_v37  ;;  %v7448_v32 = vsel %vm10901_vm8, %v7446_v52, %v7447_v55  ;;  %v5121_v56 = vld [vmem:[#allocation2 + $0x38] sm:$0xff] }
 0x37f   : > { %v4916_v29 = vld [vmem:[#allocation2 + $0x70] sm:$0xff]  ;;  %v5231_v54 = vpop.f32.mrf.mxu1  ;;  %10402 = vmatmul.mubr.msk.bf16.gmra.mxu0 %vm338_vm1, %v9435_v34  ;;  %v9524_v39 = vcombine.low %v7445_v12, %v7448_v32  ;;  %v5119_v24 = vld [vmem:[#allocation2 + $0x28] sm:$0xff]  ;;  %v9502_v34 = vld [vmem:[%s10681_s10 + $0x584] sm:$0xf]  ;;  %v12572_v46 = vpop.f32.mrf.mxu0 }
 0x380   : > { %5091 = vst.msk [vmem:[#allocation2 + $0x48] sm:$0xff] %vm618_vm9, %v5075_v10  ;;  %v5080_v14 = vadd.f32 %v12371_v28, %v4916_v29  ;;  %5312 = vst.msk [vmem:[#allocation2 + $0x10] sm:$0xff] %vm618_vm9, %v5296_v8  ;;  %v5294_v31 = vadd.f32 %v5231_v54, %v5114_v36  ;;  %v9498_v10 = vld [vmem:[%s10681_s10 + $0x55c] sm:$0x8]  ;;  %v9500_v29 = vld [vmem:[%s10681_s10 + $0x564] sm:$0x7] }
 0x381   : > { %v4914_v38 = vld [vmem:[#allocation2 + $0x60] sm:$0xff]  ;;  %v10266_v44 = vpop.f32.mrf.mxu1  ;;  %10425 = vmatprep.mubr.msk.bf16.mxu0 %vm338_vm1, %v9524_v39  ;;  %v9518_v9 = vrot.slane %v9498_v10, 11  ;;  %v12582_v12 = vpop.f32.mrf.mxu0  ;;  %v9506_v39 = vld [vmem:[%s10681_s10 + $0x5ac] sm:$0x7] }
 0x382   : > { %5096 = vst.msk [vmem:[#allocation2 + $0x70] sm:$0xff] %vm618_vm9, %v5080_v14  ;;  %v5078_v28 = vadd.f32 %v12385_v45, %v4914_v38  ;;  %5310 = vst.msk [vmem:[#allocation2] sm:$0xff] %vm618_vm9, %v5294_v31  ;;  %v5297_v2 = vadd.f32 %v10266_v44, %v5117_v42  ;;  %v7451_v45 = vrot.slane %v9496_v22, 7  ;;  %v9501_v36 = vld [vmem:[%s10681_s10 + $0x580] sm:$0x8]  ;;  %v8091_v31 = vsel %vm363_vm0, %v5848_v47, 0 }
 0x383   : > { %v4917_v16 = vld [vmem:[#allocation2 + $0x78] sm:$0xff]  ;;  %v5234_v50 = vpop.f32.mrf.mxu1  ;;  %v5124_v42 = vld [vmem:[#allocation2 + $0x50] sm:$0xff]  ;;  %v7458_v22 = vrot.slane %v9499_v19, 7 }
 0x384   : > { %5094 = vst.msk [vmem:[#allocation2 + $0x60] sm:$0xff] %vm618_vm9, %v5078_v28  ;;  %v5081_v60 = vadd.f32 %v12396_v26, %v4917_v16  ;;  %5313 = vst.msk [vmem:[#allocation2 + $0x18] sm:$0xff] %vm618_vm9, %v5297_v2  ;;  %v5295_v4 = vadd.f32 %v5234_v50, %v5115_v49  ;;  %v7452_v7 = vsel %vm10901_vm8, %v9517_v0, %v7451_v45  ;;  %v7453_v48 = vrot.slane %v7451_v45, 4  ;;  %v5122_v50 = vld [vmem:[#allocation2 + $0x40] sm:$0xff] }
 0x385   : > { %v4915_v18 = vld [vmem:[#allocation2 + $0x68] sm:$0xff]  ;;  %v10269_v58 = vpop.f32.mrf.mxu1  ;;  %v7461_v28 = vrot.slane %v9500_v29, 7  ;;  %v9519_v2 = vrot.slane %v9501_v36, 11  ;;  %v7465_v16 = vrot.slane %v9502_v34, 7  ;;  %v7459_v55 = vsel %vm10901_vm8, %v9518_v9, %v7458_v22  ;;  %v10609_v29 = vld [vmem:[%s13413_s4] sm:$0x3] }
 0x386   : > { %5097 = vst.msk [vmem:[#allocation2 + $0x78] sm:$0xff] %vm618_vm9, %v5081_v60  ;;  %v5079_v26 = vadd.f32 %v12414_v1, %v4915_v18  ;;  %5311 = vst.msk [vmem:[#allocation2 + $0x8] sm:$0xff] %vm618_vm9, %v5295_v4  ;;  %v5300_v3 = vadd.f32 %v10269_v58, %v5120_v21  ;;  %v7455_v15 = vsel %vm10901_vm8, %v7453_v48, %v7454_v40  ;;  %v7460_v0 = vrot.slane %v7458_v22, 4  ;;  %v5125_v21 = vld [vmem:[#allocation2 + $0x58] sm:$0xff]  ;;  %v9509_v22 = vld [vmem:[%s10681_s10 + $0x5d0] sm:$0x7] }
 0x387   : > { %v5432_v27 = vld [vmem:[#allocation2 + $0x10] sm:$0xff]  ;;  %v5247_v51 = vpop.f32.mrf.mxu1  ;;  %v9525_v33 = vcombine.low %v7452_v7, %v7455_v15  ;;  %v7468_v60 = vrot.slane %v9503_v30, 7  ;;  %v7466_v40 = vsel %vm10901_vm8, %v9519_v2, %v7465_v16  ;;  %v6134_v36 = vsel %vm363_vm0, %v10609_v29, 0 }
 0x388   : > { %5095 = vst.msk [vmem:[#allocation2 + $0x68] sm:$0xff] %vm618_vm9, %v5079_v26  ;;  %v5596_v1 = vadd.f32 %v12433_v57, %v5432_v27  ;;  %5316 = vst.msk [vmem:[#allocation2 + $0x30] sm:$0xff] %vm618_vm9, %v5300_v3  ;;  %v5298_v25 = vadd.f32 %v5247_v51, %v5118_v17  ;;  %v7462_v52 = vsel %vm10901_vm8, %v7460_v0, %v7461_v28  ;;  %v5123_v27 = vld [vmem:[#allocation2 + $0x48] sm:$0xff] }
 0x389   : > { %v5430_v37 = vld [vmem:[#allocation2] sm:$0xff]  ;;  %v10270_v6 = vpop.f32.mrf.mxu1  ;;  %10426 = vmatmul.mubr.msk.bf16.vlgmr.msra.gmra.mxu0 %vm338_vm1, %v9525_v33  ;;  %v9526_v26 = vcombine.low %v7459_v55, %v7462_v52  ;;  %v5128_v51 = vld [vmem:[#allocation2 + $0x70] sm:$0xff] }
 0x38a   : > { %5612 = vst.msk [vmem:[#allocation2 + $0x10] sm:$0xff] %vm618_vm9, %v5596_v1  ;;  %v5594_v57 = vadd.f32 %v12447_v20, %v5430_v37  ;;  %5314 = vst.msk [vmem:[#allocation2 + $0x20] sm:$0xff] %vm618_vm9, %v5298_v25  ;;  %v5301_v8 = vadd.f32 %v10270_v6, %v5121_v56  ;;  %10460 = vmatpush3.bf16.msra.mxu0 %v8091_v31  ;;  %v9504_v1 = vld [vmem:[%s10681_s10 + $0x5a4] sm:$0x8]  ;;  %v9505_v25 = vld [vmem:[%s10681_s10 + $0x5a8] sm:$0xf]  ;;  %v12600_v6 = vpop.f32.mrf.mxu0 }
 0x38b   : > { %v5433_v54 = vld [vmem:[#allocation2 + $0x18] sm:$0xff]  ;;  %v5250_v14 = vpop.f32.mrf.mxu1  ;;  %10429 = vmatprep.mubr.msk.bf16.mxu0 %vm338_vm1, %v9526_v26  ;;  %v5126_v33 = vld [vmem:[#allocation2 + $0x60] sm:$0xff]  ;;  %v9520_v34 = vrot.slane %v9504_v1, 11 }
 0x38c   : > { %5610 = vst.msk [vmem:[#allocation2] sm:$0xff] %vm618_vm9, %v5594_v57  ;;  %v5597_v20 = vadd.f32 %v12463_v23, %v5433_v54  ;;  %5317 = vst.msk [vmem:[#allocation2 + $0x38] sm:$0xff] %vm618_vm9, %v5301_v8  ;;  %v5299_v63 = vadd.f32 %v5250_v14, %v5119_v24  ;;  %v12603_v57 = vld [vmem:[%s10681_s10 + $0x8] sm:$0xf]  ;;  %v12640_v26 = vld [vmem:[%s13413_s4 + $0x4] sm:$0x3] }
 0x38d   : > { %v5431_v38 = vld [vmem:[#allocation2 + $0x8] sm:$0xff]  ;;  %v10273_v44 = vpop.f32.mrf.mxu1  ;;  %v5129_v2 = vld [vmem:[#allocation2 + $0x78] sm:$0xff] }
 0x38e   : > { %5613 = vst.msk [vmem:[#allocation2 + $0x18] sm:$0xff] %vm618_vm9, %v5597_v20  ;;  %v5595_v23 = vadd.f32 %v12475_v43, %v5431_v38  ;;  %5315 = vst.msk [vmem:[#allocation2 + $0x28] sm:$0xff] %vm618_vm9, %v5299_v63  ;;  %v5304_v62 = vadd.f32 %v10273_v44, %v5124_v42  ;;  %v7467_v43 = vrot.slane %v7465_v16, 4  ;;  %v9507_v54 = vld [vmem:[%s10681_s10 + $0x5c8] sm:$0x8]  ;;  %v7472_v20 = vrot.slane %v9505_v25, 7 }
 0x38f   : > { %v5436_v49 = vld [vmem:[#allocation2 + $0x30] sm:$0xff]  ;;  %v5263_v59 = vpop.f32.mrf.mxu1  ;;  %v7475_v63 = vrot.slane %v9506_v39, 7  ;;  %v9508_v44 = vld [vmem:[%s10681_s10 + $0x5cc] sm:$0xf] }
 0x390   : > { %5611 = vst.msk [vmem:[#allocation2 + $0x8] sm:$0xff] %vm618_vm9, %v5595_v23  ;;  %v5600_v4 = vadd.f32 %v12493_v61, %v5436_v49  ;;  %5320 = vst.msk [vmem:[#allocation2 + $0x50] sm:$0xff] %vm618_vm9, %v5304_v62  ;;  %v5302_v45 = vadd.f32 %v5263_v59, %v5122_v50  ;;  %v7469_v32 = vsel %vm10901_vm8, %v7467_v43, %v7468_v60  ;;  %v10295_v62 = vpop.f32.mrf.mxu0  ;;  %v7474_v50 = vrot.slane %v7472_v20, 4  ;;  %v12625_v60 = vld [vmem:[%s10681_s10 + $0x4] sm:$0x8]  ;;  %v5127_v43 = vld [vmem:[#allocation2 + $0x68] sm:$0xff] }
 0x391   : > { %v5434_v18 = vld [vmem:[#allocation2 + $0x20] sm:$0xff]  ;;  %v10274_v58 = vpop.f32.mrf.mxu1  ;;  %v9527_v48 = vcombine.low %v7466_v40, %v7469_v32  ;;  %v5628_v19 = vld [vmem:[#allocation2 + $0x10] sm:$0xff]  ;;  %v7473_v49 = vsel %vm10901_vm8, %v9520_v34, %v7472_v20  ;;  %v9521_v59 = vrot.slane %v9507_v54, 11  ;;  %v7479_v40 = vrot.slane %v9508_v44, 7  ;;  %v9572_v44 = vld [vmem:[%s10681_s10 + $0x528] sm:$0xe] }
 0x392   : > { %5616 = vst.msk [vmem:[#allocation2 + $0x30] sm:$0xff] %vm618_vm9, %v5600_v4  ;;  %v5598_v61 = vadd.f32 %v12505_v11, %v5434_v18  ;;  %5318 = vst.msk [vmem:[#allocation2 + $0x40] sm:$0xff] %vm618_vm9, %v5302_v45  ;;  %v5305_v47 = vadd.f32 %v10274_v58, %v5125_v21  ;;  %v5644_v16 = vmax.f32 %v5628_v19, 0.0  ;;  %v6015_v4 = vrot.slane %v12603_v57, 7  ;;  %v12629_v58 = vld [vmem:[%s10681_s10 + $0xc] sm:$0x7] }
 0x393   : > { %v5437_v3 = vld [vmem:[#allocation2 + $0x38] sm:$0xff]  ;;  %v5266_v17 = vpop.f32.mrf.mxu1  ;;  %v5626_v15 = vld [vmem:[#allocation2] sm:$0xff]  ;;  %10430 = vmatmul.mubr.msk.bf16.gmra.mxu0 %vm338_vm1, %v9527_v48  ;;  %v7476_v52 = vsel %vm10901_vm8, %v7474_v50, %v7475_v63  ;;  %v9332_v25 = vrot.slane %v12625_v60, 11  ;;  %v5971_v57 = vld [vmem:[%s10681_s10 + $0x4c] sm:$0x8] }
 0x394   : > { %5614 = vst.msk [vmem:[#allocation2 + $0x20] sm:$0xff] %vm618_vm9, %v5598_v61  ;;  %v5601_v7 = vadd.f32 %v12524_v53, %v5437_v3  ;;  %5321 = vst.msk [vmem:[#allocation2 + $0x58] sm:$0xff] %vm618_vm9, %v5305_v47  ;;  %v5303_v11 = vadd.f32 %v5266_v17, %v5123_v27  ;;  %v5642_v38 = vmax.f32 %v5626_v15, 0.0  ;;  %v12643_v3 = vld [vmem:[%s10681_s10 + $0x28] sm:$0x8]  ;;  %v9528_v27 = vcombine.low %v7473_v49, %v7476_v52 }
 0x395   : > { %v5435_v37 = vld [vmem:[#allocation2 + $0x28] sm:$0xff]  ;;  %v10277_v56 = vpop.f32.mrf.mxu1  ;;  %v5629_v10 = vld [vmem:[#allocation2 + $0x18] sm:$0xff]  ;;  %v12654_v39 = vrot.slane %v6015_v4, 4 }
 0x396   : > { %5617 = vst.msk [vmem:[#allocation2 + $0x38] sm:$0xff] %vm618_vm9, %v5601_v7  ;;  %v5599_v53 = vadd.f32 %v12535_v5, %v5435_v37  ;;  %5319 = vst.msk [vmem:[#allocation2 + $0x48] sm:$0xff] %vm618_vm9, %v5303_v11  ;;  %v5308_v8 = vadd.f32 %v10277_v56, %v5128_v51  ;;  %v5645_v5 = vmax.f32 %v5629_v10, 0.0  ;;  %v5579_v51 = vpop.f32.mrf.mxu0  ;;  %v7480_v7 = vsel %vm10901_vm8, %v9521_v59, %v7479_v40  ;;  %v9510_v56 = vld [vmem:[%s10681_s10 + $0x5ec] sm:$0x8] }
 0x397   : > { %v5440_v24 = vld [vmem:[#allocation2 + $0x50] sm:$0xff]  ;;  %v5279_v14 = vpop.f32.mrf.mxu1  ;;  %v5627_v31 = vld [vmem:[#allocation2 + $0x8] sm:$0xff]  ;;  %v7481_v11 = vrot.slane %v7479_v40, 4  ;;  %v6018_v37 = vrot.slane %v12629_v58, 7  ;;  %10433 = vmatprep.mubr.msk.bf16.mxu0 %vm338_vm1, %v9528_v27  ;;  %v9522_v63 = vrot.slane %v9510_v56, 11 }
 0x398   : > { %5615 = vst.msk [vmem:[#allocation2 + $0x28] sm:$0xff] %vm618_vm9, %v5599_v53  ;;  %v5604_v9 = vadd.f32 %v12553_v41, %v5440_v24  ;;  %5324 = vst.msk [vmem:[#allocation2 + $0x70] sm:$0xff] %vm618_vm9, %v5308_v8  ;;  %v5306_v30 = vadd.f32 %v5279_v14, %v5126_v33  ;;  %v5643_v42 = vmax.f32 %v5627_v31, 0.0  ;;  %v5659_v21 = vpack.c.bf16 %v5645_v5, %v5644_v16  ;;  %v9511_v33 = vld [vmem:[%s10681_s10 + $0x5f0] sm:$0xf]  ;;  %v10296_v5 = vpop.f32.mrf.mxu0 }
 0x399   : > { %v5438_v28 = vld [vmem:[#allocation2 + $0x40] sm:$0xff]  ;;  %v10278_v23 = vpop.f32.mrf.mxu1  ;;  %v5632_v1 = vld [vmem:[#allocation2 + $0x30] sm:$0xff]  ;;  %v9333_v53 = vrot.slane %v12643_v3, 11 }
 0x39a   : > { %5620 = vst.msk [vmem:[#allocation2 + $0x50] sm:$0xff] %vm618_vm9, %v5604_v9  ;;  %v5602_v41 = vadd.f32 %v12572_v46, %v5438_v28  ;;  %5322 = vst.msk [vmem:[#allocation2 + $0x60] sm:$0xff] %vm618_vm9, %v5306_v30  ;;  %v5309_v55 = vadd.f32 %v10278_v23, %v5129_v2  ;;  %v5658_v0 = vpack.c.bf16 %v5643_v42, %v5642_v38  ;;  %v7482_v46 = vrot.slane %v9509_v22, 7  ;;  %v9512_v24 = vld [vmem:[%s10681_s10 + $0x5f4] sm:$0x7] }
 0x39b   : > { %v5441_v45 = vld [vmem:[#allocation2 + $0x58] sm:$0xff]  ;;  %v5282_v18 = vpop.f32.mrf.mxu1  ;;  %v5630_v32 = vld [vmem:[#allocation2 + $0x20] sm:$0xff]  ;;  %v9513_v14 = vld [vmem:[%s10681_s10 + $0x610] sm:$0x8]  ;;  %v5648_v34 = vmax.f32 %v5632_v1, 0.0  ;;  %v7489_v16 = vrot.slane %v9512_v24, 7 }
 0x39c   : > { %5618 = vst.msk [vmem:[#allocation2 + $0x40] sm:$0xff] %vm618_vm9, %v5602_v41  ;;  %v5605_v61 = vadd.f32 %v12582_v12, %v5441_v45  ;;  %5325 = vst.msk [vmem:[#allocation2 + $0x78] sm:$0xff] %vm618_vm9, %v5309_v55  ;;  %v5307_v47 = vadd.f32 %v5282_v18, %v5127_v43  ;;  %10299 = vmatprep.mubr.msk.bf16.mxu1 %vm618_vm9, %v5658_v0  ;;  %v7483_v8 = vsel %vm10901_vm8, %v7481_v11, %v7482_v46  ;;  %v9514_v9 = vld [vmem:[%s10681_s10 + $0x614] sm:$0xf]  ;;  %v9515_v42 = vld [vmem:[%s10681_s10 + $0x618] sm:$0x7]  ;;  %v5582_v43 = vpop.f32.mrf.mxu0 }
 0x39d   : > { %v5439_v17 = vld [vmem:[#allocation2 + $0x48] sm:$0xff]  ;;  %10300 = vmatmul.mubr.msk.bf16.vlgmr.msra.gmra.mxu1 %vm618_vm9, %v5659_v21  ;;  %v5633_v12 = vld [vmem:[#allocation2 + $0x38] sm:$0xff]  ;;  %v5646_v29 = vmax.f32 %v5630_v32, 0.0  ;;  %v9529_v54 = vcombine.low %v7480_v7, %v7483_v8  ;;  %v9523_v49 = vrot.slane %v9513_v14, 11  ;;  %v7493_v41 = vrot.slane %v9514_v9, 7 }
 0x39e   : > { %5621 = vst.msk [vmem:[#allocation2 + $0x58] sm:$0xff] %vm618_vm9, %v5605_v61  ;;  %v5603_v48 = vadd.f32 %v12600_v6, %v5439_v17  ;;  %5323 = vst.msk [vmem:[#allocation2 + $0x68] sm:$0xff] %vm618_vm9, %v5307_v47  ;;  %10334 = vmatpush3.bf16.msra.mxu1 %v6134_v36  ;;  %v5649_v6 = vmax.f32 %v5633_v12, 0.0  ;;  %v9573_v22 = vld [vmem:[%s10681_s10 + $0x52c] sm:$0xf]  ;;  %v7496_v46 = vrot.slane %v9515_v42, 7 }
 0x39f   : > { %v5444_v15 = vld [vmem:[#allocation2 + $0x70] sm:$0xff]  ;;  %v5631_v10 = vld [vmem:[#allocation2 + $0x28] sm:$0xff]  ;;  %10519 = vmatprep.subr.msk.bf16.mxu1 %vm363_vm0, %v12640_v26  ;;  %10434 = vmatmul.mubr.msk.bf16.gmra.mxu0 %vm338_vm1, %v9529_v54  ;;  %v9596_v61 = vrot.slane %v9572_v44, 9  ;;  %v7494_v17 = vsel %vm10901_vm8, %v9523_v49, %v7493_v41  ;;  %v7972_v1 = vrot.slane %v9573_v22, 5  ;;  %v9582_v9 = vld [vmem:[%s10681_s10 + $0x598] sm:$0xf] }
 0x3a0   : > { %5619 = vst.msk [vmem:[#allocation2 + $0x48] sm:$0xff] %vm618_vm9, %v5603_v48  ;;  %v5608_v19 = vadd.f32 %v10295_v62, %v5444_v15  ;;  %v5647_v36 = vmax.f32 %v5631_v10, 0.0  ;;  %v5661_v2 = vpack.c.bf16 %v5649_v6, %v5648_v34  ;;  %v7486_v62 = vrot.slane %v9511_v33, 7  ;;  %v9574_v55 = vld [vmem:[%s10681_s10 + $0x530] sm:$0x1] }
 0x3a1   : > { %v5442_v31 = vld [vmem:[#allocation2 + $0x60] sm:$0xff]  ;;  %v12668_v20 = vld [vmem:[#allocation2 + $0x50] sm:$0xff]  ;;  %v9575_v0 = vld [vmem:[%s10681_s10 + $0x54c] sm:$0xe]  ;;  %v7975_v56 = vrot.slane %v9574_v55, 5  ;;  %v7973_v54 = vsel %vm10750_vm4, %v9596_v61, %v7972_v1  ;;  %v7974_v24 = vrot.slane %v7972_v1, 4 }
 0x3a2   : > { %5624 = vst.msk [vmem:[#allocation2 + $0x70] sm:$0xff] %vm618_vm9, %v5608_v19  ;;  %v5606_v30 = vadd.f32 %v5579_v51, %v5442_v31  ;;  %v5660_v38 = vpack.c.bf16 %v5647_v36, %v5646_v29  ;;  %v5652_v59 = vmax.f32 %v12668_v20, 0.0  ;;  %v12683_v21 = vld [vmem:[%s10681_s10 + $0x2c] sm:$0xf]  ;;  %v7487_v52 = vsel %vm10901_vm8, %v9522_v63, %v7486_v62  ;;  %v9576_v32 = vld [vmem:[%s10681_s10 + $0x550] sm:$0xf] }
 0x3a3   : > { %v5445_v28 = vld [vmem:[#allocation2 + $0x78] sm:$0xff]  ;;  %v5634_v23 = vld [vmem:[#allocation2 + $0x40] sm:$0xff]  ;;  %v7488_v40 = vrot.slane %v7486_v62, 4  ;;  %v7495_v51 = vrot.slane %v7493_v41, 4  ;;  %v9577_v12 = vld [vmem:[%s10681_s10 + $0x554] sm:$0x1]  ;;  %v7976_v42 = vsel %vm10750_vm4, %v7974_v24, %v7975_v56 }
 0x3a4   : > { %5622 = vst.msk [vmem:[#allocation2 + $0x60] sm:$0xff] %vm618_vm9, %v5606_v30  ;;  %v5609_v50 = vadd.f32 %v10296_v5, %v5445_v28  ;;  %10303 = vmatprep.mubr.msk.bf16.mxu1 %vm618_vm9, %v5660_v38  ;;  %v5650_v27 = vmax.f32 %v5634_v23, 0.0  ;;  %v9578_v15 = vld [vmem:[%s10681_s10 + $0x570] sm:$0xe]  ;;  %v9597_v33 = vrot.slane %v9575_v0, 9  ;;  %v7979_v14 = vrot.slane %v9576_v32, 5 }
 0x3a5   : > { %v5443_v45 = vld [vmem:[#allocation2 + $0x68] sm:$0xff]  ;;  %10304 = vmatmul.mubr.msk.bf16.gmra.mxu1 %vm618_vm9, %v5661_v2  ;;  %v5637_v18 = vld [vmem:[#allocation2 + $0x58] sm:$0xff]  ;;  %v7490_v48 = vsel %vm10901_vm8, %v7488_v40, %v7489_v16  ;;  %v7497_v8 = vsel %vm10901_vm8, %v7495_v51, %v7496_v46  ;;  %v9579_v19 = vld [vmem:[%s10681_s10 + $0x574] sm:$0xf]  ;;  %v6022_v34 = vrot.slane %v12683_v21, 7  ;;  %v7982_v20 = vrot.slane %v9577_v12, 5 }
 0x3a6   : > { %5625 = vst.msk [vmem:[#allocation2 + $0x78] sm:$0xff] %vm618_vm9, %v5609_v50  ;;  %v5607_v47 = vadd.f32 %v5582_v43, %v5443_v45  ;;  %v5653_v11 = vmax.f32 %v5637_v18, 0.0  ;;  %v9530_v6 = vcombine.low %v7487_v52, %v7490_v48  ;;  %v12700_v29 = vld [vmem:[%s10681_s10 + $0x50] sm:$0xf]  ;;  %v9531_v36 = vcombine.low %v7494_v17, %v7497_v8  ;;  %v9580_v31 = vld [vmem:[%s10681_s10 + $0x578] sm:$0x1] }
 0x3a7   : > { %v5635_v7 = vld [vmem:[#allocation2 + $0x48] sm:$0xff]  ;;  %v9598_v63 = vrot.slane %v9578_v15, 9  ;;  %v7981_v44 = vrot.slane %v7979_v14, 4  ;;  %v7986_v22 = vrot.slane %v9579_v19, 5  ;;  %v9581_v28 = vld [vmem:[%s10681_s10 + $0x594] sm:$0xe]  ;;  %v9604_v23 = vcombine.low %v7973_v54, %v7976_v42 }
 0x3a8   : > { %5623 = vst.msk [vmem:[#allocation2 + $0x68] sm:$0xff] %vm618_vm9, %v5607_v47  ;;  %v5651_v10 = vmax.f32 %v5635_v7, 0.0  ;;  %10437 = vmatprep.mubr.msk.bf16.mxu0 %vm338_vm1, %v9530_v6  ;;  %v5663_v30 = vpack.c.bf16 %v5653_v11, %v5652_v59  ;;  %v6029_v2 = vrot.slane %v12700_v29, 7  ;;  %v7980_v62 = vsel %vm10750_vm4, %v9597_v33, %v7979_v14  ;;  %v9585_v49 = vld [vmem:[%s10681_s10 + $0x5bc] sm:$0xf] }
 0x3a9   : > { %10438 = vmatmul.mubr.msk.bf16.gmra.mxu0 %vm338_vm1, %v9531_v36  ;;  %v7989_v16 = vrot.slane %v9580_v31, 5  ;;  %v5640_v50 = vld [vmem:[#allocation2 + $0x70] sm:$0xff]  ;;  %v7983_v55 = vsel %vm10750_vm4, %v7981_v44, %v7982_v20  ;;  %v7987_v0 = vsel %vm10750_vm4, %v9598_v63, %v7986_v22  ;;  %v7988_v45 = vrot.slane %v7986_v22, 4  ;;  %v9583_v43 = vld [vmem:[%s10681_s10 + $0x59c] sm:$0x1] }
 0x3aa   : > { %v5662_v5 = vpack.c.bf16 %v5651_v10, %v5650_v27  ;;  %v5970_v41 = vld [vmem:[%s10681_s10 + $0x30] sm:$0x7]  ;;  %v7993_v18 = vrot.slane %v9582_v9, 5  ;;  %v6016_v40 = vsel %vm10901_vm8, %v9332_v25, %v6015_v4  ;;  %v6019_v46 = vsel %vm10901_vm8, %v12654_v39, %v6018_v37  ;;  %10461 = vmatprep.mubr.msk.bf16.mxu0 %vm338_vm1, %v9604_v23  ;;  %v9584_v47 = vld [vmem:[%s10681_s10 + $0x5b8] sm:$0xe] }
 0x3ab   : > { %v5638_v38 = vld [vmem:[#allocation2 + $0x60] sm:$0xff]  ;;  %v9599_v61 = vrot.slane %v9581_v28, 9  ;;  %v9605_v32 = vcombine.low %v7980_v62, %v7983_v55  ;;  %v7990_v60 = vsel %vm10750_vm4, %v7988_v45, %v7989_v16  ;;  %v8000_v4 = vrot.slane %v9585_v49, 5  ;;  %v5973_v25 = vld [vmem:[%s10681_s10 + $0x54] sm:$0x7] }
 0x3ac   : > { %10307 = vmatprep.mubr.msk.bf16.mxu1 %vm618_vm9, %v5662_v5  ;;  %v5654_v52 = vmax.f32 %v5638_v38, 0.0  ;;  %v9586_v27 = vld [vmem:[%s10681_s10 + $0x5c0] sm:$0x1]  ;;  %v9606_v12 = vcombine.low %v7987_v0, %v7990_v60  ;;  %v7995_v39 = vrot.slane %v7993_v18, 4  ;;  %v7996_v37 = vrot.slane %v9583_v43, 5 }
 0x3ad   : > { %10308 = vmatmul.mubr.msk.bf16.gmra.mxu1 %vm618_vm9, %v5663_v30  ;;  %v5641_v59 = vld [vmem:[#allocation2 + $0x78] sm:$0xff]  ;;  %v5656_v7 = vmax.f32 %v5640_v50, 0.0  ;;  %v9600_v11 = vrot.slane %v9584_v47, 9  ;;  %v8002_v48 = vrot.slane %v8000_v4, 4  ;;  %v8003_v1 = vrot.slane %v9586_v27, 5 }
 0x3ae   : > { %v5657_v51 = vmax.f32 %v5641_v59, 0.0  ;;  %v9588_v56 = vld [vmem:[%s10681_s10 + $0x5e0] sm:$0xf]  ;;  %v9340_v10 = vcombine.low %v6016_v40, %v6019_v46  ;;  %v6024_v6 = vrot.slane %v6022_v34, 4  ;;  %v6025_v8 = vrot.slane %v5970_v41, 7 }
 0x3af   : > { %v5639_v17 = vld [vmem:[#allocation2 + $0x68] sm:$0xff]  ;;  %v12746_v33 = vld [vmem:[%s10681_s10 + $0x74] sm:$0xf]  ;;  %v9591_v19 = vld [vmem:[%s10681_s10 + $0x604] sm:$0xf]  ;;  %v9334_v54 = vrot.slane %v5971_v57, 11  ;;  %v7994_v5 = vsel %vm10750_vm4, %v9599_v61, %v7993_v18  ;;  %v7997_v20 = vsel %vm10750_vm4, %v7995_v39, %v7996_v37  ;;  %v8001_v30 = vsel %vm10750_vm4, %v9600_v11, %v8000_v4 }
 0x3b0   : > { %v5655_v58 = vmax.f32 %v5639_v17, 0.0  ;;  %v5665_v36 = vpack.c.bf16 %v5657_v51, %v5656_v7  ;;  %v6031_v24 = vrot.slane %v6029_v2, 4  ;;  %v6032_v14 = vrot.slane %v5973_v25, 7  ;;  %v12754_v31 = vld [vmem:[%s10681_s10 + $0x98] sm:$0xf] }
 0x3b1   : > { %10462 = vmatmul.mubr.msk.bf16.vlgmr.msra.gmra.mxu0 %vm338_vm1, %v9605_v32  ;;  %v8007_v63 = vrot.slane %v9588_v56, 5  ;;  %v6036_v9 = vrot.slane %v12746_v33, 7  ;;  %v8004_v38 = vsel %vm10750_vm4, %v8002_v48, %v8003_v1  ;;  %v9587_v42 = vld [vmem:[%s10681_s10 + $0x5dc] sm:$0xe]  ;;  %v9589_v44 = vld [vmem:[%s10681_s10 + $0x5e4] sm:$0x1]  ;;  %v6023_v28 = vsel %vm10901_vm8, %v9333_v53, %v6022_v34 }
 0x3b2   : > { %v5664_v15 = vpack.c.bf16 %v5655_v58, %v5654_v52  ;;  %10465 = vmatprep.mubr.msk.bf16.mxu0 %vm338_vm1, %v9606_v12  ;;  %v8014_v22 = vrot.slane %v9591_v19, 5  ;;  %v6026_v23 = vsel %vm10901_vm8, %v6024_v6, %v6025_v8  ;;  %v5974_v62 = vld [vmem:[%s10681_s10 + $0x70] sm:$0x8]  ;;  %v9590_v16 = vld [vmem:[%s10681_s10 + $0x600] sm:$0xe]  ;;  %v6030_v50 = vsel %vm10901_vm8, %v9334_v54, %v6029_v2 }
 0x3b3   : > { %v9592_v49 = vld [vmem:[%s10681_s10 + $0x608] sm:$0x1]  ;;  %v6033_v21 = vsel %vm10901_vm8, %v6031_v24, %v6032_v14  ;;  %v5976_v59 = vld [vmem:[%s10681_s10 + $0x78] sm:$0x7]  ;;  %v5977_v3 = vld [vmem:[%s10681_s10 + $0x94] sm:$0x8]  ;;  %v9607_v53 = vcombine.low %v7994_v5, %v7997_v20  ;;  %v9608_v55 = vcombine.low %v8001_v30, %v8004_v38  ;;  %v9341_v29 = vcombine.low %v6023_v28, %v6026_v23 }
 0x3b4   : > { %10311 = vmatprep.mubr.msk.bf16.mxu1 %vm618_vm9, %v5664_v15  ;;  %v6043_v41 = vrot.slane %v12754_v31, 7  ;;  %v5979_v34 = vld [vmem:[%s10681_s10 + $0x9c] sm:$0x7]  ;;  %v9601_v0 = vrot.slane %v9587_v42, 9  ;;  %v8009_v45 = vrot.slane %v8007_v63, 4  ;;  %v8010_v43 = vrot.slane %v9589_v44, 5 }
 0x3b5   : > { %10312 = vmatmul.mubr.msk.bf16.gmra.mxu1 %vm618_vm9, %v5665_v36  ;;  %v9602_v18 = vrot.slane %v9590_v16, 9  ;;  %v8016_v52 = vrot.slane %v8014_v22, 4  ;;  %v8017_v40 = vrot.slane %v9592_v49, 5  ;;  %v9594_v2 = vld [vmem:[%s10681_s10 + $0x628] sm:$0xf]  ;;  %v9342_v46 = vcombine.low %v6030_v50, %v6033_v21 }
 0x3b6   : > { %10335 = vmatprep.mubr.msk.bf16.mxu1 %vm338_vm1, %v9340_v10  ;;  %v9335_v61 = vrot.slane %v5974_v62, 11  ;;  %v6038_v47 = vrot.slane %v6036_v9, 4  ;;  %v6039_v27 = vrot.slane %v5976_v59, 7  ;;  %v6662_v17 = vsel %vm363_vm0, %v12640_v26, 0  ;;  %v5981_v60 = vld [vmem:[%s10681_s10 + $0xbc] sm:$0xf] }
 0x3b7   : > { %v9336_v51 = vrot.slane %v5977_v3, 11  ;;  %v6045_v57 = vrot.slane %v6043_v41, 4  ;;  %v6046_v32 = vrot.slane %v5979_v34, 7  ;;  %v5984_v4 = vld [vmem:[%s10681_s10 + $0xe0] sm:$0xf]  ;;  %v8008_v25 = vsel %vm10750_vm4, %v9601_v0, %v8007_v63 }
 0x3b8   : > { %v12800_v58 = vld [vmem:[%s13413_s4 + $0xa] sm:$0x3]  ;;  %v8011_v26 = vsel %vm10750_vm4, %v8009_v45, %v8010_v43  ;;  %v8021_v12 = vrot.slane %v9594_v2, 5  ;;  %v8015_v39 = vsel %vm10750_vm4, %v9602_v18, %v8014_v22  ;;  %v8018_v37 = vsel %vm10750_vm4, %v8016_v52, %v8017_v40  ;;  %v9593_v7 = vld [vmem:[%s10681_s10 + $0x624] sm:$0xe] }
 0x3b9   : > { %10466 = vmatmul.mubr.msk.bf16.gmra.mxu0 %vm338_vm1, %v9607_v53  ;;  %v9595_v11 = vld [vmem:[%s10681_s10 + $0x62c] sm:$0x1]  ;;  %v6037_v48 = vsel %vm10901_vm8, %v9335_v61, %v6036_v9  ;;  %v6040_v1 = vsel %vm10901_vm8, %v6038_v47, %v6039_v27  ;;  %v5980_v56 = vld [vmem:[%s10681_s10 + $0xb8] sm:$0x8]  ;;  %v6050_v15 = vrot.slane %v5981_v60, 7  ;;  %v6044_v10 = vsel %vm10901_vm8, %v9336_v51, %v6043_v41 }
 0x3ba   : > { %10469 = vmatprep.mubr.msk.bf16.mxu0 %vm338_vm1, %v9608_v55  ;;  %v6047_v6 = vsel %vm10901_vm8, %v6045_v57, %v6046_v32  ;;  %v5982_v8 = vld [vmem:[%s10681_s10 + $0xc0] sm:$0x7]  ;;  %v5983_v33 = vld [vmem:[%s10681_s10 + $0xdc] sm:$0x8]  ;;  %v6057_v19 = vrot.slane %v5984_v4, 7  ;;  %v9609_v36 = vcombine.low %v8008_v25, %v8011_v26  ;;  %v9610_v24 = vcombine.low %v8015_v39, %v8018_v37 }
 0x3bb   : > { %v5985_v54 = vld [vmem:[%s10681_s10 + $0xe4] sm:$0x7]  ;;  %v9603_v14 = vrot.slane %v9593_v7, 9  ;;  %v8023_v31 = vrot.slane %v8021_v12, 4  ;;  %v8024_v5 = vrot.slane %v9595_v11, 5  ;;  %v9343_v20 = vcombine.low %v6037_v48, %v6040_v1 }
 0x3bc   : > { %v9344_v63 = vcombine.low %v6044_v10, %v6047_v6  ;;  %v9337_v9 = vrot.slane %v5980_v56, 11  ;;  %v6052_v30 = vrot.slane %v6050_v15, 4  ;;  %v6053_v38 = vrot.slane %v5982_v8, 7  ;;  %v5987_v28 = vld [vmem:[%s10681_s10 + $0x104] sm:$0xf] }
 0x3bd   : > { %10336 = vmatmul.mubr.msk.bf16.vlgmr.msra.gmra.mxu1 %vm338_vm1, %v9341_v29  ;;  %v9338_v42 = vrot.slane %v5983_v33, 11  ;;  %v6059_v44 = vrot.slane %v6057_v19, 4  ;;  %v6060_v22 = vrot.slane %v5985_v54, 7  ;;  %v6494_v23 = vld [vmem:[%s10681_s10 + $0x1c] sm:$0xf]  ;;  %v8022_v62 = vsel %vm10750_vm4, %v9603_v14, %v8021_v12 }
 0x3be   : > { %10370 = vmatpush3.bf16.msra.mxu1 %v6662_v17  ;;  %10339 = vmatprep.mubr.msk.bf16.mxu1 %vm338_vm1, %v9342_v46  ;;  %v8025_v16 = vsel %vm10750_vm4, %v8023_v31, %v8024_v5  ;;  %v6051_v49 = vsel %vm10901_vm8, %v9337_v9, %v6050_v15  ;;  %v6054_v50 = vsel %vm10901_vm8, %v6052_v30, %v6053_v38  ;;  %v6064_v21 = vrot.slane %v5987_v28, 7  ;;  %v5986_v41 = vld [vmem:[%s10681_s10 + $0x100] sm:$0x8]  ;;  %v5988_v53 = vld [vmem:[%s10681_s10 + $0x108] sm:$0x7] }
 0x3bf   : > { %10521 = vmatprep.subr.msk.bf16.mxu1 %vm363_vm0, %v12800_v58  ;;  %v6058_v59 = vsel %vm10901_vm8, %v9338_v42, %v6057_v19  ;;  %v6061_v3 = vsel %vm10901_vm8, %v6059_v44, %v6060_v22  ;;  %v6543_v34 = vrot.slane %v6494_v23, 5  ;;  %v9611_v55 = vcombine.low %v8022_v62, %v8025_v16  ;;  %v6493_v0 = vld [vmem:[%s10681_s10 + $0x18] sm:$0xe]  ;;  %v6495_v45 = vld [vmem:[%s10681_s10 + $0x20] sm:$0x1] }
 0x3c0   : > { %v9345_v43 = vcombine.low %v6051_v49, %v6054_v50  ;;  %v9346_v29 = vcombine.low %v6058_v59, %v6061_v3  ;;  %v9339_v18 = vrot.slane %v5986_v41, 11  ;;  %v6066_v52 = vrot.slane %v6064_v21, 4  ;;  %v6497_v47 = vld [vmem:[%s10681_s10 + $0x40] sm:$0xf]  ;;  %v6500_v27 = vld [vmem:[%s10681_s10 + $0x64] sm:$0xf] }
 0x3c1   : > { %10470 = vmatmul.mubr.msk.bf16.gmra.mxu0 %vm338_vm1, %v9609_v36  ;;  %v6067_v40 = vrot.slane %v5988_v53, 7  ;;  %v9372_v2 = vrot.slane %v6493_v0, 9  ;;  %v6545_v46 = vrot.slane %v6543_v34, 4  ;;  %v6546_v61 = vrot.slane %v6495_v45, 5  ;;  %v6496_v4 = vld [vmem:[%s10681_s10 + $0x3c] sm:$0xe] }
 0x3c2   : > { %10473 = vmatprep.mubr.msk.bf16.mxu0 %vm338_vm1, %v9610_v24  ;;  %v6065_v17 = vsel %vm10901_vm8, %v9339_v18, %v6064_v21  ;;  %v6550_v57 = vrot.slane %v6497_v47, 5  ;;  %v6498_v25 = vld [vmem:[%s10681_s10 + $0x44] sm:$0x1]  ;;  %v6557_v26 = vrot.slane %v6500_v27, 5  ;;  %v6499_v12 = vld [vmem:[%s10681_s10 + $0x60] sm:$0xe] }
 0x3c3   : > { %v6068_v51 = vsel %vm10901_vm8, %v6066_v52, %v6067_v40  ;;  %v6544_v32 = vsel %vm10750_vm4, %v9372_v2, %v6543_v34  ;;  %v6547_v60 = vsel %vm10750_vm4, %v6545_v46, %v6546_v61  ;;  %v6501_v39 = vld [vmem:[%s10681_s10 + $0x68] sm:$0x1]  ;;  %v9373_v11 = vrot.slane %v6496_v4, 9  ;;  %v6506_v6 = vld [vmem:[%s10681_s10 + $0xac] sm:$0xf] }
 0x3c4   : > { %v9347_v37 = vcombine.low %v6065_v17, %v6068_v51  ;;  %v9380_v7 = vcombine.low %v6544_v32, %v6547_v60  ;;  %v6552_v13 = vrot.slane %v6550_v57, 4  ;;  %v6553_v48 = vrot.slane %v6498_v25, 5  ;;  %v6503_v10 = vld [vmem:[%s10681_s10 + $0x88] sm:$0xf]  ;;  %v6502_v24 = vld [vmem:[%s10681_s10 + $0x84] sm:$0xe] }
 0x3c5   : > { %10340 = vmatmul.mubr.msk.bf16.gmra.mxu1 %vm338_vm1, %v9343_v20  ;;  %v9374_v1 = vrot.slane %v6499_v12, 9  ;;  %v6559_v56 = vrot.slane %v6557_v26, 4  ;;  %v6560_v15 = vrot.slane %v6501_v39, 5  ;;  %v6551_v8 = vsel %vm10750_vm4, %v9373_v11, %v6550_v57  ;;  %v6504_v14 = vld [vmem:[%s10681_s10 + $0x8c] sm:$0x1] }
 0x3c6   : > { %10343 = vmatprep.mubr.msk.bf16.mxu1 %vm338_vm1, %v9344_v63  ;;  %v6554_v33 = vsel %vm10750_vm4, %v6552_v13, %v6553_v48  ;;  %v6564_v19 = vrot.slane %v6503_v10, 5  ;;  %v6571_v31 = vrot.slane %v6506_v6, 5  ;;  %v6505_v5 = vld [vmem:[%s10681_s10 + $0xa8] sm:$0xe]  ;;  %v6507_v20 = vld [vmem:[%s10681_s10 + $0xb0] sm:$0x1] }
 0x3c7   : > { %v6558_v36 = vsel %vm10750_vm4, %v9374_v1, %v6557_v26  ;;  %v6561_v54 = vsel %vm10750_vm4, %v6559_v56, %v6560_v15  ;;  %v9381_v63 = vcombine.low %v6551_v8, %v6554_v33  ;;  %v9375_v30 = vrot.slane %v6502_v24, 9  ;;  %v6509_v62 = vld [vmem:[%s10681_s10 + $0xd0] sm:$0xf]  ;;  %v6512_v16 = vld [vmem:[%s10681_s10 + $0xf4] sm:$0xf] }
 0x3c8   : > { %v9382_v9 = vcombine.low %v6558_v36, %v6561_v54  ;;  %v6566_v38 = vrot.slane %v6564_v19, 4  ;;  %v6567_v42 = vrot.slane %v6504_v14, 5  ;;  %v7262_v44 = vsel %vm363_vm0, %v12800_v58, 0  ;;  %v12891_v49 = vld [vmem:[%s13413_s4 + $0xe] sm:$0x3] }
 0x3c9   : > { %10474 = vmatmul.mubr.msk.bf16.gmra.mxu0 %vm338_vm1, %v9611_v55  ;;  %v9376_v22 = vrot.slane %v6505_v5, 9  ;;  %v6573_v28 = vrot.slane %v6571_v31, 4  ;;  %v6574_v23 = vrot.slane %v6507_v20, 5  ;;  %v6565_v58 = vsel %vm10750_vm4, %v9375_v30, %v6564_v19  ;;  %v6508_v41 = vld [vmem:[%s10681_s10 + $0xcc] sm:$0xe] }
 0x3ca   : > { %v6568_v50 = vsel %vm10750_vm4, %v6566_v38, %v6567_v42  ;;  %v6578_v21 = vrot.slane %v6509_v62, 5  ;;  %v6510_v53 = vld [vmem:[%s10681_s10 + $0xd4] sm:$0x1]  ;;  %v6585_v34 = vrot.slane %v6512_v16, 5  ;;  %v6511_v55 = vld [vmem:[%s10681_s10 + $0xf0] sm:$0xe] }
 0x3cb   : > { %v6572_v59 = vsel %vm10750_vm4, %v9376_v22, %v6571_v31  ;;  %v6575_v3 = vsel %vm10750_vm4, %v6573_v28, %v6574_v23  ;;  %v6513_v0 = vld [vmem:[%s10681_s10 + $0xf8] sm:$0x1]  ;;  %v9383_v45 = vcombine.low %v6565_v58, %v6568_v50  ;;  %v9377_v18 = vrot.slane %v6508_v41, 9  ;;  %v9445_v17 = vld [vmem:[%s10681_s10 + $0x2a4] sm:$0xf] }
 0x3cc   : > { %v6580_v52 = vrot.slane %v6578_v21, 4  ;;  %v6581_v40 = vrot.slane %v6510_v53, 5  ;;  %v9378_v2 = vrot.slane %v6511_v55, 9  ;;  %v6587_v46 = vrot.slane %v6585_v34, 4  ;;  %v6515_v47 = vld [vmem:[%s10681_s10 + $0x118] sm:$0xf] }
 0x3cd   : > { %10344 = vmatmul.mubr.msk.bf16.gmra.mxu1 %vm338_vm1, %v9345_v43  ;;  %v10319_v43 = vpop.f32.mrf.mxu0  ;;  %v6588_v61 = vrot.slane %v6513_v0, 5  ;;  %v6579_v57 = vsel %vm10750_vm4, %v9377_v18, %v6578_v21  ;;  %v6592_v60 = vrot.slane %v6515_v47, 5  ;;  %v6514_v26 = vld [vmem:[%s10681_s10 + $0x114] sm:$0xe]  ;;  %v6516_v12 = vld [vmem:[%s10681_s10 + $0x11c] sm:$0x1] }
 0x3ce   : > { %10347 = vmatprep.mubr.msk.bf16.mxu1 %vm338_vm1, %v9346_v29  ;;  %v9384_v29 = vcombine.low %v6572_v59, %v6575_v3  ;;  %5951 = vst.msk [vmem:[#allocation2 + $0x10] sm:$0xff] %vm618_vm9, %v10319_v43  ;;  %v6582_v32 = vsel %vm10750_vm4, %v6580_v52, %v6581_v40  ;;  %v6586_v4 = vsel %vm10750_vm4, %v9378_v2, %v6585_v34  ;;  %v7143_v39 = vrot.slane %v9445_v17, 5  ;;  %v9446_v11 = vld [vmem:[%s10681_s10 + $0x2a8] sm:$0x1]  ;;  %v9451_v54 = vld [vmem:[%s10681_s10 + $0x2ec] sm:$0xf] }
 0x3cf   : > { %v5886_v27 = vpop.f32.mrf.mxu0  ;;  %v6589_v25 = vsel %vm10750_vm4, %v6587_v46, %v6588_v61  ;;  %v9385_v13 = vcombine.low %v6579_v57, %v6582_v32  ;;  %v9379_v56 = vrot.slane %v6514_v26, 9  ;;  %v6594_v15 = vrot.slane %v6592_v60, 4  ;;  %v9448_v19 = vld [vmem:[%s10681_s10 + $0x2c8] sm:$0xf]  ;;  %v9449_v30 = vld [vmem:[%s10681_s10 + $0x2cc] sm:$0x1] }
 0x3d0   : > { %5949 = vst.msk [vmem:[#allocation2] sm:$0xff] %vm618_vm9, %v5886_v27  ;;  %v9386_v1 = vcombine.low %v6586_v4, %v6589_v25  ;;  %v6595_v10 = vrot.slane %v6516_v12, 5  ;;  %v7145_v8 = vrot.slane %v7143_v39, 4  ;;  %v7146_v33 = vrot.slane %v9446_v11, 5  ;;  %v9452_v22 = vld [vmem:[%s10681_s10 + $0x2f0] sm:$0x1] }
 0x3d1   : > { %v10320_v51 = vpop.f32.mrf.mxu0  ;;  %v6593_v14 = vsel %vm10750_vm4, %v9379_v56, %v6592_v60  ;;  %v7150_v5 = vrot.slane %v9448_v19, 5  ;;  %v7157_v38 = vrot.slane %v9451_v54, 5  ;;  %v7153_v50 = vrot.slane %v9449_v30, 5  ;;  %v9454_v41 = vld [vmem:[%s10681_s10 + $0x310] sm:$0xf] }
 0x3d2   : > { %5952 = vst.msk [vmem:[#allocation2 + $0x18] sm:$0xff] %vm618_vm9, %v10320_v51  ;;  %v6596_v31 = vsel %vm10750_vm4, %v6594_v15, %v6595_v10  ;;  %v7160_v3 = vrot.slane %v9452_v22, 5  ;;  %v9457_v34 = vld [vmem:[%s10681_s10 + $0x334] sm:$0xf]  ;;  %v7164_v43 = vrot.slane %v9454_v41, 5  ;;  %v7791_v4 = vsel %vm363_vm0, %v12891_v49, 0 }
 0x3d3   : > { %v9387_v28 = vcombine.low %v6593_v14, %v6596_v31  ;;  %v7152_v58 = vrot.slane %v7150_v5, 4  ;;  %v7159_v59 = vrot.slane %v7157_v38, 4  ;;  %v9453_v52 = vld [vmem:[%s10681_s10 + $0x30c] sm:$0xe]  ;;  %v9455_v40 = vld [vmem:[%s10681_s10 + $0x314] sm:$0x1] }
 0x3d4   : > { %v7171_v2 = vrot.slane %v9457_v34, 5  ;;  %v9456_v61 = vld [vmem:[%s10681_s10 + $0x330] sm:$0xe]  ;;  %v9458_v47 = vld [vmem:[%s10681_s10 + $0x338] sm:$0x1]  ;;  %v9471_v57 = vrot.slane %v9453_v52, 9 }
 0x3d5   : > { %10348 = vmatmul.mubr.msk.bf16.gmra.mxu1 %vm338_vm1, %v9347_v37  ;;  %v5889_v37 = vpop.f32.mrf.mxu0  ;;  %v7161_v18 = vsel %vm10750_vm4, %v7159_v59, %v7160_v3  ;;  %v7166_v32 = vrot.slane %v7164_v43, 4  ;;  %v7167_v60 = vrot.slane %v9455_v40, 5  ;;  %v9472_v25 = vrot.slane %v9456_v61, 9  ;;  %v9459_v15 = vld [vmem:[%s10681_s10 + $0x354] sm:$0xe]  ;;  %v10587_v52 = vld [vmem:[%s10681_s10 + $0x58c] sm:$0xff]  }
 0x3d6   : > { %10371 = vmatprep.mubr.msk.bf16.mxu1 %vm338_vm1, %v9380_v7  ;;  %v9444_v7 = vld [vmem:[%s10681_s10 + $0x2a0] sm:$0xe]  ;;  %5950 = vst.msk [vmem:[#allocation2 + $0x8] sm:$0xff] %vm618_vm9, %v5889_v37  ;;  %v7173_v26 = vrot.slane %v7171_v2, 4  ;;  %v7174_v12 = vrot.slane %v9458_v47, 5  ;;  %v10589_v61 = vld [vmem:[%s10681_s10 + $0x5d4] sm:$0xff]  }
 0x3d7   : > { %v10323_v48 = vpop.f32.mrf.mxu0  ;;  %v9468_v6 = vrot.slane %v9444_v7, 9  ;;  %v9463_v7 = vld [vmem:[%s10681_s10 + $0x37c] sm:$0xf]  ;;  %v9464_v19 = vld [vmem:[%s10681_s10 + $0x380] sm:$0x1] }
 0x3d8   : > { %5955 = vst.msk [vmem:[#allocation2 + $0x30] sm:$0xff] %vm618_vm9, %v10323_v48  ;;  %v7175_v56 = vsel %vm10750_vm4, %v7173_v26, %v7174_v12  ;;  %v9461_v10 = vld [vmem:[%s10681_s10 + $0x35c] sm:$0x1] }
 0x3d9   : > { %v5902_v36 = vpop.f32.mrf.mxu0  ;;  %v7144_v20 = vsel %vm10750_vm4, %v9468_v6, %v7143_v39  ;;  %v9460_v39 = vld [vmem:[%s10681_s10 + $0x358] sm:$0xf]  ;;  %v7185_v6 = vrot.slane %v9463_v7, 5  ;;  %v7181_v31 = vrot.slane %v9461_v10, 5 }
 0x3da   : > { %5953 = vst.msk [vmem:[#allocation2 + $0x20] sm:$0xff] %vm618_vm9, %v5902_v36  ;;  %v7178_v48 = vrot.slane %v9460_v39, 5 }
 0x3db   : > { %v10324_v24 = vpop.f32.mrf.mxu0 }
 0x3dc   : > { %5956 = vst.msk [vmem:[#allocation2 + $0x38] sm:$0xff] %vm618_vm9, %v10324_v24  ;;  %v9473_v24 = vrot.slane %v9459_v15, 9  ;;  %v7180_v14 = vrot.slane %v7178_v48, 4 }
 0x3dd   : > { %10372 = vmatmul.mubr.msk.bf16.vlgmr.msra.gmra.mxu1 %vm338_vm1, %v9381_v63  ;;  %v7147_v63 = vsel %vm10750_vm4, %v7145_v8, %v7146_v33  ;;  %v5905_v42 = vpop.f32.mrf.mxu0  ;;  %v9462_v33 = vld [vmem:[%s10681_s10 + $0x378] sm:$0xe] }
 0x3de   : > { %10406 = vmatpush3.bf16.msra.mxu1 %v7262_v44  ;;  %10375 = vmatprep.mubr.msk.bf16.mxu1 %vm338_vm1, %v9382_v9  ;;  %v9447_v9 = vld [vmem:[%s10681_s10 + $0x2c4] sm:$0xe]  ;;  %v9450_v44 = vld [vmem:[%s10681_s10 + $0x2e8] sm:$0xe]  ;;  %5954 = vst.msk [vmem:[#allocation2 + $0x28] sm:$0xff] %vm618_vm9, %v5905_v42  ;;  %v9476_v62 = vcombine.low %v7144_v20, %v7147_v63  ;;  %v7187_v20 = vrot.slane %v7185_v6, 4  ;;  %v7179_v30 = vsel %vm10750_vm4, %v9473_v24, %v7178_v48 }
 0x3df   : > { %10523 = vmatprep.subr.msk.bf16.mxu1 %vm363_vm0, %v12891_v49  ;;  %v10327_v23 = vpop.f32.mrf.mxu0  ;;  %v9469_v16 = vrot.slane %v9447_v9, 9  ;;  %v9470_v21 = vrot.slane %v9450_v44, 9  ;;  %v7165_v49 = vsel %vm10750_vm4, %v9471_v57, %v7164_v43  ;;  %v7188_v63 = vrot.slane %v9464_v19, 5  ;;  %v9466_v9 = vld [vmem:[%s10681_s10 + $0x3a0] sm:$0xf]  ;;  %v10585_v43 = vld [vmem:[%s10681_s10 + $0x544] sm:$0xff]  }
 0x3e0   : > { %5959 = vst.msk [vmem:[#allocation2 + $0x50] sm:$0xff] %vm618_vm9, %v10327_v23  ;;  %v7192_v42 = vrot.slane %v9466_v9, 5  ;;  %v9467_v23 = vld [vmem:[%s10681_s10 + $0x3a4] sm:$0x1] }
 0x3e1   : > { %v5918_v53 = vpop.f32.mrf.mxu0  ;;  %v7151_v0 = vsel %vm10750_vm4, %v9469_v16, %v7150_v5  ;;  %v9474_v5 = vrot.slane %v9462_v33, 9  ;;  %v7189_v22 = vsel %vm10750_vm4, %v7187_v20, %v7188_v63  ;;  %v7195_v59 = vrot.slane %v9467_v23, 5 }
 0x3e2   : > { %5957 = vst.msk [vmem:[#allocation2 + $0x40] sm:$0xff] %vm618_vm9, %v5918_v53 }
 0x3e3   : > { %v10328_v55 = vpop.f32.mrf.mxu0  ;;  %v7186_v44 = vsel %vm10750_vm4, %v9474_v5, %v7185_v6  ;;  %v5669_v6 = vld [vmem:[#allocation3 + $0x18] sm:$0xff] }
 0x3e4   : > { %5960 = vst.msk [vmem:[#allocation2 + $0x58] sm:$0xff] %vm618_vm9, %v10328_v55 }
 0x3e5   : > { %10376 = vmatmul.mubr.msk.bf16.gmra.mxu1 %vm338_vm1, %v9383_v45  ;;  %v7154_v45 = vsel %vm10750_vm4, %v7152_v58, %v7153_v50  ;;  %v5921_v46 = vpop.f32.mrf.mxu0  ;;  %v9482_v58 = vcombine.low %v7186_v44, %v7189_v22  ;;  %v5673_v44 = vld [vmem:[#allocation3 + $0x38] sm:$0xff] }
 0x3e6   : > { %10379 = vmatprep.mubr.msk.bf16.mxu1 %vm338_vm1, %v9384_v29  ;;  %v7158_v29 = vsel %vm10750_vm4, %v9470_v21, %v7157_v38  ;;  %5958 = vst.msk [vmem:[#allocation2 + $0x48] sm:$0xff] %vm618_vm9, %v5921_v46  ;;  %v9477_v27 = vcombine.low %v7151_v0, %v7154_v45  ;;  %v7182_v38 = vsel %vm10750_vm4, %v7180_v14, %v7181_v31  ;;  %v7194_v21 = vrot.slane %v7192_v42, 4  ;;  %v10584_v0 = vld [vmem:[%s10681_s10 + $0x520] sm:$0xff]   ;;  %v9323_v14 = vld [vmem:[%s13415_s6 + $0x8] sm:$0xf]  ;;  %v5672_v31 = vld [vmem:[#allocation3 + $0x30] sm:$0xff] }
 0x3e7   : > { %v10331_v17 = vpop.f32.mrf.mxu0  ;;  %v9478_v51 = vcombine.low %v7158_v29, %v7161_v18  ;;  %v10586_v18 = vld [vmem:[%s10681_s10 + $0x568] sm:$0xff]   ;;  %v8303_v9 = vsel %vm3105_vm10, %v9323_v14, 0 }
 0x3e8   : > { %5963 = vst.msk [vmem:[#allocation2 + $0x70] sm:$0xff] %vm618_vm9, %v10331_v17  ;;  %v7196_v53 = vsel %vm10750_vm4, %v7194_v21, %v7195_v59  ;;  %v5676_v21 = vld [vmem:[#allocation3 + $0x50] sm:$0xff] }
 0x3e9   : > { %v5934_v37 = vpop.f32.mrf.mxu0 }
 0x3ea   : > { %5961 = vst.msk [vmem:[#allocation2 + $0x60] sm:$0xff] %vm618_vm9, %v5934_v37 }
 0x3eb   : > { %v10332_v11 = vpop.f32.mrf.mxu0 }
 0x3ec   : > { %5964 = vst.msk [vmem:[#allocation2 + $0x78] sm:$0xff] %vm618_vm9, %v10332_v11 }
 0x3ed   : > { %10380 = vmatmul.mubr.msk.bf16.gmra.mxu1 %vm338_vm1, %v9385_v13  ;;  %v7168_v13 = vsel %vm10750_vm4, %v7166_v32, %v7167_v60  ;;  %v5937_v8 = vpop.f32.mrf.mxu0 }
 0x3ee   : > { %10383 = vmatprep.mubr.msk.bf16.mxu1 %vm338_vm1, %v9386_v1  ;;  %v7172_v1 = vsel %vm10750_vm4, %v9472_v25, %v7171_v2  ;;  %5962 = vst.msk [vmem:[#allocation2 + $0x68] sm:$0xff] %vm618_vm9, %v5937_v8  ;;  %v9479_v36 = vcombine.low %v7165_v49, %v7168_v13  ;;  %v10588_v2 = vld [vmem:[%s10681_s10 + $0x5b0] sm:$0xff]  }
 0x3ef   : > { %v9480_v54 = vcombine.low %v7172_v1, %v7175_v56  ;;  %v5668_v49 = vld [vmem:[#allocation3 + $0x10] sm:$0xff]  ;;  %v5666_v56 = vld [vmem:[#allocation3] sm:$0xff] }
 0x3f5   : > { %10384 = vmatmul.mubr.msk.bf16.gmra.mxu1 %vm338_vm1, %v9387_v28  ;;  %v9465_v28 = vld [vmem:[%s10681_s10 + $0x39c] sm:$0xe]  ;;  %v13004_v16 = vpop.f32.mrf.mxu0 }
 0x3f6   : > { %10407 = vmatprep.mubr.msk.bf16.mxu1 %vm338_vm1, %v9476_v62  ;;  %v9481_v62 = vcombine.low %v7179_v30, %v7182_v38  ;;  %v9475_v50 = vrot.slane %v9465_v28, 9  ;;  %v5670_v30 = vld [vmem:[#allocation3 + $0x20] sm:$0xff] }
 0x3f7   : > { %v13007_v3 = vpop.f32.mrf.mxu0 }
 0x3f8   : > { %v7193_v41 = vsel %vm10750_vm4, %v9475_v50, %v7192_v42 }
 0x3f9   : > { %v9483_v34 = vcombine.low %v7193_v41, %v7196_v53  ;;  %v13014_v55 = vpop.f32.mrf.mxu0 }
 0x3fb   : > { %v13018_v45 = vpop.f32.mrf.mxu0 }
 0x3fd   : > { %10408 = vmatmul.mubr.msk.bf16.vlgmr.msra.gmra.mxu1 %vm338_vm1, %v9477_v27  ;;  %v13022_v29 = vpop.f32.mrf.mxu0  ;;  %v10590_v27 = vld [vmem:[%s10681_s10 + $0x5f8] sm:$0xff]  }
 0x3fe   : > { %10442 = vmatpush3.bf16.msra.mxu1 %v7791_v4  ;;  %10411 = vmatprep.mubr.msk.bf16.mxu1 %vm338_vm1, %v9478_v51  ;;  %v10591_v51 = vld [vmem:[%s10681_s10 + $0x61c] sm:$0xff]  }
 0x3ff   : > { %v13026_v35 = vpop.f32.mrf.mxu0  ;;  %10525 = vmatprep.subr.msk.bf16.mxu1 %vm3105_vm10, %v9323_v14  ;;  %v5679_v14 = vld [vmem:[#allocation3 + $0x68] sm:$0xff] }
 0x401   : > { %v13030_v40 = vpop.f32.mrf.mxu0 }
 0x403   : > { %v13034_v46 = vpop.f32.mrf.mxu0 }
 0x405   : > { %10412 = vmatmul.mubr.msk.bf16.gmra.mxu1 %vm338_vm1, %v9479_v36  ;;  %v5667_v36 = vld [vmem:[#allocation3 + $0x8] sm:$0xff] }
 0x406   : > { %10415 = vmatprep.mubr.msk.bf16.mxu1 %vm338_vm1, %v9480_v54 }
 0x40c   : > { %v13038_v47 = vpop.f32.mrf.mxu0 }
 0x40d   : > { %10416 = vmatmul.mubr.msk.bf16.gmra.mxu1 %vm338_vm1, %v9481_v62  ;;  %v5671_v62 = vld [vmem:[#allocation3 + $0x28] sm:$0xff] }
 0x40e   : > { %10419 = vmatprep.mubr.msk.bf16.mxu1 %vm338_vm1, %v9482_v58  ;;  %v13042_v17 = vpop.f32.mrf.mxu0 }
 0x410   : > { %v13046_v57 = vpop.f32.mrf.mxu0 }
 0x412   : > { %v13049_v32 = vpop.f32.mrf.mxu0 }
 0x414   : > { %v13051_v60 = vpop.f32.mrf.mxu0 }
 0x415   : > { %10420 = vmatmul.mubr.msk.bf16.gmra.mxu1 %vm338_vm1, %v9483_v34  ;;  %v5674_v34 = vld [vmem:[#allocation3 + $0x40] sm:$0xff] }
 0x416   : > { %10443 = vmatprep.mubr.msk.bf16.mxu1 %vm338_vm1, %v10584_v0  ;;  %v13053_v4 = vpop.f32.mrf.mxu0 }
 0x418   : > { %v13055_v25 = vpop.f32.mrf.mxu0 }
 0x41a   : > { %v13057_v26 = vpop.f32.mrf.mxu0 }
 0x41d   : > { %10444 = vmatmul.mubr.msk.bf16.vlgmr.msra.gmra.mxu1 %vm338_vm1, %v10585_v43 }
 0x41e   : > { %10447 = vmatprep.mubr.msk.bf16.mxu1 %vm338_vm1, %v10586_v18  ;;  %10478 = vmatpush3.bf16.msra.mxu1 %v8303_v9  ;;  %v5677_v18 = vld [vmem:[#allocation3 + $0x58] sm:$0xff] }
 0x422   : > { %v13059_v12 = vpop.f32.mrf.mxu0 }
 0x424   : > { %v13061_v39 = vpop.f32.mrf.mxu0 }
 0x425   : > { %10448 = vmatmul.mubr.msk.bf16.gmra.mxu1 %vm338_vm1, %v10587_v52 }
 0x426   : > { %10451 = vmatprep.mubr.msk.bf16.mxu1 %vm338_vm1, %v10588_v2  ;;  %v13063_v37 = vpop.f32.mrf.mxu0 }
 0x428   : > { %v13065_v7 = vpop.f32.mrf.mxu0 }
 0x42d   : > { %10452 = vmatmul.mubr.msk.bf16.gmra.mxu1 %vm338_vm1, %v10589_v61  ;;  %v13067_v11 = vpop.f32.mrf.mxu0 }
 0x42e   : > { %10455 = vmatprep.mubr.msk.bf16.mxu1 %vm338_vm1, %v10590_v27  ;;  %v5675_v27 = vld [vmem:[#allocation3 + $0x48] sm:$0xff] }
 0x42f   : > { %v13069_v48 = vpop.f32.mrf.mxu0 }
 0x431   : > { %v13072_v33 = vpop.f32.mrf.mxu0 }
 0x433   : > { %v13079_v20 = vpop.f32.mrf.mxu0 }
 0x435   : > { %10456 = vmatmul.mubr.msk.bf16.gmra.mxu1 %vm338_vm1, %v10591_v51 }
 0x436   : > { %v13085_v28 = vpop.f32.mrf.mxu0 }
 0x438   : > { %v13089_v41 = vpop.f32.mrf.mxu0 }
 0x43a   : > { %v13093_v2 = vpop.f32.mrf.mxu0 }
 0x45d   : > { %v10301_v13 = vpop.f32.mrf.mxu1 }
 0x45e   : > { %v5808_v1 = vadd.f32 %v10301_v13, %v5668_v49  ;;  %v5680_v13 = vld [vmem:[#allocation3 + $0x70] sm:$0xff] }
 0x45f   : > { %v5743_v15 = vpop.f32.mrf.mxu1 }
 0x460   : > { %5824 = vst.msk [vmem:[#allocation3 + $0x10] sm:$0xff] %vm618_vm9, %v5808_v1  ;;  %v5806_v10 = vadd.f32 %v5743_v15, %v5666_v56  ;;  %v13097_v56 = vpop.f32.mrf.mxu0 }
 0x461   : > { %v10302_v8 = vpop.f32.mrf.mxu1 }
 0x462   : > { %5822 = vst.msk [vmem:[#allocation3] sm:$0xff] %vm618_vm9, %v5806_v10  ;;  %v5809_v19 = vadd.f32 %v10302_v8, %v5669_v6  ;;  %v5678_v10 = vld [vmem:[#allocation3 + $0x60] sm:$0xff] }
 0x463   : > { %v5746_v54 = vpop.f32.mrf.mxu1 }
 0x464   : > { %5825 = vst.msk [vmem:[#allocation3 + $0x18] sm:$0xff] %vm618_vm9, %v5809_v19  ;;  %v5807_v24 = vadd.f32 %v5746_v54, %v5667_v36  ;;  %v5681_v19 = vld [vmem:[#allocation3 + $0x78] sm:$0xff]  ;;  %v13101_v54 = vpop.f32.mrf.mxu0 }
 0x465   : > { %v10305_v5 = vpop.f32.mrf.mxu1 }
 0x466   : > { %5823 = vst.msk [vmem:[#allocation3 + $0x8] sm:$0xff] %vm618_vm9, %v5807_v24  ;;  %v5812_v63 = vadd.f32 %v10305_v5, %v5672_v31 }
 0x467   : > { %v5759_v38 = vpop.f32.mrf.mxu1 }
 0x468   : > { %5828 = vst.msk [vmem:[#allocation3 + $0x30] sm:$0xff] %vm618_vm9, %v5812_v63  ;;  %v5810_v42 = vadd.f32 %v5759_v38, %v5670_v30  ;;  %v6071_v63 = vld [vmem:[#allocation2 + $0x10] sm:$0xff]  ;;  %v13105_v30 = vpop.f32.mrf.mxu0 }
 0x469   : > { %v10306_v22 = vpop.f32.mrf.mxu1 }
 0x46a   : > { %5826 = vst.msk [vmem:[#allocation3 + $0x20] sm:$0xff] %vm618_vm9, %v5810_v42  ;;  %v5813_v23 = vadd.f32 %v10306_v22, %v5673_v44  ;;  %v6069_v42 = vld [vmem:[#allocation2] sm:$0xff] }
 0x46b   : > { %v5762_v58 = vpop.f32.mrf.mxu1 }
 0x46c   : > { %5829 = vst.msk [vmem:[#allocation3 + $0x38] sm:$0xff] %vm618_vm9, %v5813_v23  ;;  %v5811_v50 = vadd.f32 %v5762_v58, %v5671_v62  ;;  %v6072_v23 = vld [vmem:[#allocation2 + $0x18] sm:$0xff]  ;;  %v13109_v58 = vpop.f32.mrf.mxu0 }
 0x46d   : > { %v10309_v59 = vpop.f32.mrf.mxu1 }
 0x46e   : > { %5827 = vst.msk [vmem:[#allocation3 + $0x28] sm:$0xff] %vm618_vm9, %v5811_v50  ;;  %v5816_v53 = vadd.f32 %v10309_v59, %v5676_v21  ;;  %v6070_v21 = vld [vmem:[#allocation2 + $0x8] sm:$0xff] }
 0x46f   : > { %v5775_v0 = vpop.f32.mrf.mxu1 }
 0x470   : > { %5832 = vst.msk [vmem:[#allocation3 + $0x50] sm:$0xff] %vm618_vm9, %v5816_v53  ;;  %v5814_v43 = vadd.f32 %v5775_v0, %v5674_v34  ;;  %v6075_v34 = vld [vmem:[#allocation2 + $0x30] sm:$0xff] }
 0x471   : > { %v10310_v52 = vpop.f32.mrf.mxu1 }
 0x472   : > { %5830 = vst.msk [vmem:[#allocation3 + $0x40] sm:$0xff] %vm618_vm9, %v5814_v43  ;;  %v5817_v61 = vadd.f32 %v10310_v52, %v5677_v18  ;;  %v13113_v43 = vpop.f32.mrf.mxu0 }
 0x473   : > { %v5778_v51 = vpop.f32.mrf.mxu1 }
 0x474   : > { %5833 = vst.msk [vmem:[#allocation3 + $0x58] sm:$0xff] %vm618_vm9, %v5817_v61  ;;  %v5815_v49 = vadd.f32 %v5778_v51, %v5675_v27  ;;  %v6073_v61 = vld [vmem:[#allocation2 + $0x20] sm:$0xff] }
 0x475   : > { %v10313_v1 = vpop.f32.mrf.mxu1 }
 0x476   : > { %5831 = vst.msk [vmem:[#allocation3 + $0x48] sm:$0xff] %vm618_vm9, %v5815_v49  ;;  %v5820_v15 = vadd.f32 %v10313_v1, %v5680_v13  ;;  %v6076_v1 = vld [vmem:[#allocation2 + $0x38] sm:$0xff] }
 0x477   : > { %v5791_v6 = vpop.f32.mrf.mxu1 }
 0x478   : > { %5836 = vst.msk [vmem:[#allocation3 + $0x70] sm:$0xff] %vm618_vm9, %v5820_v15  ;;  %v5818_v8 = vadd.f32 %v5791_v6, %v5678_v10  ;;  %v13118_v10 = vpop.f32.mrf.mxu0 }
 0x479   : > { %v10314_v36 = vpop.f32.mrf.mxu1 }
 0x47a   : > { %5834 = vst.msk [vmem:[#allocation3 + $0x60] sm:$0xff] %vm618_vm9, %v5818_v8  ;;  %v5821_v24 = vadd.f32 %v10314_v36, %v5681_v19  ;;  %v6074_v36 = vld [vmem:[#allocation2 + $0x28] sm:$0xff] }
 0x47b   : > { %v5794_v31 = vpop.f32.mrf.mxu1 }
 0x47c   : > { %5837 = vst.msk [vmem:[#allocation3 + $0x78] sm:$0xff] %vm618_vm9, %v5821_v24  ;;  %v5819_v5 = vadd.f32 %v5794_v31, %v5679_v14 }
 0x47d   : > { %v10337_v9 = vpop.f32.mrf.mxu1 }
 0x47e   : > { %5835 = vst.msk [vmem:[#allocation3 + $0x68] sm:$0xff] %vm618_vm9, %v5819_v5  ;;  %v6235_v38 = vadd.f32 %v10337_v9, %v6071_v63  ;;  %v6079_v5 = vld [vmem:[#allocation2 + $0x50] sm:$0xff]  ;;  %v13126_v9 = vpop.f32.mrf.mxu0 }
 0x47f   : > { %v6170_v44 = vpop.f32.mrf.mxu1 }
 0x480   : > { %6251 = vst.msk [vmem:[#allocation2 + $0x10] sm:$0xff] %vm618_vm9, %v6235_v38  ;;  %v6233_v22 = vadd.f32 %v6170_v44, %v6069_v42  ;;  %v6077_v44 = vld [vmem:[#allocation2 + $0x40] sm:$0xff] }
 0x481   : > { %v10338_v62 = vpop.f32.mrf.mxu1 }
 0x482   : > { %6249 = vst.msk [vmem:[#allocation2] sm:$0xff] %vm618_vm9, %v6233_v22  ;;  %v6236_v50 = vadd.f32 %v10338_v62, %v6072_v23 }
 0x483   : > { %v6173_v59 = vpop.f32.mrf.mxu1 }
 0x484   : > { %6252 = vst.msk [vmem:[#allocation2 + $0x18] sm:$0xff] %vm618_vm9, %v6236_v50  ;;  %v6234_v53 = vadd.f32 %v6173_v59, %v6070_v21  ;;  %v6080_v50 = vld [vmem:[#allocation2 + $0x58] sm:$0xff]  ;;  %v13134_v59 = vpop.f32.mrf.mxu0 }
 0x485   : > { %v10341_v0 = vpop.f32.mrf.mxu1 }
 0x486   : > { %6250 = vst.msk [vmem:[#allocation2 + $0x8] sm:$0xff] %vm618_vm9, %v6234_v53  ;;  %v6239_v18 = vadd.f32 %v10341_v0, %v6075_v34  ;;  %v6078_v0 = vld [vmem:[#allocation2 + $0x48] sm:$0xff] }
 0x487   : > { %v6283_v52 = vld [vmem:[#allocation2 + $0x10] sm:$0xff]  ;;  %v6186_v27 = vpop.f32.mrf.mxu1 }
 0x488   : > { %v6463_v51 = vadd.f32 %v13004_v16, %v6283_v52  ;;  %6255 = vst.msk [vmem:[#allocation2 + $0x30] sm:$0xff] %vm618_vm9, %v6239_v18  ;;  %v6237_v49 = vadd.f32 %v6186_v27, %v6073_v61  ;;  %v6083_v27 = vld [vmem:[#allocation2 + $0x70] sm:$0xff] }
 0x489   : > { %v6281_v13 = vld [vmem:[#allocation2] sm:$0xff]  ;;  %v10342_v15 = vpop.f32.mrf.mxu1 }
 0x48a   : > { %6479 = vst.msk [vmem:[#allocation2 + $0x10] sm:$0xff] %vm618_vm9, %v6463_v51  ;;  %v6461_v6 = vadd.f32 %v13007_v3, %v6281_v13  ;;  %6253 = vst.msk [vmem:[#allocation2 + $0x20] sm:$0xff] %vm618_vm9, %v6237_v49  ;;  %v6240_v8 = vadd.f32 %v10342_v15, %v6076_v1  ;;  %v13142_v49 = vpop.f32.mrf.mxu0  ;;  %v6081_v15 = vld [vmem:[#allocation2 + $0x60] sm:$0xff] }
 0x48b   : > { %v6284_v19 = vld [vmem:[#allocation2 + $0x18] sm:$0xff]  ;;  %v6189_v24 = vpop.f32.mrf.mxu1 }
 0x48c   : > { %6477 = vst.msk [vmem:[#allocation2] sm:$0xff] %vm618_vm9, %v6461_v6  ;;  %v6464_v16 = vadd.f32 %v13014_v55, %v6284_v19  ;;  %6256 = vst.msk [vmem:[#allocation2 + $0x38] sm:$0xff] %vm618_vm9, %v6240_v8  ;;  %v6238_v14 = vadd.f32 %v6189_v24, %v6074_v36  ;;  %v6084_v36 = vld [vmem:[#allocation2 + $0x78] sm:$0xff] }
 0x48d   : > { %v6282_v31 = vld [vmem:[#allocation2 + $0x8] sm:$0xff]  ;;  %v10345_v63 = vpop.f32.mrf.mxu1 }
 0x48e   : > { %6480 = vst.msk [vmem:[#allocation2 + $0x18] sm:$0xff] %vm618_vm9, %v6464_v16  ;;  %v6462_v3 = vadd.f32 %v13018_v45, %v6282_v31  ;;  %6254 = vst.msk [vmem:[#allocation2 + $0x28] sm:$0xff] %vm618_vm9, %v6238_v14  ;;  %v6243_v38 = vadd.f32 %v10345_v63, %v6079_v5  ;;  %v13150_v16 = vpop.f32.mrf.mxu0  ;;  %v6082_v5 = vld [vmem:[#allocation2 + $0x68] sm:$0xff] }
 0x48f   : > { %v6287_v42 = vld [vmem:[#allocation2 + $0x30] sm:$0xff]  ;;  %v6202_v22 = vpop.f32.mrf.mxu1 }
 0x490   : > { %6478 = vst.msk [vmem:[#allocation2 + $0x8] sm:$0xff] %vm618_vm9, %v6462_v3  ;;  %v6467_v55 = vadd.f32 %v13022_v29, %v6287_v42  ;;  %6259 = vst.msk [vmem:[#allocation2 + $0x50] sm:$0xff] %vm618_vm9, %v6243_v38  ;;  %v6241_v23 = vadd.f32 %v6202_v22, %v6077_v44  ;;  %v13158_v22 = vpop.f32.mrf.mxu0 }
 0x491   : > { %v6285_v62 = vld [vmem:[#allocation2 + $0x20] sm:$0xff]  ;;  %v10346_v21 = vpop.f32.mrf.mxu1  ;;  %v6599_v42 = vld [vmem:[#allocation2 + $0x10] sm:$0xff] }
 0x492   : > { %6483 = vst.msk [vmem:[#allocation2 + $0x30] sm:$0xff] %vm618_vm9, %v6467_v55  ;;  %v6465_v45 = vadd.f32 %v13026_v35, %v6285_v62  ;;  %6257 = vst.msk [vmem:[#allocation2 + $0x40] sm:$0xff] %vm618_vm9, %v6241_v23  ;;  %v6244_v53 = vadd.f32 %v10346_v21, %v6080_v50 }
 0x493   : > { %v6288_v34 = vld [vmem:[#allocation2 + $0x38] sm:$0xff]  ;;  %v6205_v18 = vpop.f32.mrf.mxu1  ;;  %v6597_v62 = vld [vmem:[#allocation2] sm:$0xff] }
 0x494   : > { %6481 = vst.msk [vmem:[#allocation2 + $0x20] sm:$0xff] %vm618_vm9, %v6465_v45  ;;  %v6468_v29 = vadd.f32 %v13030_v40, %v6288_v34  ;;  %6260 = vst.msk [vmem:[#allocation2 + $0x58] sm:$0xff] %vm618_vm9, %v6244_v53  ;;  %v6242_v52 = vadd.f32 %v6205_v18, %v6078_v0  ;;  %v13166_v0 = vpop.f32.mrf.mxu0 }
 0x495   : > { %v6286_v61 = vld [vmem:[#allocation2 + $0x28] sm:$0xff]  ;;  %v10349_v51 = vpop.f32.mrf.mxu1  ;;  %v6600_v53 = vld [vmem:[#allocation2 + $0x18] sm:$0xff] }
 0x496   : > { %6484 = vst.msk [vmem:[#allocation2 + $0x38] sm:$0xff] %vm618_vm9, %v6468_v29  ;;  %v6466_v35 = vadd.f32 %v13034_v46, %v6286_v61  ;;  %6258 = vst.msk [vmem:[#allocation2 + $0x48] sm:$0xff] %vm618_vm9, %v6242_v52  ;;  %v6247_v13 = vadd.f32 %v10349_v51, %v6083_v27 }
 0x497   : > { %v6291_v1 = vld [vmem:[#allocation2 + $0x50] sm:$0xff]  ;;  %v6218_v6 = vpop.f32.mrf.mxu1  ;;  %v6598_v52 = vld [vmem:[#allocation2 + $0x8] sm:$0xff] }
 0x498   : > { %6482 = vst.msk [vmem:[#allocation2 + $0x28] sm:$0xff] %vm618_vm9, %v6466_v35  ;;  %v6471_v40 = vadd.f32 %v13038_v47, %v6291_v1  ;;  %6263 = vst.msk [vmem:[#allocation2 + $0x70] sm:$0xff] %vm618_vm9, %v6247_v13  ;;  %v6245_v8 = vadd.f32 %v6218_v6, %v6081_v15  ;;  %v13174_v1 = vpop.f32.mrf.mxu0 }
 0x499   : > { %v6289_v19 = vld [vmem:[#allocation2 + $0x40] sm:$0xff]  ;;  %v10350_v24 = vpop.f32.mrf.mxu1  ;;  %v6603_v35 = vld [vmem:[#allocation2 + $0x30] sm:$0xff] }
 0x49a   : > { %6487 = vst.msk [vmem:[#allocation2 + $0x50] sm:$0xff] %vm618_vm9, %v6471_v40  ;;  %v6469_v46 = vadd.f32 %v13042_v17, %v6289_v19  ;;  %6261 = vst.msk [vmem:[#allocation2 + $0x60] sm:$0xff] %vm618_vm9, %v6245_v8  ;;  %v6248_v14 = vadd.f32 %v10350_v24, %v6084_v36 }
 0x49b   : > { %v6292_v31 = vld [vmem:[#allocation2 + $0x58] sm:$0xff]  ;;  %v6221_v63 = vpop.f32.mrf.mxu1  ;;  %v6601_v40 = vld [vmem:[#allocation2 + $0x20] sm:$0xff] }
 0x49c   : > { %6485 = vst.msk [vmem:[#allocation2 + $0x40] sm:$0xff] %vm618_vm9, %v6469_v46  ;;  %v6472_v47 = vadd.f32 %v13046_v57, %v6292_v31  ;;  %6264 = vst.msk [vmem:[#allocation2 + $0x78] sm:$0xff] %vm618_vm9, %v6248_v14  ;;  %v6246_v3 = vadd.f32 %v6221_v63, %v6082_v5  ;;  %v13182_v14 = vpop.f32.mrf.mxu0 }
 0x49d   : > { %v6290_v38 = vld [vmem:[#allocation2 + $0x48] sm:$0xff]  ;;  %v10373_v44 = vpop.f32.mrf.mxu1  ;;  %v6604_v24 = vld [vmem:[#allocation2 + $0x38] sm:$0xff] }
 0x49e   : > { %6488 = vst.msk [vmem:[#allocation2 + $0x58] sm:$0xff] %vm618_vm9, %v6472_v47  ;;  %v6470_v17 = vadd.f32 %v13049_v32, %v6290_v38  ;;  %6262 = vst.msk [vmem:[#allocation2 + $0x68] sm:$0xff] %vm618_vm9, %v6246_v3  ;;  %v6763_v55 = vadd.f32 %v10373_v44, %v6599_v42 }
 0x49f   : > { %v6295_v23 = vld [vmem:[#allocation2 + $0x70] sm:$0xff]  ;;  %v6698_v50 = vpop.f32.mrf.mxu1  ;;  %v6602_v63 = vld [vmem:[#allocation2 + $0x28] sm:$0xff] }
 0x4a0   : > { %6486 = vst.msk [vmem:[#allocation2 + $0x48] sm:$0xff] %vm618_vm9, %v6470_v17  ;;  %v6475_v57 = vadd.f32 %v13051_v60, %v6295_v23  ;;  %6779 = vst.msk [vmem:[#allocation2 + $0x10] sm:$0xff] %vm618_vm9, %v6763_v55  ;;  %v6761_v21 = vadd.f32 %v6698_v50, %v6597_v62  ;;  %v13190_v17 = vpop.f32.mrf.mxu0 }
 0x4a1   : > { %v6293_v45 = vld [vmem:[#allocation2 + $0x60] sm:$0xff]  ;;  %v10374_v34 = vpop.f32.mrf.mxu1  ;;  %v6607_v42 = vld [vmem:[#allocation2 + $0x50] sm:$0xff] }
 0x4a2   : > { %6491 = vst.msk [vmem:[#allocation2 + $0x70] sm:$0xff] %vm618_vm9, %v6475_v57  ;;  %v6473_v32 = vadd.f32 %v13053_v4, %v6293_v45  ;;  %6777 = vst.msk [vmem:[#allocation2] sm:$0xff] %vm618_vm9, %v6761_v21  ;;  %v6764_v18 = vadd.f32 %v10374_v34, %v6600_v53  ;;  %v13198_v34 = vpop.f32.mrf.mxu0 }
 0x4a3   : > { %v6296_v29 = vld [vmem:[#allocation2 + $0x78] sm:$0xff]  ;;  %v6701_v61 = vpop.f32.mrf.mxu1  ;;  %v6605_v62 = vld [vmem:[#allocation2 + $0x40] sm:$0xff] }
 0x4a4   : > { %6489 = vst.msk [vmem:[#allocation2 + $0x60] sm:$0xff] %vm618_vm9, %v6473_v32  ;;  %v6476_v60 = vadd.f32 %v13055_v25, %v6296_v29  ;;  %6780 = vst.msk [vmem:[#allocation2 + $0x18] sm:$0xff] %vm618_vm9, %v6764_v18  ;;  %v6762_v27 = vadd.f32 %v6701_v61, %v6598_v52 }
 0x4a5   : > { %v6294_v51 = vld [vmem:[#allocation2 + $0x68] sm:$0xff]  ;;  %v10377_v13 = vpop.f32.mrf.mxu1  ;;  %v6608_v45 = vld [vmem:[#allocation2 + $0x58] sm:$0xff] }
 0x4a6   : > { %6492 = vst.msk [vmem:[#allocation2 + $0x78] sm:$0xff] %vm618_vm9, %v6476_v60  ;;  %v6474_v4 = vadd.f32 %v13057_v26, %v6294_v51  ;;  %6778 = vst.msk [vmem:[#allocation2 + $0x8] sm:$0xff] %vm618_vm9, %v6762_v27  ;;  %v6767_v15 = vadd.f32 %v10377_v13, %v6603_v35  ;;  %v13206_v35 = vpop.f32.mrf.mxu0 }
 0x4a7   : > { %v6899_v6 = vld [vmem:[#allocation2 + $0x10] sm:$0xff]  ;;  %v6714_v8 = vpop.f32.mrf.mxu1  ;;  %v6606_v29 = vld [vmem:[#allocation2 + $0x48] sm:$0xff] }
 0x4a8   : > { %6490 = vst.msk [vmem:[#allocation2 + $0x68] sm:$0xff] %vm618_vm9, %v6474_v4  ;;  %v7063_v25 = vadd.f32 %v13059_v12, %v6899_v6  ;;  %6783 = vst.msk [vmem:[#allocation2 + $0x30] sm:$0xff] %vm618_vm9, %v6767_v15  ;;  %v6765_v19 = vadd.f32 %v6714_v8, %v6601_v40 }
 0x4a9   : > { %v6897_v36 = vld [vmem:[#allocation2] sm:$0xff]  ;;  %v10378_v46 = vpop.f32.mrf.mxu1  ;;  %v6611_v27 = vld [vmem:[#allocation2 + $0x70] sm:$0xff] }
 0x4aa   : > { %7079 = vst.msk [vmem:[#allocation2 + $0x10] sm:$0xff] %vm618_vm9, %v7063_v25  ;;  %v7061_v26 = vadd.f32 %v13061_v39, %v6897_v36  ;;  %6781 = vst.msk [vmem:[#allocation2 + $0x20] sm:$0xff] %vm618_vm9, %v6765_v19  ;;  %v6768_v31 = vadd.f32 %v10378_v46, %v6604_v24  ;;  %v13214_v36 = vpop.f32.mrf.mxu0 }
 0x4ab   : > { %v6900_v5 = vld [vmem:[#allocation2 + $0x18] sm:$0xff]  ;;  %v6717_v47 = vpop.f32.mrf.mxu1  ;;  %v6609_v15 = vld [vmem:[#allocation2 + $0x60] sm:$0xff] }
 0x4ac   : > { %7077 = vst.msk [vmem:[#allocation2] sm:$0xff] %vm618_vm9, %v7061_v26  ;;  %v7064_v12 = vadd.f32 %v13063_v37, %v6900_v5  ;;  %6784 = vst.msk [vmem:[#allocation2 + $0x38] sm:$0xff] %vm618_vm9, %v6768_v31  ;;  %v6766_v3 = vadd.f32 %v6717_v47, %v6602_v63 }
 0x4ad   : > { %v6898_v38 = vld [vmem:[#allocation2 + $0x8] sm:$0xff]  ;;  %v10381_v44 = vpop.f32.mrf.mxu1  ;;  %v6612_v25 = vld [vmem:[#allocation2 + $0x78] sm:$0xff] }
 0x4ae   : > { %7080 = vst.msk [vmem:[#allocation2 + $0x18] sm:$0xff] %vm618_vm9, %v7064_v12  ;;  %v7062_v39 = vadd.f32 %v13065_v7, %v6898_v38  ;;  %6782 = vst.msk [vmem:[#allocation2 + $0x28] sm:$0xff] %vm618_vm9, %v6766_v3  ;;  %v6771_v55 = vadd.f32 %v10381_v44, %v6607_v42  ;;  %v13222_v3 = vpop.f32.mrf.mxu0 }
 0x4af   : > { %v6903_v23 = vld [vmem:[#allocation2 + $0x30] sm:$0xff]  ;;  %v6730_v50 = vpop.f32.mrf.mxu1  ;;  %v6610_v26 = vld [vmem:[#allocation2 + $0x68] sm:$0xff] }
 0x4b0   : > { %7078 = vst.msk [vmem:[#allocation2 + $0x8] sm:$0xff] %vm618_vm9, %v7062_v39  ;;  %v7067_v37 = vadd.f32 %v13067_v11, %v6903_v23  ;;  %6787 = vst.msk [vmem:[#allocation2 + $0x50] sm:$0xff] %vm618_vm9, %v6771_v55  ;;  %v6769_v57 = vadd.f32 %v6730_v50, %v6605_v62 }
 0x4b1   : > { %v6901_v21 = vld [vmem:[#allocation2 + $0x20] sm:$0xff]  ;;  %v10382_v53 = vpop.f32.mrf.mxu1  ;;  %v7199_v47 = vld [vmem:[#allocation2 + $0x10] sm:$0xff] }
 0x4b2   : > { %7083 = vst.msk [vmem:[#allocation2 + $0x30] sm:$0xff] %vm618_vm9, %v7067_v37  ;;  %v7065_v7 = vadd.f32 %v13069_v48, %v6901_v21  ;;  %6785 = vst.msk [vmem:[#allocation2 + $0x40] sm:$0xff] %vm618_vm9, %v6769_v57  ;;  %v6772_v32 = vadd.f32 %v10382_v53, %v6608_v45  ;;  %v13230_v37 = vpop.f32.mrf.mxu0 }
 0x4b3   : > { %v6904_v18 = vld [vmem:[#allocation2 + $0x38] sm:$0xff]  ;;  %v6733_v52 = vpop.f32.mrf.mxu1  ;;  %v7197_v44 = vld [vmem:[#allocation2] sm:$0xff] }
 0x4b4   : > { %7081 = vst.msk [vmem:[#allocation2 + $0x20] sm:$0xff] %vm618_vm9, %v7065_v7  ;;  %v7068_v11 = vadd.f32 %v13072_v33, %v6904_v18  ;;  %6788 = vst.msk [vmem:[#allocation2 + $0x58] sm:$0xff] %vm618_vm9, %v6772_v32  ;;  %v6770_v61 = vadd.f32 %v6733_v52, %v6606_v29  ;;  %v13238_v52 = vpop.f32.mrf.mxu0 }
 0x4b5   : > { %v6902_v60 = vld [vmem:[#allocation2 + $0x28] sm:$0xff]  ;;  %v10385_v51 = vpop.f32.mrf.mxu1  ;;  %v7200_v62 = vld [vmem:[#allocation2 + $0x18] sm:$0xff] }
 0x4b6   : > { %7084 = vst.msk [vmem:[#allocation2 + $0x38] sm:$0xff] %vm618_vm9, %v7068_v11  ;;  %v7066_v48 = vadd.f32 %v13079_v20, %v6902_v60  ;;  %6786 = vst.msk [vmem:[#allocation2 + $0x48] sm:$0xff] %vm618_vm9, %v6770_v61  ;;  %v6775_v13 = vadd.f32 %v10385_v51, %v6611_v27 }
 0x4b7   : > { %v6907_v4 = vld [vmem:[#allocation2 + $0x50] sm:$0xff]  ;;  %v6746_v6 = vpop.f32.mrf.mxu1  ;;  %v7198_v45 = vld [vmem:[#allocation2 + $0x8] sm:$0xff] }
 0x4b8   : > { %7082 = vst.msk [vmem:[#allocation2 + $0x28] sm:$0xff] %vm618_vm9, %v7066_v48  ;;  %v7071_v33 = vadd.f32 %v13085_v28, %v6907_v4  ;;  %6791 = vst.msk [vmem:[#allocation2 + $0x70] sm:$0xff] %vm618_vm9, %v6775_v13  ;;  %v6773_v40 = vadd.f32 %v6746_v6, %v6609_v15  ;;  %v13246_v15 = vpop.f32.mrf.mxu0 }
 0x4b9   : > { %v6905_v8 = vld [vmem:[#allocation2 + $0x40] sm:$0xff]  ;;  %v10386_v19 = vpop.f32.mrf.mxu1  ;;  %v7203_v18 = vld [vmem:[#allocation2 + $0x30] sm:$0xff] }
 0x4ba   : > { %7087 = vst.msk [vmem:[#allocation2 + $0x50] sm:$0xff] %vm618_vm9, %v7071_v33  ;;  %v7069_v20 = vadd.f32 %v13089_v41, %v6905_v8  ;;  %6789 = vst.msk [vmem:[#allocation2 + $0x60] sm:$0xff] %vm618_vm9, %v6773_v40  ;;  %v6776_v24 = vadd.f32 %v10386_v19, %v6612_v25 }
 0x4bb   : > { %v6908_v46 = vld [vmem:[#allocation2 + $0x58] sm:$0xff]  ;;  %v6749_v31 = vpop.f32.mrf.mxu1  ;;  %v7201_v60 = vld [vmem:[#allocation2 + $0x20] sm:$0xff] }
 0x4bc   : > { %7085 = vst.msk [vmem:[#allocation2 + $0x40] sm:$0xff] %vm618_vm9, %v7069_v20  ;;  %v7072_v28 = vadd.f32 %v13093_v2, %v6908_v46  ;;  %6792 = vst.msk [vmem:[#allocation2 + $0x78] sm:$0xff] %vm618_vm9, %v6776_v24  ;;  %v6774_v5 = vadd.f32 %v6749_v31, %v6610_v26  ;;  %v13254_v46 = vpop.f32.mrf.mxu0 }
 0x4bd   : > { %v6906_v63 = vld [vmem:[#allocation2 + $0x48] sm:$0xff]  ;;  %v10409_v12 = vpop.f32.mrf.mxu1  ;;  %v7204_v13 = vld [vmem:[#allocation2 + $0x38] sm:$0xff] }
 0x4be   : > { %7088 = vst.msk [vmem:[#allocation2 + $0x58] sm:$0xff] %vm618_vm9, %v7072_v28  ;;  %v7070_v41 = vadd.f32 %v13097_v56, %v6906_v63  ;;  %6790 = vst.msk [vmem:[#allocation2 + $0x68] sm:$0xff] %vm618_vm9, %v6774_v5  ;;  %v7363_v38 = vadd.f32 %v10409_v12, %v7199_v47 }
 0x4bf   : > { %v6911_v42 = vld [vmem:[#allocation2 + $0x70] sm:$0xff]  ;;  %v7298_v39 = vpop.f32.mrf.mxu1  ;;  %v7202_v40 = vld [vmem:[#allocation2 + $0x28] sm:$0xff] }
 0x4c0   : > { %7086 = vst.msk [vmem:[#allocation2 + $0x48] sm:$0xff] %vm618_vm9, %v7070_v41  ;;  %v7075_v2 = vadd.f32 %v13101_v54, %v6911_v42  ;;  %7379 = vst.msk [vmem:[#allocation2 + $0x10] sm:$0xff] %vm618_vm9, %v7363_v38  ;;  %v7361_v55 = vadd.f32 %v7298_v39, %v7197_v44  ;;  %v13262_v38 = vpop.f32.mrf.mxu0 }
 0x4c1   : > { %v6909_v23 = vld [vmem:[#allocation2 + $0x60] sm:$0xff]  ;;  %v10410_v50 = vpop.f32.mrf.mxu1  ;;  %v7207_v20 = vld [vmem:[#allocation2 + $0x50] sm:$0xff] }
 0x4c2   : > { %7091 = vst.msk [vmem:[#allocation2 + $0x70] sm:$0xff] %vm618_vm9, %v7075_v2  ;;  %v7073_v56 = vadd.f32 %v13105_v30, %v6909_v23  ;;  %7377 = vst.msk [vmem:[#allocation2] sm:$0xff] %vm618_vm9, %v7361_v55  ;;  %v7364_v57 = vadd.f32 %v10410_v50, %v7200_v62 }
 0x4c3   : > { %v6912_v21 = vld [vmem:[#allocation2 + $0x78] sm:$0xff]  ;;  %v7301_v53 = vpop.f32.mrf.mxu1  ;;  %v7205_v28 = vld [vmem:[#allocation2 + $0x40] sm:$0xff] }
 0x4c4   : > { %7089 = vst.msk [vmem:[#allocation2 + $0x60] sm:$0xff] %vm618_vm9, %v7073_v56  ;;  %v7076_v54 = vadd.f32 %v13109_v58, %v6912_v21  ;;  %7380 = vst.msk [vmem:[#allocation2 + $0x18] sm:$0xff] %vm618_vm9, %v7364_v57  ;;  %v7362_v7 = vadd.f32 %v7301_v53, %v7198_v45  ;;  %v13270_v56 = vpop.f32.mrf.mxu0 }
 0x4c5   : > { %v6910_v32 = vld [vmem:[#allocation2 + $0x68] sm:$0xff]  ;;  %v10413_v29 = vpop.f32.mrf.mxu1  ;;  %v7208_v12 = vld [vmem:[#allocation2 + $0x58] sm:$0xff] }
 0x4c6   : > { %7092 = vst.msk [vmem:[#allocation2 + $0x78] sm:$0xff] %vm618_vm9, %v7076_v54  ;;  %v7074_v30 = vadd.f32 %v13113_v43, %v6910_v32  ;;  %7378 = vst.msk [vmem:[#allocation2 + $0x8] sm:$0xff] %vm618_vm9, %v7362_v7  ;;  %v7367_v11 = vadd.f32 %v10413_v29, %v7203_v18  ;;  %v13278_v29 = vpop.f32.mrf.mxu0 }
 0x4c7   : > { %v7500_v61 = vld [vmem:[#allocation2 + $0x10] sm:$0xff]  ;;  %v7314_v27 = vpop.f32.mrf.mxu1  ;;  %v7206_v39 = vld [vmem:[#allocation2 + $0x48] sm:$0xff] }
 0x4c8   : > { %7090 = vst.msk [vmem:[#allocation2 + $0x68] sm:$0xff] %vm618_vm9, %v7074_v30  ;;  %v7664_v58 = vadd.f32 %v13118_v10, %v7500_v61  ;;  %7383 = vst.msk [vmem:[#allocation2 + $0x30] sm:$0xff] %vm618_vm9, %v7367_v11  ;;  %v7365_v51 = vadd.f32 %v7314_v27, %v7201_v60 }
 0x4c9   : > { %v7498_v48 = vld [vmem:[#allocation2] sm:$0xff]  ;;  %v10414_v4 = vpop.f32.mrf.mxu1  ;;  %v7211_v62 = vld [vmem:[#allocation2 + $0x70] sm:$0xff] }
 0x4ca   : > { %7680 = vst.msk [vmem:[#allocation2 + $0x10] sm:$0xff] %vm618_vm9, %v7664_v58  ;;  %v7662_v43 = vadd.f32 %v13126_v9, %v7498_v48  ;;  %7381 = vst.msk [vmem:[#allocation2 + $0x20] sm:$0xff] %vm618_vm9, %v7365_v51  ;;  %v7368_v6 = vadd.f32 %v10414_v4, %v7204_v13  ;;  %v13286_v13 = vpop.f32.mrf.mxu0 }
 0x4cb   : > { %v7501_v33 = vld [vmem:[#allocation2 + $0x18] sm:$0xff]  ;;  %v7317_v8 = vpop.f32.mrf.mxu1  ;;  %v7209_v45 = vld [vmem:[#allocation2 + $0x60] sm:$0xff] }
 0x4cc   : > { %7678 = vst.msk [vmem:[#allocation2] sm:$0xff] %vm618_vm9, %v7662_v43  ;;  %v7665_v10 = vadd.f32 %v13134_v59, %v7501_v33  ;;  %7384 = vst.msk [vmem:[#allocation2 + $0x38] sm:$0xff] %vm618_vm9, %v7368_v6  ;;  %v7366_v25 = vadd.f32 %v7317_v8, %v7202_v40 }
 0x4cd   : > { %v7499_v19 = vld [vmem:[#allocation2 + $0x8] sm:$0xff]  ;;  %v10417_v24 = vpop.f32.mrf.mxu1  ;;  %v7212_v32 = vld [vmem:[#allocation2 + $0x78] sm:$0xff] }
 0x4ce   : > { %7681 = vst.msk [vmem:[#allocation2 + $0x18] sm:$0xff] %vm618_vm9, %v7665_v10  ;;  %v7663_v9 = vadd.f32 %v13142_v49, %v7499_v19  ;;  %7382 = vst.msk [vmem:[#allocation2 + $0x28] sm:$0xff] %vm618_vm9, %v7366_v25  ;;  %v7371_v26 = vadd.f32 %v10417_v24, %v7207_v20  ;;  %v13294_v19 = vpop.f32.mrf.mxu0 }
 0x4cf   : > { %v7504_v31 = vld [vmem:[#allocation2 + $0x30] sm:$0xff]  ;;  %v7330_v5 = vpop.f32.mrf.mxu1  ;;  %v7210_v61 = vld [vmem:[#allocation2 + $0x68] sm:$0xff] }
 0x4d0   : > { %7679 = vst.msk [vmem:[#allocation2 + $0x8] sm:$0xff] %vm618_vm9, %v7663_v9  ;;  %v7668_v59 = vadd.f32 %v13150_v16, %v7504_v31  ;;  %7387 = vst.msk [vmem:[#allocation2 + $0x50] sm:$0xff] %vm618_vm9, %v7371_v26  ;;  %v7369_v63 = vadd.f32 %v7330_v5, %v7205_v28 }
 0x4d1   : > { %v7502_v47 = vld [vmem:[#allocation2 + $0x20] sm:$0xff]  ;;  %v10418_v41 = vpop.f32.mrf.mxu1  ;;  %v7712_v51 = vld [vmem:[#allocation2 + $0x10] sm:$0xff] }
 0x4d2   : > { %7684 = vst.msk [vmem:[#allocation2 + $0x30] sm:$0xff] %vm618_vm9, %v7668_v59  ;;  %v7666_v49 = vadd.f32 %v13158_v22, %v7502_v47  ;;  %7385 = vst.msk [vmem:[#allocation2 + $0x40] sm:$0xff] %vm618_vm9, %v7369_v63  ;;  %v7372_v42 = vadd.f32 %v10418_v41, %v7208_v12  ;;  %v13302_v63 = vpop.f32.mrf.mxu0 }
 0x4d3   : > { %v7505_v44 = vld [vmem:[#allocation2 + $0x38] sm:$0xff]  ;;  %v7333_v2 = vpop.f32.mrf.mxu1  ;;  %v7710_v6 = vld [vmem:[#allocation2] sm:$0xff] }
 0x4d4   : > { %7682 = vst.msk [vmem:[#allocation2 + $0x20] sm:$0xff] %vm618_vm9, %v7666_v49  ;;  %v7669_v16 = vadd.f32 %v13166_v0, %v7505_v44  ;;  %7388 = vst.msk [vmem:[#allocation2 + $0x58] sm:$0xff] %vm618_vm9, %v7372_v42  ;;  %v7370_v55 = vadd.f32 %v7333_v2, %v7206_v39 }
 0x4d5   : > { %v7503_v23 = vld [vmem:[#allocation2 + $0x28] sm:$0xff]  ;;  %v10421_v50 = vpop.f32.mrf.mxu1  ;;  %v7713_v10 = vld [vmem:[#allocation2 + $0x18] sm:$0xff] }
 0x4d6   : > { %7685 = vst.msk [vmem:[#allocation2 + $0x38] sm:$0xff] %vm618_vm9, %v7669_v16  ;;  %v7667_v22 = vadd.f32 %v13174_v1, %v7503_v23  ;;  %7386 = vst.msk [vmem:[#allocation2 + $0x48] sm:$0xff] %vm618_vm9, %v7370_v55  ;;  %v7375_v57 = vadd.f32 %v10421_v50, %v7211_v62  ;;  %v10471_v16 = vpop.f32.mrf.mxu0 }
 0x4d7   : > { %v7508_v21 = vld [vmem:[#allocation2 + $0x50] sm:$0xff]  ;;  %v7346_v53 = vpop.f32.mrf.mxu1  ;;  %v7711_v9 = vld [vmem:[#allocation2 + $0x8] sm:$0xff] }
 0x4d8   : > { %7683 = vst.msk [vmem:[#allocation2 + $0x28] sm:$0xff] %vm618_vm9, %v7667_v22  ;;  %v7672_v0 = vadd.f32 %v13182_v14, %v7508_v21  ;;  %7391 = vst.msk [vmem:[#allocation2 + $0x70] sm:$0xff] %vm618_vm9, %v7375_v57  ;;  %v7373_v54 = vadd.f32 %v7346_v53, %v7209_v45  ;;  %v8159_v53 = vpop.f32.mrf.mxu0 }
 0x4d9   : > { %v7506_v7 = vld [vmem:[#allocation2 + $0x40] sm:$0xff]  ;;  %v10422_v18 = vpop.f32.mrf.mxu1  ;;  %v7716_v5 = vld [vmem:[#allocation2 + $0x30] sm:$0xff] }
 0x4da   : > { %7688 = vst.msk [vmem:[#allocation2 + $0x50] sm:$0xff] %vm618_vm9, %v7672_v0  ;;  %v7670_v1 = vadd.f32 %v13190_v17, %v7506_v7  ;;  %7389 = vst.msk [vmem:[#allocation2 + $0x60] sm:$0xff] %vm618_vm9, %v7373_v54  ;;  %v7376_v30 = vadd.f32 %v10422_v18, %v7212_v32 }
 0x4db   : > { %v7509_v11 = vld [vmem:[#allocation2 + $0x58] sm:$0xff]  ;;  %v7349_v60 = vpop.f32.mrf.mxu1  ;;  %v7714_v41 = vld [vmem:[#allocation2 + $0x20] sm:$0xff] }
 0x4dc   : > { %7686 = vst.msk [vmem:[#allocation2 + $0x40] sm:$0xff] %vm618_vm9, %v7670_v1  ;;  %v7673_v14 = vadd.f32 %v13198_v34, %v7509_v11  ;;  %7392 = vst.msk [vmem:[#allocation2 + $0x78] sm:$0xff] %vm618_vm9, %v7376_v30  ;;  %v7374_v27 = vadd.f32 %v7349_v60, %v7210_v61  ;;  %v10472_v61 = vpop.f32.mrf.mxu0 }
 0x4dd   : > { %v7507_v58 = vld [vmem:[#allocation2 + $0x48] sm:$0xff]  ;;  %v10445_v48 = vpop.f32.mrf.mxu1  ;;  %v7717_v39 = vld [vmem:[#allocation2 + $0x38] sm:$0xff] }
 0x4de   : > { %7689 = vst.msk [vmem:[#allocation2 + $0x58] sm:$0xff] %vm618_vm9, %v7673_v14  ;;  %v7671_v17 = vadd.f32 %v13206_v35, %v7507_v58  ;;  %7390 = vst.msk [vmem:[#allocation2 + $0x68] sm:$0xff] %vm618_vm9, %v7374_v27  ;;  %v7892_v4 = vadd.f32 %v10445_v48, %v7712_v51 }
 0x4df   : > { %v7512_v43 = vld [vmem:[#allocation2 + $0x70] sm:$0xff]  ;;  %v7827_v33 = vpop.f32.mrf.mxu1  ;;  %v7715_v62 = vld [vmem:[#allocation2 + $0x28] sm:$0xff] }
 0x4e0   : > { %7687 = vst.msk [vmem:[#allocation2 + $0x48] sm:$0xff] %vm618_vm9, %v7671_v17  ;;  %v7676_v34 = vadd.f32 %v13214_v36, %v7512_v43  ;;  %7908 = vst.msk [vmem:[#allocation2 + $0x10] sm:$0xff] %vm618_vm9, %v7892_v4  ;;  %v7890_v40 = vadd.f32 %v7827_v33, %v7710_v6  ;;  %v8162_v43 = vpop.f32.mrf.mxu0 }
 0x4e1   : > { %v7510_v8 = vld [vmem:[#allocation2 + $0x60] sm:$0xff]  ;;  %v10446_v25 = vpop.f32.mrf.mxu1  ;;  %v7720_v21 = vld [vmem:[#allocation2 + $0x50] sm:$0xff] }
 0x4e2   : > { %7692 = vst.msk [vmem:[#allocation2 + $0x70] sm:$0xff] %vm618_vm9, %v7676_v34  ;;  %v7674_v35 = vadd.f32 %v13222_v3, %v7510_v8  ;;  %7906 = vst.msk [vmem:[#allocation2] sm:$0xff] %vm618_vm9, %v7890_v40  ;;  %v7893_v20 = vadd.f32 %v10446_v25, %v7713_v10 }
 0x4e3   : > { %v7513_v24 = vld [vmem:[#allocation2 + $0x78] sm:$0xff]  ;;  %v7830_v26 = vpop.f32.mrf.mxu1  ;;  %v7718_v7 = vld [vmem:[#allocation2 + $0x40] sm:$0xff] }
 0x4e4   : > { %7690 = vst.msk [vmem:[#allocation2 + $0x60] sm:$0xff] %vm618_vm9, %v7674_v35  ;;  %v7677_v36 = vadd.f32 %v13230_v37, %v7513_v24  ;;  %7909 = vst.msk [vmem:[#allocation2 + $0x18] sm:$0xff] %vm618_vm9, %v7893_v20  ;;  %v7891_v31 = vadd.f32 %v7830_v26, %v7711_v9 }
 0x4e5   : > { %v7511_v28 = vld [vmem:[#allocation2 + $0x68] sm:$0xff]  ;;  %v10449_v59 = vpop.f32.mrf.mxu1  ;;  %v7721_v30 = vld [vmem:[#allocation2 + $0x58] sm:$0xff] }
 0x4e6   : > { %7693 = vst.msk [vmem:[#allocation2 + $0x78] sm:$0xff] %vm618_vm9, %v7677_v36  ;;  %v7675_v3 = vadd.f32 %v13238_v52, %v7511_v28  ;;  %7907 = vst.msk [vmem:[#allocation2 + $0x8] sm:$0xff] %vm618_vm9, %v7891_v31  ;;  %v7896_v47 = vadd.f32 %v10449_v59, %v7716_v5  ;;  %v10475_v5 = vpop.f32.mrf.mxu0 }
 0x4e7   : > { %v8028_v12 = vld [vmem:[#allocation2 + $0x10] sm:$0xff]  ;;  %v7843_v49 = vpop.f32.mrf.mxu1  ;;  %v7719_v27 = vld [vmem:[#allocation2 + $0x48] sm:$0xff] }
 0x4e8   : > { %7691 = vst.msk [vmem:[#allocation2 + $0x68] sm:$0xff] %vm618_vm9, %v7675_v3  ;;  %v8192_v37 = vadd.f32 %v13246_v15, %v8028_v12  ;;  %7912 = vst.msk [vmem:[#allocation2 + $0x30] sm:$0xff] %vm618_vm9, %v7896_v47  ;;  %v7894_v42 = vadd.f32 %v7843_v49, %v7714_v41 }
 0x4e9   : > { %v8026_v44 = vld [vmem:[#allocation2] sm:$0xff]  ;;  %v10450_v2 = vpop.f32.mrf.mxu1  ;;  %v7724_v48 = vld [vmem:[#allocation2 + $0x70] sm:$0xff] }
 0x4ea   : > { %8208 = vst.msk [vmem:[#allocation2 + $0x10] sm:$0xff] %vm618_vm9, %v8192_v37  ;;  %v8190_v52 = vadd.f32 %v13254_v46, %v8026_v44  ;;  %7910 = vst.msk [vmem:[#allocation2 + $0x20] sm:$0xff] %vm618_vm9, %v7894_v42  ;;  %v7897_v55 = vadd.f32 %v10450_v2, %v7717_v39  ;;  %v8175_v2 = vpop.f32.mrf.mxu0 }
 0x4eb   : > { %v8029_v23 = vld [vmem:[#allocation2 + $0x18] sm:$0xff]  ;;  %v7846_v50 = vpop.f32.mrf.mxu1  ;;  %v7722_v10 = vld [vmem:[#allocation2 + $0x60] sm:$0xff] }
 0x4ec   : > { %8206 = vst.msk [vmem:[#allocation2] sm:$0xff] %vm618_vm9, %v8190_v52  ;;  %v8193_v15 = vadd.f32 %v13262_v38, %v8029_v23  ;;  %7913 = vst.msk [vmem:[#allocation2 + $0x38] sm:$0xff] %vm618_vm9, %v7897_v55  ;;  %v7895_v22 = vadd.f32 %v7846_v50, %v7715_v62 }
 0x4ed   : > { %v8027_v57 = vld [vmem:[#allocation2 + $0x8] sm:$0xff]  ;;  %v10453_v45 = vpop.f32.mrf.mxu1  ;;  %v7725_v31 = vld [vmem:[#allocation2 + $0x78] sm:$0xff] }
 0x4ee   : > { %8209 = vst.msk [vmem:[#allocation2 + $0x18] sm:$0xff] %vm618_vm9, %v8193_v15  ;;  %v8191_v46 = vadd.f32 %v13270_v56, %v8027_v57  ;;  %7911 = vst.msk [vmem:[#allocation2 + $0x28] sm:$0xff] %vm618_vm9, %v7895_v22  ;;  %v7900_v0 = vadd.f32 %v10453_v45, %v7720_v21 }
 0x4ef   : > { %v8032_v54 = vld [vmem:[#allocation2 + $0x30] sm:$0xff]  ;;  %v7859_v32 = vpop.f32.mrf.mxu1  ;;  %v7723_v41 = vld [vmem:[#allocation2 + $0x68] sm:$0xff] }
 0x4f0   : > { %8207 = vst.msk [vmem:[#allocation2 + $0x8] sm:$0xff] %vm618_vm9, %v8191_v46  ;;  %v8196_v38 = vadd.f32 %v13278_v29, %v8032_v54  ;;  %7916 = vst.msk [vmem:[#allocation2 + $0x50] sm:$0xff] %vm618_vm9, %v7900_v0  ;;  %v7898_v18 = vadd.f32 %v7859_v32, %v7718_v7 }
 0x4f1   : > { %v8030_v1 = vld [vmem:[#allocation2 + $0x20] sm:$0xff]  ;;  %v10454_v11 = vpop.f32.mrf.mxu1  ;;  %v8224_v40 = vld [vmem:[#allocation2 + $0x10] sm:$0xff] }
 0x4f2   : > { %8212 = vst.msk [vmem:[#allocation2 + $0x30] sm:$0xff] %vm618_vm9, %v8196_v38  ;;  %v8194_v56 = vadd.f32 %v13286_v13, %v8030_v1  ;;  %7914 = vst.msk [vmem:[#allocation2 + $0x40] sm:$0xff] %vm618_vm9, %v7898_v18  ;;  %v7901_v60 = vadd.f32 %v10454_v11, %v7721_v30  ;;  %v8240_v59 = vmax.f32 %v8224_v40, 0.0 }
 0x4f3   : > { %v8033_v14 = vld [vmem:[#allocation2 + $0x38] sm:$0xff]  ;;  %v7862_v58 = vpop.f32.mrf.mxu1  ;;  %v8222_v6 = vld [vmem:[#allocation2] sm:$0xff] }
 0x4f4   : > { %8210 = vst.msk [vmem:[#allocation2 + $0x20] sm:$0xff] %vm618_vm9, %v8194_v56  ;;  %v8197_v29 = vadd.f32 %v13294_v19, %v8033_v14  ;;  %7917 = vst.msk [vmem:[#allocation2 + $0x58] sm:$0xff] %vm618_vm9, %v7901_v60  ;;  %v7899_v51 = vadd.f32 %v7862_v58, %v7719_v27  ;;  %v8238_v9 = vmax.f32 %v8222_v6, 0.0 }
 0x4f5   : > { %v8031_v17 = vld [vmem:[#allocation2 + $0x28] sm:$0xff]  ;;  %v10457_v4 = vpop.f32.mrf.mxu1  ;;  %v8225_v33 = vld [vmem:[#allocation2 + $0x18] sm:$0xff] }
 0x4f6   : > { %8213 = vst.msk [vmem:[#allocation2 + $0x38] sm:$0xff] %vm618_vm9, %v8197_v29  ;;  %v8195_v13 = vadd.f32 %v13302_v63, %v8031_v17  ;;  %7915 = vst.msk [vmem:[#allocation2 + $0x48] sm:$0xff] %vm618_vm9, %v7899_v51  ;;  %v7904_v34 = vadd.f32 %v10457_v4, %v7724_v48  ;;  %v8241_v35 = vmax.f32 %v8225_v33, 0.0 }
 0x4f7   : > { %v8036_v8 = vld [vmem:[#allocation2 + $0x50] sm:$0xff]  ;;  %v7875_v25 = vpop.f32.mrf.mxu1  ;;  %v8223_v19 = vld [vmem:[#allocation2 + $0x8] sm:$0xff] }
 0x4f8   : > { %8211 = vst.msk [vmem:[#allocation2 + $0x28] sm:$0xff] %vm618_vm9, %v8195_v13  ;;  %v8200_v20 = vadd.f32 %v10471_v16, %v8036_v8  ;;  %7920 = vst.msk [vmem:[#allocation2 + $0x70] sm:$0xff] %vm618_vm9, %v7904_v34  ;;  %v7902_v24 = vadd.f32 %v7875_v25, %v7722_v10  ;;  %v8239_v26 = vmax.f32 %v8223_v19, 0.0  ;;  %v8255_v37 = vpack.c.bf16 %v8241_v35, %v8240_v59  ;;  %v8264_v25 = vld [vmem:[#allocation3 + $0x10] sm:$0xff] }
 0x4f9   : > { %v8034_v36 = vld [vmem:[#allocation2 + $0x40] sm:$0xff]  ;;  %v10458_v28 = vpop.f32.mrf.mxu1  ;;  %v8228_v23 = vld [vmem:[#allocation2 + $0x30] sm:$0xff] }
 0x4fa   : > { %8216 = vst.msk [vmem:[#allocation2 + $0x50] sm:$0xff] %vm618_vm9, %v8200_v20  ;;  %v8198_v63 = vadd.f32 %v8159_v53, %v8034_v36  ;;  %7918 = vst.msk [vmem:[#allocation2 + $0x60] sm:$0xff] %vm618_vm9, %v7902_v24  ;;  %v7905_v3 = vadd.f32 %v10458_v28, %v7725_v31  ;;  %v8254_v47 = vpack.c.bf16 %v8239_v26, %v8238_v9  ;;  %v10476_v53 = vpop.f32.mrf.mxu0  ;;  %v8244_v46 = vmax.f32 %v8228_v23, 0.0  ;;  %v8262_v20 = vld [vmem:[#allocation3] sm:$0xff]  ;;  %v8265_v26 = vld [vmem:[#allocation3 + $0x18] sm:$0xff] }
 0x4fb   : > { %v8037_v12 = vld [vmem:[#allocation2 + $0x58] sm:$0xff]  ;;  %v7878_v49 = vpop.f32.mrf.mxu1  ;;  %v8226_v16 = vld [vmem:[#allocation2 + $0x20] sm:$0xff]  ;;  %v8263_v28 = vld [vmem:[#allocation3 + $0x8] sm:$0xff] }
 0x4fc   : > { %8214 = vst.msk [vmem:[#allocation2 + $0x40] sm:$0xff] %vm618_vm9, %v8198_v63  ;;  %v8201_v42 = vadd.f32 %v10472_v61, %v8037_v12  ;;  %7921 = vst.msk [vmem:[#allocation2 + $0x78] sm:$0xff] %vm618_vm9, %v7905_v3  ;;  %v7903_v44 = vadd.f32 %v7878_v49, %v7723_v41  ;;  %10479 = vmatprep.mubr.msk.bf16.mxu1 %vm618_vm9, %v8254_v47  ;;  %v8242_v57 = vmax.f32 %v8226_v16, 0.0  ;;  %v8178_v1 = vpop.f32.mrf.mxu0  ;;  %v8268_v63 = vld [vmem:[#allocation3 + $0x30] sm:$0xff]  ;;  %v8266_v41 = vld [vmem:[#allocation3 + $0x20] sm:$0xff] }
 0x4fd   : > { %v8035_v39 = vld [vmem:[#allocation2 + $0x48] sm:$0xff]  ;;  %10480 = vmatmul.mubr.msk.bf16.vlgmr.msra.gmra.mxu1 %vm618_vm9, %v8255_v37  ;;  %v8229_v52 = vld [vmem:[#allocation2 + $0x38] sm:$0xff] }
 0x4fe   : > { %8217 = vst.msk [vmem:[#allocation2 + $0x58] sm:$0xff] %vm618_vm9, %v8201_v42  ;;  %v8199_v55 = vadd.f32 %v8162_v43, %v8035_v39  ;;  %7919 = vst.msk [vmem:[#allocation2 + $0x68] sm:$0xff] %vm618_vm9, %v7903_v44  ;;  %v8245_v15 = vmax.f32 %v8229_v52, 0.0  ;;  %v8269_v39 = vld [vmem:[#allocation3 + $0x38] sm:$0xff]  ;;  %v8267_v23 = vld [vmem:[#allocation3 + $0x28] sm:$0xff] }
 0x4ff   : > { %v8040_v62 = vld [vmem:[#allocation2 + $0x70] sm:$0xff]  ;;  %v8227_v50 = vld [vmem:[#allocation2 + $0x28] sm:$0xff] }
 0x500   : > { %8215 = vst.msk [vmem:[#allocation2 + $0x48] sm:$0xff] %vm618_vm9, %v8199_v55  ;;  %v8204_v22 = vadd.f32 %v10475_v5, %v8040_v62  ;;  %v8243_v21 = vmax.f32 %v8227_v50, 0.0  ;;  %v8257_v32 = vpack.c.bf16 %v8245_v15, %v8244_v46 }
 0x501   : > { %v8038_v45 = vld [vmem:[#allocation2 + $0x60] sm:$0xff]  ;;  %v8232_v56 = vld [vmem:[#allocation2 + $0x50] sm:$0xff] }
 0x502   : > { %8220 = vst.msk [vmem:[#allocation2 + $0x70] sm:$0xff] %vm618_vm9, %v8204_v22  ;;  %v8202_v0 = vadd.f32 %v8175_v2, %v8038_v45  ;;  %v8256_v54 = vpack.c.bf16 %v8243_v21, %v8242_v57  ;;  %v8248_v29 = vmax.f32 %v8232_v56, 0.0  ;;  %v8272_v57 = vld [vmem:[#allocation3 + $0x50] sm:$0xff]  ;;  %v8271_v56 = vld [vmem:[#allocation3 + $0x48] sm:$0xff] }
 0x503   : > { %v8041_v7 = vld [vmem:[#allocation2 + $0x78] sm:$0xff]  ;;  %v8230_v30 = vld [vmem:[#allocation2 + $0x40] sm:$0xff] }
 0x504   : > { %8218 = vst.msk [vmem:[#allocation2 + $0x60] sm:$0xff] %vm618_vm9, %v8202_v0  ;;  %v8205_v38 = vadd.f32 %v10476_v53, %v8041_v7  ;;  %10483 = vmatprep.mubr.msk.bf16.mxu1 %vm618_vm9, %v8256_v54  ;;  %v8246_v27 = vmax.f32 %v8230_v30, 0.0  ;;  %v8270_v0 = vld [vmem:[#allocation3 + $0x40] sm:$0xff] }
 0x505   : > { %v8039_v18 = vld [vmem:[#allocation2 + $0x68] sm:$0xff]  ;;  %10484 = vmatmul.mubr.msk.bf16.gmra.mxu1 %vm618_vm9, %v8257_v32  ;;  %v8233_v11 = vld [vmem:[#allocation2 + $0x58] sm:$0xff] }
 0x506   : > { %8221 = vst.msk [vmem:[#allocation2 + $0x78] sm:$0xff] %vm618_vm9, %v8205_v38  ;;  %v8203_v61 = vadd.f32 %v8178_v1, %v8039_v18  ;;  %v8249_v14 = vmax.f32 %v8233_v11, 0.0  ;;  %v8273_v18 = vld [vmem:[#allocation3 + $0x58] sm:$0xff] }
 0x507   : > { %v8231_v60 = vld [vmem:[#allocation2 + $0x48] sm:$0xff] }
 0x508   : > { %8219 = vst.msk [vmem:[#allocation2 + $0x68] sm:$0xff] %vm618_vm9, %v8203_v61  ;;  %v8247_v58 = vmax.f32 %v8231_v60, 0.0  ;;  %v8259_v48 = vpack.c.bf16 %v8249_v14, %v8248_v29  ;;  %v8276_v29 = vld [vmem:[#allocation3 + $0x70] sm:$0xff] }
 0x509   : > { %v8236_v43 = vld [vmem:[#allocation2 + $0x70] sm:$0xff] }
 0x50a   : > { %v8258_v51 = vpack.c.bf16 %v8247_v58, %v8246_v27  ;;  %v8252_v40 = vmax.f32 %v8236_v43, 0.0  ;;  %v8274_v43 = vld [vmem:[#allocation3 + $0x60] sm:$0xff] }
 0x50b   : > { %v8234_v17 = vld [vmem:[#allocation2 + $0x60] sm:$0xff] }
 0x50c   : > { %10487 = vmatprep.mubr.msk.bf16.mxu1 %vm618_vm9, %v8258_v51  ;;  %v8250_v13 = vmax.f32 %v8234_v17, 0.0 }
 0x50d   : > { %10488 = vmatmul.mubr.msk.bf16.gmra.mxu1 %vm618_vm9, %v8259_v48  ;;  %v8237_v4 = vld [vmem:[#allocation2 + $0x78] sm:$0xff] }
 0x50e   : > { %v8253_v33 = vmax.f32 %v8237_v4, 0.0 }
 0x50f   : > { %v8235_v6 = vld [vmem:[#allocation2 + $0x68] sm:$0xff] }
 0x510   : > { %v8251_v34 = vmax.f32 %v8235_v6, 0.0  ;;  %v8261_v10 = vpack.c.bf16 %v8253_v33, %v8252_v40  ;;  %v8277_v40 = vld [vmem:[#allocation3 + $0x78] sm:$0xff] }
 0x512   : > { %v8260_v8 = vpack.c.bf16 %v8251_v34, %v8250_v13 }
 0x514   : > { %10491 = vmatprep.mubr.msk.bf16.mxu1 %vm618_vm9, %v8260_v8 }
 0x515   : > { %10492 = vmatmul.mubr.msk.bf16.gmra.mxu1 %vm618_vm9, %v8261_v10 }
 0x5bd   : > { %v10481_v19 = vpop.f32.mrf.mxu1 }
 0x5be   : > { %v8404_v35 = vadd.f32 %v10481_v19, %v8264_v25 }
 0x5bf   : > { %v8339_v24 = vpop.f32.mrf.mxu1 }
 0x5c0   : > { %8420 = vst.msk [vmem:[#allocation3 + $0x10] sm:$0xff] %vm618_vm9, %v8404_v35  ;;  %v8402_v9 = vadd.f32 %v8339_v24, %v8262_v20  ;;  %v8275_v35 = vld [vmem:[#allocation3 + $0x68] sm:$0xff] }
 0x5c1   : > { %v10482_v36 = vpop.f32.mrf.mxu1 }
 0x5c2   : > { %8418 = vst.msk [vmem:[#allocation3] sm:$0xff] %vm618_vm9, %v8402_v9  ;;  %v8405_v31 = vadd.f32 %v10482_v36, %v8265_v26 }
 0x5c3   : > { %v8342_v5 = vpop.f32.mrf.mxu1 }
 0x5c4   : > { %8421 = vst.msk [vmem:[#allocation3 + $0x18] sm:$0xff] %vm618_vm9, %v8405_v31  ;;  %v8403_v59 = vadd.f32 %v8342_v5, %v8263_v28 }
 0x5c5   : > { %v10485_v3 = vpop.f32.mrf.mxu1 }
 0x5c6   : > { %8419 = vst.msk [vmem:[#allocation3 + $0x8] sm:$0xff] %vm618_vm9, %v8403_v59  ;;  %v8408_v47 = vadd.f32 %v10485_v3, %v8268_v63 }
 0x5c7   : > { %v8436_v12 = vld [vmem:[#allocation3 + $0x10] sm:$0xff]  ;;  %v8355_v49 = vpop.f32.mrf.mxu1 }
 0x5c8   : > { %v8452_v37 = vmax.f32 %v8436_v12, 0.0  ;;  %8424 = vst.msk [vmem:[#allocation3 + $0x30] sm:$0xff] %vm618_vm9, %v8408_v47  ;;  %v8406_v42 = vadd.f32 %v8355_v49, %v8266_v41 }
 0x5c9   : > { %v8434_v44 = vld [vmem:[#allocation3] sm:$0xff]  ;;  %v10486_v2 = vpop.f32.mrf.mxu1 }
 0x5ca   : > { %8468 = vst.msk [vmem:[%s13360_s17 + $0x10] sm:$0xff] %vm618_vm9, %v8452_v37  ;;  %v8450_v16 = vmax.f32 %v8434_v44, 0.0  ;;  %8422 = vst.msk [vmem:[#allocation3 + $0x20] sm:$0xff] %vm618_vm9, %v8406_v42  ;;  %v8409_v52 = vadd.f32 %v10486_v2, %v8269_v39 }
 0x5cb   : > { %v8437_v55 = vld [vmem:[#allocation3 + $0x18] sm:$0xff]  ;;  %v8358_v62 = vpop.f32.mrf.mxu1 }
 0x5cc   : > { %8466 = vst.msk [vmem:[%s13360_s17] sm:$0xff] %vm618_vm9, %v8450_v16  ;;  %v8453_v50 = vmax.f32 %v8437_v55, 0.0  ;;  %8425 = vst.msk [vmem:[#allocation3 + $0x38] sm:$0xff] %vm618_vm9, %v8409_v52  ;;  %v8407_v15 = vadd.f32 %v8358_v62, %v8267_v23 }
 0x5cd   : > { %v8435_v22 = vld [vmem:[#allocation3 + $0x8] sm:$0xff]  ;;  %v10489_v21 = vpop.f32.mrf.mxu1 }
 0x5ce   : > { %8469 = vst.msk [vmem:[%s13360_s17 + $0x18] sm:$0xff] %vm618_vm9, %v8453_v50  ;;  %v8451_v45 = vmax.f32 %v8435_v22, 0.0  ;;  %8423 = vst.msk [vmem:[#allocation3 + $0x28] sm:$0xff] %vm618_vm9, %v8407_v15  ;;  %v8412_v53 = vadd.f32 %v10489_v21, %v8272_v57 }
 0x5cf   : > { %v8440_v46 = vld [vmem:[#allocation3 + $0x30] sm:$0xff]  ;;  %v8371_v54 = vpop.f32.mrf.mxu1 }
 0x5d0   : > { %8467 = vst.msk [vmem:[%s13360_s17 + $0x8] sm:$0xff] %vm618_vm9, %v8451_v45  ;;  %v8456_v7 = vmax.f32 %v8440_v46, 0.0  ;;  %8428 = vst.msk [vmem:[#allocation3 + $0x50] sm:$0xff] %vm618_vm9, %v8412_v53  ;;  %v8410_v32 = vadd.f32 %v8371_v54, %v8270_v0 }
 0x5d1   : > { %v8438_v38 = vld [vmem:[#allocation3 + $0x20] sm:$0xff]  ;;  %v10490_v1 = vpop.f32.mrf.mxu1 }
 0x5d2   : > { %8472 = vst.msk [vmem:[%s13360_s17 + $0x30] sm:$0xff] %vm618_vm9, %v8456_v7  ;;  %v8454_v30 = vmax.f32 %v8438_v38, 0.0  ;;  %8426 = vst.msk [vmem:[#allocation3 + $0x40] sm:$0xff] %vm618_vm9, %v8410_v32  ;;  %v8413_v11 = vadd.f32 %v10490_v1, %v8273_v18 }
 0x5d3   : > { %v8441_v61 = vld [vmem:[#allocation3 + $0x38] sm:$0xff]  ;;  %v8374_v60 = vpop.f32.mrf.mxu1 }
 0x5d4   : > { %8470 = vst.msk [vmem:[%s13360_s17 + $0x20] sm:$0xff] %vm618_vm9, %v8454_v30  ;;  %v8457_v14 = vmax.f32 %v8441_v61, 0.0  ;;  %8429 = vst.msk [vmem:[#allocation3 + $0x58] sm:$0xff] %vm618_vm9, %v8413_v11  ;;  %v8411_v27 = vadd.f32 %v8374_v60, %v8271_v56 }
 0x5d5   : > { %v8439_v58 = vld [vmem:[#allocation3 + $0x28] sm:$0xff]  ;;  %v10493_v51 = vpop.f32.mrf.mxu1 }
 0x5d6   : > { %8473 = vst.msk [vmem:[%s13360_s17 + $0x38] sm:$0xff] %vm618_vm9, %v8457_v14  ;;  %v8455_v48 = vmax.f32 %v8439_v58, 0.0  ;;  %8427 = vst.msk [vmem:[#allocation3 + $0x48] sm:$0xff] %vm618_vm9, %v8411_v27  ;;  %v8416_v17 = vadd.f32 %v10493_v51, %v8276_v29 }
 0x5d7   : > { %v8444_v4 = vld [vmem:[#allocation3 + $0x50] sm:$0xff]  ;;  %v8387_v6 = vpop.f32.mrf.mxu1 }
 0x5d8   : > { %8471 = vst.msk [vmem:[%s13360_s17 + $0x28] sm:$0xff] %vm618_vm9, %v8455_v48  ;;  %v8460_v33 = vmax.f32 %v8444_v4, 0.0  ;;  %8432 = vst.msk [vmem:[#allocation3 + $0x70] sm:$0xff] %vm618_vm9, %v8416_v17  ;;  %v8414_v13 = vadd.f32 %v8387_v6, %v8274_v43 }
 0x5d9   : > { %v8442_v34 = vld [vmem:[#allocation3 + $0x40] sm:$0xff]  ;;  %v10494_v8 = vpop.f32.mrf.mxu1 }
 0x5da   : > { %8476 = vst.msk [vmem:[%s13360_s17 + $0x50] sm:$0xff] %vm618_vm9, %v8460_v33  ;;  %v8458_v10 = vmax.f32 %v8442_v34, 0.0  ;;  %8430 = vst.msk [vmem:[#allocation3 + $0x60] sm:$0xff] %vm618_vm9, %v8414_v13  ;;  %v8417_v25 = vadd.f32 %v10494_v8, %v8277_v40 }
 0x5db   : > { %v8445_v19 = vld [vmem:[#allocation3 + $0x58] sm:$0xff]  ;;  %v8390_v20 = vpop.f32.mrf.mxu1 }
 0x5dc   : > { %8474 = vst.msk [vmem:[%s13360_s17 + $0x40] sm:$0xff] %vm618_vm9, %v8458_v10  ;;  %v8461_v24 = vmax.f32 %v8445_v19, 0.0  ;;  %8433 = vst.msk [vmem:[#allocation3 + $0x78] sm:$0xff] %vm618_vm9, %v8417_v25  ;;  %v8415_v9 = vadd.f32 %v8390_v20, %v8275_v35 }
 0x5dd   : > { %v8443_v26 = vld [vmem:[#allocation3 + $0x48] sm:$0xff] }
 0x5de   : > { %8477 = vst.msk [vmem:[%s13360_s17 + $0x58] sm:$0xff] %vm618_vm9, %v8461_v24  ;;  %v8459_v36 = vmax.f32 %v8443_v26, 0.0  ;;  %8431 = vst.msk [vmem:[#allocation3 + $0x68] sm:$0xff] %vm618_vm9, %v8415_v9 }
 0x5df   : > { %v8448_v31 = vld [vmem:[#allocation3 + $0x70] sm:$0xff] }
 0x5e0   : > { %8475 = vst.msk [vmem:[%s13360_s17 + $0x48] sm:$0xff] %vm618_vm9, %v8459_v36  ;;  %v8464_v28 = vmax.f32 %v8448_v31, 0.0 }
 0x5e1   : > { %v8446_v5 = vld [vmem:[#allocation3 + $0x60] sm:$0xff] }
 0x5e2   : > { %8480 = vst.msk [vmem:[%s13360_s17 + $0x70] sm:$0xff] %vm618_vm9, %v8464_v28  ;;  %v8462_v59 = vmax.f32 %v8446_v5, 0.0 }
 0x5e3   : > { %v8449_v63 = vld [vmem:[#allocation3 + $0x78] sm:$0xff] }
 0x5e4   : > { %8478 = vst.msk [vmem:[%s13360_s17 + $0x60] sm:$0xff] %vm618_vm9, %v8462_v59  ;;  %v8465_v3 = vmax.f32 %v8449_v63, 0.0 }
 0x5e5   : > { %v8447_v47 = vld [vmem:[#allocation3 + $0x68] sm:$0xff] }
 0x5e6   : > { %8481 = vst.msk [vmem:[%s13360_s17 + $0x78] sm:$0xff] %vm618_vm9, %v8465_v3  ;;  %v8463_v12 = vmax.f32 %v8447_v47, 0.0 }
 0x5e8   : > { %8479 = vst.msk [vmem:[%s13360_s17 + $0x68] sm:$0xff] %vm618_vm9, %v8463_v12 }
 0x5e9 PF: > { %s17_s24 = sadd.s32 1, %s10616_s24  }
 0x5ea   : > { %p14_p4 = scmp.ge.s32.totalorder %s17_s24, 6  }
 0x5ec   :  { %16 = sbr.rel (!%p14_p4) target bundleno = 1 (0x1), region = 86 }

</bundles_post_ra>
